<compile_context>
chip_gen: v7x
topology: tpu7x:2x2x1
jax: 0.10.0
libtpu: 0.0.40
codegen_flags: <defaults>
</compile_context>

<pallas_src>
import jax
import jax.numpy as jnp
from jax import lax
from jax.experimental import pallas as pl
from jax.experimental.pallas import tpu as pltpu

# Global 'highest' keeps the pure-JAX reference accurate; kernel dots pass it explicitly.
jax.config.update("jax_default_matmul_precision", "highest")

# ---------------- problem sizes (small, consistent with the module) ----------------
B = 2            # batch
S = 16           # seq_len
CIN = 4          # input_dim
HIDDEN = 32      # hidden_dim
HEADS = 4        # num_heads
HD = HIDDEN // HEADS   # head_dim = 8
LR = 8           # low_rank_dim (must equal head_dim for the module's forward to work)
WINDOW = 5
TOP_K = 4
EPS = 1e-5
NEG = -1e30

KTAPS = 7                 # fused 3/5/7-tap conv
LANES = B * HEADS * S     # 128 : packed (batch, head, key) lane axis
NB = B * HEADS            # 8   : number of 16-lane blocks

assert HD == LR, "module quirk: value_proj is applied twice, requires head_dim == low_rank_dim"
assert LANES == 128 and HIDDEN % HEADS == 0


# ---------------------------------- fused kernel ------------------------------------
def fused_kernel(x_ref, wconv_ref, bconv_ref, wqkv_ref, bqkv_ref,
                 wkp_ref, bkp_ref, wvp_ref, bvp_ref,
                 wop_ref, bop_ref, gamma_ref, beta_ref,
                 win_ref, kmask_ref, vmask_ref, blkb_ref, lane_ref, o_ref):
    f32 = jnp.float32
    PREC = lax.Precision.HIGHEST

    blk_row = lane_ref[0:1, :]          # (1,128) f32: lane // 16   (block id)
    idx_row = lane_ref[1:2, :]          # (1,128) f32: lane index   (tie-break)

    # ---- 1) im2col built in-kernel (one launch total) + fused 7-tap conv + ReLU ----
    x2 = x_ref[...]                                                 # (B*S, CIN)
    cols = []
    for t in range(KTAPS):                                          # tap t -> offset t-3
        o = t - KTAPS // 2
        if o == 0:
            cols.append(x2)
        else:
            parts = []
            for b in range(B):
                blk = x2[b * S:(b + 1) * S, :]
                if o > 0:
                    parts.append(jnp.concatenate(
                        [blk[o:, :], jnp.zeros((o, CIN), f32)], axis=0))
                else:
                    parts.append(jnp.concatenate(
                        [jnp.zeros((-o, CIN), f32), blk[:S + o, :]], axis=0))
            cols.append(jnp.concatenate(parts, axis=0))
    xcol = jnp.concatenate(cols, axis=1)                            # (B*S, 7*CIN)

    feats = jnp.maximum(
        jnp.dot(xcol, wconv_ref[...], precision=PREC, preferred_element_type=f32)
        + bconv_ref[...], 0.0)                                      # (B*S, HIDDEN)

    # ---- 2) fused QKV, then per-head low-rank projections (block-diag weights) ----
    qkv = jnp.dot(feats, wqkv_ref[...], precision=PREC,
                  preferred_element_type=f32) + bqkv_ref[...]
    q = qkv[:, 0:HIDDEN]
    k = qkv[:, HIDDEN:2 * HIDDEN]
    v = qkv[:, 2 * HIDDEN:3 * HIDDEN]
    kp = jnp.dot(k, wkp_ref[...], precision=PREC, preferred_element_type=f32) + bkp_ref[...]
    vp = jnp.dot(v, wvp_ref[...], precision=PREC, preferred_element_type=f32) + bvp_ref[...]

    # ---- 3) batch-fused packed scores: one dot per score tile (16, 128) ----
    q_bd = jnp.concatenate([q[:S, :], q[S:, :]], axis=1)            # (16, B*HIDDEN)

    def key_operand(m):
        # m (B*S, HIDDEN) -> batch+head block-diag operand (B*HIDDEN, 128)
        mT = m.T                                                    # one transpose total
        u = jnp.concatenate([mT[:, :S]] * HEADS + [mT[:, S:]] * HEADS, axis=1)
        return jnp.concatenate([u, u], axis=0) * kmask_ref[...]

    s_loc = (jnp.dot(q_bd, key_operand(k), precision=PREC, preferred_element_type=f32)
             * (HD ** -0.5)) + win_ref[...]                         # additive window bias
    s_glb = (jnp.dot(q_bd, key_operand(kp), precision=PREC, preferred_element_type=f32)
             * (LR ** -0.5))

    # per-16-lane-block max (direction-agnostic within-block cyclic roll butterfly)
    def block_max(x):
        out = x
        for sh in (1, 2, 4, 8):
            arr = jnp.concatenate([out, blk_row], axis=0)           # (17,128)
            r1 = pltpu.roll(arr, sh, 1)
            r2 = pltpu.roll(arr, sh + LANES - S, 1)                 # the wrapped neighbor
            nb = jnp.where(r1[S:S + 1, :] == blk_row, r1[:S, :], r2[:S, :])
            out = jnp.maximum(out, nb)
        return out                                                  # (16,128)

    # ---- 4) local windowed attention (masked softmax over the clipped window) ----
    p1 = jnp.exp(s_loc - block_max(s_loc))
    den1 = jnp.dot(p1, blkb_ref[...], precision=PREC, preferred_element_type=f32)
    lw = p1 / den1

    # ---- 5) global top-k: block-local roll-based rank (exact topk tie-break) ----
    arr = jnp.concatenate([s_glb, blk_row, idx_row], axis=0)        # (18,128)
    rank = jnp.zeros((S, LANES), f32)
    for d in list(range(1, S)) + list(range(LANES - S + 1, LANES)):
        r = pltpu.roll(arr, d, 1)
        in_blk = r[S:S + 1, :] == blk_row                           # stay inside block
        beats = in_blk & ((r[:S, :] > s_glb) |
                          ((r[:S, :] == s_glb) & (r[S + 1:S + 2, :] < idx_row)))
        rank = rank + beats.astype(f32)
    s_top = jnp.where(rank < TOP_K, s_glb, NEG)                     # exactly TOP_K / block
    p2 = jnp.exp(s_top - block_max(s_glb))                          # top-1 is selected
    den2 = jnp.dot(p2, blkb_ref[...], precision=PREC, preferred_element_type=f32)
    gw = p2 / den2

    # ---- 6) batch-fused weighted sums, recombined straight into (B*S, HIDDEN) ----
    def val_operand(m):
        # m (B*S, HIDDEN) -> batch+head block-diag operand (128, B*HIDDEN)
        rows = jnp.concatenate([m[:S, :]] * HEADS + [m[S:, :]] * HEADS, axis=0)
        return jnp.concatenate([rows, rows], axis=1) * vmask_ref[...]

    lo_bd = jnp.dot(lw, val_operand(v), precision=PREC, preferred_element_type=f32)
    sp_bd = jnp.dot(gw, val_operand(vp), precision=PREC, preferred_element_type=f32)
    local_out = jnp.concatenate([lo_bd[:, :HIDDEN], lo_bd[:, HIDDEN:]], axis=0)
    sparse_lr = jnp.concatenate([sp_bd[:, :HIDDEN], sp_bd[:, HIDDEN:]], axis=0)

    # second application of value_proj (module quirk: requires LR == HD), per-head
    sparse_out = jnp.dot(sparse_lr, wvp_ref[...], precision=PREC,
                         preferred_element_type=f32) + bvp_ref[...]
    attn = (local_out + sparse_out) * 0.5                           # (B*S, HIDDEN)

    # ---- 7) out_proj + residual + LayerNorm ----
    y = jnp.dot(attn, wop_ref[...], precision=PREC,
                preferred_element_type=f32) + bop_ref[...] + feats
    mu = jnp.mean(y, axis=-1, keepdims=True)
    var = jnp.mean((y - mu) ** 2, axis=-1, keepdims=True)
    o_ref[...] = (y - mu) * lax.rsqrt(var + EPS) * gamma_ref[...] + beta_ref[...]


# ------------------------------- pallas wrapper --------------------------------------
def fault_attention_forward(x, pp):
    """x: (B, S, CIN); pp: prepared (pre-fused / pre-transposed) parameters + constants."""
    x2 = x.reshape(B * S, CIN)                       # metadata-only; im2col is in-kernel

    args = (x2, pp['Wconv'], pp['bconv'], pp['Wqkv'], pp['bqkv'],
            pp['Wkp_bd'], pp['bkp_t'], pp['Wvp_bd'], pp['bvp_t'],
            pp['Wop_T'], pp['bop'], pp['gamma'], pp['beta'],
            pp['win_bias'], pp['kmask_bd'], pp['vmask_bd'], pp['blk_bcast'],
            pp['lane_info'])

    def full2(shape):
        return pl.BlockSpec(shape, lambda i: (0, 0))

    out = pl.pallas_call(
        fused_kernel,
        out_shape=jax.ShapeDtypeStruct((B * S, HIDDEN), jnp.float32),
        grid=(1,),                                   # microscopic problem: single program
        in_specs=[full2(a.shape) for a in args],
        out_specs=full2((B * S, HIDDEN)),
        compiler_params=pltpu.CompilerParams(
            dimension_semantics=("arbitrary",),
            vmem_limit_bytes=32 * 1024 * 1024),
    )(*args)
    return out.reshape(B, S, HIDDEN)                 # metadata-only reshape


# ------------------------------ parameter handling ------------------------------------
def _channel_split():
    base = HIDDEN // 3
    rem = HIDDEN % 3
    return base + (1 if rem > 0 else 0), base + (1 if rem > 1 else 0), base


def init_params(key):
    C1, C2, C3 = _channel_split()
    ks = jax.random.split(key, 18)

    def unif(k, shape, fan_in):
        bound = 1.0 / (fan_in ** 0.5)
        return jax.random.uniform(k, shape, jnp.float32, -bound, bound)

    return {
        'w1': unif(ks[0], (C1, CIN, 3), CIN * 3), 'b1': unif(ks[1], (C1,), CIN * 3),
        'w2': unif(ks[2], (C2, CIN, 5), CIN * 5), 'b2': unif(ks[3], (C2,), CIN * 5),
        'w3': unif(ks[4], (C3, CIN, 7), CIN * 7), 'b3': unif(ks[5], (C3,), CIN * 7),
        'Wq': unif(ks[6], (HIDDEN, HIDDEN), HIDDEN), 'bq': unif(ks[7], (HIDDEN,), HIDDEN),
        'Wk': unif(ks[8], (HIDDEN, HIDDEN), HIDDEN), 'bk': unif(ks[9], (HIDDEN,), HIDDEN),
        'Wv': unif(ks[10], (HIDDEN, HIDDEN), HIDDEN), 'bv': unif(ks[11], (HIDDEN,), HIDDEN),
        'Wkp': unif(ks[12], (LR, HD), HD), 'bkp': unif(ks[13], (LR,), HD),
        'Wvp': unif(ks[14], (LR, HD), HD), 'bvp': unif(ks[15], (LR,), HD),
        'Wop': unif(ks[16], (HIDDEN, HIDDEN), HIDDEN), 'bop': unif(ks[17], (HIDDEN,), HIDDEN),
        'gamma': jnp.ones((HIDDEN,), jnp.float32),
        'beta': jnp.zeros((HIDDEN,), jnp.float32),
    }


def prepare_params(p):
    """One-time packing: fused conv weight, fused QKV, block-diag per-head projections,
    all W.T transposes, AND every constant selector/mask the kernel needs (hoisted out
    of the per-call forward per the performance review)."""
    C1, C2, C3 = _channel_split()
    # Fuse convs k=3/5/7 (same padding) into one zero-padded 7-tap weight, then flatten
    # to the im2col layout (tap, cin) -> rows of a (7*CIN, HIDDEN) matrix.
    w = jnp.zeros((KTAPS, CIN, HIDDEN), jnp.float32)
    for t in range(3):
        w = w.at[2 + t, :, 0:C1].set(p['w1'][:, :, t].T)
    for t in range(5):
        w = w.at[1 + t, :, C1:C1 + C2].set(p['w2'][:, :, t].T)
    for t in range(7):
        w = w.at[t, :, C1 + C2:].set(p['w3'][:, :, t].T)

    eye_h = jnp.eye(HEADS, dtype=jnp.float32)

    # ---- constant selectors (kernel inputs, never rebuilt in-kernel) ----
    lane = jnp.arange(LANES)                       # packed (batch, head, key) lane index
    i_idx = jnp.arange(S)
    win_ok = jnp.abs(i_idx[:, None] - (lane % S)[None, :]) <= (WINDOW // 2)
    win_bias = jnp.where(win_ok, 0.0, NEG).astype(jnp.float32)            # (16,128)

    blk_id = lane // S
    blk_bcast = (blk_id[:, None] == blk_id[None, :]).astype(jnp.float32)  # (128,128)

    row64 = jnp.arange(B * HIDDEN)
    kmask_bd = ((row64[:, None] // HIDDEN == lane[None, :] // (HEADS * S)) &
                ((row64[:, None] % HIDDEN) // HD == (lane[None, :] % (HEADS * S)) // S)
                ).astype(jnp.float32)                                     # (64,128)
    vmask_bd = ((lane[:, None] // (HEADS * S) == row64[None, :] // HIDDEN) &
                ((row64[None, :] % HIDDEN) // HD == (lane[:, None] % (HEADS * S)) // S)
                ).astype(jnp.float32)                                     # (128,64)

    lane_info = jnp.stack([blk_id.astype(jnp.float32),
                           lane.astype(jnp.float32)], axis=0)             # (2,128)

    return {
        'Wconv': w.reshape(KTAPS * CIN, HIDDEN),
        'bconv': jnp.concatenate([p['b1'], p['b2'], p['b3']]).reshape(1, HIDDEN),
        'Wqkv': jnp.concatenate([p['Wq'].T, p['Wk'].T, p['Wv'].T], axis=1),   # (32, 96)
        'bqkv': jnp.concatenate([p['bq'], p['bk'], p['bv']]).reshape(1, 3 * HIDDEN),
        'Wkp_bd': jnp.kron(eye_h, p['Wkp'].T),                                # (32, 32)
        'bkp_t': jnp.tile(p['bkp'], HEADS).reshape(1, HIDDEN),
        'Wvp_bd': jnp.kron(eye_h, p['Wvp'].T),                                # (32, 32)
        'bvp_t': jnp.tile(p['bvp'], HEADS).reshape(1, HIDDEN),
        'Wop_T': p['Wop'].T,
        'bop': p['bop'].reshape(1, HIDDEN),
        'gamma': p['gamma'].reshape(1, HIDDEN),
        'beta': p['beta'].reshape(1, HIDDEN),
        'win_bias': win_bias,
        'kmask_bd': kmask_bd,
        'vmask_bd': vmask_bd,
        'blk_bcast': blk_bcast,
        'lane_info': lane_info,
    }


# ------------------------------ pure-JAX reference ------------------------------------
def reference(x, p):
    def conv1d(xx, w, b, pad):
        ksz = w.shape[-1]
        xp = jnp.pad(xx, ((0, 0), (pad, pad), (0, 0)))
        out = jnp.zeros((B, S, w.shape[0]), jnp.float32)
        for k in range(ksz):
            out = out + jnp.einsum('bsc,oc->bso', xp[:, k:k + S, :], w[:, :, k])
        return out + b

    feats = jnp.concatenate([
        jax.nn.relu(conv1d(x, p['w1'], p['b1'], 1)),
        jax.nn.relu(conv1d(x, p['w2'], p['b2'], 2)),
        jax.nn.relu(conv1d(x, p['w3'], p['b3'], 3))], axis=-1)

    def lin(z, W, b):
        return z @ W.T + b

    Q = lin(feats, p['Wq'], p['bq']).reshape(B, S, HEADS, HD).transpose(0, 2, 1, 3)
    K = lin(feats, p['Wk'], p['bk']).reshape(B, S, HEADS, HD).transpose(0, 2, 1, 3)
    V = lin(feats, p['Wv'], p['bv']).reshape(B, S, HEADS, HD).transpose(0, 2, 1, 3)
    Kp = lin(K, p['Wkp'], p['bkp'])
    Vp = lin(V, p['Wvp'], p['bvp'])

    hw = WINDOW // 2
    outs = []
    for t in range(S):
        s0, e0 = max(0, t - hw), min(S, t + hw + 1)
        lK, lV = K[:, :, s0:e0, :], V[:, :, s0:e0, :]
        qt = Q[:, :, t:t + 1, :]
        ls = jnp.einsum('bhqd,bhkd->bhqk', qt, lK) / (HD ** 0.5)
        lo = jnp.einsum('bhqk,bhkd->bhqd', jax.nn.softmax(ls, -1), lV)
        gs = jnp.einsum('bhqd,bhkd->bhqk', qt, Kp) / (LR ** 0.5)
        tv, ti = lax.top_k(gs, TOP_K)
        tw = jax.nn.softmax(tv, -1)
        ti = ti[:, :, 0, :]
        tVp = jnp.take_along_axis(
            Vp, jnp.broadcast_to(ti[..., None], (B, HEADS, TOP_K, LR)), axis=2)
        so = jnp.einsum('bhqk,bhkd->bhqd', tw, tVp)
        so = (so.reshape(-1, LR) @ p['Wvp'].T + p['bvp']).reshape(B, HEADS, 1, HD)
        outs.append((lo + so) / 2)

    out = jnp.concatenate(outs, axis=2).transpose(0, 2, 1, 3).reshape(B, S, HIDDEN)
    out = out @ p['Wop'].T + p['bop']
    y = out + feats
    mu = y.mean(-1, keepdims=True)
    var = ((y - mu) ** 2).mean(-1, keepdims=True)
    return (y - mu) / jnp.sqrt(var + EPS) * p['gamma'] + p['beta']


# ------------------------------------- main -------------------------------------------
if __name__ == "__main__":
    key = jax.random.PRNGKey(0)
    pkey, xkey = jax.random.split(key)
    params = init_params(pkey)
    prepared = prepare_params(params)          # one-time packing (outside jitted forward)
    x = jax.random.normal(xkey, (B, S, CIN), jnp.float32)

    fwd = jax.jit(fault_attention_forward)
    out = jax.block_until_ready(fwd(x, prepared))
    assert out.shape == (B, S, HIDDEN)

    ref = jax.block_until_ready(reference(x, params))
    max_err = float(jnp.max(jnp.abs(out - ref)))
    assert max_err < 1e-3, f"max abs err vs reference = {max_err}"

    print("KERNEL_OK")
</pallas_src>

<mosaic_0001>
module attributes {stable_mosaic.version = 11 : i64} {
  func.func @fused_kernel(%arg0: i32, %arg1: memref<32x4xf32, #tpu.memory_space<vmem>>, %arg2: memref<28x32xf32, #tpu.memory_space<vmem>>, %arg3: memref<1x32xf32, #tpu.memory_space<vmem>>, %arg4: memref<32x96xf32, #tpu.memory_space<vmem>>, %arg5: memref<1x96xf32, #tpu.memory_space<vmem>>, %arg6: memref<32x32xf32, #tpu.memory_space<vmem>>, %arg7: memref<1x32xf32, #tpu.memory_space<vmem>>, %arg8: memref<32x32xf32, #tpu.memory_space<vmem>>, %arg9: memref<1x32xf32, #tpu.memory_space<vmem>>, %arg10: memref<32x32xf32, #tpu.memory_space<vmem>>, %arg11: memref<1x32xf32, #tpu.memory_space<vmem>>, %arg12: memref<1x32xf32, #tpu.memory_space<vmem>>, %arg13: memref<1x32xf32, #tpu.memory_space<vmem>>, %arg14: memref<16x128xf32, #tpu.memory_space<vmem>>, %arg15: memref<64x128xf32, #tpu.memory_space<vmem>>, %arg16: memref<128x64xf32, #tpu.memory_space<vmem>>, %arg17: memref<128x128xf32, #tpu.memory_space<vmem>>, %arg18: memref<2x128xf32, #tpu.memory_space<vmem>>, %arg19: memref<32x32xf32, #tpu.memory_space<vmem>>) attributes {dimension_semantics = [#tpu.dimension_semantics<arbitrary>], iteration_bounds = array<i64: 1>, scalar_prefetch = 0 : i64, scratch_operands = 0 : i64, tpu.core_type = #tpu.core_type<tc>, window_params = [{pipeline_mode = #tpu.pipeline_mode<synchronous>, transform_indices = @transform_0, window_bounds = array<i64: 32, 4>}, {pipeline_mode = #tpu.pipeline_mode<synchronous>, transform_indices = @transform_1, window_bounds = array<i64: 28, 32>}, {pipeline_mode = #tpu.pipeline_mode<synchronous>, transform_indices = @transform_2, window_bounds = array<i64: 1, 32>}, {pipeline_mode = #tpu.pipeline_mode<synchronous>, transform_indices = @transform_3, window_bounds = array<i64: 32, 96>}, {pipeline_mode = #tpu.pipeline_mode<synchronous>, transform_indices = @transform_4, window_bounds = array<i64: 1, 96>}, {pipeline_mode = #tpu.pipeline_mode<synchronous>, transform_indices = @transform_5, window_bounds = array<i64: 32, 32>}, {pipeline_mode = #tpu.pipeline_mode<synchronous>, transform_indices = @transform_6, window_bounds = array<i64: 1, 32>}, {pipeline_mode = #tpu.pipeline_mode<synchronous>, transform_indices = @transform_7, window_bounds = array<i64: 32, 32>}, {pipeline_mode = #tpu.pipeline_mode<synchronous>, transform_indices = @transform_8, window_bounds = array<i64: 1, 32>}, {pipeline_mode = #tpu.pipeline_mode<synchronous>, transform_indices = @transform_9, window_bounds = array<i64: 32, 32>}, {pipeline_mode = #tpu.pipeline_mode<synchronous>, transform_indices = @transform_10, window_bounds = array<i64: 1, 32>}, {pipeline_mode = #tpu.pipeline_mode<synchronous>, transform_indices = @transform_11, window_bounds = array<i64: 1, 32>}, {pipeline_mode = #tpu.pipeline_mode<synchronous>, transform_indices = @transform_12, window_bounds = array<i64: 1, 32>}, {pipeline_mode = #tpu.pipeline_mode<synchronous>, transform_indices = @transform_13, window_bounds = array<i64: 16, 128>}, {pipeline_mode = #tpu.pipeline_mode<synchronous>, transform_indices = @transform_14, window_bounds = array<i64: 64, 128>}, {pipeline_mode = #tpu.pipeline_mode<synchronous>, transform_indices = @transform_15, window_bounds = array<i64: 128, 64>}, {pipeline_mode = #tpu.pipeline_mode<synchronous>, transform_indices = @transform_16, window_bounds = array<i64: 128, 128>}, {pipeline_mode = #tpu.pipeline_mode<synchronous>, transform_indices = @transform_17, window_bounds = array<i64: 2, 128>}, {pipeline_mode = #tpu.pipeline_mode<synchronous>, transform_indices = @transform_18, window_bounds = array<i64: 32, 32>}]} {
    %c0 = arith.constant 0 : index
    %c0_0 = arith.constant 0 : index
    %0 = vector.load %arg18[%c0, %c0_0] : memref<2x128xf32, #tpu.memory_space<vmem>>, vector<1x128xf32>
    %c1 = arith.constant 1 : index
    %c0_1 = arith.constant 0 : index
    %1 = vector.load %arg18[%c1, %c0_1] : memref<2x128xf32, #tpu.memory_space<vmem>>, vector<1x128xf32>
    %c0_2 = arith.constant 0 : index
    %c0_3 = arith.constant 0 : index
    %2 = vector.load %arg1[%c0_2, %c0_3] : memref<32x4xf32, #tpu.memory_space<vmem>>, vector<32x4xf32>
    %3 = vector.extract_strided_slice %2 {offsets = [0, 0], sizes = [16, 4], strides = [1, 1]} : vector<32x4xf32> to vector<16x4xf32>
    %cst = arith.constant 0.000000e+00 : f32
    %4 = vector.broadcast %cst : f32 to vector<3x4xf32>
    %5 = vector.extract_strided_slice %3 {offsets = [0, 0], sizes = [13, 4], strides = [1, 1]} : vector<16x4xf32> to vector<13x4xf32>
    %6 = tpu.concatenate %4, %5 in 0 : vector<3x4xf32>, vector<13x4xf32> -> vector<16x4xf32>
    %7 = vector.extract_strided_slice %2 {offsets = [16, 0], sizes = [16, 4], strides = [1, 1]} : vector<32x4xf32> to vector<16x4xf32>
    %cst_4 = arith.constant 0.000000e+00 : f32
    %8 = vector.broadcast %cst_4 : f32 to vector<3x4xf32>
    %9 = vector.extract_strided_slice %7 {offsets = [0, 0], sizes = [13, 4], strides = [1, 1]} : vector<16x4xf32> to vector<13x4xf32>
    %10 = tpu.concatenate %8, %9 in 0 : vector<3x4xf32>, vector<13x4xf32> -> vector<16x4xf32>
    %11 = tpu.concatenate %6, %10 in 0 : vector<16x4xf32>, vector<16x4xf32> -> vector<32x4xf32>
    %12 = vector.extract_strided_slice %2 {offsets = [0, 0], sizes = [16, 4], strides = [1, 1]} : vector<32x4xf32> to vector<16x4xf32>
    %cst_5 = arith.constant 0.000000e+00 : f32
    %13 = vector.broadcast %cst_5 : f32 to vector<2x4xf32>
    %14 = vector.extract_strided_slice %12 {offsets = [0, 0], sizes = [14, 4], strides = [1, 1]} : vector<16x4xf32> to vector<14x4xf32>
    %15 = tpu.concatenate %13, %14 in 0 : vector<2x4xf32>, vector<14x4xf32> -> vector<16x4xf32>
    %16 = vector.extract_strided_slice %2 {offsets = [16, 0], sizes = [16, 4], strides = [1, 1]} : vector<32x4xf32> to vector<16x4xf32>
    %cst_6 = arith.constant 0.000000e+00 : f32
    %17 = vector.broadcast %cst_6 : f32 to vector<2x4xf32>
    %18 = vector.extract_strided_slice %16 {offsets = [0, 0], sizes = [14, 4], strides = [1, 1]} : vector<16x4xf32> to vector<14x4xf32>
    %19 = tpu.concatenate %17, %18 in 0 : vector<2x4xf32>, vector<14x4xf32> -> vector<16x4xf32>
    %20 = tpu.concatenate %15, %19 in 0 : vector<16x4xf32>, vector<16x4xf32> -> vector<32x4xf32>
    %21 = vector.extract_strided_slice %2 {offsets = [0, 0], sizes = [16, 4], strides = [1, 1]} : vector<32x4xf32> to vector<16x4xf32>
    %cst_7 = arith.constant 0.000000e+00 : f32
    %22 = vector.broadcast %cst_7 : f32 to vector<1x4xf32>
    %23 = vector.extract_strided_slice %21 {offsets = [0, 0], sizes = [15, 4], strides = [1, 1]} : vector<16x4xf32> to vector<15x4xf32>
    %24 = tpu.concatenate %22, %23 in 0 : vector<1x4xf32>, vector<15x4xf32> -> vector<16x4xf32>
    %25 = vector.extract_strided_slice %2 {offsets = [16, 0], sizes = [16, 4], strides = [1, 1]} : vector<32x4xf32> to vector<16x4xf32>
    %cst_8 = arith.constant 0.000000e+00 : f32
    %26 = vector.broadcast %cst_8 : f32 to vector<1x4xf32>
    %27 = vector.extract_strided_slice %25 {offsets = [0, 0], sizes = [15, 4], strides = [1, 1]} : vector<16x4xf32> to vector<15x4xf32>
    %28 = tpu.concatenate %26, %27 in 0 : vector<1x4xf32>, vector<15x4xf32> -> vector<16x4xf32>
    %29 = tpu.concatenate %24, %28 in 0 : vector<16x4xf32>, vector<16x4xf32> -> vector<32x4xf32>
    %30 = vector.extract_strided_slice %2 {offsets = [0, 0], sizes = [16, 4], strides = [1, 1]} : vector<32x4xf32> to vector<16x4xf32>
    %31 = vector.extract_strided_slice %30 {offsets = [1, 0], sizes = [15, 4], strides = [1, 1]} : vector<16x4xf32> to vector<15x4xf32>
    %cst_9 = arith.constant 0.000000e+00 : f32
    %32 = vector.broadcast %cst_9 : f32 to vector<1x4xf32>
    %33 = tpu.concatenate %31, %32 in 0 : vector<15x4xf32>, vector<1x4xf32> -> vector<16x4xf32>
    %34 = vector.extract_strided_slice %2 {offsets = [16, 0], sizes = [16, 4], strides = [1, 1]} : vector<32x4xf32> to vector<16x4xf32>
    %35 = vector.extract_strided_slice %34 {offsets = [1, 0], sizes = [15, 4], strides = [1, 1]} : vector<16x4xf32> to vector<15x4xf32>
    %cst_10 = arith.constant 0.000000e+00 : f32
    %36 = vector.broadcast %cst_10 : f32 to vector<1x4xf32>
    %37 = tpu.concatenate %35, %36 in 0 : vector<15x4xf32>, vector<1x4xf32> -> vector<16x4xf32>
    %38 = tpu.concatenate %33, %37 in 0 : vector<16x4xf32>, vector<16x4xf32> -> vector<32x4xf32>
    %39 = vector.extract_strided_slice %2 {offsets = [0, 0], sizes = [16, 4], strides = [1, 1]} : vector<32x4xf32> to vector<16x4xf32>
    %40 = vector.extract_strided_slice %39 {offsets = [2, 0], sizes = [14, 4], strides = [1, 1]} : vector<16x4xf32> to vector<14x4xf32>
    %cst_11 = arith.constant 0.000000e+00 : f32
    %41 = vector.broadcast %cst_11 : f32 to vector<2x4xf32>
    %42 = tpu.concatenate %40, %41 in 0 : vector<14x4xf32>, vector<2x4xf32> -> vector<16x4xf32>
    %43 = vector.extract_strided_slice %2 {offsets = [16, 0], sizes = [16, 4], strides = [1, 1]} : vector<32x4xf32> to vector<16x4xf32>
    %44 = vector.extract_strided_slice %43 {offsets = [2, 0], sizes = [14, 4], strides = [1, 1]} : vector<16x4xf32> to vector<14x4xf32>
    %cst_12 = arith.constant 0.000000e+00 : f32
    %45 = vector.broadcast %cst_12 : f32 to vector<2x4xf32>
    %46 = tpu.concatenate %44, %45 in 0 : vector<14x4xf32>, vector<2x4xf32> -> vector<16x4xf32>
    %47 = tpu.concatenate %42, %46 in 0 : vector<16x4xf32>, vector<16x4xf32> -> vector<32x4xf32>
    %48 = vector.extract_strided_slice %2 {offsets = [0, 0], sizes = [16, 4], strides = [1, 1]} : vector<32x4xf32> to vector<16x4xf32>
    %49 = vector.extract_strided_slice %48 {offsets = [3, 0], sizes = [13, 4], strides = [1, 1]} : vector<16x4xf32> to vector<13x4xf32>
    %cst_13 = arith.constant 0.000000e+00 : f32
    %50 = vector.broadcast %cst_13 : f32 to vector<3x4xf32>
    %51 = tpu.concatenate %49, %50 in 0 : vector<13x4xf32>, vector<3x4xf32> -> vector<16x4xf32>
    %52 = vector.extract_strided_slice %2 {offsets = [16, 0], sizes = [16, 4], strides = [1, 1]} : vector<32x4xf32> to vector<16x4xf32>
    %53 = vector.extract_strided_slice %52 {offsets = [3, 0], sizes = [13, 4], strides = [1, 1]} : vector<16x4xf32> to vector<13x4xf32>
    %cst_14 = arith.constant 0.000000e+00 : f32
    %54 = vector.broadcast %cst_14 : f32 to vector<3x4xf32>
    %55 = tpu.concatenate %53, %54 in 0 : vector<13x4xf32>, vector<3x4xf32> -> vector<16x4xf32>
    %56 = tpu.concatenate %51, %55 in 0 : vector<16x4xf32>, vector<16x4xf32> -> vector<32x4xf32>
    %57 = tpu.concatenate %11, %20, %29, %2, %38, %47, %56 in 1 : vector<32x4xf32>, vector<32x4xf32>, vector<32x4xf32>, vector<32x4xf32>, vector<32x4xf32>, vector<32x4xf32>, vector<32x4xf32> -> vector<32x28xf32>
    %c0_15 = arith.constant 0 : index
    %c0_16 = arith.constant 0 : index
    %58 = vector.load %arg2[%c0_15, %c0_16] : memref<28x32xf32, #tpu.memory_space<vmem>>, vector<28x32xf32>
    %cst_17 = arith.constant dense<0.000000e+00> : vector<32x32xf32>
    %59 = tpu.matmul %57, %58, %cst_17 {dimension_numbers = #tpu.dot_dimension_numbers<[1], [0], [0], [1], [0, 0, 1, 1], [], []>, precision = #tpu.contract_precision<fp32>} : vector<32x28xf32>, vector<28x32xf32>, vector<32x32xf32> -> vector<32x32xf32>
    %c0_18 = arith.constant 0 : index
    %c0_19 = arith.constant 0 : index
    %60 = vector.load %arg3[%c0_18, %c0_19] : memref<1x32xf32, #tpu.memory_space<vmem>>, vector<1x32xf32>
    %61 = vector.broadcast %60 : vector<1x32xf32> to vector<32x32xf32>
    %62 = arith.addf %59, %61 : vector<32x32xf32>
    %cst_20 = arith.constant 0.000000e+00 : f32
    %63 = vector.broadcast %cst_20 : f32 to vector<32x32xf32>
    %64 = arith.maximumf %62, %63 : vector<32x32xf32>
    %c0_21 = arith.constant 0 : index
    %c0_22 = arith.constant 0 : index
    %65 = vector.load %arg4[%c0_21, %c0_22] : memref<32x96xf32, #tpu.memory_space<vmem>>, vector<32x96xf32>
    %cst_23 = arith.constant dense<0.000000e+00> : vector<32x96xf32>
    %66 = tpu.matmul %64, %65, %cst_23 {dimension_numbers = #tpu.dot_dimension_numbers<[1], [0], [0], [1], [0, 0, 1, 1], [], []>, precision = #tpu.contract_precision<fp32>} : vector<32x32xf32>, vector<32x96xf32>, vector<32x96xf32> -> vector<32x96xf32>
    %c0_24 = arith.constant 0 : index
    %c0_25 = arith.constant 0 : index
    %67 = vector.load %arg5[%c0_24, %c0_25] : memref<1x96xf32, #tpu.memory_space<vmem>>, vector<1x96xf32>
    %68 = vector.broadcast %67 : vector<1x96xf32> to vector<32x96xf32>
    %69 = arith.addf %66, %68 : vector<32x96xf32>
    %70 = vector.extract_strided_slice %69 {offsets = [0, 0], sizes = [32, 32], strides = [1, 1]} : vector<32x96xf32> to vector<32x32xf32>
    %71 = vector.extract_strided_slice %69 {offsets = [0, 32], sizes = [32, 32], strides = [1, 1]} : vector<32x96xf32> to vector<32x32xf32>
    %72 = vector.extract_strided_slice %69 {offsets = [0, 64], sizes = [32, 32], strides = [1, 1]} : vector<32x96xf32> to vector<32x32xf32>
    %c0_26 = arith.constant 0 : index
    %c0_27 = arith.constant 0 : index
    %73 = vector.load %arg6[%c0_26, %c0_27] : memref<32x32xf32, #tpu.memory_space<vmem>>, vector<32x32xf32>
    %cst_28 = arith.constant dense<0.000000e+00> : vector<32x32xf32>
    %74 = tpu.matmul %71, %73, %cst_28 {dimension_numbers = #tpu.dot_dimension_numbers<[1], [0], [0], [1], [0, 0, 1, 1], [], []>, precision = #tpu.contract_precision<fp32>} : vector<32x32xf32>, vector<32x32xf32>, vector<32x32xf32> -> vector<32x32xf32>
    %c0_29 = arith.constant 0 : index
    %c0_30 = arith.constant 0 : index
    %75 = vector.load %arg7[%c0_29, %c0_30] : memref<1x32xf32, #tpu.memory_space<vmem>>, vector<1x32xf32>
    %76 = vector.broadcast %75 : vector<1x32xf32> to vector<32x32xf32>
    %77 = arith.addf %74, %76 : vector<32x32xf32>
    %c0_31 = arith.constant 0 : index
    %c0_32 = arith.constant 0 : index
    %78 = vector.load %arg8[%c0_31, %c0_32] : memref<32x32xf32, #tpu.memory_space<vmem>>, vector<32x32xf32>
    %cst_33 = arith.constant dense<0.000000e+00> : vector<32x32xf32>
    %79 = tpu.matmul %72, %78, %cst_33 {dimension_numbers = #tpu.dot_dimension_numbers<[1], [0], [0], [1], [0, 0, 1, 1], [], []>, precision = #tpu.contract_precision<fp32>} : vector<32x32xf32>, vector<32x32xf32>, vector<32x32xf32> -> vector<32x32xf32>
    %c0_34 = arith.constant 0 : index
    %c0_35 = arith.constant 0 : index
    %80 = vector.load %arg9[%c0_34, %c0_35] : memref<1x32xf32, #tpu.memory_space<vmem>>, vector<1x32xf32>
    %81 = vector.broadcast %80 : vector<1x32xf32> to vector<32x32xf32>
    %82 = arith.addf %79, %81 : vector<32x32xf32>
    %83 = vector.extract_strided_slice %70 {offsets = [0, 0], sizes = [16, 32], strides = [1, 1]} : vector<32x32xf32> to vector<16x32xf32>
    %84 = vector.extract_strided_slice %70 {offsets = [16, 0], sizes = [16, 32], strides = [1, 1]} : vector<32x32xf32> to vector<16x32xf32>
    %85 = tpu.concatenate %83, %84 in 1 : vector<16x32xf32>, vector<16x32xf32> -> vector<16x64xf32>
    %86 = tpu.transpose %71, [1, 0] : vector<32x32xf32> -> vector<32x32xf32>
    %87 = vector.extract_strided_slice %86 {offsets = [0, 0], sizes = [32, 16], strides = [1, 1]} : vector<32x32xf32> to vector<32x16xf32>
    %88 = vector.extract_strided_slice %86 {offsets = [0, 16], sizes = [32, 16], strides = [1, 1]} : vector<32x32xf32> to vector<32x16xf32>
    %89 = tpu.concatenate %87, %87, %87, %87, %88, %88, %88, %88 in 1 : vector<32x16xf32>, vector<32x16xf32>, vector<32x16xf32>, vector<32x16xf32>, vector<32x16xf32>, vector<32x16xf32>, vector<32x16xf32>, vector<32x16xf32> -> vector<32x128xf32>
    %90 = tpu.concatenate %89, %89 in 0 : vector<32x128xf32>, vector<32x128xf32> -> vector<64x128xf32>
    %c0_36 = arith.constant 0 : index
    %c0_37 = arith.constant 0 : index
    %91 = vector.load %arg15[%c0_36, %c0_37] : memref<64x128xf32, #tpu.memory_space<vmem>>, vector<64x128xf32>
    %92 = arith.mulf %90, %91 : vector<64x128xf32>
    %cst_38 = arith.constant dense<0.000000e+00> : vector<16x128xf32>
    %93 = tpu.matmul %85, %92, %cst_38 {dimension_numbers = #tpu.dot_dimension_numbers<[1], [0], [0], [1], [0, 0, 1, 1], [], []>, precision = #tpu.contract_precision<fp32>} : vector<16x64xf32>, vector<64x128xf32>, vector<16x128xf32> -> vector<16x128xf32>
    %cst_39 = arith.constant 0.353553385 : f32
    %94 = vector.broadcast %cst_39 : f32 to vector<16x128xf32>
    %95 = arith.mulf %93, %94 : vector<16x128xf32>
    %c0_40 = arith.constant 0 : index
    %c0_41 = arith.constant 0 : index
    %96 = vector.load %arg14[%c0_40, %c0_41] : memref<16x128xf32, #tpu.memory_space<vmem>>, vector<16x128xf32>
    %97 = arith.addf %95, %96 : vector<16x128xf32>
    %98 = tpu.transpose %77, [1, 0] : vector<32x32xf32> -> vector<32x32xf32>
    %99 = vector.extract_strided_slice %98 {offsets = [0, 0], sizes = [32, 16], strides = [1, 1]} : vector<32x32xf32> to vector<32x16xf32>
    %100 = vector.extract_strided_slice %98 {offsets = [0, 16], sizes = [32, 16], strides = [1, 1]} : vector<32x32xf32> to vector<32x16xf32>
    %101 = tpu.concatenate %99, %99, %99, %99, %100, %100, %100, %100 in 1 : vector<32x16xf32>, vector<32x16xf32>, vector<32x16xf32>, vector<32x16xf32>, vector<32x16xf32>, vector<32x16xf32>, vector<32x16xf32>, vector<32x16xf32> -> vector<32x128xf32>
    %102 = tpu.concatenate %101, %101 in 0 : vector<32x128xf32>, vector<32x128xf32> -> vector<64x128xf32>
    %c0_42 = arith.constant 0 : index
    %c0_43 = arith.constant 0 : index
    %103 = vector.load %arg15[%c0_42, %c0_43] : memref<64x128xf32, #tpu.memory_space<vmem>>, vector<64x128xf32>
    %104 = arith.mulf %102, %103 : vector<64x128xf32>
    %cst_44 = arith.constant dense<0.000000e+00> : vector<16x128xf32>
    %105 = tpu.matmul %85, %104, %cst_44 {dimension_numbers = #tpu.dot_dimension_numbers<[1], [0], [0], [1], [0, 0, 1, 1], [], []>, precision = #tpu.contract_precision<fp32>} : vector<16x64xf32>, vector<64x128xf32>, vector<16x128xf32> -> vector<16x128xf32>
    %cst_45 = arith.constant 0.353553385 : f32
    %106 = vector.broadcast %cst_45 : f32 to vector<16x128xf32>
    %107 = arith.mulf %105, %106 : vector<16x128xf32>
    %108 = tpu.concatenate %97, %0 in 0 : vector<16x128xf32>, vector<1x128xf32> -> vector<17x128xf32>
    %c1_i32 = arith.constant 1 : i32
    %109 = tpu.dynamic_rotate %108 by %c1_i32 dim 1 : vector<17x128xf32>, i32 -> vector<17x128xf32>
    %c113_i32 = arith.constant 113 : i32
    %110 = tpu.dynamic_rotate %108 by %c113_i32 dim 1 : vector<17x128xf32>, i32 -> vector<17x128xf32>
    %111 = vector.extract_strided_slice %109 {offsets = [16, 0], sizes = [1, 128], strides = [1, 1]} : vector<17x128xf32> to vector<1x128xf32>
    %112 = arith.cmpf oeq, %111, %0 : vector<1x128xf32>
    %113 = vector.extract_strided_slice %109 {offsets = [0, 0], sizes = [16, 128], strides = [1, 1]} : vector<17x128xf32> to vector<16x128xf32>
    %114 = vector.extract_strided_slice %110 {offsets = [0, 0], sizes = [16, 128], strides = [1, 1]} : vector<17x128xf32> to vector<16x128xf32>
    %115 = vector.shape_cast %112 : vector<1x128xi1> to vector<1x128xi1>
    %116 = vector.broadcast %115 : vector<1x128xi1> to vector<16x128xi1>
    %117 = arith.select %116, %113, %114 : vector<16x128xi1>, vector<16x128xf32>
    %118 = arith.maximumf %97, %117 : vector<16x128xf32>
    %119 = tpu.concatenate %118, %0 in 0 : vector<16x128xf32>, vector<1x128xf32> -> vector<17x128xf32>
    %c2_i32 = arith.constant 2 : i32
    %120 = tpu.dynamic_rotate %119 by %c2_i32 dim 1 : vector<17x128xf32>, i32 -> vector<17x128xf32>
    %c114_i32 = arith.constant 114 : i32
    %121 = tpu.dynamic_rotate %119 by %c114_i32 dim 1 : vector<17x128xf32>, i32 -> vector<17x128xf32>
    %122 = vector.extract_strided_slice %120 {offsets = [16, 0], sizes = [1, 128], strides = [1, 1]} : vector<17x128xf32> to vector<1x128xf32>
    %123 = arith.cmpf oeq, %122, %0 : vector<1x128xf32>
    %124 = vector.extract_strided_slice %120 {offsets = [0, 0], sizes = [16, 128], strides = [1, 1]} : vector<17x128xf32> to vector<16x128xf32>
    %125 = vector.extract_strided_slice %121 {offsets = [0, 0], sizes = [16, 128], strides = [1, 1]} : vector<17x128xf32> to vector<16x128xf32>
    %126 = vector.shape_cast %123 : vector<1x128xi1> to vector<1x128xi1>
    %127 = vector.broadcast %126 : vector<1x128xi1> to vector<16x128xi1>
    %128 = arith.select %127, %124, %125 : vector<16x128xi1>, vector<16x128xf32>
    %129 = arith.maximumf %118, %128 : vector<16x128xf32>
    %130 = tpu.concatenate %129, %0 in 0 : vector<16x128xf32>, vector<1x128xf32> -> vector<17x128xf32>
    %c4_i32 = arith.constant 4 : i32
    %131 = tpu.dynamic_rotate %130 by %c4_i32 dim 1 : vector<17x128xf32>, i32 -> vector<17x128xf32>
    %c116_i32 = arith.constant 116 : i32
    %132 = tpu.dynamic_rotate %130 by %c116_i32 dim 1 : vector<17x128xf32>, i32 -> vector<17x128xf32>
    %133 = vector.extract_strided_slice %131 {offsets = [16, 0], sizes = [1, 128], strides = [1, 1]} : vector<17x128xf32> to vector<1x128xf32>
    %134 = arith.cmpf oeq, %133, %0 : vector<1x128xf32>
    %135 = vector.extract_strided_slice %131 {offsets = [0, 0], sizes = [16, 128], strides = [1, 1]} : vector<17x128xf32> to vector<16x128xf32>
    %136 = vector.extract_strided_slice %132 {offsets = [0, 0], sizes = [16, 128], strides = [1, 1]} : vector<17x128xf32> to vector<16x128xf32>
    %137 = vector.shape_cast %134 : vector<1x128xi1> to vector<1x128xi1>
    %138 = vector.broadcast %137 : vector<1x128xi1> to vector<16x128xi1>
    %139 = arith.select %138, %135, %136 : vector<16x128xi1>, vector<16x128xf32>
    %140 = arith.maximumf %129, %139 : vector<16x128xf32>
    %141 = tpu.concatenate %140, %0 in 0 : vector<16x128xf32>, vector<1x128xf32> -> vector<17x128xf32>
    %c8_i32 = arith.constant 8 : i32
    %142 = tpu.dynamic_rotate %141 by %c8_i32 dim 1 : vector<17x128xf32>, i32 -> vector<17x128xf32>
    %c120_i32 = arith.constant 120 : i32
    %143 = tpu.dynamic_rotate %141 by %c120_i32 dim 1 : vector<17x128xf32>, i32 -> vector<17x128xf32>
    %144 = vector.extract_strided_slice %142 {offsets = [16, 0], sizes = [1, 128], strides = [1, 1]} : vector<17x128xf32> to vector<1x128xf32>
    %145 = arith.cmpf oeq, %144, %0 : vector<1x128xf32>
    %146 = vector.extract_strided_slice %142 {offsets = [0, 0], sizes = [16, 128], strides = [1, 1]} : vector<17x128xf32> to vector<16x128xf32>
    %147 = vector.extract_strided_slice %143 {offsets = [0, 0], sizes = [16, 128], strides = [1, 1]} : vector<17x128xf32> to vector<16x128xf32>
    %148 = vector.shape_cast %145 : vector<1x128xi1> to vector<1x128xi1>
    %149 = vector.broadcast %148 : vector<1x128xi1> to vector<16x128xi1>
    %150 = arith.select %149, %146, %147 : vector<16x128xi1>, vector<16x128xf32>
    %151 = arith.maximumf %140, %150 : vector<16x128xf32>
    %152 = arith.subf %97, %151 : vector<16x128xf32>
    %153 = math.exp %152 : vector<16x128xf32>
    %c0_46 = arith.constant 0 : index
    %c0_47 = arith.constant 0 : index
    %154 = vector.load %arg17[%c0_46, %c0_47] : memref<128x128xf32, #tpu.memory_space<vmem>>, vector<128x128xf32>
    %cst_48 = arith.constant dense<0.000000e+00> : vector<16x128xf32>
    %155 = tpu.matmul %153, %154, %cst_48 {dimension_numbers = #tpu.dot_dimension_numbers<[1], [0], [0], [1], [0, 0, 1, 1], [], []>, precision = #tpu.contract_precision<fp32>} : vector<16x128xf32>, vector<128x128xf32>, vector<16x128xf32> -> vector<16x128xf32>
    %156 = arith.divf %153, %155 : vector<16x128xf32>
    %157 = tpu.concatenate %107, %0, %1 in 0 : vector<16x128xf32>, vector<1x128xf32>, vector<1x128xf32> -> vector<18x128xf32>
    %cst_49 = arith.constant 0.000000e+00 : f32
    %158 = vector.broadcast %cst_49 : f32 to vector<16x128xf32>
    %c1_i32_50 = arith.constant 1 : i32
    %159 = tpu.dynamic_rotate %157 by %c1_i32_50 dim 1 : vector<18x128xf32>, i32 -> vector<18x128xf32>
    %160 = vector.extract_strided_slice %159 {offsets = [16, 0], sizes = [1, 128], strides = [1, 1]} : vector<18x128xf32> to vector<1x128xf32>
    %161 = arith.cmpf oeq, %160, %0 : vector<1x128xf32>
    %162 = vector.extract_strided_slice %159 {offsets = [0, 0], sizes = [16, 128], strides = [1, 1]} : vector<18x128xf32> to vector<16x128xf32>
    %163 = arith.cmpf ogt, %162, %107 : vector<16x128xf32>
    %164 = vector.extract_strided_slice %159 {offsets = [0, 0], sizes = [16, 128], strides = [1, 1]} : vector<18x128xf32> to vector<16x128xf32>
    %165 = arith.cmpf oeq, %164, %107 : vector<16x128xf32>
    %166 = vector.extract_strided_slice %159 {offsets = [17, 0], sizes = [1, 128], strides = [1, 1]} : vector<18x128xf32> to vector<1x128xf32>
    %167 = arith.cmpf olt, %166, %1 : vector<1x128xf32>
    %168 = vector.broadcast %167 : vector<1x128xi1> to vector<16x128xi1>
    %169 = arith.andi %165, %168 : vector<16x128xi1>
    %170 = arith.ori %163, %169 : vector<16x128xi1>
    %171 = vector.broadcast %161 : vector<1x128xi1> to vector<16x128xi1>
    %172 = arith.andi %171, %170 : vector<16x128xi1>
    %173 = arith.extui %172 : vector<16x128xi1> to vector<16x128xi32>
    %174 = arith.sitofp %173 : vector<16x128xi32> to vector<16x128xf32>
    %175 = arith.addf %158, %174 : vector<16x128xf32>
    %c2_i32_51 = arith.constant 2 : i32
    %176 = tpu.dynamic_rotate %157 by %c2_i32_51 dim 1 : vector<18x128xf32>, i32 -> vector<18x128xf32>
    %177 = vector.extract_strided_slice %176 {offsets = [16, 0], sizes = [1, 128], strides = [1, 1]} : vector<18x128xf32> to vector<1x128xf32>
    %178 = arith.cmpf oeq, %177, %0 : vector<1x128xf32>
    %179 = vector.extract_strided_slice %176 {offsets = [0, 0], sizes = [16, 128], strides = [1, 1]} : vector<18x128xf32> to vector<16x128xf32>
    %180 = arith.cmpf ogt, %179, %107 : vector<16x128xf32>
    %181 = vector.extract_strided_slice %176 {offsets = [0, 0], sizes = [16, 128], strides = [1, 1]} : vector<18x128xf32> to vector<16x128xf32>
    %182 = arith.cmpf oeq, %181, %107 : vector<16x128xf32>
    %183 = vector.extract_strided_slice %176 {offsets = [17, 0], sizes = [1, 128], strides = [1, 1]} : vector<18x128xf32> to vector<1x128xf32>
    %184 = arith.cmpf olt, %183, %1 : vector<1x128xf32>
    %185 = vector.broadcast %184 : vector<1x128xi1> to vector<16x128xi1>
    %186 = arith.andi %182, %185 : vector<16x128xi1>
    %187 = arith.ori %180, %186 : vector<16x128xi1>
    %188 = vector.broadcast %178 : vector<1x128xi1> to vector<16x128xi1>
    %189 = arith.andi %188, %187 : vector<16x128xi1>
    %190 = arith.extui %189 : vector<16x128xi1> to vector<16x128xi32>
    %191 = arith.sitofp %190 : vector<16x128xi32> to vector<16x128xf32>
    %192 = arith.addf %175, %191 : vector<16x128xf32>
    %c3_i32 = arith.constant 3 : i32
    %193 = tpu.dynamic_rotate %157 by %c3_i32 dim 1 : vector<18x128xf32>, i32 -> vector<18x128xf32>
    %194 = vector.extract_strided_slice %193 {offsets = [16, 0], sizes = [1, 128], strides = [1, 1]} : vector<18x128xf32> to vector<1x128xf32>
    %195 = arith.cmpf oeq, %194, %0 : vector<1x128xf32>
    %196 = vector.extract_strided_slice %193 {offsets = [0, 0], sizes = [16, 128], strides = [1, 1]} : vector<18x128xf32> to vector<16x128xf32>
    %197 = arith.cmpf ogt, %196, %107 : vector<16x128xf32>
    %198 = vector.extract_strided_slice %193 {offsets = [0, 0], sizes = [16, 128], strides = [1, 1]} : vector<18x128xf32> to vector<16x128xf32>
    %199 = arith.cmpf oeq, %198, %107 : vector<16x128xf32>
    %200 = vector.extract_strided_slice %193 {offsets = [17, 0], sizes = [1, 128], strides = [1, 1]} : vector<18x128xf32> to vector<1x128xf32>
    %201 = arith.cmpf olt, %200, %1 : vector<1x128xf32>
    %202 = vector.broadcast %201 : vector<1x128xi1> to vector<16x128xi1>
    %203 = arith.andi %199, %202 : vector<16x128xi1>
    %204 = arith.ori %197, %203 : vector<16x128xi1>
    %205 = vector.broadcast %195 : vector<1x128xi1> to vector<16x128xi1>
    %206 = arith.andi %205, %204 : vector<16x128xi1>
    %207 = arith.extui %206 : vector<16x128xi1> to vector<16x128xi32>
    %208 = arith.sitofp %207 : vector<16x128xi32> to vector<16x128xf32>
    %209 = arith.addf %192, %208 : vector<16x128xf32>
    %c4_i32_52 = arith.constant 4 : i32
    %210 = tpu.dynamic_rotate %157 by %c4_i32_52 dim 1 : vector<18x128xf32>, i32 -> vector<18x128xf32>
    %211 = vector.extract_strided_slice %210 {offsets = [16, 0], sizes = [1, 128], strides = [1, 1]} : vector<18x128xf32> to vector<1x128xf32>
    %212 = arith.cmpf oeq, %211, %0 : vector<1x128xf32>
    %213 = vector.extract_strided_slice %210 {offsets = [0, 0], sizes = [16, 128], strides = [1, 1]} : vector<18x128xf32> to vector<16x128xf32>
    %214 = arith.cmpf ogt, %213, %107 : vector<16x128xf32>
    %215 = vector.extract_strided_slice %210 {offsets = [0, 0], sizes = [16, 128], strides = [1, 1]} : vector<18x128xf32> to vector<16x128xf32>
    %216 = arith.cmpf oeq, %215, %107 : vector<16x128xf32>
    %217 = vector.extract_strided_slice %210 {offsets = [17, 0], sizes = [1, 128], strides = [1, 1]} : vector<18x128xf32> to vector<1x128xf32>
    %218 = arith.cmpf olt, %217, %1 : vector<1x128xf32>
    %219 = vector.broadcast %218 : vector<1x128xi1> to vector<16x128xi1>
    %220 = arith.andi %216, %219 : vector<16x128xi1>
    %221 = arith.ori %214, %220 : vector<16x128xi1>
    %222 = vector.broadcast %212 : vector<1x128xi1> to vector<16x128xi1>
    %223 = arith.andi %222, %221 : vector<16x128xi1>
    %224 = arith.extui %223 : vector<16x128xi1> to vector<16x128xi32>
    %225 = arith.sitofp %224 : vector<16x128xi32> to vector<16x128xf32>
    %226 = arith.addf %209, %225 : vector<16x128xf32>
    %c5_i32 = arith.constant 5 : i32
    %227 = tpu.dynamic_rotate %157 by %c5_i32 dim 1 : vector<18x128xf32>, i32 -> vector<18x128xf32>
    %228 = vector.extract_strided_slice %227 {offsets = [16, 0], sizes = [1, 128], strides = [1, 1]} : vector<18x128xf32> to vector<1x128xf32>
    %229 = arith.cmpf oeq, %228, %0 : vector<1x128xf32>
    %230 = vector.extract_strided_slice %227 {offsets = [0, 0], sizes = [16, 128], strides = [1, 1]} : vector<18x128xf32> to vector<16x128xf32>
    %231 = arith.cmpf ogt, %230, %107 : vector<16x128xf32>
    %232 = vector.extract_strided_slice %227 {offsets = [0, 0], sizes = [16, 128], strides = [1, 1]} : vector<18x128xf32> to vector<16x128xf32>
    %233 = arith.cmpf oeq, %232, %107 : vector<16x128xf32>
    %234 = vector.extract_strided_slice %227 {offsets = [17, 0], sizes = [1, 128], strides = [1, 1]} : vector<18x128xf32> to vector<1x128xf32>
    %235 = arith.cmpf olt, %234, %1 : vector<1x128xf32>
    %236 = vector.broadcast %235 : vector<1x128xi1> to vector<16x128xi1>
    %237 = arith.andi %233, %236 : vector<16x128xi1>
    %238 = arith.ori %231, %237 : vector<16x128xi1>
    %239 = vector.broadcast %229 : vector<1x128xi1> to vector<16x128xi1>
    %240 = arith.andi %239, %238 : vector<16x128xi1>
    %241 = arith.extui %240 : vector<16x128xi1> to vector<16x128xi32>
    %242 = arith.sitofp %241 : vector<16x128xi32> to vector<16x128xf32>
    %243 = arith.addf %226, %242 : vector<16x128xf32>
    %c6_i32 = arith.constant 6 : i32
    %244 = tpu.dynamic_rotate %157 by %c6_i32 dim 1 : vector<18x128xf32>, i32 -> vector<18x128xf32>
    %245 = vector.extract_strided_slice %244 {offsets = [16, 0], sizes = [1, 128], strides = [1, 1]} : vector<18x128xf32> to vector<1x128xf32>
    %246 = arith.cmpf oeq, %245, %0 : vector<1x128xf32>
    %247 = vector.extract_strided_slice %244 {offsets = [0, 0], sizes = [16, 128], strides = [1, 1]} : vector<18x128xf32> to vector<16x128xf32>
    %248 = arith.cmpf ogt, %247, %107 : vector<16x128xf32>
    %249 = vector.extract_strided_slice %244 {offsets = [0, 0], sizes = [16, 128], strides = [1, 1]} : vector<18x128xf32> to vector<16x128xf32>
    %250 = arith.cmpf oeq, %249, %107 : vector<16x128xf32>
    %251 = vector.extract_strided_slice %244 {offsets = [17, 0], sizes = [1, 128], strides = [1, 1]} : vector<18x128xf32> to vector<1x128xf32>
    %252 = arith.cmpf olt, %251, %1 : vector<1x128xf32>
    %253 = vector.broadcast %252 : vector<1x128xi1> to vector<16x128xi1>
    %254 = arith.andi %250, %253 : vector<16x128xi1>
    %255 = arith.ori %248, %254 : vector<16x128xi1>
    %256 = vector.broadcast %246 : vector<1x128xi1> to vector<16x128xi1>
    %257 = arith.andi %256, %255 : vector<16x128xi1>
    %258 = arith.extui %257 : vector<16x128xi1> to vector<16x128xi32>
    %259 = arith.sitofp %258 : vector<16x128xi32> to vector<16x128xf32>
    %260 = arith.addf %243, %259 : vector<16x128xf32>
    %c7_i32 = arith.constant 7 : i32
    %261 = tpu.dynamic_rotate %157 by %c7_i32 dim 1 : vector<18x128xf32>, i32 -> vector<18x128xf32>
    %262 = vector.extract_strided_slice %261 {offsets = [16, 0], sizes = [1, 128], strides = [1, 1]} : vector<18x128xf32> to vector<1x128xf32>
    %263 = arith.cmpf oeq, %262, %0 : vector<1x128xf32>
    %264 = vector.extract_strided_slice %261 {offsets = [0, 0], sizes = [16, 128], strides = [1, 1]} : vector<18x128xf32> to vector<16x128xf32>
    %265 = arith.cmpf ogt, %264, %107 : vector<16x128xf32>
    %266 = vector.extract_strided_slice %261 {offsets = [0, 0], sizes = [16, 128], strides = [1, 1]} : vector<18x128xf32> to vector<16x128xf32>
    %267 = arith.cmpf oeq, %266, %107 : vector<16x128xf32>
    %268 = vector.extract_strided_slice %261 {offsets = [17, 0], sizes = [1, 128], strides = [1, 1]} : vector<18x128xf32> to vector<1x128xf32>
    %269 = arith.cmpf olt, %268, %1 : vector<1x128xf32>
    %270 = vector.broadcast %269 : vector<1x128xi1> to vector<16x128xi1>
    %271 = arith.andi %267, %270 : vector<16x128xi1>
    %272 = arith.ori %265, %271 : vector<16x128xi1>
    %273 = vector.broadcast %263 : vector<1x128xi1> to vector<16x128xi1>
    %274 = arith.andi %273, %272 : vector<16x128xi1>
    %275 = arith.extui %274 : vector<16x128xi1> to vector<16x128xi32>
    %276 = arith.sitofp %275 : vector<16x128xi32> to vector<16x128xf32>
    %277 = arith.addf %260, %276 : vector<16x128xf32>
    %c8_i32_53 = arith.constant 8 : i32
    %278 = tpu.dynamic_rotate %157 by %c8_i32_53 dim 1 : vector<18x128xf32>, i32 -> vector<18x128xf32>
    %279 = vector.extract_strided_slice %278 {offsets = [16, 0], sizes = [1, 128], strides = [1, 1]} : vector<18x128xf32> to vector<1x128xf32>
    %280 = arith.cmpf oeq, %279, %0 : vector<1x128xf32>
    %281 = vector.extract_strided_slice %278 {offsets = [0, 0], sizes = [16, 128], strides = [1, 1]} : vector<18x128xf32> to vector<16x128xf32>
    %282 = arith.cmpf ogt, %281, %107 : vector<16x128xf32>
    %283 = vector.extract_strided_slice %278 {offsets = [0, 0], sizes = [16, 128], strides = [1, 1]} : vector<18x128xf32> to vector<16x128xf32>
    %284 = arith.cmpf oeq, %283, %107 : vector<16x128xf32>
    %285 = vector.extract_strided_slice %278 {offsets = [17, 0], sizes = [1, 128], strides = [1, 1]} : vector<18x128xf32> to vector<1x128xf32>
    %286 = arith.cmpf olt, %285, %1 : vector<1x128xf32>
    %287 = vector.broadcast %286 : vector<1x128xi1> to vector<16x128xi1>
    %288 = arith.andi %284, %287 : vector<16x128xi1>
    %289 = arith.ori %282, %288 : vector<16x128xi1>
    %290 = vector.broadcast %280 : vector<1x128xi1> to vector<16x128xi1>
    %291 = arith.andi %290, %289 : vector<16x128xi1>
    %292 = arith.extui %291 : vector<16x128xi1> to vector<16x128xi32>
    %293 = arith.sitofp %292 : vector<16x128xi32> to vector<16x128xf32>
    %294 = arith.addf %277, %293 : vector<16x128xf32>
    %c9_i32 = arith.constant 9 : i32
    %295 = tpu.dynamic_rotate %157 by %c9_i32 dim 1 : vector<18x128xf32>, i32 -> vector<18x128xf32>
    %296 = vector.extract_strided_slice %295 {offsets = [16, 0], sizes = [1, 128], strides = [1, 1]} : vector<18x128xf32> to vector<1x128xf32>
    %297 = arith.cmpf oeq, %296, %0 : vector<1x128xf32>
    %298 = vector.extract_strided_slice %295 {offsets = [0, 0], sizes = [16, 128], strides = [1, 1]} : vector<18x128xf32> to vector<16x128xf32>
    %299 = arith.cmpf ogt, %298, %107 : vector<16x128xf32>
    %300 = vector.extract_strided_slice %295 {offsets = [0, 0], sizes = [16, 128], strides = [1, 1]} : vector<18x128xf32> to vector<16x128xf32>
    %301 = arith.cmpf oeq, %300, %107 : vector<16x128xf32>
    %302 = vector.extract_strided_slice %295 {offsets = [17, 0], sizes = [1, 128], strides = [1, 1]} : vector<18x128xf32> to vector<1x128xf32>
    %303 = arith.cmpf olt, %302, %1 : vector<1x128xf32>
    %304 = vector.broadcast %303 : vector<1x128xi1> to vector<16x128xi1>
    %305 = arith.andi %301, %304 : vector<16x128xi1>
    %306 = arith.ori %299, %305 : vector<16x128xi1>
    %307 = vector.broadcast %297 : vector<1x128xi1> to vector<16x128xi1>
    %308 = arith.andi %307, %306 : vector<16x128xi1>
    %309 = arith.extui %308 : vector<16x128xi1> to vector<16x128xi32>
    %310 = arith.sitofp %309 : vector<16x128xi32> to vector<16x128xf32>
    %311 = arith.addf %294, %310 : vector<16x128xf32>
    %c10_i32 = arith.constant 10 : i32
    %312 = tpu.dynamic_rotate %157 by %c10_i32 dim 1 : vector<18x128xf32>, i32 -> vector<18x128xf32>
    %313 = vector.extract_strided_slice %312 {offsets = [16, 0], sizes = [1, 128], strides = [1, 1]} : vector<18x128xf32> to vector<1x128xf32>
    %314 = arith.cmpf oeq, %313, %0 : vector<1x128xf32>
    %315 = vector.extract_strided_slice %312 {offsets = [0, 0], sizes = [16, 128], strides = [1, 1]} : vector<18x128xf32> to vector<16x128xf32>
    %316 = arith.cmpf ogt, %315, %107 : vector<16x128xf32>
    %317 = vector.extract_strided_slice %312 {offsets = [0, 0], sizes = [16, 128], strides = [1, 1]} : vector<18x128xf32> to vector<16x128xf32>
    %318 = arith.cmpf oeq, %317, %107 : vector<16x128xf32>
    %319 = vector.extract_strided_slice %312 {offsets = [17, 0], sizes = [1, 128], strides = [1, 1]} : vector<18x128xf32> to vector<1x128xf32>
    %320 = arith.cmpf olt, %319, %1 : vector<1x128xf32>
    %321 = vector.broadcast %320 : vector<1x128xi1> to vector<16x128xi1>
    %322 = arith.andi %318, %321 : vector<16x128xi1>
    %323 = arith.ori %316, %322 : vector<16x128xi1>
    %324 = vector.broadcast %314 : vector<1x128xi1> to vector<16x128xi1>
    %325 = arith.andi %324, %323 : vector<16x128xi1>
    %326 = arith.extui %325 : vector<16x128xi1> to vector<16x128xi32>
    %327 = arith.sitofp %326 : vector<16x128xi32> to vector<16x128xf32>
    %328 = arith.addf %311, %327 : vector<16x128xf32>
    %c11_i32 = arith.constant 11 : i32
    %329 = tpu.dynamic_rotate %157 by %c11_i32 dim 1 : vector<18x128xf32>, i32 -> vector<18x128xf32>
    %330 = vector.extract_strided_slice %329 {offsets = [16, 0], sizes = [1, 128], strides = [1, 1]} : vector<18x128xf32> to vector<1x128xf32>
    %331 = arith.cmpf oeq, %330, %0 : vector<1x128xf32>
    %332 = vector.extract_strided_slice %329 {offsets = [0, 0], sizes = [16, 128], strides = [1, 1]} : vector<18x128xf32> to vector<16x128xf32>
    %333 = arith.cmpf ogt, %332, %107 : vector<16x128xf32>
    %334 = vector.extract_strided_slice %329 {offsets = [0, 0], sizes = [16, 128], strides = [1, 1]} : vector<18x128xf32> to vector<16x128xf32>
    %335 = arith.cmpf oeq, %334, %107 : vector<16x128xf32>
    %336 = vector.extract_strided_slice %329 {offsets = [17, 0], sizes = [1, 128], strides = [1, 1]} : vector<18x128xf32> to vector<1x128xf32>
    %337 = arith.cmpf olt, %336, %1 : vector<1x128xf32>
    %338 = vector.broadcast %337 : vector<1x128xi1> to vector<16x128xi1>
    %339 = arith.andi %335, %338 : vector<16x128xi1>
    %340 = arith.ori %333, %339 : vector<16x128xi1>
    %341 = vector.broadcast %331 : vector<1x128xi1> to vector<16x128xi1>
    %342 = arith.andi %341, %340 : vector<16x128xi1>
    %343 = arith.extui %342 : vector<16x128xi1> to vector<16x128xi32>
    %344 = arith.sitofp %343 : vector<16x128xi32> to vector<16x128xf32>
    %345 = arith.addf %328, %344 : vector<16x128xf32>
    %c12_i32 = arith.constant 12 : i32
    %346 = tpu.dynamic_rotate %157 by %c12_i32 dim 1 : vector<18x128xf32>, i32 -> vector<18x128xf32>
    %347 = vector.extract_strided_slice %346 {offsets = [16, 0], sizes = [1, 128], strides = [1, 1]} : vector<18x128xf32> to vector<1x128xf32>
    %348 = arith.cmpf oeq, %347, %0 : vector<1x128xf32>
    %349 = vector.extract_strided_slice %346 {offsets = [0, 0], sizes = [16, 128], strides = [1, 1]} : vector<18x128xf32> to vector<16x128xf32>
    %350 = arith.cmpf ogt, %349, %107 : vector<16x128xf32>
    %351 = vector.extract_strided_slice %346 {offsets = [0, 0], sizes = [16, 128], strides = [1, 1]} : vector<18x128xf32> to vector<16x128xf32>
    %352 = arith.cmpf oeq, %351, %107 : vector<16x128xf32>
    %353 = vector.extract_strided_slice %346 {offsets = [17, 0], sizes = [1, 128], strides = [1, 1]} : vector<18x128xf32> to vector<1x128xf32>
    %354 = arith.cmpf olt, %353, %1 : vector<1x128xf32>
    %355 = vector.broadcast %354 : vector<1x128xi1> to vector<16x128xi1>
    %356 = arith.andi %352, %355 : vector<16x128xi1>
    %357 = arith.ori %350, %356 : vector<16x128xi1>
    %358 = vector.broadcast %348 : vector<1x128xi1> to vector<16x128xi1>
    %359 = arith.andi %358, %357 : vector<16x128xi1>
    %360 = arith.extui %359 : vector<16x128xi1> to vector<16x128xi32>
    %361 = arith.sitofp %360 : vector<16x128xi32> to vector<16x128xf32>
    %362 = arith.addf %345, %361 : vector<16x128xf32>
    %c13_i32 = arith.constant 13 : i32
    %363 = tpu.dynamic_rotate %157 by %c13_i32 dim 1 : vector<18x128xf32>, i32 -> vector<18x128xf32>
    %364 = vector.extract_strided_slice %363 {offsets = [16, 0], sizes = [1, 128], strides = [1, 1]} : vector<18x128xf32> to vector<1x128xf32>
    %365 = arith.cmpf oeq, %364, %0 : vector<1x128xf32>
    %366 = vector.extract_strided_slice %363 {offsets = [0, 0], sizes = [16, 128], strides = [1, 1]} : vector<18x128xf32> to vector<16x128xf32>
    %367 = arith.cmpf ogt, %366, %107 : vector<16x128xf32>
    %368 = vector.extract_strided_slice %363 {offsets = [0, 0], sizes = [16, 128], strides = [1, 1]} : vector<18x128xf32> to vector<16x128xf32>
    %369 = arith.cmpf oeq, %368, %107 : vector<16x128xf32>
    %370 = vector.extract_strided_slice %363 {offsets = [17, 0], sizes = [1, 128], strides = [1, 1]} : vector<18x128xf32> to vector<1x128xf32>
    %371 = arith.cmpf olt, %370, %1 : vector<1x128xf32>
    %372 = vector.broadcast %371 : vector<1x128xi1> to vector<16x128xi1>
    %373 = arith.andi %369, %372 : vector<16x128xi1>
    %374 = arith.ori %367, %373 : vector<16x128xi1>
    %375 = vector.broadcast %365 : vector<1x128xi1> to vector<16x128xi1>
    %376 = arith.andi %375, %374 : vector<16x128xi1>
    %377 = arith.extui %376 : vector<16x128xi1> to vector<16x128xi32>
    %378 = arith.sitofp %377 : vector<16x128xi32> to vector<16x128xf32>
    %379 = arith.addf %362, %378 : vector<16x128xf32>
    %c14_i32 = arith.constant 14 : i32
    %380 = tpu.dynamic_rotate %157 by %c14_i32 dim 1 : vector<18x128xf32>, i32 -> vector<18x128xf32>
    %381 = vector.extract_strided_slice %380 {offsets = [16, 0], sizes = [1, 128], strides = [1, 1]} : vector<18x128xf32> to vector<1x128xf32>
    %382 = arith.cmpf oeq, %381, %0 : vector<1x128xf32>
    %383 = vector.extract_strided_slice %380 {offsets = [0, 0], sizes = [16, 128], strides = [1, 1]} : vector<18x128xf32> to vector<16x128xf32>
    %384 = arith.cmpf ogt, %383, %107 : vector<16x128xf32>
    %385 = vector.extract_strided_slice %380 {offsets = [0, 0], sizes = [16, 128], strides = [1, 1]} : vector<18x128xf32> to vector<16x128xf32>
    %386 = arith.cmpf oeq, %385, %107 : vector<16x128xf32>
    %387 = vector.extract_strided_slice %380 {offsets = [17, 0], sizes = [1, 128], strides = [1, 1]} : vector<18x128xf32> to vector<1x128xf32>
    %388 = arith.cmpf olt, %387, %1 : vector<1x128xf32>
    %389 = vector.broadcast %388 : vector<1x128xi1> to vector<16x128xi1>
    %390 = arith.andi %386, %389 : vector<16x128xi1>
    %391 = arith.ori %384, %390 : vector<16x128xi1>
    %392 = vector.broadcast %382 : vector<1x128xi1> to vector<16x128xi1>
    %393 = arith.andi %392, %391 : vector<16x128xi1>
    %394 = arith.extui %393 : vector<16x128xi1> to vector<16x128xi32>
    %395 = arith.sitofp %394 : vector<16x128xi32> to vector<16x128xf32>
    %396 = arith.addf %379, %395 : vector<16x128xf32>
    %c15_i32 = arith.constant 15 : i32
    %397 = tpu.dynamic_rotate %157 by %c15_i32 dim 1 : vector<18x128xf32>, i32 -> vector<18x128xf32>
    %398 = vector.extract_strided_slice %397 {offsets = [16, 0], sizes = [1, 128], strides = [1, 1]} : vector<18x128xf32> to vector<1x128xf32>
    %399 = arith.cmpf oeq, %398, %0 : vector<1x128xf32>
    %400 = vector.extract_strided_slice %397 {offsets = [0, 0], sizes = [16, 128], strides = [1, 1]} : vector<18x128xf32> to vector<16x128xf32>
    %401 = arith.cmpf ogt, %400, %107 : vector<16x128xf32>
    %402 = vector.extract_strided_slice %397 {offsets = [0, 0], sizes = [16, 128], strides = [1, 1]} : vector<18x128xf32> to vector<16x128xf32>
    %403 = arith.cmpf oeq, %402, %107 : vector<16x128xf32>
    %404 = vector.extract_strided_slice %397 {offsets = [17, 0], sizes = [1, 128], strides = [1, 1]} : vector<18x128xf32> to vector<1x128xf32>
    %405 = arith.cmpf olt, %404, %1 : vector<1x128xf32>
    %406 = vector.broadcast %405 : vector<1x128xi1> to vector<16x128xi1>
    %407 = arith.andi %403, %406 : vector<16x128xi1>
    %408 = arith.ori %401, %407 : vector<16x128xi1>
    %409 = vector.broadcast %399 : vector<1x128xi1> to vector<16x128xi1>
    %410 = arith.andi %409, %408 : vector<16x128xi1>
    %411 = arith.extui %410 : vector<16x128xi1> to vector<16x128xi32>
    %412 = arith.sitofp %411 : vector<16x128xi32> to vector<16x128xf32>
    %413 = arith.addf %396, %412 : vector<16x128xf32>
    %c113_i32_54 = arith.constant 113 : i32
    %414 = tpu.dynamic_rotate %157 by %c113_i32_54 dim 1 : vector<18x128xf32>, i32 -> vector<18x128xf32>
    %415 = vector.extract_strided_slice %414 {offsets = [16, 0], sizes = [1, 128], strides = [1, 1]} : vector<18x128xf32> to vector<1x128xf32>
    %416 = arith.cmpf oeq, %415, %0 : vector<1x128xf32>
    %417 = vector.extract_strided_slice %414 {offsets = [0, 0], sizes = [16, 128], strides = [1, 1]} : vector<18x128xf32> to vector<16x128xf32>
    %418 = arith.cmpf ogt, %417, %107 : vector<16x128xf32>
    %419 = vector.extract_strided_slice %414 {offsets = [0, 0], sizes = [16, 128], strides = [1, 1]} : vector<18x128xf32> to vector<16x128xf32>
    %420 = arith.cmpf oeq, %419, %107 : vector<16x128xf32>
    %421 = vector.extract_strided_slice %414 {offsets = [17, 0], sizes = [1, 128], strides = [1, 1]} : vector<18x128xf32> to vector<1x128xf32>
    %422 = arith.cmpf olt, %421, %1 : vector<1x128xf32>
    %423 = vector.broadcast %422 : vector<1x128xi1> to vector<16x128xi1>
    %424 = arith.andi %420, %423 : vector<16x128xi1>
    %425 = arith.ori %418, %424 : vector<16x128xi1>
    %426 = vector.broadcast %416 : vector<1x128xi1> to vector<16x128xi1>
    %427 = arith.andi %426, %425 : vector<16x128xi1>
    %428 = arith.extui %427 : vector<16x128xi1> to vector<16x128xi32>
    %429 = arith.sitofp %428 : vector<16x128xi32> to vector<16x128xf32>
    %430 = arith.addf %413, %429 : vector<16x128xf32>
    %c114_i32_55 = arith.constant 114 : i32
    %431 = tpu.dynamic_rotate %157 by %c114_i32_55 dim 1 : vector<18x128xf32>, i32 -> vector<18x128xf32>
    %432 = vector.extract_strided_slice %431 {offsets = [16, 0], sizes = [1, 128], strides = [1, 1]} : vector<18x128xf32> to vector<1x128xf32>
    %433 = arith.cmpf oeq, %432, %0 : vector<1x128xf32>
    %434 = vector.extract_strided_slice %431 {offsets = [0, 0], sizes = [16, 128], strides = [1, 1]} : vector<18x128xf32> to vector<16x128xf32>
    %435 = arith.cmpf ogt, %434, %107 : vector<16x128xf32>
    %436 = vector.extract_strided_slice %431 {offsets = [0, 0], sizes = [16, 128], strides = [1, 1]} : vector<18x128xf32> to vector<16x128xf32>
    %437 = arith.cmpf oeq, %436, %107 : vector<16x128xf32>
    %438 = vector.extract_strided_slice %431 {offsets = [17, 0], sizes = [1, 128], strides = [1, 1]} : vector<18x128xf32> to vector<1x128xf32>
    %439 = arith.cmpf olt, %438, %1 : vector<1x128xf32>
    %440 = vector.broadcast %439 : vector<1x128xi1> to vector<16x128xi1>
    %441 = arith.andi %437, %440 : vector<16x128xi1>
    %442 = arith.ori %435, %441 : vector<16x128xi1>
    %443 = vector.broadcast %433 : vector<1x128xi1> to vector<16x128xi1>
    %444 = arith.andi %443, %442 : vector<16x128xi1>
    %445 = arith.extui %444 : vector<16x128xi1> to vector<16x128xi32>
    %446 = arith.sitofp %445 : vector<16x128xi32> to vector<16x128xf32>
    %447 = arith.addf %430, %446 : vector<16x128xf32>
    %c115_i32 = arith.constant 115 : i32
    %448 = tpu.dynamic_rotate %157 by %c115_i32 dim 1 : vector<18x128xf32>, i32 -> vector<18x128xf32>
    %449 = vector.extract_strided_slice %448 {offsets = [16, 0], sizes = [1, 128], strides = [1, 1]} : vector<18x128xf32> to vector<1x128xf32>
    %450 = arith.cmpf oeq, %449, %0 : vector<1x128xf32>
    %451 = vector.extract_strided_slice %448 {offsets = [0, 0], sizes = [16, 128], strides = [1, 1]} : vector<18x128xf32> to vector<16x128xf32>
    %452 = arith.cmpf ogt, %451, %107 : vector<16x128xf32>
    %453 = vector.extract_strided_slice %448 {offsets = [0, 0], sizes = [16, 128], strides = [1, 1]} : vector<18x128xf32> to vector<16x128xf32>
    %454 = arith.cmpf oeq, %453, %107 : vector<16x128xf32>
    %455 = vector.extract_strided_slice %448 {offsets = [17, 0], sizes = [1, 128], strides = [1, 1]} : vector<18x128xf32> to vector<1x128xf32>
    %456 = arith.cmpf olt, %455, %1 : vector<1x128xf32>
    %457 = vector.broadcast %456 : vector<1x128xi1> to vector<16x128xi1>
    %458 = arith.andi %454, %457 : vector<16x128xi1>
    %459 = arith.ori %452, %458 : vector<16x128xi1>
    %460 = vector.broadcast %450 : vector<1x128xi1> to vector<16x128xi1>
    %461 = arith.andi %460, %459 : vector<16x128xi1>
    %462 = arith.extui %461 : vector<16x128xi1> to vector<16x128xi32>
    %463 = arith.sitofp %462 : vector<16x128xi32> to vector<16x128xf32>
    %464 = arith.addf %447, %463 : vector<16x128xf32>
    %c116_i32_56 = arith.constant 116 : i32
    %465 = tpu.dynamic_rotate %157 by %c116_i32_56 dim 1 : vector<18x128xf32>, i32 -> vector<18x128xf32>
    %466 = vector.extract_strided_slice %465 {offsets = [16, 0], sizes = [1, 128], strides = [1, 1]} : vector<18x128xf32> to vector<1x128xf32>
    %467 = arith.cmpf oeq, %466, %0 : vector<1x128xf32>
    %468 = vector.extract_strided_slice %465 {offsets = [0, 0], sizes = [16, 128], strides = [1, 1]} : vector<18x128xf32> to vector<16x128xf32>
    %469 = arith.cmpf ogt, %468, %107 : vector<16x128xf32>
    %470 = vector.extract_strided_slice %465 {offsets = [0, 0], sizes = [16, 128], strides = [1, 1]} : vector<18x128xf32> to vector<16x128xf32>
    %471 = arith.cmpf oeq, %470, %107 : vector<16x128xf32>
    %472 = vector.extract_strided_slice %465 {offsets = [17, 0], sizes = [1, 128], strides = [1, 1]} : vector<18x128xf32> to vector<1x128xf32>
    %473 = arith.cmpf olt, %472, %1 : vector<1x128xf32>
    %474 = vector.broadcast %473 : vector<1x128xi1> to vector<16x128xi1>
    %475 = arith.andi %471, %474 : vector<16x128xi1>
    %476 = arith.ori %469, %475 : vector<16x128xi1>
    %477 = vector.broadcast %467 : vector<1x128xi1> to vector<16x128xi1>
    %478 = arith.andi %477, %476 : vector<16x128xi1>
    %479 = arith.extui %478 : vector<16x128xi1> to vector<16x128xi32>
    %480 = arith.sitofp %479 : vector<16x128xi32> to vector<16x128xf32>
    %481 = arith.addf %464, %480 : vector<16x128xf32>
    %c117_i32 = arith.constant 117 : i32
    %482 = tpu.dynamic_rotate %157 by %c117_i32 dim 1 : vector<18x128xf32>, i32 -> vector<18x128xf32>
    %483 = vector.extract_strided_slice %482 {offsets = [16, 0], sizes = [1, 128], strides = [1, 1]} : vector<18x128xf32> to vector<1x128xf32>
    %484 = arith.cmpf oeq, %483, %0 : vector<1x128xf32>
    %485 = vector.extract_strided_slice %482 {offsets = [0, 0], sizes = [16, 128], strides = [1, 1]} : vector<18x128xf32> to vector<16x128xf32>
    %486 = arith.cmpf ogt, %485, %107 : vector<16x128xf32>
    %487 = vector.extract_strided_slice %482 {offsets = [0, 0], sizes = [16, 128], strides = [1, 1]} : vector<18x128xf32> to vector<16x128xf32>
    %488 = arith.cmpf oeq, %487, %107 : vector<16x128xf32>
    %489 = vector.extract_strided_slice %482 {offsets = [17, 0], sizes = [1, 128], strides = [1, 1]} : vector<18x128xf32> to vector<1x128xf32>
    %490 = arith.cmpf olt, %489, %1 : vector<1x128xf32>
    %491 = vector.broadcast %490 : vector<1x128xi1> to vector<16x128xi1>
    %492 = arith.andi %488, %491 : vector<16x128xi1>
    %493 = arith.ori %486, %492 : vector<16x128xi1>
    %494 = vector.broadcast %484 : vector<1x128xi1> to vector<16x128xi1>
    %495 = arith.andi %494, %493 : vector<16x128xi1>
    %496 = arith.extui %495 : vector<16x128xi1> to vector<16x128xi32>
    %497 = arith.sitofp %496 : vector<16x128xi32> to vector<16x128xf32>
    %498 = arith.addf %481, %497 : vector<16x128xf32>
    %c118_i32 = arith.constant 118 : i32
    %499 = tpu.dynamic_rotate %157 by %c118_i32 dim 1 : vector<18x128xf32>, i32 -> vector<18x128xf32>
    %500 = vector.extract_strided_slice %499 {offsets = [16, 0], sizes = [1, 128], strides = [1, 1]} : vector<18x128xf32> to vector<1x128xf32>
    %501 = arith.cmpf oeq, %500, %0 : vector<1x128xf32>
    %502 = vector.extract_strided_slice %499 {offsets = [0, 0], sizes = [16, 128], strides = [1, 1]} : vector<18x128xf32> to vector<16x128xf32>
    %503 = arith.cmpf ogt, %502, %107 : vector<16x128xf32>
    %504 = vector.extract_strided_slice %499 {offsets = [0, 0], sizes = [16, 128], strides = [1, 1]} : vector<18x128xf32> to vector<16x128xf32>
    %505 = arith.cmpf oeq, %504, %107 : vector<16x128xf32>
    %506 = vector.extract_strided_slice %499 {offsets = [17, 0], sizes = [1, 128], strides = [1, 1]} : vector<18x128xf32> to vector<1x128xf32>
    %507 = arith.cmpf olt, %506, %1 : vector<1x128xf32>
    %508 = vector.broadcast %507 : vector<1x128xi1> to vector<16x128xi1>
    %509 = arith.andi %505, %508 : vector<16x128xi1>
    %510 = arith.ori %503, %509 : vector<16x128xi1>
    %511 = vector.broadcast %501 : vector<1x128xi1> to vector<16x128xi1>
    %512 = arith.andi %511, %510 : vector<16x128xi1>
    %513 = arith.extui %512 : vector<16x128xi1> to vector<16x128xi32>
    %514 = arith.sitofp %513 : vector<16x128xi32> to vector<16x128xf32>
    %515 = arith.addf %498, %514 : vector<16x128xf32>
    %c119_i32 = arith.constant 119 : i32
    %516 = tpu.dynamic_rotate %157 by %c119_i32 dim 1 : vector<18x128xf32>, i32 -> vector<18x128xf32>
    %517 = vector.extract_strided_slice %516 {offsets = [16, 0], sizes = [1, 128], strides = [1, 1]} : vector<18x128xf32> to vector<1x128xf32>
    %518 = arith.cmpf oeq, %517, %0 : vector<1x128xf32>
    %519 = vector.extract_strided_slice %516 {offsets = [0, 0], sizes = [16, 128], strides = [1, 1]} : vector<18x128xf32> to vector<16x128xf32>
    %520 = arith.cmpf ogt, %519, %107 : vector<16x128xf32>
    %521 = vector.extract_strided_slice %516 {offsets = [0, 0], sizes = [16, 128], strides = [1, 1]} : vector<18x128xf32> to vector<16x128xf32>
    %522 = arith.cmpf oeq, %521, %107 : vector<16x128xf32>
    %523 = vector.extract_strided_slice %516 {offsets = [17, 0], sizes = [1, 128], strides = [1, 1]} : vector<18x128xf32> to vector<1x128xf32>
    %524 = arith.cmpf olt, %523, %1 : vector<1x128xf32>
    %525 = vector.broadcast %524 : vector<1x128xi1> to vector<16x128xi1>
    %526 = arith.andi %522, %525 : vector<16x128xi1>
    %527 = arith.ori %520, %526 : vector<16x128xi1>
    %528 = vector.broadcast %518 : vector<1x128xi1> to vector<16x128xi1>
    %529 = arith.andi %528, %527 : vector<16x128xi1>
    %530 = arith.extui %529 : vector<16x128xi1> to vector<16x128xi32>
    %531 = arith.sitofp %530 : vector<16x128xi32> to vector<16x128xf32>
    %532 = arith.addf %515, %531 : vector<16x128xf32>
    %c120_i32_57 = arith.constant 120 : i32
    %533 = tpu.dynamic_rotate %157 by %c120_i32_57 dim 1 : vector<18x128xf32>, i32 -> vector<18x128xf32>
    %534 = vector.extract_strided_slice %533 {offsets = [16, 0], sizes = [1, 128], strides = [1, 1]} : vector<18x128xf32> to vector<1x128xf32>
    %535 = arith.cmpf oeq, %534, %0 : vector<1x128xf32>
    %536 = vector.extract_strided_slice %533 {offsets = [0, 0], sizes = [16, 128], strides = [1, 1]} : vector<18x128xf32> to vector<16x128xf32>
    %537 = arith.cmpf ogt, %536, %107 : vector<16x128xf32>
    %538 = vector.extract_strided_slice %533 {offsets = [0, 0], sizes = [16, 128], strides = [1, 1]} : vector<18x128xf32> to vector<16x128xf32>
    %539 = arith.cmpf oeq, %538, %107 : vector<16x128xf32>
    %540 = vector.extract_strided_slice %533 {offsets = [17, 0], sizes = [1, 128], strides = [1, 1]} : vector<18x128xf32> to vector<1x128xf32>
    %541 = arith.cmpf olt, %540, %1 : vector<1x128xf32>
    %542 = vector.broadcast %541 : vector<1x128xi1> to vector<16x128xi1>
    %543 = arith.andi %539, %542 : vector<16x128xi1>
    %544 = arith.ori %537, %543 : vector<16x128xi1>
    %545 = vector.broadcast %535 : vector<1x128xi1> to vector<16x128xi1>
    %546 = arith.andi %545, %544 : vector<16x128xi1>
    %547 = arith.extui %546 : vector<16x128xi1> to vector<16x128xi32>
    %548 = arith.sitofp %547 : vector<16x128xi32> to vector<16x128xf32>
    %549 = arith.addf %532, %548 : vector<16x128xf32>
    %c121_i32 = arith.constant 121 : i32
    %550 = tpu.dynamic_rotate %157 by %c121_i32 dim 1 : vector<18x128xf32>, i32 -> vector<18x128xf32>
    %551 = vector.extract_strided_slice %550 {offsets = [16, 0], sizes = [1, 128], strides = [1, 1]} : vector<18x128xf32> to vector<1x128xf32>
    %552 = arith.cmpf oeq, %551, %0 : vector<1x128xf32>
    %553 = vector.extract_strided_slice %550 {offsets = [0, 0], sizes = [16, 128], strides = [1, 1]} : vector<18x128xf32> to vector<16x128xf32>
    %554 = arith.cmpf ogt, %553, %107 : vector<16x128xf32>
    %555 = vector.extract_strided_slice %550 {offsets = [0, 0], sizes = [16, 128], strides = [1, 1]} : vector<18x128xf32> to vector<16x128xf32>
    %556 = arith.cmpf oeq, %555, %107 : vector<16x128xf32>
    %557 = vector.extract_strided_slice %550 {offsets = [17, 0], sizes = [1, 128], strides = [1, 1]} : vector<18x128xf32> to vector<1x128xf32>
    %558 = arith.cmpf olt, %557, %1 : vector<1x128xf32>
    %559 = vector.broadcast %558 : vector<1x128xi1> to vector<16x128xi1>
    %560 = arith.andi %556, %559 : vector<16x128xi1>
    %561 = arith.ori %554, %560 : vector<16x128xi1>
    %562 = vector.broadcast %552 : vector<1x128xi1> to vector<16x128xi1>
    %563 = arith.andi %562, %561 : vector<16x128xi1>
    %564 = arith.extui %563 : vector<16x128xi1> to vector<16x128xi32>
    %565 = arith.sitofp %564 : vector<16x128xi32> to vector<16x128xf32>
    %566 = arith.addf %549, %565 : vector<16x128xf32>
    %c122_i32 = arith.constant 122 : i32
    %567 = tpu.dynamic_rotate %157 by %c122_i32 dim 1 : vector<18x128xf32>, i32 -> vector<18x128xf32>
    %568 = vector.extract_strided_slice %567 {offsets = [16, 0], sizes = [1, 128], strides = [1, 1]} : vector<18x128xf32> to vector<1x128xf32>
    %569 = arith.cmpf oeq, %568, %0 : vector<1x128xf32>
    %570 = vector.extract_strided_slice %567 {offsets = [0, 0], sizes = [16, 128], strides = [1, 1]} : vector<18x128xf32> to vector<16x128xf32>
    %571 = arith.cmpf ogt, %570, %107 : vector<16x128xf32>
    %572 = vector.extract_strided_slice %567 {offsets = [0, 0], sizes = [16, 128], strides = [1, 1]} : vector<18x128xf32> to vector<16x128xf32>
    %573 = arith.cmpf oeq, %572, %107 : vector<16x128xf32>
    %574 = vector.extract_strided_slice %567 {offsets = [17, 0], sizes = [1, 128], strides = [1, 1]} : vector<18x128xf32> to vector<1x128xf32>
    %575 = arith.cmpf olt, %574, %1 : vector<1x128xf32>
    %576 = vector.broadcast %575 : vector<1x128xi1> to vector<16x128xi1>
    %577 = arith.andi %573, %576 : vector<16x128xi1>
    %578 = arith.ori %571, %577 : vector<16x128xi1>
    %579 = vector.broadcast %569 : vector<1x128xi1> to vector<16x128xi1>
    %580 = arith.andi %579, %578 : vector<16x128xi1>
    %581 = arith.extui %580 : vector<16x128xi1> to vector<16x128xi32>
    %582 = arith.sitofp %581 : vector<16x128xi32> to vector<16x128xf32>
    %583 = arith.addf %566, %582 : vector<16x128xf32>
    %c123_i32 = arith.constant 123 : i32
    %584 = tpu.dynamic_rotate %157 by %c123_i32 dim 1 : vector<18x128xf32>, i32 -> vector<18x128xf32>
    %585 = vector.extract_strided_slice %584 {offsets = [16, 0], sizes = [1, 128], strides = [1, 1]} : vector<18x128xf32> to vector<1x128xf32>
    %586 = arith.cmpf oeq, %585, %0 : vector<1x128xf32>
    %587 = vector.extract_strided_slice %584 {offsets = [0, 0], sizes = [16, 128], strides = [1, 1]} : vector<18x128xf32> to vector<16x128xf32>
    %588 = arith.cmpf ogt, %587, %107 : vector<16x128xf32>
    %589 = vector.extract_strided_slice %584 {offsets = [0, 0], sizes = [16, 128], strides = [1, 1]} : vector<18x128xf32> to vector<16x128xf32>
    %590 = arith.cmpf oeq, %589, %107 : vector<16x128xf32>
    %591 = vector.extract_strided_slice %584 {offsets = [17, 0], sizes = [1, 128], strides = [1, 1]} : vector<18x128xf32> to vector<1x128xf32>
    %592 = arith.cmpf olt, %591, %1 : vector<1x128xf32>
    %593 = vector.broadcast %592 : vector<1x128xi1> to vector<16x128xi1>
    %594 = arith.andi %590, %593 : vector<16x128xi1>
    %595 = arith.ori %588, %594 : vector<16x128xi1>
    %596 = vector.broadcast %586 : vector<1x128xi1> to vector<16x128xi1>
    %597 = arith.andi %596, %595 : vector<16x128xi1>
    %598 = arith.extui %597 : vector<16x128xi1> to vector<16x128xi32>
    %599 = arith.sitofp %598 : vector<16x128xi32> to vector<16x128xf32>
    %600 = arith.addf %583, %599 : vector<16x128xf32>
    %c124_i32 = arith.constant 124 : i32
    %601 = tpu.dynamic_rotate %157 by %c124_i32 dim 1 : vector<18x128xf32>, i32 -> vector<18x128xf32>
    %602 = vector.extract_strided_slice %601 {offsets = [16, 0], sizes = [1, 128], strides = [1, 1]} : vector<18x128xf32> to vector<1x128xf32>
    %603 = arith.cmpf oeq, %602, %0 : vector<1x128xf32>
    %604 = vector.extract_strided_slice %601 {offsets = [0, 0], sizes = [16, 128], strides = [1, 1]} : vector<18x128xf32> to vector<16x128xf32>
    %605 = arith.cmpf ogt, %604, %107 : vector<16x128xf32>
    %606 = vector.extract_strided_slice %601 {offsets = [0, 0], sizes = [16, 128], strides = [1, 1]} : vector<18x128xf32> to vector<16x128xf32>
    %607 = arith.cmpf oeq, %606, %107 : vector<16x128xf32>
    %608 = vector.extract_strided_slice %601 {offsets = [17, 0], sizes = [1, 128], strides = [1, 1]} : vector<18x128xf32> to vector<1x128xf32>
    %609 = arith.cmpf olt, %608, %1 : vector<1x128xf32>
    %610 = vector.broadcast %609 : vector<1x128xi1> to vector<16x128xi1>
    %611 = arith.andi %607, %610 : vector<16x128xi1>
    %612 = arith.ori %605, %611 : vector<16x128xi1>
    %613 = vector.broadcast %603 : vector<1x128xi1> to vector<16x128xi1>
    %614 = arith.andi %613, %612 : vector<16x128xi1>
    %615 = arith.extui %614 : vector<16x128xi1> to vector<16x128xi32>
    %616 = arith.sitofp %615 : vector<16x128xi32> to vector<16x128xf32>
    %617 = arith.addf %600, %616 : vector<16x128xf32>
    %c125_i32 = arith.constant 125 : i32
    %618 = tpu.dynamic_rotate %157 by %c125_i32 dim 1 : vector<18x128xf32>, i32 -> vector<18x128xf32>
    %619 = vector.extract_strided_slice %618 {offsets = [16, 0], sizes = [1, 128], strides = [1, 1]} : vector<18x128xf32> to vector<1x128xf32>
    %620 = arith.cmpf oeq, %619, %0 : vector<1x128xf32>
    %621 = vector.extract_strided_slice %618 {offsets = [0, 0], sizes = [16, 128], strides = [1, 1]} : vector<18x128xf32> to vector<16x128xf32>
    %622 = arith.cmpf ogt, %621, %107 : vector<16x128xf32>
    %623 = vector.extract_strided_slice %618 {offsets = [0, 0], sizes = [16, 128], strides = [1, 1]} : vector<18x128xf32> to vector<16x128xf32>
    %624 = arith.cmpf oeq, %623, %107 : vector<16x128xf32>
    %625 = vector.extract_strided_slice %618 {offsets = [17, 0], sizes = [1, 128], strides = [1, 1]} : vector<18x128xf32> to vector<1x128xf32>
    %626 = arith.cmpf olt, %625, %1 : vector<1x128xf32>
    %627 = vector.broadcast %626 : vector<1x128xi1> to vector<16x128xi1>
    %628 = arith.andi %624, %627 : vector<16x128xi1>
    %629 = arith.ori %622, %628 : vector<16x128xi1>
    %630 = vector.broadcast %620 : vector<1x128xi1> to vector<16x128xi1>
    %631 = arith.andi %630, %629 : vector<16x128xi1>
    %632 = arith.extui %631 : vector<16x128xi1> to vector<16x128xi32>
    %633 = arith.sitofp %632 : vector<16x128xi32> to vector<16x128xf32>
    %634 = arith.addf %617, %633 : vector<16x128xf32>
    %c126_i32 = arith.constant 126 : i32
    %635 = tpu.dynamic_rotate %157 by %c126_i32 dim 1 : vector<18x128xf32>, i32 -> vector<18x128xf32>
    %636 = vector.extract_strided_slice %635 {offsets = [16, 0], sizes = [1, 128], strides = [1, 1]} : vector<18x128xf32> to vector<1x128xf32>
    %637 = arith.cmpf oeq, %636, %0 : vector<1x128xf32>
    %638 = vector.extract_strided_slice %635 {offsets = [0, 0], sizes = [16, 128], strides = [1, 1]} : vector<18x128xf32> to vector<16x128xf32>
    %639 = arith.cmpf ogt, %638, %107 : vector<16x128xf32>
    %640 = vector.extract_strided_slice %635 {offsets = [0, 0], sizes = [16, 128], strides = [1, 1]} : vector<18x128xf32> to vector<16x128xf32>
    %641 = arith.cmpf oeq, %640, %107 : vector<16x128xf32>
    %642 = vector.extract_strided_slice %635 {offsets = [17, 0], sizes = [1, 128], strides = [1, 1]} : vector<18x128xf32> to vector<1x128xf32>
    %643 = arith.cmpf olt, %642, %1 : vector<1x128xf32>
    %644 = vector.broadcast %643 : vector<1x128xi1> to vector<16x128xi1>
    %645 = arith.andi %641, %644 : vector<16x128xi1>
    %646 = arith.ori %639, %645 : vector<16x128xi1>
    %647 = vector.broadcast %637 : vector<1x128xi1> to vector<16x128xi1>
    %648 = arith.andi %647, %646 : vector<16x128xi1>
    %649 = arith.extui %648 : vector<16x128xi1> to vector<16x128xi32>
    %650 = arith.sitofp %649 : vector<16x128xi32> to vector<16x128xf32>
    %651 = arith.addf %634, %650 : vector<16x128xf32>
    %c127_i32 = arith.constant 127 : i32
    %652 = tpu.dynamic_rotate %157 by %c127_i32 dim 1 : vector<18x128xf32>, i32 -> vector<18x128xf32>
    %653 = vector.extract_strided_slice %652 {offsets = [16, 0], sizes = [1, 128], strides = [1, 1]} : vector<18x128xf32> to vector<1x128xf32>
    %654 = arith.cmpf oeq, %653, %0 : vector<1x128xf32>
    %655 = vector.extract_strided_slice %652 {offsets = [0, 0], sizes = [16, 128], strides = [1, 1]} : vector<18x128xf32> to vector<16x128xf32>
    %656 = arith.cmpf ogt, %655, %107 : vector<16x128xf32>
    %657 = vector.extract_strided_slice %652 {offsets = [0, 0], sizes = [16, 128], strides = [1, 1]} : vector<18x128xf32> to vector<16x128xf32>
    %658 = arith.cmpf oeq, %657, %107 : vector<16x128xf32>
    %659 = vector.extract_strided_slice %652 {offsets = [17, 0], sizes = [1, 128], strides = [1, 1]} : vector<18x128xf32> to vector<1x128xf32>
    %660 = arith.cmpf olt, %659, %1 : vector<1x128xf32>
    %661 = vector.broadcast %660 : vector<1x128xi1> to vector<16x128xi1>
    %662 = arith.andi %658, %661 : vector<16x128xi1>
    %663 = arith.ori %656, %662 : vector<16x128xi1>
    %664 = vector.broadcast %654 : vector<1x128xi1> to vector<16x128xi1>
    %665 = arith.andi %664, %663 : vector<16x128xi1>
    %666 = arith.extui %665 : vector<16x128xi1> to vector<16x128xi32>
    %667 = arith.sitofp %666 : vector<16x128xi32> to vector<16x128xf32>
    %668 = arith.addf %651, %667 : vector<16x128xf32>
    %cst_58 = arith.constant 4.000000e+00 : f32
    %669 = vector.broadcast %cst_58 : f32 to vector<16x128xf32>
    %670 = arith.cmpf olt, %668, %669 : vector<16x128xf32>
    %cst_59 = arith.constant -1.000000e+30 : f32
    %671 = vector.broadcast %cst_59 : f32 to vector<16x128xf32>
    %672 = arith.select %670, %107, %671 : vector<16x128xi1>, vector<16x128xf32>
    %673 = tpu.concatenate %107, %0 in 0 : vector<16x128xf32>, vector<1x128xf32> -> vector<17x128xf32>
    %c1_i32_60 = arith.constant 1 : i32
    %674 = tpu.dynamic_rotate %673 by %c1_i32_60 dim 1 : vector<17x128xf32>, i32 -> vector<17x128xf32>
    %c113_i32_61 = arith.constant 113 : i32
    %675 = tpu.dynamic_rotate %673 by %c113_i32_61 dim 1 : vector<17x128xf32>, i32 -> vector<17x128xf32>
    %676 = vector.extract_strided_slice %674 {offsets = [16, 0], sizes = [1, 128], strides = [1, 1]} : vector<17x128xf32> to vector<1x128xf32>
    %677 = arith.cmpf oeq, %676, %0 : vector<1x128xf32>
    %678 = vector.extract_strided_slice %674 {offsets = [0, 0], sizes = [16, 128], strides = [1, 1]} : vector<17x128xf32> to vector<16x128xf32>
    %679 = vector.extract_strided_slice %675 {offsets = [0, 0], sizes = [16, 128], strides = [1, 1]} : vector<17x128xf32> to vector<16x128xf32>
    %680 = vector.shape_cast %677 : vector<1x128xi1> to vector<1x128xi1>
    %681 = vector.broadcast %680 : vector<1x128xi1> to vector<16x128xi1>
    %682 = arith.select %681, %678, %679 : vector<16x128xi1>, vector<16x128xf32>
    %683 = arith.maximumf %107, %682 : vector<16x128xf32>
    %684 = tpu.concatenate %683, %0 in 0 : vector<16x128xf32>, vector<1x128xf32> -> vector<17x128xf32>
    %c2_i32_62 = arith.constant 2 : i32
    %685 = tpu.dynamic_rotate %684 by %c2_i32_62 dim 1 : vector<17x128xf32>, i32 -> vector<17x128xf32>
    %c114_i32_63 = arith.constant 114 : i32
    %686 = tpu.dynamic_rotate %684 by %c114_i32_63 dim 1 : vector<17x128xf32>, i32 -> vector<17x128xf32>
    %687 = vector.extract_strided_slice %685 {offsets = [16, 0], sizes = [1, 128], strides = [1, 1]} : vector<17x128xf32> to vector<1x128xf32>
    %688 = arith.cmpf oeq, %687, %0 : vector<1x128xf32>
    %689 = vector.extract_strided_slice %685 {offsets = [0, 0], sizes = [16, 128], strides = [1, 1]} : vector<17x128xf32> to vector<16x128xf32>
    %690 = vector.extract_strided_slice %686 {offsets = [0, 0], sizes = [16, 128], strides = [1, 1]} : vector<17x128xf32> to vector<16x128xf32>
    %691 = vector.shape_cast %688 : vector<1x128xi1> to vector<1x128xi1>
    %692 = vector.broadcast %691 : vector<1x128xi1> to vector<16x128xi1>
    %693 = arith.select %692, %689, %690 : vector<16x128xi1>, vector<16x128xf32>
    %694 = arith.maximumf %683, %693 : vector<16x128xf32>
    %695 = tpu.concatenate %694, %0 in 0 : vector<16x128xf32>, vector<1x128xf32> -> vector<17x128xf32>
    %c4_i32_64 = arith.constant 4 : i32
    %696 = tpu.dynamic_rotate %695 by %c4_i32_64 dim 1 : vector<17x128xf32>, i32 -> vector<17x128xf32>
    %c116_i32_65 = arith.constant 116 : i32
    %697 = tpu.dynamic_rotate %695 by %c116_i32_65 dim 1 : vector<17x128xf32>, i32 -> vector<17x128xf32>
    %698 = vector.extract_strided_slice %696 {offsets = [16, 0], sizes = [1, 128], strides = [1, 1]} : vector<17x128xf32> to vector<1x128xf32>
    %699 = arith.cmpf oeq, %698, %0 : vector<1x128xf32>
    %700 = vector.extract_strided_slice %696 {offsets = [0, 0], sizes = [16, 128], strides = [1, 1]} : vector<17x128xf32> to vector<16x128xf32>
    %701 = vector.extract_strided_slice %697 {offsets = [0, 0], sizes = [16, 128], strides = [1, 1]} : vector<17x128xf32> to vector<16x128xf32>
    %702 = vector.shape_cast %699 : vector<1x128xi1> to vector<1x128xi1>
    %703 = vector.broadcast %702 : vector<1x128xi1> to vector<16x128xi1>
    %704 = arith.select %703, %700, %701 : vector<16x128xi1>, vector<16x128xf32>
    %705 = arith.maximumf %694, %704 : vector<16x128xf32>
    %706 = tpu.concatenate %705, %0 in 0 : vector<16x128xf32>, vector<1x128xf32> -> vector<17x128xf32>
    %c8_i32_66 = arith.constant 8 : i32
    %707 = tpu.dynamic_rotate %706 by %c8_i32_66 dim 1 : vector<17x128xf32>, i32 -> vector<17x128xf32>
    %c120_i32_67 = arith.constant 120 : i32
    %708 = tpu.dynamic_rotate %706 by %c120_i32_67 dim 1 : vector<17x128xf32>, i32 -> vector<17x128xf32>
    %709 = vector.extract_strided_slice %707 {offsets = [16, 0], sizes = [1, 128], strides = [1, 1]} : vector<17x128xf32> to vector<1x128xf32>
    %710 = arith.cmpf oeq, %709, %0 : vector<1x128xf32>
    %711 = vector.extract_strided_slice %707 {offsets = [0, 0], sizes = [16, 128], strides = [1, 1]} : vector<17x128xf32> to vector<16x128xf32>
    %712 = vector.extract_strided_slice %708 {offsets = [0, 0], sizes = [16, 128], strides = [1, 1]} : vector<17x128xf32> to vector<16x128xf32>
    %713 = vector.shape_cast %710 : vector<1x128xi1> to vector<1x128xi1>
    %714 = vector.broadcast %713 : vector<1x128xi1> to vector<16x128xi1>
    %715 = arith.select %714, %711, %712 : vector<16x128xi1>, vector<16x128xf32>
    %716 = arith.maximumf %705, %715 : vector<16x128xf32>
    %717 = arith.subf %672, %716 : vector<16x128xf32>
    %718 = math.exp %717 : vector<16x128xf32>
    %c0_68 = arith.constant 0 : index
    %c0_69 = arith.constant 0 : index
    %719 = vector.load %arg17[%c0_68, %c0_69] : memref<128x128xf32, #tpu.memory_space<vmem>>, vector<128x128xf32>
    %cst_70 = arith.constant dense<0.000000e+00> : vector<16x128xf32>
    %720 = tpu.matmul %718, %719, %cst_70 {dimension_numbers = #tpu.dot_dimension_numbers<[1], [0], [0], [1], [0, 0, 1, 1], [], []>, precision = #tpu.contract_precision<fp32>} : vector<16x128xf32>, vector<128x128xf32>, vector<16x128xf32> -> vector<16x128xf32>
    %721 = arith.divf %718, %720 : vector<16x128xf32>
    %722 = vector.extract_strided_slice %72 {offsets = [0, 0], sizes = [16, 32], strides = [1, 1]} : vector<32x32xf32> to vector<16x32xf32>
    %723 = vector.extract_strided_slice %72 {offsets = [16, 0], sizes = [16, 32], strides = [1, 1]} : vector<32x32xf32> to vector<16x32xf32>
    %724 = tpu.concatenate %722, %722, %722, %722, %723, %723, %723, %723 in 0 : vector<16x32xf32>, vector<16x32xf32>, vector<16x32xf32>, vector<16x32xf32>, vector<16x32xf32>, vector<16x32xf32>, vector<16x32xf32>, vector<16x32xf32> -> vector<128x32xf32>
    %725 = tpu.concatenate %724, %724 in 1 : vector<128x32xf32>, vector<128x32xf32> -> vector<128x64xf32>
    %c0_71 = arith.constant 0 : index
    %c0_72 = arith.constant 0 : index
    %726 = vector.load %arg16[%c0_71, %c0_72] : memref<128x64xf32, #tpu.memory_space<vmem>>, vector<128x64xf32>
    %727 = arith.mulf %725, %726 : vector<128x64xf32>
    %cst_73 = arith.constant dense<0.000000e+00> : vector<16x64xf32>
    %728 = tpu.matmul %156, %727, %cst_73 {dimension_numbers = #tpu.dot_dimension_numbers<[1], [0], [0], [1], [0, 0, 1, 1], [], []>, precision = #tpu.contract_precision<fp32>} : vector<16x128xf32>, vector<128x64xf32>, vector<16x64xf32> -> vector<16x64xf32>
    %729 = vector.extract_strided_slice %82 {offsets = [0, 0], sizes = [16, 32], strides = [1, 1]} : vector<32x32xf32> to vector<16x32xf32>
    %730 = vector.extract_strided_slice %82 {offsets = [16, 0], sizes = [16, 32], strides = [1, 1]} : vector<32x32xf32> to vector<16x32xf32>
    %731 = tpu.concatenate %729, %729, %729, %729, %730, %730, %730, %730 in 0 : vector<16x32xf32>, vector<16x32xf32>, vector<16x32xf32>, vector<16x32xf32>, vector<16x32xf32>, vector<16x32xf32>, vector<16x32xf32>, vector<16x32xf32> -> vector<128x32xf32>
    %732 = tpu.concatenate %731, %731 in 1 : vector<128x32xf32>, vector<128x32xf32> -> vector<128x64xf32>
    %c0_74 = arith.constant 0 : index
    %c0_75 = arith.constant 0 : index
    %733 = vector.load %arg16[%c0_74, %c0_75] : memref<128x64xf32, #tpu.memory_space<vmem>>, vector<128x64xf32>
    %734 = arith.mulf %732, %733 : vector<128x64xf32>
    %cst_76 = arith.constant dense<0.000000e+00> : vector<16x64xf32>
    %735 = tpu.matmul %721, %734, %cst_76 {dimension_numbers = #tpu.dot_dimension_numbers<[1], [0], [0], [1], [0, 0, 1, 1], [], []>, precision = #tpu.contract_precision<fp32>} : vector<16x128xf32>, vector<128x64xf32>, vector<16x64xf32> -> vector<16x64xf32>
    %736 = vector.extract_strided_slice %728 {offsets = [0, 0], sizes = [16, 32], strides = [1, 1]} : vector<16x64xf32> to vector<16x32xf32>
    %737 = vector.extract_strided_slice %728 {offsets = [0, 32], sizes = [16, 32], strides = [1, 1]} : vector<16x64xf32> to vector<16x32xf32>
    %738 = tpu.concatenate %736, %737 in 0 : vector<16x32xf32>, vector<16x32xf32> -> vector<32x32xf32>
    %739 = vector.extract_strided_slice %735 {offsets = [0, 0], sizes = [16, 32], strides = [1, 1]} : vector<16x64xf32> to vector<16x32xf32>
    %740 = vector.extract_strided_slice %735 {offsets = [0, 32], sizes = [16, 32], strides = [1, 1]} : vector<16x64xf32> to vector<16x32xf32>
    %741 = tpu.concatenate %739, %740 in 0 : vector<16x32xf32>, vector<16x32xf32> -> vector<32x32xf32>
    %c0_77 = arith.constant 0 : index
    %c0_78 = arith.constant 0 : index
    %742 = vector.load %arg8[%c0_77, %c0_78] : memref<32x32xf32, #tpu.memory_space<vmem>>, vector<32x32xf32>
    %cst_79 = arith.constant dense<0.000000e+00> : vector<32x32xf32>
    %743 = tpu.matmul %741, %742, %cst_79 {dimension_numbers = #tpu.dot_dimension_numbers<[1], [0], [0], [1], [0, 0, 1, 1], [], []>, precision = #tpu.contract_precision<fp32>} : vector<32x32xf32>, vector<32x32xf32>, vector<32x32xf32> -> vector<32x32xf32>
    %c0_80 = arith.constant 0 : index
    %c0_81 = arith.constant 0 : index
    %744 = vector.load %arg9[%c0_80, %c0_81] : memref<1x32xf32, #tpu.memory_space<vmem>>, vector<1x32xf32>
    %745 = vector.broadcast %744 : vector<1x32xf32> to vector<32x32xf32>
    %746 = arith.addf %743, %745 : vector<32x32xf32>
    %747 = arith.addf %738, %746 : vector<32x32xf32>
    %cst_82 = arith.constant 5.000000e-01 : f32
    %748 = vector.broadcast %cst_82 : f32 to vector<32x32xf32>
    %749 = arith.mulf %747, %748 : vector<32x32xf32>
    %c0_83 = arith.constant 0 : index
    %c0_84 = arith.constant 0 : index
    %750 = vector.load %arg10[%c0_83, %c0_84] : memref<32x32xf32, #tpu.memory_space<vmem>>, vector<32x32xf32>
    %cst_85 = arith.constant dense<0.000000e+00> : vector<32x32xf32>
    %751 = tpu.matmul %749, %750, %cst_85 {dimension_numbers = #tpu.dot_dimension_numbers<[1], [0], [0], [1], [0, 0, 1, 1], [], []>, precision = #tpu.contract_precision<fp32>} : vector<32x32xf32>, vector<32x32xf32>, vector<32x32xf32> -> vector<32x32xf32>
    %c0_86 = arith.constant 0 : index
    %c0_87 = arith.constant 0 : index
    %752 = vector.load %arg11[%c0_86, %c0_87] : memref<1x32xf32, #tpu.memory_space<vmem>>, vector<1x32xf32>
    %753 = vector.broadcast %752 : vector<1x32xf32> to vector<32x32xf32>
    %754 = arith.addf %751, %753 : vector<32x32xf32>
    %755 = arith.addf %754, %64 : vector<32x32xf32>
    %cst_88 = arith.constant dense<0.000000e+00> : vector<32xf32>
    %756 = vector.multi_reduction <add>, %755, %cst_88 [1] : vector<32x32xf32> to vector<32xf32>
    %757 = vector.shape_cast %756 : vector<32xf32> to vector<32x1xf32>
    %cst_89 = arith.constant 3.200000e+01 : f32
    %758 = vector.broadcast %cst_89 : f32 to vector<32x1xf32>
    %759 = arith.divf %757, %758 : vector<32x1xf32>
    %760 = vector.broadcast %759 : vector<32x1xf32> to vector<32x32xf32>
    %761 = arith.subf %755, %760 : vector<32x32xf32>
    %762 = arith.mulf %761, %761 : vector<32x32xf32>
    %cst_90 = arith.constant dense<0.000000e+00> : vector<32xf32>
    %763 = vector.multi_reduction <add>, %762, %cst_90 [1] : vector<32x32xf32> to vector<32xf32>
    %764 = vector.shape_cast %763 : vector<32xf32> to vector<32x1xf32>
    %cst_91 = arith.constant 3.200000e+01 : f32
    %765 = vector.broadcast %cst_91 : f32 to vector<32x1xf32>
    %766 = arith.divf %764, %765 : vector<32x1xf32>
    %767 = vector.broadcast %759 : vector<32x1xf32> to vector<32x32xf32>
    %768 = arith.subf %755, %767 : vector<32x32xf32>
    %cst_92 = arith.constant 9.99999974E-6 : f32
    %769 = vector.broadcast %cst_92 : f32 to vector<32x1xf32>
    %770 = arith.addf %766, %769 : vector<32x1xf32>
    %771 = math.rsqrt %770 : vector<32x1xf32>
    %772 = vector.broadcast %771 : vector<32x1xf32> to vector<32x32xf32>
    %773 = arith.mulf %768, %772 : vector<32x32xf32>
    %c0_93 = arith.constant 0 : index
    %c0_94 = arith.constant 0 : index
    %774 = vector.load %arg12[%c0_93, %c0_94] : memref<1x32xf32, #tpu.memory_space<vmem>>, vector<1x32xf32>
    %775 = vector.broadcast %774 : vector<1x32xf32> to vector<32x32xf32>
    %776 = arith.mulf %773, %775 : vector<32x32xf32>
    %c0_95 = arith.constant 0 : index
    %c0_96 = arith.constant 0 : index
    %777 = vector.load %arg13[%c0_95, %c0_96] : memref<1x32xf32, #tpu.memory_space<vmem>>, vector<1x32xf32>
    %778 = vector.broadcast %777 : vector<1x32xf32> to vector<32x32xf32>
    %779 = arith.addf %776, %778 : vector<32x32xf32>
    %c0_97 = arith.constant 0 : index
    %c0_98 = arith.constant 0 : index
    %780 = vector.load %arg19[%c0_97, %c0_98] : memref<32x32xf32, #tpu.memory_space<vmem>>, vector<32x32xf32>
    tpu.vector_store %arg19[%c0_97, %c0_98], %779 {strides = array<i32>} : memref<32x32xf32, #tpu.memory_space<vmem>>, vector<32x32xf32>,
    return
  }
  func.func @transform_0(%arg0: i32) -> (i32, i32) {
    %c0_i32 = arith.constant 0 : i32
    %c0_i32_0 = arith.constant 0 : i32
    %c0_i32_1 = arith.constant 0 : i32
    return %c0_i32, %c0_i32_0 : i32, i32
  }
  func.func @transform_1(%arg0: i32) -> (i32, i32) {
    %c0_i32 = arith.constant 0 : i32
    %c0_i32_0 = arith.constant 0 : i32
    %c0_i32_1 = arith.constant 0 : i32
    return %c0_i32, %c0_i32_0 : i32, i32
  }
  func.func @transform_2(%arg0: i32) -> (i32, i32) {
    %c0_i32 = arith.constant 0 : i32
    %c0_i32_0 = arith.constant 0 : i32
    %c0_i32_1 = arith.constant 0 : i32
    return %c0_i32, %c0_i32_0 : i32, i32
  }
  func.func @transform_3(%arg0: i32) -> (i32, i32) {
    %c0_i32 = arith.constant 0 : i32
    %c0_i32_0 = arith.constant 0 : i32
    %c0_i32_1 = arith.constant 0 : i32
    return %c0_i32, %c0_i32_0 : i32, i32
  }
  func.func @transform_4(%arg0: i32) -> (i32, i32) {
    %c0_i32 = arith.constant 0 : i32
    %c0_i32_0 = arith.constant 0 : i32
    %c0_i32_1 = arith.constant 0 : i32
    return %c0_i32, %c0_i32_0 : i32, i32
  }
  func.func @transform_5(%arg0: i32) -> (i32, i32) {
    %c0_i32 = arith.constant 0 : i32
    %c0_i32_0 = arith.constant 0 : i32
    %c0_i32_1 = arith.constant 0 : i32
    return %c0_i32, %c0_i32_0 : i32, i32
  }
  func.func @transform_6(%arg0: i32) -> (i32, i32) {
    %c0_i32 = arith.constant 0 : i32
    %c0_i32_0 = arith.constant 0 : i32
    %c0_i32_1 = arith.constant 0 : i32
    return %c0_i32, %c0_i32_0 : i32, i32
  }
  func.func @transform_7(%arg0: i32) -> (i32, i32) {
    %c0_i32 = arith.constant 0 : i32
    %c0_i32_0 = arith.constant 0 : i32
    %c0_i32_1 = arith.constant 0 : i32
    return %c0_i32, %c0_i32_0 : i32, i32
  }
  func.func @transform_8(%arg0: i32) -> (i32, i32) {
    %c0_i32 = arith.constant 0 : i32
    %c0_i32_0 = arith.constant 0 : i32
    %c0_i32_1 = arith.constant 0 : i32
    return %c0_i32, %c0_i32_0 : i32, i32
  }
  func.func @transform_9(%arg0: i32) -> (i32, i32) {
    %c0_i32 = arith.constant 0 : i32
    %c0_i32_0 = arith.constant 0 : i32
    %c0_i32_1 = arith.constant 0 : i32
    return %c0_i32, %c0_i32_0 : i32, i32
  }
  func.func @transform_10(%arg0: i32) -> (i32, i32) {
    %c0_i32 = arith.constant 0 : i32
    %c0_i32_0 = arith.constant 0 : i32
    %c0_i32_1 = arith.constant 0 : i32
    return %c0_i32, %c0_i32_0 : i32, i32
  }
  func.func @transform_11(%arg0: i32) -> (i32, i32) {
    %c0_i32 = arith.constant 0 : i32
    %c0_i32_0 = arith.constant 0 : i32
    %c0_i32_1 = arith.constant 0 : i32
    return %c0_i32, %c0_i32_0 : i32, i32
  }
  func.func @transform_12(%arg0: i32) -> (i32, i32) {
    %c0_i32 = arith.constant 0 : i32
    %c0_i32_0 = arith.constant 0 : i32
    %c0_i32_1 = arith.constant 0 : i32
    return %c0_i32, %c0_i32_0 : i32, i32
  }
  func.func @transform_13(%arg0: i32) -> (i32, i32) {
    %c0_i32 = arith.constant 0 : i32
    %c0_i32_0 = arith.constant 0 : i32
    %c0_i32_1 = arith.constant 0 : i32
    return %c0_i32, %c0_i32_0 : i32, i32
  }
  func.func @transform_14(%arg0: i32) -> (i32, i32) {
    %c0_i32 = arith.constant 0 : i32
    %c0_i32_0 = arith.constant 0 : i32
    %c0_i32_1 = arith.constant 0 : i32
    return %c0_i32, %c0_i32_0 : i32, i32
  }
  func.func @transform_15(%arg0: i32) -> (i32, i32) {
    %c0_i32 = arith.constant 0 : i32
    %c0_i32_0 = arith.constant 0 : i32
    %c0_i32_1 = arith.constant 0 : i32
    return %c0_i32, %c0_i32_0 : i32, i32
  }
  func.func @transform_16(%arg0: i32) -> (i32, i32) {
    %c0_i32 = arith.constant 0 : i32
    %c0_i32_0 = arith.constant 0 : i32
    %c0_i32_1 = arith.constant 0 : i32
    return %c0_i32, %c0_i32_0 : i32, i32
  }
  func.func @transform_17(%arg0: i32) -> (i32, i32) {
    %c0_i32 = arith.constant 0 : i32
    %c0_i32_0 = arith.constant 0 : i32
    %c0_i32_1 = arith.constant 0 : i32
    return %c0_i32, %c0_i32_0 : i32, i32
  }
  func.func @transform_18(%arg0: i32) -> (i32, i32) {
    %c0_i32 = arith.constant 0 : i32
    %c0_i32_0 = arith.constant 0 : i32
    %c0_i32_1 = arith.constant 0 : i32
    return %c0_i32, %c0_i32_0 : i32, i32
  }
}

</mosaic_0001>

<bundles_post_ra>
// kernel: fault_attention_forward.1
= control target key start
LH: loop header
LB: loop body
LE: loop exit
PB: predicated region body
PF: predicated region fallthrough
CT: control target
= control target key end

     0   :  { %s18514_s0 = inlined_call_operand.vmem [shape: f32[32,4], index: 0, kind: input, shape index: {}]   ;;  %s18515_s1 = inlined_call_operand.vmem [shape: f32[28,32], index: 1, kind: input, shape index: {}]   ;;  %s18516_s2 = inlined_call_operand.vmem [shape: f32[1,32], index: 2, kind: input, shape index: {}]   ;;  %s18517_s3 = inlined_call_operand.hbm [shape: f32[32,96], index: 3, kind: input, shape index: {}]   ;;  %s18518_s4 = inlined_call_operand.vmem [shape: f32[1,96], index: 4, kind: input, shape index: {}]   ;;  %s18519_s5 = inlined_call_operand.hbm [shape: f32[32,32], index: 5, kind: input, shape index: {}]   ;;  %s18520_s6 = inlined_call_operand.vmem [shape: f32[1,32], index: 6, kind: input, shape index: {}]   ;;  %s18521_s7 = inlined_call_operand.hbm [shape: f32[32,32], index: 7, kind: input, shape index: {}]   ;;  %s18522_s8 = inlined_call_operand.vmem [shape: f32[1,32], index: 8, kind: input, shape index: {}]   ;;  %s18523_s9 = inlined_call_operand.hbm [shape: f32[32,32], index: 9, kind: input, shape index: {}]   ;;  %s18524_s10 = inlined_call_operand.vmem [shape: f32[1,32], index: 10, kind: input, shape index: {}]   ;;  %s18525_s11 = inlined_call_operand.vmem [shape: f32[1,32], index: 11, kind: input, shape index: {}]   ;;  %s18526_s12 = inlined_call_operand.hbm [shape: f32[1,32], index: 12, kind: input, shape index: {}]   ;;  %s18527_s13 = inlined_call_operand.hbm [shape: f32[16,128], index: 13, kind: input, shape index: {}]   ;;  %s18528_s14 = inlined_call_operand.vmem [shape: f32[64,128], index: 14, kind: input, shape index: {}]   ;;  %s18529_s15 = inlined_call_operand.vmem [shape: f32[128,64], index: 15, kind: input, shape index: {}]   ;;  %s18530_s16 = inlined_call_operand.vmem [shape: f32[128,128], index: 16, kind: input, shape index: {}]   ;;  %s18531_s17 = inlined_call_operand.vmem [shape: f32[2,128], index: 17, kind: input, shape index: {}]   ;;  %s18532_s18 = inlined_call_operand.hbm [shape: f32[32,32], index: 18, kind: output, shape index: {}]  }
   0x1   :  { %18736 = sst [smem:[#allocation92_spill]] %s18514_s0 }
   0x2   :  { %18737 = sst [smem:[#allocation93_spill]] %s18515_s1 }
   0x3   :  { %18738 = sst [smem:[#allocation94_spill]] %s18516_s2 }
   0x4   :  { %23 = vsyncpa [#allocation3], 0 }
   0x5   :  { %24 = vsyncpa [#allocation6], 0 }
   0x6   :  { %25 = vsyncpa [#allocation9], 0 }
   0x7   :  { %26 = vsyncpa [#allocation12], 0 }
   0x8   :  { %27 = vsyncpa [#allocation4], 0  ;;  %s14017_s27 = smov [#allocation5]   ;;  %s14018_s29 = smov [#allocation8]  }
   0x9   :  { %s53_s28 = sshll.u32 %s14017_s27, 4  ;;  %s81_s30 = sshll.u32 %s14018_s29, 4  ;;  %s54_s28 = int_to_ptr.vmem [resolvable:$true] %s53_s28  ;;  %s14160_s30 = int_to_ptr.vmem [resolvable:$true] %s81_s30 }
   0xa   :  { %s13853_s1 = scalar_lea.hbm %s18519_s5, 512 }
   0xb   :  { %p13854_p0 = scmp.ne.s32.totalorder %s18519_s5, %s13853_s1  ;;  %p13857_p1 = scmp.lt.u32.totalorder %s13853_s1, %s18519_s5 }
   0xd   :  { %p13859_p2 = pnand %p13857_p1, %p13854_p0 }
   0xf   :  { %13862 = shalt.err (!%p13859_p2)
}
  0x10   :  { %s13863_s23 = scalar_lea.vmem %s54_s28, 512  ;;  %p13868_p4 = scmp.lt.s32.totalorder %s54_s28, %s54_s28 }
  0x11   :  { %p13864_p3 = scmp.ne.s32.totalorder %s54_s28, %s13863_s23  ;;  %p13869_p5 = scmp.lt.s32.totalorder %s13863_s23, %s13863_s23 }
  0x13   :  { %p13870_p6 = por %p13869_p5, %p13868_p4 }
  0x15   :  { %p13871_p7 = pnand %p13870_p6, %p13864_p3 }
  0x17   :  { %13874 = shalt.err (!%p13871_p7)
}
  0x18   :  { %s14019_s24 = smov 128   ;;  %s14020_s25 = smov 8  }
  0x19   :  { %59 = dma.hbm_to_vmem [thread:$0]  %s18519_s5, 512, %s54_s28, [#allocation6], %s14019_s24, %s14019_s24, %s14020_s25  }
  0x1a   :  { %s13875_s19 = scalar_lea.hbm %s18523_s9, 512 }
  0x1b   :  { %p13876_p8 = scmp.ne.s32.totalorder %s18523_s9, %s13875_s19  ;;  %p13879_p9 = scmp.lt.u32.totalorder %s13875_s19, %s18523_s9 }
  0x1d   :  { %p13881_p10 = pnand %p13879_p9, %p13876_p8 }
  0x1f   :  { %13884 = shalt.err (!%p13881_p10)
}
  0x20   :  { %s13885_s2 = scalar_lea.vmem %s14160_s30, 512  ;;  %p13890_p12 = scmp.lt.s32.totalorder %s14160_s30, %s14160_s30 }
  0x21   :  { %p13886_p11 = scmp.ne.s32.totalorder %s14160_s30, %s13885_s2  ;;  %p13891_p13 = scmp.lt.s32.totalorder %s13885_s2, %s13885_s2 }
  0x23   :  { %p13892_p0 = por %p13891_p13, %p13890_p12 }
  0x25   :  { %p13893_p1 = pnand %p13892_p0, %p13886_p11 }
  0x27   :  { %13896 = shalt.err (!%p13893_p1)
}
  0x28   :  { %87 = dma.hbm_to_vmem [thread:$0]  %s18523_s9, 512, %s14160_s30, [#allocation9], %s14019_s24, %s14019_s24, %s14020_s25  }
  0x29   :  { %s14021_s23 = smov [#allocation2]   ;;  %s14022_s27 = smov [#allocation7]  }
  0x2a   :  { %s39_s26 = sshll.u32 %s14021_s23, 4  ;;  %s67_s29 = sshll.u32 %s14022_s27, 4  ;;  %s40_s26 = int_to_ptr.vmem [resolvable:$true] %s39_s26  ;;  %s14197_s29 = int_to_ptr.vmem [resolvable:$true] %s67_s29 }
  0x2b   :  { %s13897_s1 = scalar_lea.hbm %s18517_s3, 512 }
  0x2c   :  { %p13898_p2 = scmp.ne.s32.totalorder %s18517_s3, %s13897_s1  ;;  %p13901_p3 = scmp.lt.u32.totalorder %s13897_s1, %s18517_s3 }
  0x2e   :  { %p13903_p4 = pnand %p13901_p3, %p13898_p2 }
  0x30   :  { %13906 = shalt.err (!%p13903_p4)
}
  0x31   :  { %s13907_s9 = scalar_lea.vmem %s40_s26, 512  ;;  %p13912_p6 = scmp.lt.s32.totalorder %s40_s26, %s40_s26 }
  0x32   :  { %p13908_p5 = scmp.ne.s32.totalorder %s40_s26, %s13907_s9  ;;  %p13913_p7 = scmp.lt.s32.totalorder %s13907_s9, %s13907_s9 }
  0x34   :  { %p13914_p8 = por %p13913_p7, %p13912_p6 }
  0x36   :  { %p13915_p9 = pnand %p13914_p8, %p13908_p5 }
  0x38   :  { %13918 = shalt.err (!%p13915_p9)
}
  0x39   :  { %45 = dma.hbm_to_vmem [thread:$0]  %s18517_s3, 512, %s40_s26, [#allocation3], %s14019_s24, %s14019_s24, %s14020_s25  }
  0x3a   :  { %s13919_s27 = scalar_lea.hbm %s18521_s7, 512 }
  0x3b   :  { %p13920_p10 = scmp.ne.s32.totalorder %s18521_s7, %s13919_s27  ;;  %p13923_p11 = scmp.lt.u32.totalorder %s13919_s27, %s18521_s7 }
  0x3d   :  { %p13925_p12 = pnand %p13923_p11, %p13920_p10 }
  0x3f   :  { %13928 = shalt.err (!%p13925_p12)
}
  0x40   :  { %s13929_s21 = scalar_lea.vmem %s14197_s29, 512  ;;  %p13934_p0 = scmp.lt.s32.totalorder %s14197_s29, %s14197_s29 }
  0x41   :  { %p13930_p13 = scmp.ne.s32.totalorder %s14197_s29, %s13929_s21  ;;  %p13935_p1 = scmp.lt.s32.totalorder %s13929_s21, %s13929_s21 }
  0x43   :  { %p13936_p2 = por %p13935_p1, %p13934_p0 }
  0x45   :  { %p13937_p3 = pnand %p13936_p2, %p13930_p13 }
  0x47   :  { %13940 = shalt.err (!%p13937_p3)
}
  0x48   :  { %73 = dma.hbm_to_vmem [thread:$0]  %s18521_s7, 512, %s14197_s29, [#allocation6], %s14019_s24, %s14019_s24, %s14020_s25  }
  0x49   :  { %s14023_s22 = smov [#allocation10]   ;;  %s14024_s9 = smov [#allocation11]  }
  0x4a   :  { %s98_s2 = sshll.u32 %s14023_s22, 4  ;;  %s107_s30 = sshll.u32 %s14024_s9, 4  ;;  %s99_s2 = int_to_ptr.vmem [resolvable:$true] %s98_s2  ;;  %s14234_s30 = int_to_ptr.vmem [resolvable:$true] %s107_s30 }
  0x4b   :  { %s13941_s23 = scalar_lea.hbm %s18526_s12, 16 }
  0x4c   :  { %p13942_p4 = scmp.ne.s32.totalorder %s18526_s12, %s13941_s23  ;;  %p13945_p5 = scmp.lt.u32.totalorder %s13941_s23, %s18526_s12 }
  0x4e   :  { %p13947_p6 = pnand %p13945_p5, %p13942_p4 }
  0x50   :  { %13950 = shalt.err (!%p13947_p6)
}
  0x51   :  { %s13951_s7 = scalar_lea.vmem %s99_s2, 16  ;;  %s13955_s29 = scalar_lea.vmem %s99_s2, 32 }
  0x52   :  { %p13952_p7 = scmp.ne.s32.totalorder %s99_s2, %s13951_s7  ;;  %p13956_p8 = scmp.lt.s32.totalorder %s99_s2, %s99_s2 }
  0x53   :  { %p13957_p9 = scmp.lt.s32.totalorder %s13955_s29, %s13951_s7 }
  0x55   :  { %p13958_p10 = por %p13957_p9, %p13956_p8 }
  0x57   :  { %p13959_p11 = pnand %p13958_p10, %p13952_p7 }
  0x59   :  { %13962 = shalt.err (!%p13959_p11)
}
  0x5a   :  { %101 = dma.hbm_to_vmem [thread:$0]  %s18526_s12, 16, %s99_s2, [#allocation9]  }
  0x5b   :  { %s13963_s22 = scalar_lea.hbm %s18527_s13, 256 }
  0x5c   :  { %p13964_p12 = scmp.ne.s32.totalorder %s18527_s13, %s13963_s22  ;;  %p13967_p13 = scmp.lt.u32.totalorder %s13963_s22, %s18527_s13 }
  0x5e   :  { %p13969_p0 = pnand %p13967_p13, %p13964_p12 }
  0x60   :  { %13972 = shalt.err (!%p13969_p0)
}
  0x61   :  { %s13973_s27 = scalar_lea.vmem %s14234_s30, 256  ;;  %p13978_p2 = scmp.lt.s32.totalorder %s14234_s30, %s14234_s30 }
  0x62   :  { %p13974_p1 = scmp.ne.s32.totalorder %s14234_s30, %s13973_s27  ;;  %p13979_p3 = scmp.lt.s32.totalorder %s13973_s27, %s13973_s27 }
  0x64   :  { %p13980_p4 = por %p13979_p3, %p13978_p2 }
  0x66   :  { %p13981_p5 = pnand %p13980_p4, %p13974_p1 }
  0x68   :  { %13984 = shalt.err (!%p13981_p5)
}
  0x69   :  { %113 = dma.hbm_to_vmem [thread:$0]  %s18527_s13, 256, %s14234_s30, [#allocation12], %s14019_s24, %s14019_s24, %s14020_s25  }
  0x6a   :  { %14007 = dma.done.wait [#allocation3], 512  }
  0x6b   :  { %14008 = vsyncadd [#allocation3], 4294966784 }
  0x6c   :  { %14009 = dma.done.wait [#allocation6], 1024  }
  0x6d   :  { %14010 = vsyncadd [#allocation6], 4294966272 }
  0x6e   :  { %14011 = dma.done.wait [#allocation9], 528  }
  0x6f   :  { %14012 = vsyncadd [#allocation9], 4294966768 }
  0x70   :  { %14013 = dma.done.wait [#allocation12], 256  }
  0x71   :  { %14014 = vsyncadd [#allocation12], 4294967040  ;;  %s18739_s1 = sld [smem:[#allocation92_spill]]  ;;  %vm174_vm0 = vcmask 1040384   ;;  %vm163_vm1 = vcmask 1041408   ;;  %s14025_s13 = smov 12  }
  0x72   :  { %s14026_s21 = smov 4   ;;  %vm185_vm2 = vcmask 1046528   ;;  %vm196_vm3 = vcmask 1045504   ;;  %vm148_vm4 = vcmask 1042432   ;;  %s14027_s22 = smov 16   ;;  %vm207_vm5 = vcmask 1044480  }
  0x73   :  { %s14028_s9 = smov 20   ;;  %s18740_s23 = sld [smem:[#allocation93_spill]]  ;;  %vm354_vm6 = vcmask 1043456   ;;  %vm300_vm7 = vcmask 31744   ;;  %vm305_vm8 = vcmask 64512   ;;  %vm310_vm9 = vcmask 97280  }
  0x74   :  { %s14029_s7 = smov 24   ;;  %vm315_vm10 = vcmask 130048   ;;  %vm320_vm11 = vcmask 162816   ;;  %vm325_vm12 = vcmask 195584   ;;  %vm341_vm13 = vcmask 228352   ;;  %s18741_s20 = sld [smem:[#allocation94_spill]] }
  0x75   :  { %vm18608_vm14 = vcmask 261120   ;;  %s14033_s12 = smov 48   ;;  %s14034_s2 = smov 80   ;;  %vm3033_vm15 = vcmask 523264  }
  0x76   :  { %s14037_s29 = smov 3   ;;  %s14038_s30 = smov 5  }
  0x77   :  { %v14271_v0 = vld [vmem:[%s18739_s1 + $0x8] sm:$0xff]  ;;  %v14276_v1 = vld [vmem:[%s18739_s1] sm:$0xff]  ;;  %v14291_v8 = vld [vmem:[%s18739_s1 + $0x10] sm:$0xff]  ;;  %s14040_s3 = smov 6   ;;  %s14041_s26 = smov 7  }
  0x78   :  { %248 = vrot.lane.b32.xlu1 %v14271_v0, %s14025_s13  ;;  %246 = vrot.lane.b32.xlu0 %v14276_v1, %s14025_s13  ;;  %v175_v2 = vrot.slane %v14276_v1, 7  ;;  %v164_v3 = vrot.slane %v14276_v1, 6  ;;  %v176_v4 = vrot.slane %v14271_v0, 7  ;;  %v165_v5 = vrot.slane %v14271_v0, 6  ;;  %v14309_v18 = vld [vmem:[%s18739_s1 + $0x18] sm:$0xff]  ;;  %s14042_s5 = smov 9  }
  0x79   :  { %v186_v9 = vrot.slane %v14276_v1, 1  ;;  %v169_v12 = vrot.slane %v14291_v8, 6  ;;  %v187_v13 = vrot.slane %v14271_v0, 1  ;;  %v197_v16 = vrot.slane %v14276_v1, 2  ;;  %v330_v33 = vld [vmem:[%s18740_s23] sm:$0xff]  ;;  %v331_v34 = vld [vmem:[%s18740_s23 + $0x8] sm:$0xff] }
  0x7a   :  { %v179_v6 = vsel %vm174_vm0, 0.0, %v175_v2  ;;  %v168_v7 = vsel %vm163_vm1, 0.0, %v164_v3  ;;  %v177_v10 = vsel %vm174_vm0, %v175_v2, %v176_v4  ;;  %v166_v11 = vsel %vm163_vm1, %v164_v3, %v165_v5  ;;  %v333_v41 = vld [vmem:[%s18740_s23 + $0x18] sm:$0xf]  ;;  %v332_v42 = vld [vmem:[%s18740_s23 + $0x10] sm:$0xff]  ;;  %s14043_s28 = smov 10  }
  0x7b   :  { %v173_v14 = vsel %vm163_vm1, 0.0, %v169_v12  ;;  %v188_v15 = vsel %vm185_vm2, %v186_v9, %v187_v13  ;;  %v198_v17 = vrot.slane %v14271_v0, 2  ;;  %v149_v19 = vrot.slane %v14276_v1, 5  ;;  %s14044_s23 = smov 11   ;;  %s14045_s27 = smov 13  }
  0x7c   :  { %234 = vrot.lane.b32.xlu1 %v179_v6, %s14020_s25  ;;  %220 = vrot.lane.b32.xlu0 %v168_v7, %s14026_s21  ;;  %v150_v20 = vrot.slane %v14271_v0, 5  ;;  %v157_v21 = vrot.slane %v14291_v8, 5  ;;  %v158_v22 = vrot.slane %v14309_v18, 5  ;;  %v190_v23 = vsel %vm185_vm2, %v187_v13, 0.0  ;;  %s14047_s0 = smov 114   ;;  %s14048_s19 = smov 14  }
  0x7d   :  { %v199_v25 = vsel %vm196_vm3, %v197_v16, %v198_v17  ;;  %v180_v26 = vrot.slane %v14291_v8, 7  ;;  %v170_v27 = vrot.slane %v14309_v18, 6  ;;  %v208_v31 = vrot.slane %v14276_v1, 3  ;;  %s14049_s1 = smov 15  }
  0x7e   :  { %v14321_v24 = vsel %vm148_vm4, %v149_v19, %v150_v20  ;;  %v14329_v28 = vsel %vm148_vm4, %v157_v21, %v158_v22  ;;  %v209_v32 = vrot.slane %v14271_v0, 3  ;;  %v359_v35 = vand.u32 4294901760, %v330_v33 }
  0x7f   :  { %v184_v29 = vsel %vm174_vm0, 0.0, %v180_v26  ;;  %v171_v30 = vsel %vm163_vm1, %v169_v12, %v170_v27  ;;  %v362_v36 = vand.u32 4294901760, %v331_v34  ;;  %v201_v37 = vsel %vm196_vm3, %v198_v17, 0.0 }
  0x80   :  { %236 = vrot.lane.b32.xlu1 %v177_v10, %s14020_s25  ;;  %222 = vrot.lane.b32.xlu0 %v166_v11, %s14026_s21  ;;  %v210_v38 = vsel %vm207_vm5, %v208_v31, %v209_v32  ;;  %v181_v39 = vrot.slane %v14309_v18, 7  ;;  %v356_v43 = vsel %vm354_vm6, %v333_v41, 0  ;;  %v365_v44 = vand.u32 4294901760, %v332_v42 }
  0x81   :  { %v14348_v40 = vpack.c.bf16 %v362_v36, %v359_v35  ;;  %v368_v45 = vand.u32 4294901760, %v356_v43  ;;  %v212_v48 = vsel %vm207_vm5, %v209_v32, 0.0  ;;  %v192_v49 = vrot.slane %v14309_v18, 1 }
  0x82   :  { %v182_v46 = vsel %vm174_vm0, %v180_v26, %v181_v39  ;;  %v191_v50 = vrot.slane %v14291_v8, 1  ;;  %v469_v51 = vsub.f32 %v330_v33, %v359_v35  ;;  %v476_v52 = vsub.f32 %v331_v34, %v362_v36 }
  0x83   :  { %12311 = vmatprep.subr.bf16.mxu0 %v14348_v40  ;;  %v14361_v47 = vpack.c.bf16 %v368_v45, %v365_v44  ;;  %v195_v55 = vsel %vm185_vm2, %v192_v49, 0.0  ;;  %v203_v57 = vrot.slane %v14309_v18, 2  ;;  %v202_v58 = vrot.slane %v14291_v8, 2 }
  0x84   :  { %224 = vrot.lane.b32.xlu1 %v173_v14, %s14026_s21  ;;  %260 = vrot.lane.b32.xlu0 %v188_v15, %s14027_s22  ;;  %v470_v53 = vand.u32 4294901760, %v469_v51  ;;  %v477_v54 = vand.u32 4294901760, %v476_v52  ;;  %v193_v56 = vsel %vm185_vm2, %v191_v50, %v192_v49  ;;  %v483_v61 = vsub.f32 %v332_v42, %v365_v44 }
  0x85   :  { %12313 = vmatpush3.bf16.msra.mxu0 %v14348_v40  ;;  %v490_v62 = vsub.f32 %v356_v43, %v368_v45  ;;  %v206_v4 = vsel %vm196_vm3, %v203_v57, 0.0  ;;  %v204_v5 = vsel %vm196_vm3, %v202_v58, %v203_v57  ;;  %v214_v6 = vrot.slane %v14309_v18, 3 }
  0x86   :  { %12315 = vmatprep.subr.bf16.mxu0 %v14361_v47  ;;  %v471_v59 = vsub.f32 %v469_v51, %v470_v53  ;;  %v478_v60 = vsub.f32 %v476_v52, %v477_v54  ;;  %v484_v2 = vand.u32 4294901760, %v483_v61  ;;  %v213_v7 = vrot.slane %v14291_v8, 3 }
  0x87   :  { %v491_v3 = vand.u32 4294901760, %v490_v62  ;;  %v217_v14 = vsel %vm207_vm5, %v214_v6, 0.0  ;;  %v14395_v17 = vpack.c.bf16 %v476_v52, %v469_v51  ;;  %v14399_v20 = vpack.c.bf16 %v477_v54, %v470_v53 }
  0x88   :  { %274 = vrot.lane.b32.xlu1 %v199_v25, %s14028_s9  ;;  %262 = vrot.lane.b32.xlu0 %v190_v23, %s14027_s22  ;;  %v472_v63 = vand.u32 4294901760, %v471_v59  ;;  %v479_v0 = vand.u32 4294901760, %v478_v60  ;;  %v485_v10 = vsub.f32 %v483_v61, %v484_v2  ;;  %v215_v15 = vsel %vm207_vm5, %v213_v7, %v214_v6 }
  0x89   :  { %12317 = vmatpush3.bf16.msra.mxu0 %v14361_v47  ;;  %v492_v11 = vsub.f32 %v490_v62, %v491_v3  ;;  %v14401_v22 = vpack.c.bf16 %v491_v3, %v484_v2  ;;  %v154_v33 = vsel %vm148_vm4, 0.0, %v149_v19  ;;  %v162_v2 = vsel %vm148_vm4, 0.0, %v157_v21 }
  0x8a   :  { %v14384_v9 = vpack.c.bf16 %v479_v0, %v472_v63  ;;  %v486_v12 = vand.u32 4294901760, %v485_v10  ;;  %vm3028_vm1 = vcmask 392192   ;;  %vm3038_vm2 = vcmask 654336  }
  0x8b   :  { %v493_v13 = vand.u32 4294901760, %v492_v11  ;;  %vm3043_vm3 = vcmask 785408   ;;  %vm3048_vm4 = vcmask 916480  }
  0x8c   :  { %238 = vrot.lane.b32.xlu1 %v184_v29, %s14020_s25  ;;  %226 = vrot.lane.b32.xlu0 %v171_v30, %s14026_s21 }
  0x8d   :  { %12319 = vmatprep.subr.bf16.mxu0 %v14384_v9  ;;  %v14391_v16 = vpack.c.bf16 %v493_v13, %v486_v12 }
  0x90   :  { %288 = vrot.lane.b32.xlu1 %v210_v38, %s14029_s7  ;;  %276 = vrot.lane.b32.xlu0 %v201_v37, %s14028_s9 }
  0x94   :  { %250 = vrot.lane.b32.xlu1 %v14291_v8, %s14025_s13  ;;  %240 = vrot.lane.b32.xlu0 %v182_v46, %s14020_s25 }
  0x98   :  { %252 = vrot.lane.b32.xlu1 %v14309_v18, %s14025_s13  ;;  %290 = vrot.lane.b32.xlu0 %v212_v48, %s14029_s7  ;;  %v14397_v18 = vpack.c.bf16 %v490_v62, %v483_v61 }
  0x9c   :  { %266 = vrot.lane.b32.xlu1 %v195_v55, %s14027_s22  ;;  %264 = vrot.lane.b32.xlu0 %v193_v56, %s14027_s22 }
  0xa0   :  { %280 = vrot.lane.b32.xlu1 %v206_v4, %s14028_s9  ;;  %278 = vrot.lane.b32.xlu0 %v204_v5, %s14028_s9  ;;  %s14031_s9 = smov 64  }
  0xa4   :  { %294 = vrot.lane.b32.xlu1 %v217_v14, %s14029_s7  ;;  %292 = vrot.lane.b32.xlu0 %v215_v15, %s14029_s7  ;;  %s14036_s7 = smov 1  }
  0xea   :  { %v249_v23 = vpop.permute.xlu1 %248  ;;  %v247_v25 = vpop.permute.xlu0 %246 }
  0xee   :  { %v235_v26 = vpop.permute.xlu1 %234  ;;  %v221_v27 = vpop.permute.xlu0 %220 }
  0xef   :  { %v301_v34 = vsel %vm300_vm7, %v154_v33, %v221_v27 }
  0xf0   :  { %v306_v37 = vsel %vm305_vm8, %v301_v34, %v235_v26 }
  0xf1   :  { %v311_v41 = vsel %vm310_vm9, %v306_v37, %v247_v25 }
  0xf2   :  { %v237_v29 = vpop.permute.xlu1 %236  ;;  %v223_v30 = vpop.permute.xlu0 %222 }
  0xf3   :  { %v302_v1 = vsel %vm300_vm7, %v14321_v24, %v223_v30 }
  0xf4   :  { %v307_v48 = vsel %vm305_vm8, %v302_v1, %v237_v29 }
  0xf5   :  { %v312_v53 = vsel %vm310_vm9, %v307_v48, %v249_v23 }
  0xf6   :  { %v225_v31 = vpop.permute.xlu1 %224  ;;  %v261_v32 = vpop.permute.xlu0 %260 }
  0xf7   :  { %v316_v42 = vsel %vm315_vm10, %v311_v41, %v261_v32  ;;  %v303_v5 = vsel %vm300_vm7, %v162_v2, %v225_v31 }
  0xfa   :  { %v275_v35 = vpop.permute.xlu1 %274  ;;  %v263_v36 = vpop.permute.xlu0 %262 }
  0xfb   :  { %v321_v19 = vsel %vm320_vm11, %v316_v42, %v275_v35  ;;  %v317_v24 = vsel %vm315_vm10, %v312_v53, %v263_v36 }
  0xfe   :  { %v239_v38 = vpop.permute.xlu1 %238  ;;  %v227_v39 = vpop.permute.xlu0 %226 }
  0xff   :  { %v304_v6 = vsel %vm300_vm7, %v14329_v28, %v227_v39  ;;  %v308_v11 = vsel %vm305_vm8, %v303_v5, %v239_v38 }
 0x102   :  { %v289_v43 = vpop.permute.xlu1 %288  ;;  %v277_v44 = vpop.permute.xlu0 %276 }
 0x103   :  { %v326_v45 = vsel %vm325_vm12, %v321_v19, %v289_v43  ;;  %v322_v55 = vsel %vm320_vm11, %v317_v24, %v277_v44  ;;  %v978_v19 = vld [vmem:[#allocation2 + $0x10] sm:$0xff]  ;;  %v979_v43 = vld [vmem:[#allocation2 + $0x18] sm:$0xff] }
 0x104   :  { %v343_v46 = vsel %vm341_vm13, %v326_v45, 0  ;;  %v1007_v44 = vand.u32 4294901760, %v978_v19 }
 0x105   :  { %v14416_v49 = vand.u32 4294901760, %v343_v46 }
 0x106   :  { %v251_v50 = vpop.permute.xlu1 %250  ;;  %v241_v51 = vpop.permute.xlu0 %240 }
 0x107   :  { %v14419_v52 = vsub.f32 %v343_v46, %v14416_v49  ;;  %v309_v12 = vsel %vm305_vm8, %v304_v6, %v241_v51  ;;  %v313_v8 = vsel %vm310_vm9, %v308_v11, %v251_v50  ;;  %v1125_v51 = vsub.f32 %v978_v19, %v1007_v44  ;;  %v1615_v19 = vld [vmem:[#allocation5 + $0x8] sm:$0xff] }
 0x109   :  { %v429_v54 = vand.u32 4294901760, %v14419_v52 }
 0x10a   :  { %v253_v56 = vpop.permute.xlu1 %252  ;;  %v291_v57 = vpop.permute.xlu0 %290 }
 0x10b   :  { %v327_v58 = vsel %vm325_vm12, %v322_v55, %v291_v57  ;;  %v430_v59 = vsub.f32 %v14419_v52, %v429_v54  ;;  %v314_v21 = vsel %vm310_vm9, %v309_v12, %v253_v56 }
 0x10c   :  { %v346_v60 = vsel %vm341_vm13, %v327_v58, 0 }
 0x10d   :  { %v14430_v61 = vand.u32 4294901760, %v346_v60  ;;  %v431_v62 = vand.u32 4294901760, %v430_v59 }
 0x10e   :  { %v267_v63 = vpop.permute.xlu1 %266  ;;  %v265_v0 = vpop.permute.xlu0 %264 }
 0x10f   :  { %v438_v3 = vsub.f32 %v346_v60, %v14430_v61  ;;  %10746 = vmatprep.mubr.f32.mxu0 %v431_v62  ;;  %v319_v14 = vsel %vm315_vm10, %v314_v21, %v267_v63  ;;  %v318_v15 = vsel %vm315_vm10, %v313_v8, %v265_v0 }
 0x111   :  { %v439_v4 = vand.u32 4294901760, %v438_v3 }
 0x112   :  { %v281_v7 = vpop.permute.xlu1 %280  ;;  %v279_v10 = vpop.permute.xlu0 %278 }
 0x113   :  { %v440_v13 = vsub.f32 %v438_v3, %v439_v4  ;;  %v324_v25 = vsel %vm320_vm11, %v319_v14, %v281_v7  ;;  %v323_v28 = vsel %vm320_vm11, %v318_v15, %v279_v10 }
 0x115   :  { %v441_v23 = vand.u32 4294901760, %v440_v13 }
 0x116   :  { %v295_v26 = vpop.permute.xlu1 %294  ;;  %v293_v27 = vpop.permute.xlu0 %292 }
 0x117   :  { %v329_v29 = vsel %vm325_vm12, %v324_v25, %v295_v26  ;;  %v328_v30 = vsel %vm325_vm12, %v323_v28, %v293_v27  ;;  %10747 = vmatmul.mubr.f32.vlgmr.msra.gmra.mrb[0].mxu0 %v441_v23 }
 0x118   :  { %v352_v31 = vsel %vm341_vm13, %v329_v29, 0  ;;  %v349_v32 = vsel %vm341_vm13, %v328_v30, 0  ;;  %12321 = vmatpush3.bf16.msra.mxu0 %v14384_v9  ;;  %v976_v9 = vld [vmem:[#allocation2] sm:$0xff] }
 0x119   :  { %v457_v33 = vand.u32 4294901760, %v352_v31  ;;  %v447_v34 = vand.u32 4294901760, %v349_v32  ;;  %12323 = vmatprep.subr.bf16.mxu0 %v14391_v16 }
 0x11b   :  { %v458_v35 = vsub.f32 %v352_v31, %v457_v33  ;;  %v448_v36 = vsub.f32 %v349_v32, %v447_v34 }
 0x11c   :  { %12325 = vmatpush3.bf16.msra.mxu0 %v14391_v16  ;;  %v977_v16 = vld [vmem:[#allocation2 + $0x8] sm:$0xff] }
 0x11d   :  { %v449_v37 = vand.u32 4294901760, %v448_v36  ;;  %v459_v38 = vand.u32 4294901760, %v458_v35  ;;  %12327 = vmatprep.subr.bf16.mxu0 %v14395_v17 }
 0x11f   :  { %v450_v39 = vsub.f32 %v448_v36, %v449_v37  ;;  %v460_v41 = vsub.f32 %v458_v35, %v459_v38 }
 0x121   :  { %v451_v42 = vand.u32 4294901760, %v450_v39  ;;  %v461_v1 = vand.u32 4294901760, %v460_v41 }
 0x123   :  { %10749 = vmatprep.mubr.f32.mxu0 %v451_v42 }
 0x124   :  { %10750 = vmatmul.mubr.f32.gmra.mrb[2].mxu0 %v461_v1 }
 0x125   :  { %10760 = vmatprep.mubr.f32.mxu0 %v14416_v49 }
 0x128   :  { %10761 = vmatmul.mubr.f32.vlgmr.msra.gmra.mrb[0].mxu0 %v14430_v61 }
 0x129   :  { %12329 = vmatpush3.bf16.msra.mxu0 %v14395_v17  ;;  %10763 = vmatprep.mubr.f32.mxu0 %v447_v34  ;;  %v1001_v17 = vand.u32 4294901760, %v976_v9 }
 0x12a   :  { %12331 = vmatprep.subr.bf16.mxu0 %v14397_v18 }
 0x12c   :  { %10764 = vmatmul.mubr.f32.gmra.mrb[2].mxu0 %v457_v33 }
 0x12d   :  { %12333 = vmatpush3.bf16.msra.mxu0 %v14397_v18  ;;  %10774 = vmatprep.mubr.f32.mxu0 %v14419_v52  ;;  %v1004_v18 = vand.u32 4294901760, %v977_v16 }
 0x12e   :  { %12335 = vmatprep.subr.bf16.mxu0 %v14348_v40 }
 0x130   :  { %10775 = vmatmul.mubr.f32.vlgmr.msra.gmra.mrb[0].mxu0 %v438_v3  ;;  %v9831_v3 = vld [vmem:[%s18741_s20] ss:$0 sm:$0xff]  ;;  %s14039_s20 = smov 113  }
 0x131   :  { %12337 = vmatpush3.bf16.msra.mxu0 %v14348_v40  ;;  %10777 = vmatprep.mubr.f32.mxu0 %v448_v36 }
 0x132   :  { %12339 = vmatprep.subr.bf16.mxu0 %v14361_v47 }
 0x134   :  { %10778 = vmatmul.mubr.f32.gmra.mrb[2].mxu0 %v458_v35 }
 0x135   :  { %12341 = vmatpush3.bf16.msra.mxu0 %v14361_v47  ;;  %10788 = vmatprep.mubr.f32.mxu0 %v429_v54  ;;  %v1126_v54 = vand.u32 4294901760, %v1125_v51 }
 0x136   :  { %12343 = vmatprep.subr.bf16.mxu0 %v14399_v20 }
 0x137   :  { %v1127_v57 = vsub.f32 %v1125_v51, %v1126_v54 }
 0x138   :  { %10789 = vmatmul.mubr.f32.vlgmr.msra.gmra.mrb[0].mxu0 %v439_v4 }
 0x139   :  { %12345 = vmatpush3.bf16.msra.mxu0 %v14399_v20  ;;  %10791 = vmatprep.mubr.f32.mxu0 %v449_v37  ;;  %v14479_v20 = vpack.c.bf16 %v1004_v18, %v1001_v17  ;;  %v1128_v59 = vand.u32 4294901760, %v1127_v57  ;;  %v2259_v57 = vld [vmem:[#allocation7] sm:$0xff] }
 0x13a   :  { %12347 = vmatprep.subr.bf16.mxu0 %v14401_v22 }
 0x13b   :  { %12359 = vmatprep.subr.bf16.mxu1 %v14479_v20 }
 0x13c   :  { %10792 = vmatmul.mubr.f32.gmra.mrb[2].mxu0 %v459_v38  ;;  %12361 = vmatpush3.bf16.msra.mxu1 %v14479_v20 }
 0x13d   :  { %12349 = vmatpush3.bf16.msra.mxu0 %v14401_v22  ;;  %10802 = vmatprep.mubr.f32.mxu0 %v14416_v49  ;;  %v1111_v22 = vsub.f32 %v976_v9, %v1001_v17 }
 0x13e   :  { %12351 = vmatprep.subr.bf16.mxu0 %v14348_v40 }
 0x13f   :  { %v1112_v45 = vand.u32 4294901760, %v1111_v22 }
 0x140   :  { %10803 = vmatmul.mubr.f32.vlgmr.msra.gmra.mrb[0].mxu0 %v14430_v61 }
 0x141   :  { %12353 = vmatpush3.bf16.msra.mxu0 %v14348_v40  ;;  %10805 = vmatprep.mubr.f32.mxu0 %v447_v34  ;;  %v1118_v40 = vsub.f32 %v977_v16, %v1004_v18 }
 0x142   :  { %12355 = vmatprep.subr.bf16.mxu0 %v14361_v47 }
 0x143   :  { %v1119_v46 = vand.u32 4294901760, %v1118_v40  ;;  %v12374_v62 = vpack.c.bf16 %v1118_v40, %v1111_v22 }
 0x144   :  { %10806 = vmatmul.mubr.f32.gmra.mrb[2].mxu0 %v457_v33 }
 0x145   :  { %12357 = vmatpush3.bf16.msra.mxu0 %v14361_v47  ;;  %10816 = vmatprep.mubr.f32.mxu0 %v14416_v49  ;;  %v1010_v47 = vand.u32 4294901760, %v979_v43  ;;  %v1113_v49 = vsub.f32 %v1111_v22, %v1112_v45  ;;  %v1120_v50 = vsub.f32 %v1118_v40, %v1119_v46  ;;  %v14487_v0 = vpack.c.bf16 %v1119_v46, %v1112_v45  ;;  %v1614_v40 = vld [vmem:[#allocation5] sm:$0xff]  ;;  %v1616_v46 = vld [vmem:[#allocation5 + $0x10] sm:$0xff] }
 0x147   :  { %v14483_v48 = vpack.c.bf16 %v1010_v47, %v1007_v44  ;;  %v1132_v52 = vsub.f32 %v979_v43, %v1010_v47  ;;  %v1114_v53 = vand.u32 4294901760, %v1113_v49  ;;  %v1121_v24 = vand.u32 4294901760, %v1120_v50  ;;  %v1617_v49 = vld [vmem:[#allocation5 + $0x18] sm:$0xff] }
 0x148   :  { %10817 = vmatmul.mubr.f32.vlgmr.msra.gmra.mrb[0].mxu0 %v14430_v61  ;;  %v1646_v43 = vand.u32 4294901760, %v1614_v40  ;;  %v1649_v44 = vand.u32 4294901760, %v1615_v19  ;;  %v1655_v50 = vand.u32 4294901760, %v1617_v49 }
 0x149   :  { %10819 = vmatprep.mubr.f32.mxu0 %v447_v34  ;;  %12363 = vmatprep.subr.bf16.mxu1 %v14483_v48  ;;  %v1133_v55 = vand.u32 4294901760, %v1132_v52  ;;  %v12366_v56 = vpack.c.bf16 %v1121_v24, %v1114_v53  ;;  %v12378_v63 = vpack.c.bf16 %v1132_v52, %v1125_v51 }
 0x14a   :  { %12365 = vmatpush3.bf16.msra.mxu1 %v14483_v48  ;;  %v14536_v47 = vpack.c.bf16 %v1649_v44, %v1646_v43  ;;  %v14538_v45 = vsub.f32 %v1614_v40, %v1646_v43 }
 0x14b   :  { %v1134_v58 = vsub.f32 %v1132_v52, %v1133_v55  ;;  %12367 = vmatprep.subr.bf16.mxu1 %v12366_v56  ;;  %v14489_v2 = vpack.c.bf16 %v1133_v55, %v1126_v54 }
 0x14c   :  { %10820 = vmatmul.mubr.f32.gmra.mrb[2].mxu0 %v457_v33  ;;  %12407 = vmatprep.subr.bf16.mxu0 %v14536_v47  ;;  %v1757_v51 = vand.u32 4294901760, %v14538_v45 }
 0x14d   :  { %v1135_v60 = vand.u32 4294901760, %v1134_v58  ;;  %12409 = vmatpush3.bf16.msra.mxu0 %v14536_v47  ;;  %v2260_v58 = vld [vmem:[#allocation7 + $0x8] sm:$0xff] }
 0x14e   :  { %v1758_v24 = vsub.f32 %v14538_v45, %v1757_v51 }
 0x14f   :  { %v12370_v61 = vpack.c.bf16 %v1135_v60, %v1128_v59  ;;  %v14559_v59 = vsub.f32 %v1617_v49, %v1655_v50 }
 0x150   :  { %v1759_v60 = vand.u32 4294901760, %v1758_v24 }
 0x21b   :  { %v10818_v4 = vpop.f32.mrb[0].mxu0 }
 0x21c   :  { %v14494_v5 = vadd.f32 %v10818_v4, %v9831_v3  ;;  %v950_v6 = vpop.f32.mrb[1].mxu0 }
 0x21d   :  { %v14496_v7 = vadd.f32 %v9831_v3, %v950_v6 }
 0x21e   :  { %18742 = vst [vmem:[#allocation19_spill] sm:$0xff] %v14494_v5  ;;  %v18538_v10 = vmax.f32 %v14494_v5, 0.0  ;;  %v7011_v5 = vld [vmem:[%s18529_s15] sm:$0xff] }
 0x21f   :  { %18743 = vst [vmem:[#allocation20_spill] sm:$0xff] %v14496_v7  ;;  %v18537_v11 = vmax.f32 %v14496_v7, 0.0  ;;  %v10821_v12 = vpop.f32.mrb[2].mxu0 }
 0x220   :  { %v992_v13 = vsel %vm18608_vm14, %v18538_v10, 0  ;;  %v14503_v8 = vadd.f32 %v10821_v12, %v9831_v3  ;;  %v962_v21 = vpop.f32.mrb[3].mxu0 }
 0x221   :  { %v14505_v14 = vand.u32 4294901760, %v992_v13  ;;  %v989_v15 = vsel %vm18608_vm14, %v18537_v11, 0  ;;  %v14510_v23 = vadd.f32 %v9831_v3, %v962_v21  ;;  %v1778_v3 = vand.u32 4294901760, %v14559_v59 }
 0x222   :  { %18744 = vst [vmem:[#allocation21_spill] sm:$0xff] %v14503_v8  ;;  %v1069_v25 = vand.u32 4294901760, %v989_v15  ;;  %v18535_v28 = vmax.f32 %v14503_v8, 0.0 }
 0x223   :  { %18745 = vst [vmem:[#allocation22_spill] sm:$0xff] %v14510_v23  ;;  %v1080_v26 = vsub.f32 %v992_v13, %v14505_v14  ;;  %v18536_v27 = vmax.f32 %v14510_v23, 0.0 }
 0x224   :  { %v1070_v29 = vsub.f32 %v989_v15, %v1069_v25  ;;  %v998_v30 = vsel %vm18608_vm14, %v18535_v28, 0  ;;  %v1779_v15 = vsub.f32 %v14559_v59, %v1778_v3 }
 0x225   :  { %v1099_v31 = vand.u32 4294901760, %v998_v30  ;;  %v995_v32 = vsel %vm18608_vm14, %v18536_v27, 0  ;;  %v1081_v33 = vand.u32 4294901760, %v1080_v26 }
 0x226   :  { %v1089_v34 = vand.u32 4294901760, %v995_v32  ;;  %v1071_v35 = vand.u32 4294901760, %v1070_v29 }
 0x227   :  { %v1100_v36 = vsub.f32 %v998_v30, %v1099_v31  ;;  %v1082_v37 = vsub.f32 %v1080_v26, %v1081_v33  ;;  %v2261_v30 = vld [vmem:[#allocation7 + $0x10] sm:$0xff] }
 0x228   :  { %v1090_v38 = vsub.f32 %v995_v32, %v1089_v34  ;;  %v1072_v39 = vsub.f32 %v1070_v29, %v1071_v35 }
 0x229   :  { %v1101_v41 = vand.u32 4294901760, %v1100_v36  ;;  %v1083_v9 = vand.u32 4294901760, %v1082_v37 }
 0x22a   :  { %v1073_v42 = vand.u32 4294901760, %v1072_v39  ;;  %v1091_v1 = vand.u32 4294901760, %v1090_v38 }
 0x22b   :  { %v1102_v16 = vsub.f32 %v1100_v36, %v1101_v41 }
 0x22c   :  { %10830 = vmatprep.mubr.f32.mxu1 %v1073_v42  ;;  %v1092_v17 = vsub.f32 %v1090_v38, %v1091_v1 }
 0x22d   :  { %10831 = vmatmul.mubr.f32.vlgmr.msra.gmra.mrb[0].mxu1 %v1083_v9  ;;  %v1103_v22 = vand.u32 4294901760, %v1102_v16 }
 0x22e   :  { %12369 = vmatpush3.bf16.msra.mxu1 %v12366_v56  ;;  %v1093_v18 = vand.u32 4294901760, %v1092_v17  ;;  %v9832_v56 = vld [vmem:[%s18518_s4] ss:$0 sm:$0xff]  ;;  %s14030_s4 = smov 96  }
 0x22f   :  { %12371 = vmatprep.subr.bf16.mxu1 %v12370_v61 }
 0x230   :  { %10833 = vmatprep.mubr.f32.mxu1 %v1093_v18 }
 0x231   :  { %10834 = vmatmul.mubr.f32.gmra.mrb[2].mxu1 %v1103_v22 }
 0x232   :  { %12373 = vmatpush3.bf16.msra.mxu1 %v12370_v61  ;;  %10844 = vmatprep.mubr.f32.mxu1 %v1069_v25 }
 0x233   :  { %12375 = vmatprep.subr.bf16.mxu1 %v12374_v62 }
 0x235   :  { %10845 = vmatmul.mubr.f32.vlgmr.msra.gmra.mrb[0].mxu1 %v14505_v14 }
 0x236   :  { %12377 = vmatpush3.bf16.msra.mxu1 %v12374_v62  ;;  %10847 = vmatprep.mubr.f32.mxu1 %v1089_v34  ;;  %v2287_v62 = vand.u32 4294901760, %v2259_v57 }
 0x237   :  { %12379 = vmatprep.subr.bf16.mxu1 %v12378_v63 }
 0x239   :  { %10848 = vmatmul.mubr.f32.gmra.mrb[2].mxu1 %v1099_v31 }
 0x23a   :  { %12381 = vmatpush3.bf16.msra.mxu1 %v12378_v63  ;;  %10858 = vmatprep.mubr.f32.mxu1 %v1070_v29  ;;  %v2290_v63 = vand.u32 4294901760, %v2260_v58  ;;  %v1780_v29 = vand.u32 4294901760, %v1779_v15 }
 0x23b   :  { %12383 = vmatprep.subr.bf16.mxu1 %v14479_v20 }
 0x23c   :  { %v14569_v13 = vpack.c.bf16 %v2290_v63, %v2287_v62  ;;  %v2404_v39 = vsub.f32 %v2260_v58, %v2290_v63 }
 0x23d   :  { %10859 = vmatmul.mubr.f32.vlgmr.msra.gmra.mrb[0].mxu1 %v1080_v26 }
 0x23e   :  { %12385 = vmatpush3.bf16.msra.mxu1 %v14479_v20  ;;  %10861 = vmatprep.mubr.f32.mxu1 %v1090_v38  ;;  %18746 = vst [vmem:[#allocation23_spill] sm:$0xff] %v14569_v13  ;;  %v2397_v38 = vsub.f32 %v2259_v57, %v2287_v62 }
 0x23f   :  { %12387 = vmatprep.subr.bf16.mxu1 %v14483_v48 }
 0x240   :  { %v2398_v42 = vand.u32 4294901760, %v2397_v38 }
 0x241   :  { %10862 = vmatmul.mubr.f32.gmra.mrb[2].mxu1 %v1100_v36 }
 0x242   :  { %12389 = vmatpush3.bf16.msra.mxu1 %v14483_v48  ;;  %10872 = vmatprep.mubr.f32.mxu1 %v1071_v35  ;;  %v2399_v16 = vsub.f32 %v2397_v38, %v2398_v42 }
 0x243   :  { %12391 = vmatprep.subr.bf16.mxu1 %v14487_v0 }
 0x245   :  { %10873 = vmatmul.mubr.f32.vlgmr.msra.gmra.mrb[0].mxu1 %v1081_v33 }
 0x246   :  { %12393 = vmatpush3.bf16.msra.mxu1 %v14487_v0  ;;  %10875 = vmatprep.mubr.f32.mxu1 %v1091_v1  ;;  %v2405_v1 = vand.u32 4294901760, %v2404_v39 }
 0x247   :  { %12395 = vmatprep.subr.bf16.mxu1 %v14489_v2 }
 0x248   :  { %v2406_v17 = vsub.f32 %v2404_v39, %v2405_v1 }
 0x249   :  { %10876 = vmatmul.mubr.f32.gmra.mrb[2].mxu1 %v1101_v41 }
 0x24a   :  { %12397 = vmatpush3.bf16.msra.mxu1 %v14489_v2  ;;  %10886 = vmatprep.mubr.f32.mxu1 %v1069_v25  ;;  %v2407_v43 = vand.u32 4294901760, %v2406_v17 }
 0x24b   :  { %12399 = vmatprep.subr.bf16.mxu1 %v14479_v20 }
 0x24d   :  { %10887 = vmatmul.mubr.f32.vlgmr.msra.gmra.mrb[0].mxu1 %v14505_v14 }
 0x24e   :  { %12401 = vmatpush3.bf16.msra.mxu1 %v14479_v20  ;;  %10889 = vmatprep.mubr.f32.mxu1 %v1089_v34  ;;  %v14540_v20 = vsub.f32 %v1615_v19, %v1649_v44  ;;  %v2400_v19 = vand.u32 4294901760, %v2399_v16  ;;  %v7015_v16 = vld [vmem:[%s18529_s15 + $0x20] sm:$0xff] }
 0x24f   :  { %12403 = vmatprep.subr.bf16.mxu1 %v14483_v48 }
 0x250   :  { %v1764_v52 = vand.u32 4294901760, %v14540_v20  ;;  %v14597_v9 = vpack.c.bf16 %v14540_v20, %v14538_v45  ;;  %v14608_v49 = vpack.c.bf16 %v2407_v43, %v2400_v19 }
 0x251   :  { %10890 = vmatmul.mubr.f32.gmra.mrb[2].mxu1 %v1099_v31 }
 0x252   :  { %12405 = vmatpush3.bf16.msra.mxu1 %v14483_v48  ;;  %10900 = vmatprep.mubr.f32.mxu1 %v1069_v25  ;;  %v1652_v48 = vand.u32 4294901760, %v1616_v46  ;;  %v1765_v54 = vsub.f32 %v14540_v20, %v1764_v52  ;;  %18748 = vst [vmem:[#allocation25_spill] sm:$0xff] %v14608_v49  ;;  %v14623_v57 = vpack.c.bf16 %v1764_v52, %v1757_v51 }
 0x253   :  { %12455 = vmatprep.subr.bf16.mxu1 %v14569_v13 }
 0x254   :  { %v14546_v53 = vpack.c.bf16 %v1655_v50, %v1652_v48  ;;  %v14554_v55 = vsub.f32 %v1616_v46, %v1652_v48  ;;  %v1766_v61 = vand.u32 4294901760, %v1765_v54 }
 0x255   :  { %10901 = vmatmul.mubr.f32.vlgmr.msra.gmra.mrb[0].mxu1 %v14505_v14 }
 0x256   :  { %10903 = vmatprep.mubr.f32.mxu1 %v1089_v34  ;;  %12411 = vmatprep.subr.bf16.mxu0 %v14546_v53  ;;  %v1771_v2 = vand.u32 4294901760, %v14554_v55  ;;  %v14567_v12 = vpack.c.bf16 %v1766_v61, %v1759_v60  ;;  %v2293_v34 = vand.u32 4294901760, %v2261_v30  ;;  %v14606_v40 = vpack.c.bf16 %v14559_v59, %v14554_v55 }
 0x257   :  { %12413 = vmatpush3.bf16.msra.mxu0 %v14546_v53  ;;  %12457 = vmatpush3.bf16.msra.mxu1 %v14569_v13  ;;  %v14629_v60 = vpack.c.bf16 %v2405_v1, %v2398_v42  ;;  %v7013_v1 = vld [vmem:[%s18529_s15 + $0x10] sm:$0xff] }
 0x258   :  { %v1772_v14 = vsub.f32 %v14554_v55, %v1771_v2  ;;  %12415 = vmatprep.subr.bf16.mxu0 %v14567_v12  ;;  %v2411_v18 = vsub.f32 %v2261_v30, %v2293_v34  ;;  %v14627_v59 = vpack.c.bf16 %v1778_v3, %v1771_v2 }
 0x259   :  { %10904 = vmatmul.mubr.f32.gmra.mrb[2].mxu1 %v1099_v31  ;;  %v2262_v31 = vld [vmem:[#allocation7 + $0x18] sm:$0xff]  ;;  %18752 = vst [vmem:[#allocation29_spill] sm:$0xff] %v14629_v60 }
 0x25a   :  { %v1773_v26 = vand.u32 4294901760, %v1772_v14  ;;  %v2296_v35 = vand.u32 4294901760, %v2262_v31  ;;  %v2412_v44 = vand.u32 4294901760, %v2411_v18 }
 0x25c   :  { %v14586_v37 = vpack.c.bf16 %v1780_v29, %v1773_v26  ;;  %v14590_v41 = vpack.c.bf16 %v2296_v35, %v2293_v34  ;;  %v2418_v22 = vsub.f32 %v2262_v31, %v2296_v35  ;;  %v2413_v48 = vsub.f32 %v2411_v18, %v2412_v44 }
 0x25e   :  { %18747 = vst [vmem:[#allocation24_spill] sm:$0xff] %v14590_v41  ;;  %12459 = vmatprep.subr.bf16.mxu1 %v14590_v41  ;;  %v2419_v46 = vand.u32 4294901760, %v2418_v22  ;;  %v2414_v24 = vand.u32 4294901760, %v2413_v48  ;;  %v14625_v58 = vpack.c.bf16 %v2418_v22, %v2411_v18  ;;  %v7017_v48 = vld [vmem:[%s18529_s15 + $0x30] sm:$0xff] }
 0x25f   :  { %12461 = vmatpush3.bf16.msra.mxu1 %v14590_v41 }
 0x260   :  { %v2420_v50 = vsub.f32 %v2418_v22, %v2419_v46  ;;  %12463 = vmatprep.subr.bf16.mxu1 %v14608_v49  ;;  %18751 = vst [vmem:[#allocation28_spill] sm:$0xff] %v14625_v58  ;;  %v14631_v61 = vpack.c.bf16 %v2419_v46, %v2412_v44 }
 0x262   :  { %v2421_v54 = vand.u32 4294901760, %v2420_v50  ;;  %18753 = vst [vmem:[#allocation30_spill] sm:$0xff] %v14631_v61 }
 0x264   :  { %v14615_v55 = vpack.c.bf16 %v2421_v54, %v2414_v24 }
 0x266   :  { %18749 = vst [vmem:[#allocation26_spill] sm:$0xff] %v14615_v55 }
 0x328   :  { %v10902_v0 = vpop.f32.mrb[0].mxu1 }
 0x329   :  { %v14565_v4 = vadd.f32 %v10902_v0, %v9832_v56  ;;  %v1592_v6 = vpop.f32.mrb[1].mxu1 }
 0x32a   :  { %v14571_v21 = vadd.f32 %v9832_v56, %v1592_v6 }
 0x32b   :  { %1631 = vrot.lane.b32.xlu1 %v14565_v4, %s14030_s4 }
 0x32c   :  { %v10905_v25 = vpop.f32.mrb[2].mxu1  ;;  %1629 = vrot.lane.b32.xlu0 %v14571_v21, %s14030_s4 }
 0x32d   :  { %v14581_v32 = vadd.f32 %v10905_v25, %v9832_v56  ;;  %v1604_v33 = vpop.f32.mrb[3].mxu1 }
 0x32e   :  { %v14584_v36 = vadd.f32 %v9832_v56, %v1604_v33  ;;  %v14617_v56 = vpack.c.bf16 %v2404_v39, %v2397_v38 }
 0x32f   :  { %1635 = vrot.lane.b32.xlu1 %v14581_v32, %s14030_s4 }
 0x330   :  { %1633 = vrot.lane.b32.xlu0 %v14584_v36, %s14030_s4  ;;  %18750 = vst [vmem:[#allocation27_spill] sm:$0xff] %v14617_v56 }
 0x333   :  { %2272 = vrot.lane.b32.xlu1 %v14565_v4, %s14031_s9 }
 0x334   :  { %2270 = vrot.lane.b32.xlu0 %v14571_v21, %s14031_s9 }
 0x337   :  { %2276 = vrot.lane.b32.xlu1 %v14581_v32, %s14031_s9 }
 0x33b   :  { %2274 = vrot.lane.b32.xlu1 %v14584_v36, %s14031_s9 }
 0x39d   :  { %v14633_v62 = vpop.permute.xlu1 %1631 }
 0x39e   :  { %v1639_v63 = vsel %vm18608_vm14, %v14633_v62, 0  ;;  %v14637_v0 = vpop.permute.xlu0 %1629 }
 0x39f   :  { %v14639_v45 = vand.u32 4294901760, %v1639_v63  ;;  %v1637_v20 = vsel %vm18608_vm14, %v14637_v0, 0 }
 0x3a0   :  { %v14643_v51 = vand.u32 4294901760, %v1637_v20 }
 0x3a1   :  { %v14646_v52 = vsub.f32 %v1639_v63, %v14639_v45  ;;  %v14648_v2 = vpop.permute.xlu1 %1635 }
 0x3a2   :  { %v14651_v3 = vsub.f32 %v1637_v20, %v14643_v51  ;;  %v1643_v6 = vsel %vm18608_vm14, %v14648_v2, 0  ;;  %v14655_v14 = vpop.permute.xlu0 %1633 }
 0x3a3   :  { %v18543_v15 = vand.u32 4294901760, %v14646_v52  ;;  %v14658_v25 = vand.u32 4294901760, %v1643_v6  ;;  %v1641_v26 = vsel %vm18608_vm14, %v14655_v14, 0 }
 0x3a4   :  { %v14662_v29 = vand.u32 4294901760, %v1641_v26  ;;  %v18544_v30 = vand.u32 4294901760, %v14651_v3 }
 0x3a5   :  { %v1727_v31 = vsub.f32 %v14646_v52, %v18543_v15  ;;  %v14669_v33 = vsub.f32 %v1643_v6, %v14658_v25  ;;  %v2273_v34 = vpop.permute.xlu1 %2272 }
 0x3a6   :  { %v14672_v35 = vsub.f32 %v1641_v26, %v14662_v29  ;;  %v2280_v38 = vsel %vm18608_vm14, %v2273_v34, 0  ;;  %v2271_v39 = vpop.permute.xlu0 %2270  ;;  %v1717_v42 = vsub.f32 %v14651_v3, %v18544_v30 }
 0x3a7   :  { %v14684_v17 = vand.u32 4294901760, %v2280_v38  ;;  %v2278_v18 = vsel %vm18608_vm14, %v2271_v39, 0  ;;  %v14689_v22 = vsel %vm18608_vm14, %v2271_v39, %v14637_v0  ;;  %v18540_v46 = vand.u32 4294901760, %v14669_v33 }
 0x3a8   :  { %v14691_v19 = vand.u32 4294901760, %v2278_v18  ;;  %v1718_v43 = vand.u32 4294901760, %v1717_v42  ;;  %v18542_v44 = vand.u32 4294901760, %v14672_v35  ;;  %v1728_v50 = vand.u32 4294901760, %v1727_v31 }
 0x3a9   :  { %v14699_v24 = vsub.f32 %v2280_v38, %v14684_v17  ;;  %v14701_v54 = vpop.permute.xlu1 %2276  ;;  %v14704_v63 = vmul.f32 %v7013_v1, %v14689_v22  ;;  %v14707_v20 = vmul.f32 %v7015_v16, %v14689_v22  ;;  %v1747_v42 = vsub.f32 %v14669_v33, %v18540_v46 }
 0x3aa   :  { %v14710_v6 = vsub.f32 %v2278_v18, %v14691_v19  ;;  %v2284_v26 = vsel %vm18608_vm14, %v14701_v54, 0  ;;  %10914 = vmatprep.mubr.f32.mxu0 %v1718_v43  ;;  %v1737_v31 = vsub.f32 %v14672_v35, %v18542_v44  ;;  %v14724_v1 = vmul.f32 %v7017_v48, %v14689_v22  ;;  %v7019_v44 = vld [vmem:[%s18529_s15 + $0x40] sm:$0xff] }
 0x3ab   :  { %18754 = vst [vmem:[#allocation31_spill] sm:$0xff] %v14704_v63  ;;  %18755 = vst [vmem:[#allocation32_spill] sm:$0xff] %v14707_v20  ;;  %v18539_v38 = vand.u32 4294901760, %v14699_v24  ;;  %v14718_v39 = vand.u32 4294901760, %v2284_v26  ;;  %10915 = vmatmul.mubr.f32.vlgmr.msra.gmra.mrb[4].mxu0 %v1728_v50  ;;  %v18545_v43 = vand.u32 4294901760, %v14704_v63  ;;  %v1748_v11 = vand.u32 4294901760, %v1747_v42 }
 0x3ac   :  { %18756 = vst [vmem:[#allocation33_spill] sm:$0xff] %v14724_v1  ;;  %12417 = vmatpush3.bf16.msra.mxu0 %v14567_v12  ;;  %v1738_v16 = vand.u32 4294901760, %v1737_v31  ;;  %v18541_v18 = vand.u32 4294901760, %v14710_v6  ;;  %v18546_v48 = vand.u32 4294901760, %v14707_v20  ;;  %v7008_v12 = vsel %vm18608_vm14, %v2273_v34, %v14633_v62 }
 0x3ad   :  { %v2368_v28 = vsub.f32 %v14699_v24, %v18539_v38  ;;  %v14733_v50 = vsub.f32 %v2284_v26, %v14718_v39  ;;  %v2275_v27 = vpop.permute.xlu1 %2274  ;;  %12419 = vmatprep.subr.bf16.mxu0 %v14586_v37  ;;  %v18547_v38 = vand.u32 4294901760, %v14724_v1  ;;  %v7014_v26 = vld [vmem:[%s18529_s15 + $0x18] sm:$0xff] }
 0x3ae   :  { %v2282_v31 = vsel %vm18608_vm14, %v2275_v27, 0  ;;  %10917 = vmatprep.mubr.f32.mxu0 %v1738_v16  ;;  %v2358_v10 = vsub.f32 %v14710_v6, %v18541_v18  ;;  %v7009_v42 = vsel %vm18608_vm14, %v2275_v27, %v14655_v14  ;;  %v7016_v16 = vld [vmem:[%s18529_s15 + $0x28] sm:$0xff]  ;;  %v7018_v18 = vld [vmem:[%s18529_s15 + $0x38] sm:$0xff]  ;;  %v14771_v15 = vsub.f32 %v14707_v20, %v18546_v48  ;;  %v7023_v48 = vld [vmem:[%s18529_s15 + $0x60] sm:$0xff] }
 0x3af   :  { %v14747_v46 = vand.u32 4294901760, %v2282_v31  ;;  %10918 = vmatmul.mubr.f32.gmra.mrb[6].mxu0 %v1748_v11  ;;  %v14766_v11 = vsub.f32 %v14704_v63, %v18545_v43  ;;  %v14776_v30 = vsub.f32 %v14724_v1, %v18547_v38  ;;  %v14785_v43 = vmul.f32 %v7014_v26, %v7008_v12  ;;  %v7025_v38 = vld [vmem:[%s18529_s15 + $0x70] sm:$0xff] }
 0x3b0   :  { %12421 = vmatpush3.bf16.msra.mxu0 %v14586_v37  ;;  %10928 = vmatprep.mubr.f32.mxu0 %v14643_v51  ;;  %v2359_v27 = vand.u32 4294901760, %v2358_v10  ;;  %v7021_v37 = vld [vmem:[%s18529_s15 + $0x50] sm:$0xff]  ;;  %v2369_v10 = vand.u32 4294901760, %v2368_v28  ;;  %v18758_v8 = vand.u32 4294901760, %v14733_v50  ;;  %v14796_v23 = vmul.f32 %v7016_v16, %v7008_v12 }
 0x3b1   :  { %v14782_v34 = vsub.f32 %v2282_v31, %v14747_v46  ;;  %12423 = vmatprep.subr.bf16.mxu0 %v14597_v9  ;;  %18757 = vst [vmem:[#allocation34_spill] sm:$0xff] %v14785_v43  ;;  %v14798_v31 = vmul.f32 %v7018_v18, %v7008_v12  ;;  %v14800_v7 = vmul.f32 %v7019_v44, %v7009_v42 }
 0x3b2   :  { %10998 = vmatprep.mubr.f32.mxu1 %v2359_v27  ;;  %v2388_v28 = vsub.f32 %v14733_v50, %v18758_v8  ;;  %18759 = vst [vmem:[#allocation35_spill] sm:$0xff] %v14796_v23  ;;  %v7012_v27 = vld [vmem:[%s18529_s15 + $0x8] sm:$0xff]  ;;  %v18553_v8 = vand.u32 4294901760, %v14785_v43  ;;  %v14811_v16 = vmul.f32 %v7021_v37, %v7009_v42  ;;  %v14819_v26 = vmul.f32 %v7025_v38, %v7009_v42 }
 0x3b3   :  { %18760 = vst [vmem:[#allocation36_spill] sm:$0xff] %v14798_v31  ;;  %18761 = vst [vmem:[#allocation37_spill] sm:$0xff] %v14800_v7  ;;  %10929 = vmatmul.mubr.f32.vlgmr.msra.gmra.mrb[4].mxu0 %v14639_v45  ;;  %10999 = vmatmul.mubr.f32.vlgmr.msra.gmra.mrb[4].mxu1 %v2369_v10  ;;  %v14817_v10 = vmul.f32 %v7023_v48, %v7009_v42  ;;  %v7010_v1 = vsel %vm18608_vm14, %v14701_v54, %v14648_v2  ;;  %v7020_v48 = vld [vmem:[%s18529_s15 + $0x48] sm:$0xff] }
 0x3b4   :  { %18762 = vst [vmem:[#allocation38_spill] sm:$0xff] %v14811_v16  ;;  %12425 = vmatpush3.bf16.msra.mxu0 %v14597_v9  ;;  %10931 = vmatprep.mubr.f32.mxu0 %v14662_v29  ;;  %18764 = vst [vmem:[#allocation40_spill] sm:$0xff] %v14819_v26  ;;  %v18765_v9 = vand.u32 4294901760, %v14782_v34  ;;  %v2389_v38 = vand.u32 4294901760, %v2388_v28  ;;  %v14835_v42 = vmul.f32 %v7011_v5, %v14689_v22  ;;  %v7024_v28 = vld [vmem:[%s18529_s15 + $0x68] sm:$0xff]  ;;  %v18768_v5 = vand.u32 4294901760, %v14796_v23 }
 0x3b5   :  { %18763 = vst [vmem:[#allocation39_spill] sm:$0xff] %v14817_v10  ;;  %12427 = vmatprep.subr.bf16.mxu0 %v14606_v40  ;;  %12465 = vmatpush3.bf16.msra.mxu1 %v14608_v49  ;;  %v14837_v54 = vmul.f32 %v7012_v27, %v7008_v12  ;;  %v14842_v18 = vsub.f32 %v14785_v43, %v18553_v8  ;;  %v18769_v12 = vand.u32 4294901760, %v14798_v31  ;;  %v18560_v8 = vand.u32 4294901760, %v14811_v16  ;;  %v7026_v49 = vld [vmem:[%s18529_s15 + $0x78] sm:$0xff] }
 0x3b6   :  { %v2378_v37 = vsub.f32 %v14782_v34, %v18765_v9  ;;  %12467 = vmatprep.subr.bf16.mxu1 %v14615_v55  ;;  %18766 = vst [vmem:[#allocation41_spill] sm:$0xff] %v14835_v42  ;;  %v7022_v9 = vld [vmem:[%s18529_s15 + $0x58] sm:$0xff]  ;;  %v14854_v22 = vsub.f32 %v14796_v23, %v18768_v5  ;;  %v18770_v23 = vand.u32 4294901760, %v14800_v7  ;;  %v18774_v5 = vand.u32 4294901760, %v14817_v10 }
 0x3b7   :  { %18767 = vst [vmem:[#allocation42_spill] sm:$0xff] %v14837_v54  ;;  %10932 = vmatmul.mubr.f32.gmra.mrb[6].mxu0 %v14658_v25  ;;  %v14859_v27 = vsub.f32 %v14798_v31, %v18769_v12  ;;  %v14874_v12 = vmul.f32 %v7020_v48, %v7010_v1  ;;  %v14882_v31 = vmul.f32 %v7022_v9, %v7010_v1  ;;  %v18775_v48 = vand.u32 4294901760, %v14819_v26 }
 0x3b8   :  { %v2379_v44 = vand.u32 4294901760, %v2378_v37  ;;  %12429 = vmatpush3.bf16.msra.mxu0 %v14606_v40  ;;  %10942 = vmatprep.mubr.f32.mxu0 %v14651_v3  ;;  %v14872_v20 = vsub.f32 %v14800_v7, %v18770_v23  ;;  %v14880_v40 = vsub.f32 %v14811_v16, %v18560_v8  ;;  %v14884_v37 = vmul.f32 %v7024_v28, %v7010_v1 }
 0x3b9   :  { %18771 = vst [vmem:[#allocation43_spill] sm:$0xff] %v14874_v12  ;;  %12431 = vmatprep.subr.bf16.mxu0 %v14536_v47  ;;  %18772 = vst [vmem:[#allocation44_spill] sm:$0xff] %v14882_v31  ;;  %v14889_v23 = vsub.f32 %v14817_v10, %v18774_v5  ;;  %v14896_v7 = vmul.f32 %v7026_v49, %v7010_v1  ;;  %v18561_v8 = vand.u32 4294901760, %v14874_v12  ;;  %12469 = vmatpush3.bf16.msra.mxu1 %v14615_v55 }
 0x3ba   :  { %11001 = vmatprep.mubr.f32.mxu1 %v2379_v44  ;;  %18773 = vst [vmem:[#allocation45_spill] sm:$0xff] %v14884_v37  ;;  %v14894_v44 = vsub.f32 %v14819_v26, %v18775_v48  ;;  %v18562_v9 = vand.u32 4294901760, %v14882_v31  ;;  %v18566_v28 = vand.u32 4294901760, %v14884_v37  ;;  %12471 = vmatprep.subr.bf16.mxu1 %v14617_v56  ;;  %v18575_v48 = vand.u32 4294901760, %v14842_v18 }
 0x3bb   :  { %11002 = vmatmul.mubr.f32.gmra.mrb[6].mxu1 %v2389_v38  ;;  %18776 = vst [vmem:[#allocation46_spill] sm:$0xff] %v14896_v7  ;;  %10943 = vmatmul.mubr.f32.vlgmr.msra.gmra.mrb[4].mxu0 %v14646_v52  ;;  %v18568_v5 = vand.u32 4294901760, %v14896_v7  ;;  %v14910_v49 = vsub.f32 %v14874_v12, %v18561_v8  ;;  %v18779_v26 = vand.u32 4294901760, %v14766_v11  ;;  %v18783_v16 = vand.u32 4294901760, %v14771_v15 }
 0x3bc   :  { %12433 = vmatpush3.bf16.msra.mxu0 %v14536_v47  ;;  %11012 = vmatprep.mubr.f32.mxu1 %v14691_v19  ;;  %v14919_v38 = vsub.f32 %v14882_v31, %v18562_v9  ;;  %v14926_v8 = vsub.f32 %v14884_v37, %v18566_v28  ;;  %v18777_v9 = vand.u32 4294901760, %v14835_v42  ;;  %v18784_v10 = vand.u32 4294901760, %v14854_v22 }
 0x3bd   :  { %10945 = vmatprep.mubr.f32.mxu0 %v14672_v35  ;;  %12435 = vmatprep.subr.bf16.mxu0 %v14546_v53  ;;  %v14931_v1 = vsub.f32 %v14896_v7, %v18568_v5  ;;  %v7162_v28 = vsub.f32 %v14766_v11, %v18779_v26  ;;  %v7169_v7 = vsub.f32 %v14842_v18, %v18575_v48  ;;  %v18780_v26 = vand.u32 4294901760, %v14651_v3 }
 0x3be   :  { %v14939_v55 = vsub.f32 %v14835_v42, %v18777_v9  ;;  %v18781_v5 = vand.u32 4294901760, %v14837_v54  ;;  %v7176_v48 = vsub.f32 %v14771_v15, %v18783_v16  ;;  %v7183_v9 = vsub.f32 %v14854_v22, %v18784_v10 }
 0x3bf   :  { %11013 = vmatmul.mubr.f32.vlgmr.msra.gmra.mrb[4].mxu1 %v14684_v17  ;;  %10946 = vmatmul.mubr.f32.gmra.mrb[6].mxu0 %v14669_v33  ;;  %v7170_v3 = vand.u32 4294901760, %v7169_v7  ;;  %v18787_v12 = vand.u32 4294901760, %v14872_v20  ;;  %v18788_v43 = vand.u32 4294901760, %v14646_v52  ;;  %v18790_v52 = vand.u32 4294901760, %v14672_v35 }
 0x3c0   :  { %11015 = vmatprep.mubr.f32.mxu1 %v14747_v46  ;;  %18778 = vst [vmem:[#allocation47_spill] sm:$0xff] %v14939_v55  ;;  %12437 = vmatpush3.bf16.msra.mxu0 %v14546_v53  ;;  %v14960_v37 = vsub.f32 %v14837_v54, %v18781_v5  ;;  %v18786_v5 = vand.u32 4294901760, %v14859_v27  ;;  %v7177_v7 = vand.u32 4294901760, %v7176_v48  ;;  %v7184_v63 = vand.u32 4294901760, %v7183_v9 }
 0x3c1   :  { %12473 = vmatpush3.bf16.msra.mxu1 %v14617_v56  ;;  %10956 = vmatprep.mubr.f32.mxu0 %v18780_v26  ;;  %v7163_v56 = vand.u32 4294901760, %v7162_v28  ;;  %v18785_v26 = vand.u32 4294901760, %v14776_v30  ;;  %v7204_v16 = vsub.f32 %v14872_v20, %v18787_v12  ;;  %v18581_v54 = vand.u32 4294901760, %v14910_v49 }
 0x3c2   :  { %12439 = vmatprep.subr.bf16.mxu0 %v14623_v57  ;;  %18782 = vst [vmem:[#allocation48_spill] sm:$0xff] %v14960_v37  ;;  %12475 = vmatprep.subr.bf16.mxu1 %v14625_v58  ;;  %v7197_v28 = vsub.f32 %v14859_v27, %v18786_v5  ;;  %v7224_v9 = vand.u32 4294901760, %v14919_v38  ;;  %v7238_v35 = vand.u32 4294901760, %v14926_v8 }
 0x3c3   :  { %11016 = vmatmul.mubr.f32.gmra.mrb[6].mxu1 %v14718_v39  ;;  %v7190_v31 = vsub.f32 %v14776_v30, %v18785_v26  ;;  %10957 = vmatmul.mubr.f32.vlgmr.msra.gmra.mrb[4].mxu0 %v18788_v43  ;;  %v14986_v26 = vpack.c.bf16 %v7170_v3, %v7163_v56  ;;  %v7205_v12 = vand.u32 4294901760, %v7204_v16  ;;  %v14991_v43 = vpack.c.bf16 %v7184_v63, %v7177_v7 }
 0x3c4   :  { %11026 = vmatprep.mubr.f32.mxu1 %v14710_v6  ;;  %12441 = vmatpush3.bf16.msra.mxu0 %v14623_v57  ;;  %v7198_v42 = vand.u32 4294901760, %v7197_v28  ;;  %v7211_v48 = vsub.f32 %v14910_v49, %v18581_v54  ;;  %v7217_v57 = vand.u32 4294901760, %v14880_v40  ;;  %v7245_v3 = vand.u32 4294901760, %v14894_v44 }
 0x3c5   :  { %12477 = vmatpush3.bf16.msra.mxu1 %v14625_v58  ;;  %18789 = vst [vmem:[#allocation49_spill] sm:$0xff] %v14986_v26  ;;  %v7191_v5 = vand.u32 4294901760, %v7190_v31  ;;  %10959 = vmatprep.mubr.f32.mxu0 %v18790_v52  ;;  %18791 = vst [vmem:[#allocation50_spill] sm:$0xff] %v14991_v43  ;;  %v7231_v31 = vand.u32 4294901760, %v14889_v23  ;;  %v18793_v63 = vand.u32 4294901760, %v14669_v33  ;;  %v7225_v7 = vsub.f32 %v14919_v38, %v7224_v9 }
 0x3c6   :  { %12443 = vmatprep.subr.bf16.mxu0 %v14627_v59  ;;  %12479 = vmatprep.subr.bf16.mxu1 %v14569_v13  ;;  %v7212_v28 = vand.u32 4294901760, %v7211_v48  ;;  %v7218_v16 = vsub.f32 %v14880_v40, %v7217_v57  ;;  %v7252_v52 = vand.u32 4294901760, %v14931_v1  ;;  %v7239_v54 = vsub.f32 %v14926_v8, %v7238_v35 }
 0x3c7   :  { %v14999_v56 = vpack.c.bf16 %v7198_v42, %v7191_v5  ;;  %10960 = vmatmul.mubr.f32.gmra.mrb[6].mxu0 %v18793_v63  ;;  %v7232_v5 = vsub.f32 %v14889_v23, %v7231_v31  ;;  %v7246_v33 = vsub.f32 %v14894_v44, %v7245_v3  ;;  %v7226_v10 = vand.u32 4294901760, %v7225_v7 }
 0x3c8   :  { %11027 = vmatmul.mubr.f32.vlgmr.msra.gmra.mrb[4].mxu1 %v14699_v24  ;;  %12445 = vmatpush3.bf16.msra.mxu0 %v14627_v59  ;;  %v15018_v48 = vpack.c.bf16 %v7212_v28, %v7205_v12  ;;  %v7219_v63 = vand.u32 4294901760, %v7218_v16  ;;  %v7253_v59 = vsub.f32 %v14931_v1, %v7252_v52  ;;  %v7240_v58 = vand.u32 4294901760, %v7239_v54 }
 0x3c9   :  { %18792 = vst [vmem:[#allocation51_spill] sm:$0xff] %v14999_v56  ;;  %11029 = vmatprep.mubr.f32.mxu1 %v14782_v34  ;;  %12481 = vmatpush3.bf16.msra.mxu1 %v14569_v13  ;;  %v7233_v42 = vand.u32 4294901760, %v7232_v5  ;;  %v7247_v56 = vand.u32 4294901760, %v7246_v33  ;;  %v15025_v43 = vpack.c.bf16 %v14960_v37, %v14939_v55  ;;  %v15033_v16 = vpack.c.bf16 %v14842_v18, %v14766_v11 }
 0x3ca   :  { %10970 = vmatprep.mubr.f32.mxu0 %v14643_v51  ;;  %18794 = vst [vmem:[#allocation52_spill] sm:$0xff] %v15018_v48  ;;  %12447 = vmatprep.subr.bf16.mxu0 %v14536_v47  ;;  %v15029_v12 = vpack.c.bf16 %v7226_v10, %v7219_v63  ;;  %v7254_v28 = vand.u32 4294901760, %v7253_v59  ;;  %v15037_v7 = vpack.c.bf16 %v14854_v22, %v14771_v15  ;;  %v18799_v54 = vand.u32 4294901760, %v14710_v6 }
 0x3cb   :  { %12483 = vmatprep.subr.bf16.mxu1 %v14590_v41  ;;  %18795 = vst [vmem:[#allocation53_spill] sm:$0xff] %v15025_v43  ;;  %10971 = vmatmul.mubr.f32.vlgmr.msra.gmra.mrb[4].mxu0 %v14639_v45  ;;  %18797 = vst [vmem:[#allocation55_spill] sm:$0xff] %v15033_v16  ;;  %v15042_v5 = vpack.c.bf16 %v7240_v58, %v7233_v42  ;;  %v15046_v10 = vpack.c.bf16 %v14859_v27, %v14776_v30  ;;  %v18807_v42 = vand.u32 4294901760, %v14939_v55  ;;  %v18862_v16 = vmov 0 }
 0x3cc   :  { %11030 = vmatmul.mubr.f32.gmra.mrb[6].mxu1 %v14733_v50  ;;  %18796 = vst [vmem:[#allocation54_spill] sm:$0xff] %v15029_v12  ;;  %18798 = vst [vmem:[#allocation56_spill] sm:$0xff] %v15037_v7  ;;  %12449 = vmatpush3.bf16.msra.mxu0 %v14536_v47  ;;  %v15050_v33 = vpack.c.bf16 %v14910_v49, %v14872_v20  ;;  %v15054_v63 = vpack.c.bf16 %v7254_v28, %v7247_v56  ;;  %v18808_v56 = vand.u32 4294901760, %v14960_v37  ;;  %v18871_v12 = vmov 0 }
 0x3cd   :  { %11040 = vmatprep.mubr.f32.mxu1 %v18799_v54  ;;  %18800 = vst [vmem:[#allocation57_spill] sm:$0xff] %v15042_v5  ;;  %18801 = vst [vmem:[#allocation58_spill] sm:$0xff] %v15046_v10  ;;  %12485 = vmatpush3.bf16.msra.mxu1 %v14590_v41  ;;  %v15058_v47 = vpack.c.bf16 %v14919_v38, %v14880_v40  ;;  %v15062_v58 = vpack.c.bf16 %v14926_v8, %v14889_v23  ;;  %v18810_v40 = vand.u32 4294901760, %v14766_v11  ;;  %v18876_v48 = vmov 0 }
 0x3ce   :  { %18802 = vst [vmem:[#allocation59_spill] sm:$0xff] %v15050_v33  ;;  %10973 = vmatprep.mubr.f32.mxu0 %v14662_v29  ;;  %18803 = vst [vmem:[#allocation60_spill] sm:$0xff] %v15054_v63  ;;  %12451 = vmatprep.subr.bf16.mxu0 %v14546_v53  ;;  %v15068_v6 = vpack.c.bf16 %v14931_v1, %v14894_v44  ;;  %v15074_v59 = vpack.c.bf16 %v18808_v56, %v18807_v42  ;;  %v18811_v38 = vand.u32 4294901760, %v14842_v18  ;;  %v18878_v26 = vmov 0 }
 0x3cf   :  { %18804 = vst [vmem:[#allocation61_spill] sm:$0xff] %v15058_v47  ;;  %18805 = vst [vmem:[#allocation62_spill] sm:$0xff] %v15062_v58  ;;  %12487 = vmatprep.subr.bf16.mxu1 %v14629_v60  ;;  %10974 = vmatmul.mubr.f32.gmra.mrb[6].mxu0 %v14658_v25  ;;  %v18813_v23 = vand.u32 4294901760, %v14771_v15  ;;  %v18814_v28 = vand.u32 4294901760, %v14854_v22  ;;  %v18816_v1 = vand.u32 4294901760, %v14776_v30  ;;  %v18817_v54 = vand.u32 4294901760, %v14859_v27 }
 0x3d0   :  { %18806 = vst [vmem:[#allocation63_spill] sm:$0xff] %v15068_v6  ;;  %18809 = vst [vmem:[#allocation64_spill] sm:$0xff] %v15074_v59  ;;  %v15080_v8 = vpack.c.bf16 %v18811_v38, %v18810_v40  ;;  %v18819_v11 = vand.u32 4294901760, %v14872_v20  ;;  %v18820_v18 = vand.u32 4294901760, %v14910_v49  ;;  %v15101_v40 = vpack.c.bf16 %v7224_v9, %v7217_v57  ;;  %12453 = vmatpush3.bf16.msra.mxu0 %v14546_v53  ;;  %v9833_v53 = vld [vmem:[%s18520_s6] ss:$0 sm:$0xff] }
 0x3d1   :  { %v15087_v44 = vpack.c.bf16 %v18814_v28, %v18813_v23  ;;  %v15093_v42 = vpack.c.bf16 %v18817_v54, %v18816_v1  ;;  %v18823_v15 = vand.u32 4294901760, %v14699_v24  ;;  %v15106_v22 = vpack.c.bf16 %v7238_v35, %v7231_v31  ;;  %10984 = vmatprep.mubr.f32.mxu0 %v14643_v51  ;;  %s14032_s6 = smov 32  }
 0x3d2   :  { %18812 = vst [vmem:[#allocation65_spill] sm:$0xff] %v15080_v8  ;;  %v15099_v56 = vpack.c.bf16 %v18820_v18, %v18819_v11  ;;  %18822 = vst [vmem:[#allocation69_spill] sm:$0xff] %v15101_v40  ;;  %v15108_v30 = vpack.c.bf16 %v7252_v52, %v7245_v3  ;;  %v18826_v27 = vand.u32 4294901760, %v14782_v34  ;;  %v18827_v24 = vand.u32 4294901760, %v14733_v50 }
 0x3d3   :  { %18815 = vst [vmem:[#allocation66_spill] sm:$0xff] %v15087_v44  ;;  %18818 = vst [vmem:[#allocation67_spill] sm:$0xff] %v15093_v42  ;;  %11041 = vmatmul.mubr.f32.vlgmr.msra.gmra.mrb[4].mxu1 %v18823_v15  ;;  %10985 = vmatmul.mubr.f32.vlgmr.msra.gmra.mrb[4].mxu0 %v14639_v45  ;;  %v18892_v37 = vmov 0  ;;  %v18916_v10 = vmov 0 }
 0x3d4   :  { %18821 = vst [vmem:[#allocation68_spill] sm:$0xff] %v15099_v56  ;;  %18824 = vst [vmem:[#allocation70_spill] sm:$0xff] %v15106_v22  ;;  %11043 = vmatprep.mubr.f32.mxu1 %v18826_v27  ;;  %12489 = vmatpush3.bf16.msra.mxu1 %v14629_v60 }
 0x3d5   :  { %18825 = vst [vmem:[#allocation71_spill] sm:$0xff] %v15108_v30  ;;  %12491 = vmatprep.subr.bf16.mxu1 %v14631_v61  ;;  %10987 = vmatprep.mubr.f32.mxu0 %v14662_v29 }
 0x3d7   :  { %11044 = vmatmul.mubr.f32.gmra.mrb[6].mxu1 %v18827_v24  ;;  %10988 = vmatmul.mubr.f32.gmra.mrb[6].mxu0 %v14658_v25 }
 0x3d8   :  { %12493 = vmatpush3.bf16.msra.mxu1 %v14631_v61  ;;  %11054 = vmatprep.mubr.f32.mxu1 %v14691_v19 }
 0x3d9   :  { %12495 = vmatprep.subr.bf16.mxu1 %v14569_v13 }
 0x3db   :  { %11055 = vmatmul.mubr.f32.vlgmr.msra.gmra.mrb[4].mxu1 %v14684_v17 }
 0x3dc   :  { %11057 = vmatprep.mubr.f32.mxu1 %v14747_v46  ;;  %12497 = vmatpush3.bf16.msra.mxu1 %v14569_v13 }
 0x3dd   :  { %12499 = vmatprep.subr.bf16.mxu1 %v14590_v41 }
 0x3df   :  { %11058 = vmatmul.mubr.f32.gmra.mrb[6].mxu1 %v14718_v39 }
 0x3e0   :  { %12501 = vmatpush3.bf16.msra.mxu1 %v14590_v41  ;;  %11068 = vmatprep.mubr.f32.mxu1 %v14691_v19 }
 0x3e3   :  { %11069 = vmatmul.mubr.f32.vlgmr.msra.gmra.mrb[4].mxu1 %v14684_v17 }
 0x3e4   :  { %11071 = vmatprep.mubr.f32.mxu1 %v14747_v46 }
 0x3e7   :  { %11072 = vmatmul.mubr.f32.gmra.mrb[6].mxu1 %v14718_v39 }
 0x4a6   :  { %v10986_v45 = vpop.f32.mrb[4].mxu0 }
 0x4a7   :  { %v2237_v51 = vpop.f32.mrb[5].mxu0  ;;  %v13566_v50 = vadd.f32 %v10986_v45, %v9833_v53 }
 0x4a8   :  { %v13567_v25 = vadd.f32 %v9833_v53, %v2237_v51 }
 0x4aa   :  { %v10989_v29 = vpop.f32.mrb[6].mxu0  ;;  %3661 = vxpose.xlu0.b32.start [1/4] (short) (narrow) %v13567_v25, 32 }
 0x4ab   :  { %v2249_v20 = vpop.f32.mrb[7].mxu0  ;;  %v13568_v17 = vadd.f32 %v10989_v29, %v9833_v53 }
 0x4ac   :  { %v13569_v34 = vadd.f32 %v9833_v53, %v2249_v20 }
 0x4ae   :  { %3662 = vxpose.xlu0.b32.cont [2/4] (short) (narrow) %v13566_v50, 32 }
 0x4b2   :  { %3663 = vxpose.xlu0.b32.cont [3/4] (short) (narrow) %v13569_v34, 32 }
 0x4b6   :  { %v15136_v19 = vpop.f32.mrb[4].mxu1  ;;  %3664 = vxpose.xlu0.b32.end [4/4] (short) (narrow) %v13568_v17, 32 }
 0x4b7   :  { %18828 = vst [vmem:[#allocation72_spill] sm:$0xff] %v15136_v19  ;;  %v15138_v46 = vpop.f32.mrb[5].mxu1 }
 0x4b8   :  { %18829 = vst [vmem:[#allocation73_spill] sm:$0xff] %v15138_v46 }
 0x4ba   :  { %v15140_v39 = vpop.f32.mrb[6].mxu1 }
 0x4bb   :  { %18830 = vst [vmem:[#allocation74_spill] sm:$0xff] %v15140_v39  ;;  %v15142_v49 = vpop.f32.mrb[7].mxu1  ;;  %v18904_v39 = vmov 0 }
 0x4bc   :  { %18831 = vst [vmem:[#allocation75_spill] sm:$0xff] %v15142_v49  ;;  %v18898_v49 = vmov 0 }
 0x52a   :  { %v3677_v57 = vpop.trf.xlu0 }
 0x52b   :  { %3697 = vrot.lane.b32.xlu1 %v3677_v57, %s14027_s22 }
 0x52e   :  { %v3678_v9 = vpop.trf.xlu0 }
 0x52f   :  { %3709 = vrot.lane.b32.xlu1 %v3677_v57, %s14032_s6  ;;  %3735 = vrot.lane.b32.xlu0 %v3678_v9, %s14031_s9 }
 0x532   :  { %v15147_v31 = vpop.trf.xlu0 }
 0x533   :  { %3721 = vrot.lane.b32.xlu1 %v3677_v57, %s14033_s12  ;;  %3749 = vrot.lane.b32.xlu0 %v15147_v31, %s14034_s2 }
 0x537   :  { %3733 = vrot.lane.b32.xlu1 %v3677_v57, %s14031_s9  ;;  %3761 = vrot.lane.b32.xlu0 %v15147_v31, %s14030_s4 }
 0x53b   :  { %3745 = vrot.lane.b32.xlu1 %v3677_v57, %s14034_s2  ;;  %2900 = vrot.lane.b32.xlu0 %v14584_v36, %s14032_s6  ;;  %v15175_v36 = vpop.trf.xlu0 }
 0x53f   :  { %3757 = vrot.lane.b32.xlu1 %v3677_v57, %s14030_s4 }
 0x543   :  { %3699 = vrot.lane.b32.xlu1 %v3678_v9, %s14027_s22 }
 0x547   :  { %3711 = vrot.lane.b32.xlu1 %v3678_v9, %s14032_s6 }
 0x54b   :  { %3723 = vrot.lane.b32.xlu1 %v3678_v9, %s14033_s12 }
 0x54f   :  { %3747 = vrot.lane.b32.xlu1 %v3678_v9, %s14034_s2 }
 0x553   :  { %3759 = vrot.lane.b32.xlu1 %v3678_v9, %s14030_s4 }
 0x557   :  { %3701 = vrot.lane.b32.xlu1 %v15147_v31, %s14027_s22 }
 0x559   :  { %2912 = vxpose.xlu0.b32.start [1/4] (short) (narrow) %v14637_v0, 32 }
 0x55b   :  { %3713 = vrot.lane.b32.xlu1 %v15147_v31, %s14032_s6 }
 0x55d   :  { %2913 = vxpose.xlu0.b32.cont [2/4] (short) (narrow) %v14633_v62, 32 }
 0x55f   :  { %3725 = vrot.lane.b32.xlu1 %v15147_v31, %s14033_s12 }
 0x561   :  { %2914 = vxpose.xlu0.b32.cont [3/4] (short) (narrow) %v14655_v14, 32 }
 0x563   :  { %3737 = vrot.lane.b32.xlu1 %v15147_v31, %s14031_s9 }
 0x565   :  { %2915 = vxpose.xlu0.b32.end [4/4] (short) (narrow) %v14648_v2, 32 }
 0x567   :  { %3703 = vrot.lane.b32.xlu1 %v15175_v36, %s14027_s22 }
 0x56b   :  { %3715 = vrot.lane.b32.xlu1 %v15175_v36, %s14032_s6 }
 0x56f   :  { %3727 = vrot.lane.b32.xlu1 %v15175_v36, %s14033_s12 }
 0x573   :  { %3739 = vrot.lane.b32.xlu1 %v15175_v36, %s14031_s9 }
 0x577   :  { %3751 = vrot.lane.b32.xlu1 %v15175_v36, %s14034_s2 }
 0x57b   :  { %3763 = vrot.lane.b32.xlu1 %v15175_v36, %s14030_s4 }
 0x57f   :  { %2902 = vrot.lane.b32.xlu1 %v14581_v32, %s14032_s6 }
 0x59d   :  { %v3698_v62 = vpop.permute.xlu1 %3697 }
 0x5a1   :  { %v3710_v0 = vpop.permute.xlu1 %3709  ;;  %v3736_v2 = vpop.permute.xlu0 %3735 }
 0x5a5   :  { %v3722_v14 = vpop.permute.xlu1 %3721  ;;  %v15192_v35 = vpop.permute.xlu0 %3749 }
 0x5a9   :  { %v3734_v3 = vpop.permute.xlu1 %3733  ;;  %v15194_v52 = vpop.permute.xlu0 %3761 }
 0x5ad   :  { %v3746_v38 = vpop.permute.xlu1 %3745  ;;  %v2901_v23 = vpop.permute.xlu0 %2900 }
 0x5ae   :  { %v2906_v28 = vsel %vm18608_vm14, %v14571_v21, %v2901_v23  ;;  %v3769_v21 = vsel %vm315_vm10, %v3677_v57, %v3698_v62 }
 0x5af   :  { %v3070_v1 = vsel %vm3033_vm15, %v2906_v28, 0  ;;  %v3773_v45 = vsel %vm18608_vm14, %v3769_v21, %v3710_v0 }
 0x5b0   :  { %v15199_v54 = vand.u32 4294901760, %v3070_v1  ;;  %v3777_v51 = vsel %vm3028_vm1, %v3773_v45, %v3722_v14 }
 0x5b1   :  { %v3758_v32 = vpop.permute.xlu1 %3757  ;;  %v3781_v34 = vsel %vm3033_vm15, %v3777_v51, %v3722_v14  ;;  %v15229_v14 = vld [vmem:[%s18528_s14 + $0x8] sm:$0xff] }
 0x5b2   :  { %v15202_v11 = vsub.f32 %v3070_v1, %v15199_v54  ;;  %v3785_v57 = vsel %vm3038_vm2, %v3781_v34, %v3734_v3 }
 0x5b3   :  { %v3789_v62 = vsel %vm3043_vm3, %v3785_v57, %v3746_v38 }
 0x5b4   :  { %v15205_v18 = vand.u32 4294901760, %v15202_v11  ;;  %v3793_v23 = vsel %vm3048_vm4, %v3789_v62, %v3758_v32 }
 0x5b5   :  { %v3700_v15 = vpop.permute.xlu1 %3699 }
 0x5b6   :  { %v3151_v27 = vsub.f32 %v15202_v11, %v15205_v18  ;;  %v3770_v25 = vsel %vm315_vm10, %v3678_v9, %v3700_v15  ;;  %v15222_v9 = vld [vmem:[%s18528_s14] sm:$0xff] }
 0x5b7   :  { %v3797_v1 = vmul.f32 %v3793_v23, %v15222_v9 }
 0x5b8   :  { %v3152_v24 = vand.u32 4294901760, %v3151_v27 }
 0x5b9   :  { %v3712_v53 = vpop.permute.xlu1 %3711 }
 0x5ba   :  { %11090 = vmatprep.mubr.f32.mxu0 %v3152_v24  ;;  %11204 = vmatprep.mubr.f32.mxu1 %v3152_v24  ;;  %v3774_v29 = vsel %vm18608_vm14, %v3770_v25, %v3712_v53  ;;  %v3806_v24 = vand.u32 4294901760, %v3797_v1 }
 0x5bc   :  { %v15303_v60 = vsub.f32 %v3797_v1, %v3806_v24 }
 0x5bd   :  { %v3724_v20 = vpop.permute.xlu1 %3723 }
 0x5be   :  { %v3778_v50 = vsel %vm3028_vm1, %v3774_v29, %v3724_v20 }
 0x5bf   :  { %v3782_v17 = vsel %vm3033_vm15, %v3778_v50, %v3724_v20 }
 0x5c0   :  { %v3786_v28 = vsel %vm3038_vm2, %v3782_v17, %v3736_v2 }
 0x5c1   :  { %v3748_v0 = vpop.permute.xlu1 %3747 }
 0x5c2   :  { %v3790_v3 = vsel %vm3043_vm3, %v3786_v28, %v3748_v0 }
 0x5c5   :  { %v3760_v38 = vpop.permute.xlu1 %3759 }
 0x5c6   :  { %v3794_v15 = vsel %vm3048_vm4, %v3790_v3, %v3760_v38 }
 0x5c7   :  { %v3798_v27 = vmul.f32 %v3794_v15, %v15229_v14 }
 0x5c9   :  { %v3809_v53 = vand.u32 4294901760, %v3798_v27  ;;  %v3702_v21 = vpop.permute.xlu1 %3701 }
 0x5ca   :  { %v3771_v20 = vsel %vm315_vm10, %v15147_v31, %v3702_v21 }
 0x5cb   :  { %v15235_v32 = vpack.c.bf16 %v3809_v53, %v3806_v24 }
 0x5cd   :  { %v3714_v2 = vpop.permute.xlu1 %3713  ;;  %12599 = vmatprep.subr.bf16.mxu1 %v15235_v32 }
 0x5ce   :  { %12601 = vmatpush3.bf16.msra.mxu1 %v15235_v32  ;;  %v3775_v50 = vsel %vm18608_vm14, %v3771_v20, %v3714_v2 }
 0x5d1   :  { %v3726_v45 = vpop.permute.xlu1 %3725 }
 0x5d2   :  { %v3779_v57 = vsel %vm3028_vm1, %v3775_v50, %v3726_v45  ;;  %v15288_v50 = vld [vmem:[%s18528_s14 + $0x20] sm:$0xff] }
 0x5d3   :  { %v3783_v62 = vsel %vm3033_vm15, %v3779_v57, %v3726_v45  ;;  %v3801_v61 = vmul.f32 %v3793_v23, %v15288_v50  ;;  %v15317_v23 = vld [vmem:[%s18528_s14 + $0x30] sm:$0xff] }
 0x5d5   :  { %v3738_v51 = vpop.permute.xlu1 %3737 }
 0x5d6   :  { %v3787_v3 = vsel %vm3038_vm2, %v3783_v62, %v3738_v51  ;;  %v15271_v51 = vld [vmem:[%s18528_s14 + $0x10] sm:$0xff]  ;;  %v15293_v62 = vsub.f32 %v3798_v27, %v3809_v53 }
 0x5d7   :  { %v3791_v31 = vsel %vm3043_vm3, %v3787_v3, %v15192_v35 }
 0x5d8   :  { %v3795_v35 = vsel %vm3048_vm4, %v3791_v31, %v15194_v52  ;;  %v15299_v31 = vld [vmem:[%s18528_s14 + $0x18] sm:$0xff]  ;;  %v18832_v22 = vand.u32 4294901760, %v15293_v62 }
 0x5d9   :  { %v3704_v25 = vpop.permute.xlu1 %3703  ;;  %v15239_v29 = vpop.trf.xlu0  ;;  %v3799_v52 = vmul.f32 %v3795_v35, %v15271_v51 }
 0x5da   :  { %2948 = vrot.lane.b32.xlu1 %v15239_v29, %s14027_s22  ;;  %v3772_v2 = vsel %vm315_vm10, %v15175_v36, %v3704_v25  ;;  %v15279_v36 = vld [vmem:[%s18528_s14 + $0x28] sm:$0xff] }
 0x5db   :  { %v3802_v57 = vmul.f32 %v3794_v15, %v15279_v36  ;;  %v15308_v15 = vld [vmem:[%s18528_s14 + $0x38] sm:$0xff]  ;;  %s14051_s14 = smov 116  }
 0x5dd   :  { %v3716_v34 = vpop.permute.xlu1 %3715  ;;  %v15246_v17 = vpop.trf.xlu0 }
 0x5de   :  { %2950 = vrot.lane.b32.xlu1 %v15246_v17, %s14027_s22  ;;  %v3776_v45 = vsel %vm18608_vm14, %v3772_v2, %v3716_v34 }
 0x5e1   :  { %v3728_v0 = vpop.permute.xlu1 %3727  ;;  %v15252_v28 = vpop.trf.xlu0 }
 0x5e2   :  { %2960 = vrot.lane.b32.xlu1 %v15239_v29, %s14032_s6  ;;  %v3780_v20 = vsel %vm3028_vm1, %v3776_v45, %v3728_v0 }
 0x5e3   :  { %v3784_v34 = vsel %vm3033_vm15, %v3780_v20, %v3728_v0  ;;  %v3812_v0 = vand.u32 4294901760, %v3799_v52 }
 0x5e5   :  { %v3740_v38 = vpop.permute.xlu1 %3739  ;;  %v15259_v21 = vpop.trf.xlu0  ;;  %v15329_v13 = vsub.f32 %v3799_v52, %v3812_v0 }
 0x5e6   :  { %2962 = vrot.lane.b32.xlu1 %v15246_v17, %s14032_s6  ;;  %2966 = vrot.lane.b32.xlu0 %v15259_v21, %s14032_s6  ;;  %v3788_v3 = vsel %vm3038_vm2, %v3784_v34, %v3740_v38  ;;  %v3821_v38 = vand.u32 4294901760, %v3802_v57  ;;  %v3818_v34 = vand.u32 4294901760, %v3801_v61 }
 0x5e8   :  { %v15345_v52 = vsub.f32 %v3801_v61, %v3818_v34 }
 0x5e9   :  { %v3752_v25 = vpop.permute.xlu1 %3751 }
 0x5ea   :  { %2972 = vrot.lane.b32.xlu1 %v15239_v29, %s14033_s12  ;;  %3012 = vrot.lane.b32.xlu0 %v15252_v28, %s14030_s4  ;;  %v3792_v2 = vsel %vm3043_vm3, %v3788_v3, %v3752_v25 }
 0x5ed   :  { %v3764_v45 = vpop.permute.xlu1 %3763 }
 0x5ee   :  { %v3796_v27 = vsel %vm3048_vm4, %v3792_v2, %v3764_v45  ;;  %2974 = vrot.lane.b32.xlu1 %v15246_v17, %s14033_s12  ;;  %v3803_v45 = vmul.f32 %v3795_v35, %v15317_v23 }
 0x5ef   :  { %v3800_v53 = vmul.f32 %v3796_v27, %v15299_v31  ;;  %v3804_v24 = vmul.f32 %v3796_v27, %v15308_v15  ;;  %v15333_v27 = vsub.f32 %v3802_v57, %v3821_v38 }
 0x5f0   :  { %v3824_v57 = vand.u32 4294901760, %v3803_v45 }
 0x5f1   :  { %v3815_v20 = vand.u32 4294901760, %v3800_v53  ;;  %v2903_v25 = vpop.permute.xlu1 %2902  ;;  %v3827_v40 = vand.u32 4294901760, %v3804_v24  ;;  %v18835_v44 = vand.u32 4294901760, %v15333_v27 }
 0x5f2   :  { %v2907_v3 = vsel %vm18608_vm14, %v14565_v4, %v2903_v25  ;;  %2952 = vrot.lane.b32.xlu1 %v15252_v28, %s14027_s22  ;;  %v3909_v4 = vsub.f32 %v15293_v62, %v18832_v22  ;;  %v15339_v25 = vpack.c.bf16 %v3821_v38, %v3818_v34  ;;  %v18833_v22 = vand.u32 4294901760, %v15303_v60 }
 0x5f3   :  { %v15327_v41 = vpack.c.bf16 %v3815_v20, %v3812_v0  ;;  %v15331_v1 = vsub.f32 %v3800_v53, %v3815_v20  ;;  %v3073_v30 = vsel %vm3033_vm15, %v2907_v3, 0  ;;  %v18601_v38 = vand.u32 4294901760, %v15329_v13 }
 0x5f4   :  { %v15341_v2 = vand.u32 4294901760, %v3073_v30  ;;  %v3902_v0 = vsub.f32 %v15303_v60, %v18833_v22  ;;  %v3910_v20 = vand.u32 4294901760, %v3909_v4  ;;  %v15359_v34 = vpack.c.bf16 %v3827_v40, %v3824_v57 }
 0x5f5   :  { %12603 = vmatprep.subr.bf16.mxu1 %v15327_v41  ;;  %v15361_v3 = vsub.f32 %v3804_v24, %v3827_v40  ;;  %v15373_v22 = vsub.f32 %v3803_v45, %v3824_v57  ;;  %v3916_v61 = vsub.f32 %v15329_v13, %v18601_v38  ;;  %v3937_v8 = vsub.f32 %v15333_v27, %v18835_v44 }
 0x5f6   :  { %12605 = vmatpush3.bf16.msra.mxu1 %v15327_v41  ;;  %2954 = vrot.lane.b32.xlu1 %v15259_v21, %s14027_s22  ;;  %v15351_v53 = vsub.f32 %v3073_v30, %v15341_v2  ;;  %v18834_v30 = vand.u32 4294901760, %v15331_v1  ;;  %v3903_v24 = vand.u32 4294901760, %v3902_v0  ;;  %v18836_v0 = vand.u32 4294901760, %v15345_v52  ;;  %s14053_s22 = smov 117  }
 0x5f7   :  { %12607 = vmatprep.subr.bf16.mxu1 %v15339_v25  ;;  %v3950_v4 = vand.u32 4294901760, %v15361_v3  ;;  %v3917_v57 = vand.u32 4294901760, %v3916_v61 }
 0x5f8   :  { %v15364_v35 = vand.u32 4294901760, %v15351_v53  ;;  %v3923_v56 = vsub.f32 %v15331_v1, %v18834_v30  ;;  %v12614_v30 = vpack.c.bf16 %v3910_v20, %v3903_v24  ;;  %v3930_v20 = vsub.f32 %v15345_v52, %v18836_v0 }
 0x5f9   :  { %v3938_v24 = vand.u32 4294901760, %v3937_v8  ;;  %v3951_v38 = vsub.f32 %v15361_v3, %v3950_v4 }
 0x5fa   :  { %12609 = vmatpush3.bf16.msra.mxu1 %v15339_v25  ;;  %2984 = vrot.lane.b32.xlu1 %v15239_v29, %s14031_s9  ;;  %v3161_v40 = vsub.f32 %v15351_v53, %v15364_v35  ;;  %v3924_v42 = vand.u32 4294901760, %v3923_v56  ;;  %v3943_v56 = vand.u32 4294901760, %v15373_v22  ;;  %v3931_v61 = vand.u32 4294901760, %v3930_v20 }
 0x5fb   :  { %12611 = vmatprep.subr.bf16.mxu1 %v15359_v34  ;;  %v3952_v59 = vand.u32 4294901760, %v3951_v38  ;;  %v12634_v38 = vpack.c.bf16 %v15331_v1, %v15329_v13  ;;  %v18837_v20 = vand.u32 4294901760, %v15303_v60 }
 0x5fc   :  { %v15388_v45 = vand.u32 4294901760, %v3161_v40  ;;  %v12618_v44 = vpack.c.bf16 %v3924_v42, %v3917_v57  ;;  %v3944_v40 = vsub.f32 %v15373_v22, %v3943_v56  ;;  %v12622_v0 = vpack.c.bf16 %v3938_v24, %v3931_v61 }
 0x5fd   :  { %v12642_v57 = vpack.c.bf16 %v15361_v3, %v15373_v22  ;;  %v18839_v61 = vand.u32 4294901760, %v15329_v13 }
 0x5fe   :  { %12613 = vmatpush3.bf16.msra.mxu1 %v15359_v34  ;;  %2986 = vrot.lane.b32.xlu1 %v15246_v17, %s14031_s9  ;;  %v3945_v8 = vand.u32 4294901760, %v3944_v40  ;;  %v18840_v40 = vand.u32 4294901760, %v15331_v1 }
 0x5ff   :  { %12615 = vmatprep.subr.bf16.mxu1 %v12614_v30 }
 0x600   :  { %v12626_v42 = vpack.c.bf16 %v3952_v59, %v3945_v8  ;;  %v12638_v59 = vpack.c.bf16 %v15333_v27, %v15345_v52 }
 0x601   :  { %11205 = vmatmul.mubr.f32.vlgmr.msra.gmra.mrb[8].mxu1 %v15388_v45 }
 0x602   :  { %12617 = vmatpush3.bf16.msra.mxu1 %v12614_v30  ;;  %11223 = vmatprep.mubr.f32.mxu1 %v15199_v54  ;;  %v12630_v30 = vpack.c.bf16 %v15293_v62, %v15303_v60  ;;  %v18841_v60 = vand.u32 4294901760, %v15345_v52 }
 0x603   :  { %2964 = vrot.lane.b32.xlu1 %v15252_v28, %s14032_s6  ;;  %12619 = vmatprep.subr.bf16.mxu1 %v12618_v44 }
 0x606   :  { %12621 = vmatpush3.bf16.msra.mxu1 %v12618_v44  ;;  %v18838_v44 = vand.u32 4294901760, %v15293_v62  ;;  %v18842_v62 = vand.u32 4294901760, %v15333_v27 }
 0x607   :  { %2996 = vrot.lane.b32.xlu1 %v15239_v29, %s14034_s2  ;;  %12623 = vmatprep.subr.bf16.mxu1 %v12622_v0 }
 0x608   :  { %v12662_v24 = vpack.c.bf16 %v18838_v44, %v18837_v20  ;;  %v12670_v8 = vpack.c.bf16 %v18842_v62, %v18841_v60 }
 0x60a   :  { %12625 = vmatpush3.bf16.msra.mxu1 %v12622_v0  ;;  %v12666_v0 = vpack.c.bf16 %v18840_v40, %v18839_v61 }
 0x60b   :  { %2998 = vrot.lane.b32.xlu1 %v15246_v17, %s14034_s2  ;;  %12627 = vmatprep.subr.bf16.mxu1 %v12626_v42 }
 0x60e   :  { %12629 = vmatpush3.bf16.msra.mxu1 %v12626_v42  ;;  %v12674_v42 = vpack.c.bf16 %v3950_v4, %v3943_v56 }
 0x60f   :  { %2976 = vrot.lane.b32.xlu1 %v15252_v28, %s14033_s12  ;;  %12631 = vmatprep.subr.bf16.mxu1 %v12630_v30 }
 0x611   :  { %11224 = vmatmul.mubr.f32.vlgmr.msra.gmra.mrb[8].mxu1 %v15341_v2 }
 0x612   :  { %12633 = vmatpush3.bf16.msra.mxu1 %v12630_v30  ;;  %11242 = vmatprep.mubr.f32.mxu1 %v15202_v11 }
 0x613   :  { %2978 = vrot.lane.b32.xlu1 %v15259_v21, %s14033_s12  ;;  %12635 = vmatprep.subr.bf16.mxu1 %v12634_v38  ;;  %s14055_s12 = smov 119  }
 0x616   :  { %12637 = vmatpush3.bf16.msra.mxu1 %v12634_v38 }
 0x617   :  { %3008 = vrot.lane.b32.xlu1 %v15239_v29, %s14030_s4  ;;  %12639 = vmatprep.subr.bf16.mxu1 %v12638_v59 }
 0x61a   :  { %12641 = vmatpush3.bf16.msra.mxu1 %v12638_v59 }
 0x61b   :  { %3010 = vrot.lane.b32.xlu1 %v15246_v17, %s14030_s4  ;;  %12643 = vmatprep.subr.bf16.mxu1 %v12642_v57 }
 0x61e   :  { %12645 = vmatpush3.bf16.msra.mxu1 %v12642_v57 }
 0x61f   :  { %2988 = vrot.lane.b32.xlu1 %v15252_v28, %s14031_s9  ;;  %12647 = vmatprep.subr.bf16.mxu1 %v15235_v32 }
 0x621   :  { %11243 = vmatmul.mubr.f32.vlgmr.msra.gmra.mrb[8].mxu1 %v15351_v53 }
 0x622   :  { %12649 = vmatpush3.bf16.msra.mxu1 %v15235_v32  ;;  %11261 = vmatprep.mubr.f32.mxu1 %v15205_v18 }
 0x623   :  { %2990 = vrot.lane.b32.xlu1 %v15259_v21, %s14031_s9  ;;  %12651 = vmatprep.subr.bf16.mxu1 %v15327_v41  ;;  %s14054_s9 = smov 118  }
 0x626   :  { %12653 = vmatpush3.bf16.msra.mxu1 %v15327_v41 }
 0x627   :  { %3000 = vrot.lane.b32.xlu1 %v15252_v28, %s14034_s2  ;;  %12655 = vmatprep.subr.bf16.mxu1 %v15339_v25 }
 0x62a   :  { %12657 = vmatpush3.bf16.msra.mxu1 %v15339_v25 }
 0x62b   :  { %3002 = vrot.lane.b32.xlu1 %v15259_v21, %s14034_s2  ;;  %12659 = vmatprep.subr.bf16.mxu1 %v15359_v34  ;;  %s14035_s2 = smov 2  }
 0x62e   :  { %12661 = vmatpush3.bf16.msra.mxu1 %v15359_v34 }
 0x62f   :  { %3014 = vrot.lane.b32.xlu1 %v15259_v21, %s14030_s4  ;;  %12663 = vmatprep.subr.bf16.mxu1 %v12662_v24 }
 0x631   :  { %11262 = vmatmul.mubr.f32.vlgmr.msra.gmra.mrb[8].mxu1 %v15364_v35 }
 0x632   :  { %12665 = vmatpush3.bf16.msra.mxu1 %v12662_v24  ;;  %11280 = vmatprep.mubr.f32.mxu1 %v15199_v54  ;;  %v141_v24 = vld [vmem:[%s18531_s17 + $0x1] sm:$0x1] }
 0x633   :  { %12667 = vmatprep.subr.bf16.mxu1 %v12666_v0 }
 0x636   :  { %12669 = vmatpush3.bf16.msra.mxu1 %v12666_v0  ;;  %v15490_v0 = vld [vmem:[%s18531_s17] sm:$0x1] }
 0x637   :  { %12671 = vmatprep.subr.bf16.mxu1 %v12670_v8  ;;  %4412 = vrot.lane.b32.xlu1 %v15490_v0, %s14035_s2 }
 0x638   :  { %4391 = vrot.lane.b32.xlu0 %v15490_v0, %s14036_s7 }
 0x63a   :  { %12673 = vmatpush3.bf16.msra.mxu1 %v12670_v8 }
 0x63b   :  { %12675 = vmatprep.subr.bf16.mxu1 %v12674_v42 }
 0x63c   :  { %4433 = vrot.lane.b32.xlu0 %v15490_v0, %s14026_s21 }
 0x63e   :  { %12677 = vmatpush3.bf16.msra.mxu1 %v12674_v42 }
 0x63f   :  { %12679 = vmatprep.subr.bf16.mxu1 %v15235_v32 }
 0x641   :  { %11281 = vmatmul.mubr.f32.vlgmr.msra.gmra.mrb[8].mxu1 %v15341_v2 }
 0x642   :  { %12681 = vmatpush3.bf16.msra.mxu1 %v15235_v32  ;;  %11299 = vmatprep.mubr.f32.mxu1 %v15199_v54 }
 0x643   :  { %12683 = vmatprep.subr.bf16.mxu1 %v15327_v41 }
 0x646   :  { %12685 = vmatpush3.bf16.msra.mxu1 %v15327_v41 }
 0x647   :  { %12687 = vmatprep.subr.bf16.mxu1 %v15339_v25 }
 0x64a   :  { %12689 = vmatpush3.bf16.msra.mxu1 %v15339_v25 }
 0x64b   :  { %12691 = vmatprep.subr.bf16.mxu1 %v15359_v34 }
 0x64c   :  { %v2949_v13 = vpop.permute.xlu1 %2948 }
 0x64d   :  { %v3020_v25 = vsel %vm315_vm10, %v15239_v29, %v2949_v13 }
 0x64e   :  { %12693 = vmatpush3.bf16.msra.mxu1 %v15359_v34 }
 0x650   :  { %v2951_v1 = vpop.permute.xlu1 %2950 }
 0x651   :  { %11300 = vmatmul.mubr.f32.vlgmr.msra.gmra.mrb[8].mxu1 %v15341_v2  ;;  %v3021_v34 = vsel %vm315_vm10, %v15246_v17, %v2951_v1  ;;  %v15492_v17 = vrot.slane %v141_v24, 7 }
 0x653   :  { %v15503_v42 = vsel %vm174_vm0, %v15490_v0, %v15492_v17 }
 0x654   :  { %v2961_v27 = vpop.permute.xlu1 %2960  ;;  %5189 = vrot.lane.b32.xlu1 %v15503_v42, %s14036_s7  ;;  %5225 = vrot.lane.b32.xlu0 %v15503_v42, %s14035_s2 }
 0x655   :  { %v3024_v59 = vsel %vm18608_vm14, %v3020_v25, %v2961_v27 }
 0x658   :  { %v2963_v32 = vpop.permute.xlu1 %2962  ;;  %5261 = vrot.lane.b32.xlu1 %v15503_v42, %s14037_s29  ;;  %5333 = vrot.lane.b32.xlu0 %v15503_v42, %s14038_s30 }
 0x659   :  { %v3025_v44 = vsel %vm18608_vm14, %v3021_v34, %v2963_v32 }
 0x65c   :  { %v2973_v52 = vpop.permute.xlu1 %2972  ;;  %5297 = vrot.lane.b32.xlu1 %v15503_v42, %s14026_s21 }
 0x65d   :  { %v3029_v20 = vsel %vm3028_vm1, %v3024_v59, %v2973_v52 }
 0x65e   :  { %v3034_v61 = vsel %vm3033_vm15, %v3029_v20, %v2973_v52 }
 0x660   :  { %v2975_v3 = vpop.permute.xlu1 %2974 }
 0x661   :  { %v3030_v29 = vsel %vm3028_vm1, %v3025_v44, %v2975_v3 }
 0x662   :  { %v3035_v62 = vsel %vm3033_vm15, %v3030_v29, %v2975_v3 }
 0x664   :  { %v2953_v4 = vpop.permute.xlu1 %2952 }
 0x665   :  { %v3022_v52 = vsel %vm315_vm10, %v15252_v28, %v2953_v4  ;;  %v2967_v4 = vpop.permute.xlu0 %2966 }
 0x668   :  { %v2955_v22 = vpop.permute.xlu1 %2954 }
 0x669   :  { %v3023_v28 = vsel %vm315_vm10, %v15259_v21, %v2955_v22 }
 0x66c   :  { %v2985_v56 = vpop.permute.xlu1 %2984 }
 0x66d   :  { %v3039_v60 = vsel %vm3038_vm2, %v3034_v61, %v2985_v56  ;;  %v3013_v61 = vpop.permute.xlu0 %3012 }
 0x670   :  { %v2987_v41 = vpop.permute.xlu1 %2986 }
 0x671   :  { %v3040_v1 = vsel %vm3038_vm2, %v3035_v62, %v2987_v41 }
 0x675   :  { %v2965_v30 = vpop.permute.xlu1 %2964 }
 0x679   :  { %v2997_v38 = vpop.permute.xlu1 %2996 }
 0x67a   :  { %v3044_v13 = vsel %vm3043_vm3, %v3039_v60, %v2997_v38  ;;  %v3026_v38 = vsel %vm18608_vm14, %v3022_v52, %v2965_v30 }
 0x67d   :  { %v2999_v57 = vpop.permute.xlu1 %2998 }
 0x67e   :  { %v3045_v3 = vsel %vm3043_vm3, %v3040_v1, %v2999_v57 }
 0x681   :  { %v2977_v40 = vpop.permute.xlu1 %2976 }
 0x685   :  { %v2979_v8 = vpop.permute.xlu1 %2978 }
 0x689   :  { %v3009_v27 = vpop.permute.xlu1 %3008 }
 0x68a   :  { %v3049_v32 = vsel %vm3048_vm4, %v3044_v13, %v3009_v27 }
 0x68b   :  { %v3061_v56 = vmul.f32 %v15222_v9, %v3049_v32  ;;  %v3031_v9 = vsel %vm3028_vm1, %v3026_v38, %v2977_v40 }
 0x68c   :  { %v3036_v44 = vsel %vm3033_vm15, %v3031_v9, %v2977_v40 }
 0x68d   :  { %v3011_v25 = vpop.permute.xlu1 %3010  ;;  %v3076_v34 = vand.u32 4294901760, %v3061_v56 }
 0x68e   :  { %v3050_v41 = vsel %vm3048_vm4, %v3045_v3, %v3011_v25  ;;  %v3065_v3 = vmul.f32 %v15288_v50, %v3049_v32 }
 0x68f   :  { %v3062_v59 = vmul.f32 %v15229_v14, %v3050_v41  ;;  %v3027_v14 = vsel %vm18608_vm14, %v3023_v28, %v2967_v4  ;;  %v15545_v25 = vsub.f32 %v3061_v56, %v3076_v34  ;;  %v3066_v38 = vmul.f32 %v15279_v36, %v3050_v41 }
 0x690   :  { %v3032_v22 = vsel %vm3028_vm1, %v3027_v14, %v2979_v8 }
 0x691   :  { %v3079_v57 = vand.u32 4294901760, %v3062_v59  ;;  %v2989_v30 = vpop.permute.xlu1 %2988  ;;  %v3037_v60 = vsel %vm3033_vm15, %v3032_v22, %v2979_v8  ;;  %v3091_v50 = vand.u32 4294901760, %v3066_v38  ;;  %v3171_v56 = vand.u32 4294901760, %v15545_v25 }
 0x692   :  { %v3041_v24 = vsel %vm3038_vm2, %v3036_v44, %v2989_v30 }
 0x693   :  { %v15530_v20 = vpack.c.bf16 %v3079_v57, %v3076_v34  ;;  %v15548_v28 = vsub.f32 %v3062_v59, %v3079_v57 }
 0x695   :  { %v2991_v21 = vpop.permute.xlu1 %2990  ;;  %12503 = vmatprep.subr.bf16.mxu0 %v15530_v20  ;;  %v3178_v36 = vand.u32 4294901760, %v15548_v28 }
 0x696   :  { %12505 = vmatpush3.bf16.msra.mxu0 %v15530_v20  ;;  %v3042_v1 = vsel %vm3038_vm2, %v3037_v60, %v2991_v21  ;;  %v3088_v21 = vand.u32 4294901760, %v3065_v3 }
 0x698   :  { %v15563_v22 = vsub.f32 %v3065_v3, %v3088_v21 }
 0x699   :  { %v3001_v29 = vpop.permute.xlu1 %3000 }
 0x69a   :  { %v3046_v62 = vsel %vm3043_vm3, %v3041_v24, %v3001_v29  ;;  %v3172_v24 = vsub.f32 %v15545_v25, %v3171_v56  ;;  %v3199_v3 = vand.u32 4294901760, %v15563_v22 }
 0x69b   :  { %v3051_v13 = vsel %vm3048_vm4, %v3046_v62, %v3013_v61  ;;  %v3179_v61 = vsub.f32 %v15548_v28, %v3178_v36 }
 0x69c   :  { %v3063_v27 = vmul.f32 %v15271_v51, %v3051_v13  ;;  %v3067_v9 = vmul.f32 %v15317_v23, %v3051_v13 }
 0x69d   :  { %v3003_v40 = vpop.permute.xlu1 %3002 }
 0x69e   :  { %v3047_v52 = vsel %vm3043_vm3, %v3042_v1, %v3003_v40  ;;  %v3082_v8 = vand.u32 4294901760, %v3063_v27  ;;  %v3094_v41 = vand.u32 4294901760, %v3067_v9 }
 0x6a0   :  { %v15552_v14 = vsub.f32 %v3063_v27, %v3082_v8  ;;  %v15577_v60 = vsub.f32 %v3067_v9, %v3094_v41  ;;  %v3173_v27 = vand.u32 4294901760, %v3172_v24 }
 0x6a1   :  { %v3015_v4 = vpop.permute.xlu1 %3014 }
 0x6a2   :  { %v3052_v30 = vsel %vm3048_vm4, %v3047_v52, %v3015_v4  ;;  %v3185_v57 = vand.u32 4294901760, %v15552_v14  ;;  %v3180_v52 = vand.u32 4294901760, %v3179_v61  ;;  %v3213_v9 = vand.u32 4294901760, %v15577_v60 }
 0x6a3   :  { %v3064_v51 = vmul.f32 %v15299_v31, %v3052_v30  ;;  %v3068_v44 = vmul.f32 %v15308_v15, %v3052_v30  ;;  %v15565_v31 = vpack.c.bf16 %v3091_v50, %v3088_v21  ;;  %v15567_v15 = vsub.f32 %v3066_v38, %v3091_v50 }
 0x6a4   :  { %v3186_v1 = vsub.f32 %v15552_v14, %v3185_v57 }
 0x6a5   :  { %v3085_v32 = vand.u32 4294901760, %v3064_v51  ;;  %v3097_v34 = vand.u32 4294901760, %v3068_v44  ;;  %v3206_v38 = vand.u32 4294901760, %v15567_v15 }
 0x6a7   :  { %v15558_v59 = vpack.c.bf16 %v3085_v32, %v3082_v8  ;;  %v15560_v23 = vsub.f32 %v3064_v51, %v3085_v32  ;;  %v15580_v62 = vpack.c.bf16 %v3097_v34, %v3094_v41  ;;  %v15582_v13 = vsub.f32 %v3068_v44, %v3097_v34 }
 0x6a8   :  { %v3187_v8 = vand.u32 4294901760, %v3186_v1  ;;  %v12518_v51 = vpack.c.bf16 %v3180_v52, %v3173_v27  ;;  %v3200_v44 = vsub.f32 %v15563_v22, %v3199_v3  ;;  %v3207_v21 = vsub.f32 %v15567_v15, %v3206_v38 }
 0x6a9   :  { %12507 = vmatprep.subr.bf16.mxu0 %v15558_v59  ;;  %v3192_v29 = vand.u32 4294901760, %v15560_v23  ;;  %v3220_v30 = vand.u32 4294901760, %v15582_v13  ;;  %v3214_v32 = vsub.f32 %v15577_v60, %v3213_v9  ;;  %v12534_v52 = vpack.c.bf16 %v15548_v28, %v15545_v25 }
 0x6aa   :  { %12509 = vmatpush3.bf16.msra.mxu0 %v15558_v59  ;;  %v3201_v34 = vand.u32 4294901760, %v3200_v44  ;;  %v3208_v24 = vand.u32 4294901760, %v3207_v21 }
 0x6ab   :  { %12511 = vmatprep.subr.bf16.mxu0 %v15565_v31  ;;  %v3193_v40 = vsub.f32 %v15560_v23, %v3192_v29  ;;  %v3221_v41 = vsub.f32 %v15582_v13, %v3220_v30  ;;  %v3215_v61 = vand.u32 4294901760, %v3214_v32  ;;  %v12578_v25 = vpack.c.bf16 %v3220_v30, %v3213_v9 }
 0x6ac   :  { %v18843_v9 = vmov 0 }
 0x6ad   :  { %v3194_v4 = vand.u32 4294901760, %v3193_v40  ;;  %v3222_v1 = vand.u32 4294901760, %v3221_v41  ;;  %v12526_v40 = vpack.c.bf16 %v3208_v24, %v3201_v34 }
 0x6ae   :  { %12513 = vmatpush3.bf16.msra.mxu0 %v15565_v31 }
 0x6af   :  { %12515 = vmatprep.subr.bf16.mxu0 %v15580_v62  ;;  %v12522_v50 = vpack.c.bf16 %v3194_v4, %v3187_v8  ;;  %v12530_v27 = vpack.c.bf16 %v3222_v1, %v3215_v61  ;;  %v12542_v8 = vpack.c.bf16 %v15567_v15, %v15563_v22  ;;  %v12546_v4 = vpack.c.bf16 %v15582_v13, %v15577_v60 }
 0x6b0   :  { %v18610_v15 = vmov 0  }
 0x6b2   :  { %12517 = vmatpush3.bf16.msra.mxu0 %v15580_v62 }
 0x6b3   :  { %12519 = vmatprep.subr.bf16.mxu0 %v12518_v51 }
 0x6b5   :  { %11091 = vmatmul.mubr.f32.vlgmr.msra.gmra.mrb[8].mxu0 %v15388_v45  ;;  %v12538_v45 = vpack.c.bf16 %v15560_v23, %v15552_v14  ;;  %v4392_v14 = vpop.permute.xlu0 %4391 }
 0x6b6   :  { %12521 = vmatpush3.bf16.msra.mxu0 %v12518_v51  ;;  %11109 = vmatprep.mubr.f32.mxu0 %v15199_v54  ;;  %vm4397_vm0 = vcmp.eq.f32.partialorder %v4392_v14, %v15490_v0 }
 0x6b7   :  { %12523 = vmatprep.subr.bf16.mxu0 %v12522_v50 }
 0x6ba   :  { %12525 = vmatpush3.bf16.msra.mxu0 %v12522_v50 }
 0x6bb   :  { %12527 = vmatprep.subr.bf16.mxu0 %v12526_v40 }
 0x6be   :  { %12529 = vmatpush3.bf16.msra.mxu0 %v12526_v40 }
 0x6bf   :  { %12531 = vmatprep.subr.bf16.mxu0 %v12530_v27 }
 0x6c2   :  { %12533 = vmatpush3.bf16.msra.mxu0 %v12530_v27 }
 0x6c3   :  { %12535 = vmatprep.subr.bf16.mxu0 %v12534_v52 }
 0x6c5   :  { %11110 = vmatmul.mubr.f32.vlgmr.msra.gmra.mrb[8].mxu0 %v15341_v2 }
 0x6c6   :  { %12537 = vmatpush3.bf16.msra.mxu0 %v12534_v52  ;;  %11128 = vmatprep.mubr.f32.mxu0 %v15202_v11  ;;  %v12566_v11 = vpack.c.bf16 %v3178_v36, %v3171_v56  ;;  %v15700_v56 = vpop.permute.xlu0 %4433 }
 0x6c7   :  { %12539 = vmatprep.subr.bf16.mxu0 %v12538_v45 }
 0x6ca   :  { %12541 = vmatpush3.bf16.msra.mxu0 %v12538_v45  ;;  %v15702_v23 = vpop.permute.xlu0 %5225 }
 0x6cb   :  { %12543 = vmatprep.subr.bf16.mxu0 %v12542_v8  ;;  %vm5227_vm8 = vcmp.eq.f32.partialorder %v15702_v23, %v15490_v0  ;;  %vm5232_vm9 = vcmp.lt.f32.partialorder %v15702_v23, %v15492_v17 }
 0x6ce   :  { %12545 = vmatpush3.bf16.msra.mxu0 %v12542_v8  ;;  %v15710_v60 = vpop.permute.xlu0 %5333 }
 0x6cf   :  { %12547 = vmatprep.subr.bf16.mxu0 %v12546_v4  ;;  %vm5340_vm2 = vcmp.lt.f32.partialorder %v15710_v60, %v15492_v17 }
 0x6d0   :  { %v15862_v58 = vsel %vm5340_vm2, 1, %v18610_v15 }
 0x6d2   :  { %12549 = vmatpush3.bf16.msra.mxu0 %v12546_v4 }
 0x6d3   :  { %12551 = vmatprep.subr.bf16.mxu0 %v15530_v20 }
 0x6d5   :  { %11129 = vmatmul.mubr.f32.vlgmr.msra.gmra.mrb[8].mxu0 %v15351_v53  ;;  %v12574_v53 = vpack.c.bf16 %v3206_v38, %v3199_v3 }
 0x6d6   :  { %12553 = vmatpush3.bf16.msra.mxu0 %v15530_v20  ;;  %11147 = vmatprep.mubr.f32.mxu0 %v15205_v18  ;;  %v12570_v18 = vpack.c.bf16 %v3192_v29, %v3185_v57  ;;  %v4398_v29 = vsel %vm4397_vm0, 1, %v18610_v15 }
 0x6d7   :  { %12555 = vmatprep.subr.bf16.mxu0 %v15558_v59 }
 0x6da   :  { %12557 = vmatpush3.bf16.msra.mxu0 %v15558_v59 }
 0x6db   :  { %12559 = vmatprep.subr.bf16.mxu0 %v15565_v31 }
 0x6de   :  { %12561 = vmatpush3.bf16.msra.mxu0 %v15565_v31 }
 0x6df   :  { %12563 = vmatprep.subr.bf16.mxu0 %v15580_v62 }
 0x6e2   :  { %12565 = vmatpush3.bf16.msra.mxu0 %v15580_v62 }
 0x6e3   :  { %12567 = vmatprep.subr.bf16.mxu0 %v12566_v11 }
 0x6e5   :  { %11148 = vmatmul.mubr.f32.vlgmr.msra.gmra.mrb[8].mxu0 %v15364_v35 }
 0x6e6   :  { %12569 = vmatpush3.bf16.msra.mxu0 %v12566_v11  ;;  %11166 = vmatprep.mubr.f32.mxu0 %v15199_v54 }
 0x6e7   :  { %12571 = vmatprep.subr.bf16.mxu0 %v12570_v18 }
 0x6ea   :  { %12573 = vmatpush3.bf16.msra.mxu0 %v12570_v18 }
 0x6eb   :  { %12575 = vmatprep.subr.bf16.mxu0 %v12574_v53 }
 0x6ee   :  { %12577 = vmatpush3.bf16.msra.mxu0 %v12574_v53 }
 0x6ef   :  { %12579 = vmatprep.subr.bf16.mxu0 %v12578_v25 }
 0x6f2   :  { %12581 = vmatpush3.bf16.msra.mxu0 %v12578_v25 }
 0x6f3   :  { %12583 = vmatprep.subr.bf16.mxu0 %v15530_v20 }
 0x6f5   :  { %11167 = vmatmul.mubr.f32.vlgmr.msra.gmra.mrb[8].mxu0 %v15341_v2 }
 0x6f6   :  { %12585 = vmatpush3.bf16.msra.mxu0 %v15530_v20  ;;  %11185 = vmatprep.mubr.f32.mxu0 %v15199_v54 }
 0x6f7   :  { %12587 = vmatprep.subr.bf16.mxu0 %v15558_v59 }
 0x6fa   :  { %12589 = vmatpush3.bf16.msra.mxu0 %v15558_v59  ;;  %v4399_v59 = vlaneseq }
 0x6fb   :  { %12591 = vmatprep.subr.bf16.mxu0 %v15565_v31 }
 0x6fc   :  { %v4400_v22 = vshrl.u32 %v4399_v59, 7  ;;  %v5243_v59 = vsel %vm5227_vm8, 1, %v18610_v15  ;;  %vm5335_vm8 = vcmp.eq.f32.partialorder %v15710_v60, %v15490_v0 }
 0x6fe   :  { %12593 = vmatpush3.bf16.msra.mxu0 %v15565_v31  ;;  %v15707_v31 = vsub.s32 0, %v4400_v22  ;;  %v15787_v18 = vsub.s32 1, %v4400_v22 }
 0x6ff   :  { %12595 = vmatprep.subr.bf16.mxu0 %v15580_v62 }
 0x700   :  { %v4402_v13 = vrot.slane %v4398_v29, %v15707_v31  ;;  %v5233_v29 = vsel %vm5232_vm9, 1, %v18610_v15 }
 0x702   :  { %12597 = vmatpush3.bf16.msra.mxu0 %v15580_v62  ;;  %vm15719_vm5 = vcmp.eq.s32.totalorder %v4402_v13, 1 }
 0x703   :  { %v18844_v9 = vsel %vm15719_vm5, 4294967295, %v18843_v9 }
 0x705   :  { %11186 = vmatmul.mubr.f32.vlgmr.msra.gmra.mrb[8].mxu0 %v15341_v2  ;;  %v15698_v2 = vpop.permute.xlu1 %4412 }
 0x709   :  { %v5190_v36 = vpop.permute.xlu1 %5189 }
 0x70a   :  { %vm5196_vm6 = vcmp.lt.f32.partialorder %v5190_v36, %v15492_v17  ;;  %vm5191_vm7 = vcmp.eq.f32.partialorder %v5190_v36, %v15490_v0 }
 0x70b   :  { %v5197_v53 = vsel %vm5196_vm6, 1, %v18610_v15  ;;  %v5207_v14 = vsel %vm5191_vm7, 1, %v18610_v15 }
 0x70c   :  { %v5211_v13 = vrot.slane %v5207_v14, %v15707_v31 }
 0x70d   :  { %v15704_v57 = vpop.permute.xlu1 %5261 }
 0x70e   :  { %vm5263_vm10 = vcmp.eq.f32.partialorder %v15704_v57, %v15490_v0  ;;  %vm5268_vm13 = vcmp.lt.f32.partialorder %v15704_v57, %v15492_v17  ;;  %vm15850_vm6 = vcmp.eq.s32.totalorder %v5211_v13, 1 }
 0x70f   :  { %v5269_v57 = vsel %vm5268_vm13, 1, %v18610_v15 }
 0x711   :  { %v15712_v62 = vpop.permute.xlu1 %5297 }
 0x712   :  { %vm5299_vm3 = vcmp.eq.f32.partialorder %v15712_v62, %v15490_v0  ;;  %vm5304_vm4 = vcmp.lt.f32.partialorder %v15712_v62, %v15492_v17  ;;  %v5273_v62 = vrot.slane %v5269_v57, %v15787_v18  ;;  %v5345_v57 = vrot.slane %v15862_v58, %v15787_v18 }
 0x713   :  { %v5315_v47 = vsel %vm5299_vm3, 1, %v18610_v15 }
 0x724   :  { %v11301_v35 = vpop.f32.mrb[8].mxu1 }
 0x725   :  { %v15645_v28 = vmul.f32 0.35355338, %v11301_v35  ;;  %v4375_v20 = vpop.f32.mrb[9].mxu1 }
 0x726   :  { %v15655_v54 = vmul.f32 0.35355338, %v4375_v20  ;;  %v5201_v20 = vrot.slane %v5197_v53, %v15787_v18  ;;  %v5237_v53 = vrot.slane %v5233_v29, %v15787_v18  ;;  %v18851_v29 = vmov 0 }
 0x727   :  { %5727 = vrot.lane.b32.xlu0 %v15645_v28, %s14039_s20  ;;  %5187 = vrot.lane.b32.xlu1 %v15645_v28, %s14036_s7 }
 0x728   :  { %vm15816_vm12 = vcmp.eq.s32.totalorder %v5201_v20, 1  ;;  %vm15866_vm9 = vcmp.eq.s32.totalorder %v5237_v53, 1  ;;  %v5351_v53 = vsel %vm5335_vm8, 1, %v18610_v15 }
 0x729   :  { %v5355_v14 = vrot.slane %v5351_v53, %v15707_v31  ;;  %v18866_v53 = vmov 0  }
 0x72b   :  { %5223 = vrot.lane.b32.xlu0 %v15645_v28, %s14035_s2  ;;  %5259 = vrot.lane.b32.xlu1 %v15645_v28, %s14037_s29 }
 0x72f   :  { %5725 = vrot.lane.b32.xlu0 %v15655_v54, %s14039_s20  ;;  %5185 = vrot.lane.b32.xlu1 %v15655_v54, %s14036_s7 }
 0x733   :  { %5295 = vrot.lane.b32.xlu0 %v15645_v28, %s14026_s21  ;;  %5369 = vrot.lane.b32.xlu1 %v15503_v42, %s14040_s3 }
 0x737   :  { %5405 = vrot.lane.b32.xlu0 %v15503_v42, %s14041_s26  ;;  %5331 = vrot.lane.b32.xlu1 %v15645_v28, %s14038_s30 }
 0x73b   :  { %5367 = vrot.lane.b32.xlu0 %v15645_v28, %s14040_s3  ;;  %5441 = vrot.lane.b32.xlu1 %v15503_v42, %s14020_s25 }
 0x73f   :  { %5477 = vrot.lane.b32.xlu0 %v15503_v42, %s14042_s5  ;;  %5403 = vrot.lane.b32.xlu1 %v15645_v28, %s14041_s26 }
 0x743   :  { %5439 = vrot.lane.b32.xlu0 %v15645_v28, %s14020_s25  ;;  %5513 = vrot.lane.b32.xlu1 %v15503_v42, %s14043_s28 }
 0x747   :  { %5549 = vrot.lane.b32.xlu0 %v15503_v42, %s14044_s23  ;;  %5475 = vrot.lane.b32.xlu1 %v15645_v28, %s14042_s5 }
 0x74b   :  { %5511 = vrot.lane.b32.xlu0 %v15645_v28, %s14043_s28  ;;  %5585 = vrot.lane.b32.xlu1 %v15503_v42, %s14025_s13 }
 0x74f   :  { %5621 = vrot.lane.b32.xlu0 %v15503_v42, %s14045_s27  ;;  %5547 = vrot.lane.b32.xlu1 %v15645_v28, %s14044_s23 }
 0x753   :  { %5221 = vrot.lane.b32.xlu0 %v15655_v54, %s14035_s2  ;;  %5257 = vrot.lane.b32.xlu1 %v15655_v54, %s14037_s29 }
 0x757   :  { %5293 = vrot.lane.b32.xlu0 %v15655_v54, %s14026_s21  ;;  %5329 = vrot.lane.b32.xlu1 %v15655_v54, %s14038_s30 }
 0x75b   :  { %5365 = vrot.lane.b32.xlu0 %v15655_v54, %s14040_s3  ;;  %5401 = vrot.lane.b32.xlu1 %v15655_v54, %s14041_s26  ;;  %s14056_s3 = smov 120   ;;  %s14057_s26 = smov 121  }
 0x75f   :  { %5437 = vrot.lane.b32.xlu0 %v15655_v54, %s14020_s25  ;;  %5473 = vrot.lane.b32.xlu1 %v15655_v54, %s14042_s5  ;;  %s14058_s5 = smov 122  }
 0x763   :  { %5509 = vrot.lane.b32.xlu0 %v15655_v54, %s14043_s28  ;;  %5545 = vrot.lane.b32.xlu1 %v15655_v54, %s14044_s23  ;;  %s14059_s28 = smov 123   ;;  %s14060_s23 = smov 124  }
 0x799   :  { %v15715_v3 = vpop.permute.xlu0 %5727  ;;  %v15717_v38 = vpop.permute.xlu1 %5187 }
 0x79a   :  { %v6270_v30 = vsel %vm15719_vm5, %v15717_v38, %v15715_v3 }
 0x79b   :  { %v15728_v51 = vmax.f32 %v15645_v28, %v6270_v30  ;;  %v5247_v30 = vrot.slane %v5243_v59, %v15707_v31 }
 0x79d   :  { %v15730_v44 = vpop.permute.xlu0 %5223  ;;  %v15732_v21 = vpop.permute.xlu1 %5259  ;;  %6279 = vrot.lane.b32.xlu1 %v15728_v51, %s14047_s0  ;;  %6275 = vrot.lane.b32.xlu0 %v15728_v51, %s14035_s2  ;;  %vm15854_vm7 = vcmp.eq.s32.totalorder %v5247_v30, 1  ;;  %v18855_v30 = vmov 0 }
 0x79e   :  { %v18852_v29 = vsel %vm15854_vm7, 4294967295, %v18851_v29 }
 0x7a1   :  { %v15738_v50 = vpop.permute.xlu0 %5725  ;;  %v15740_v32 = vpop.permute.xlu1 %5185 }
 0x7a2   :  { %v6269_v41 = vsel %vm15719_vm5, %v15740_v32, %v15738_v50  ;;  %vm5194_vm11 = vcmp.eq.f32.partialorder %v15740_v32, %v15655_v54  ;;  %vm5192_vm15 = vcmp.gt.f32.partialorder %v15740_v32, %v15655_v54 }
 0x7a3   :  { %v15747_v34 = vmax.f32 %v15655_v54, %v6269_v41  ;;  %v5279_v41 = vsel %vm5263_vm10, 1, %v18610_v15  ;;  %vm5203_vm1 = vmand %vm5194_vm11, %vm15816_vm12  ;;  %vm15900_vm11 = vcmp.eq.s32.totalorder %v5273_v62, 1 }
 0x7a4   :  { %v5283_v32 = vrot.slane %v5279_v41, %v15707_v31  ;;  %vm15846_vm0 = vmor %vm5192_vm15, %vm5203_vm1  ;;  %v5305_v41 = vsel %vm5304_vm4, 1, %v18610_v15 }
 0x7a5   :  { %v15749_v24 = vpop.permute.xlu0 %5295  ;;  %v15751_v61 = vpop.permute.xlu1 %5369  ;;  %6277 = vrot.lane.b32.xlu1 %v15747_v34, %s14047_s0  ;;  %6273 = vrot.lane.b32.xlu0 %v15747_v34, %s14035_s2 }
 0x7a6   :  { %vm15882_vm1 = vcmp.eq.s32.totalorder %v5283_v32, 1  ;;  %vm5371_vm2 = vcmp.eq.f32.partialorder %v15751_v61, %v15490_v0  ;;  %v5309_v32 = vrot.slane %v5305_v41, %v15787_v18  ;;  %vm18859_vm8 = vcmp.lt.f32.partialorder %v15751_v61, %v15492_v17 }
 0x7a7   :  { %v18856_v30 = vsel %vm15882_vm1, 4294967295, %v18855_v30  ;;  %v5377_v7 = vsel %vm18859_vm8, 1, %v18610_v15  ;;  %v18612_v41 = vmov 0.0  }
 0x7a8   :  { %v5381_v63 = vrot.slane %v5377_v7, %v15787_v18 }
 0x7a9   :  { %v15757_v1 = vpop.permute.xlu0 %5405  ;;  %v15759_v40 = vpop.permute.xlu1 %5331  ;;  %5657 = vrot.lane.b32.xlu1 %v15503_v42, %s14048_s19  ;;  %5581 = vrot.lane.b32.xlu0 %v15655_v54, %s14025_s13 }
 0x7ad   :  { %v15764_v27 = vpop.permute.xlu0 %5367  ;;  %v15766_v52 = vpop.permute.xlu1 %5441  ;;  %5617 = vrot.lane.b32.xlu1 %v15655_v54, %s14045_s27  ;;  %5583 = vrot.lane.b32.xlu0 %v15645_v28, %s14025_s13  ;;  %s14050_s13 = smov 115  }
 0x7b1   :  { %v15772_v45 = vpop.permute.xlu0 %5477  ;;  %v15774_v8 = vpop.permute.xlu1 %5403  ;;  %5619 = vrot.lane.b32.xlu1 %v15645_v28, %s14045_s27  ;;  %5693 = vrot.lane.b32.xlu0 %v15503_v42, %s14049_s1  ;;  %s14061_s27 = smov 125  }
 0x7b5   :  { %v15780_v4 = vpop.permute.xlu0 %5439  ;;  %v15782_v11 = vpop.permute.xlu1 %5513  ;;  %5729 = vrot.lane.b32.xlu1 %v15503_v42, %s14039_s20  ;;  %5653 = vrot.lane.b32.xlu0 %v15655_v54, %s14048_s19 }
 0x7b9   :  { %v15790_v25 = vpop.permute.xlu0 %5549  ;;  %v15792_v35 = vpop.permute.xlu1 %5475  ;;  %5689 = vrot.lane.b32.xlu1 %v15655_v54, %s14049_s1  ;;  %5655 = vrot.lane.b32.xlu0 %v15645_v28, %s14048_s19  ;;  %s14062_s19 = smov 126  }
 0x7bd   :  { %v15808_v36 = vpop.permute.xlu0 %5511  ;;  %v15810_v22 = vpop.permute.xlu1 %5585  ;;  %5691 = vrot.lane.b32.xlu1 %v15645_v28, %s14049_s1  ;;  %5765 = vrot.lane.b32.xlu0 %v15503_v42, %s14047_s0  ;;  %s14063_s1 = smov 127  }
 0x7c1   :  { %v15830_v20 = vpop.permute.xlu0 %5621  ;;  %v15832_v6 = vpop.permute.xlu1 %5547  ;;  %5761 = vrot.lane.b32.xlu1 %v15655_v54, %s14047_s0  ;;  %5801 = vrot.lane.b32.xlu0 %v15503_v42, %s14050_s13 }
 0x7c5   :  { %v5222_v13 = vpop.permute.xlu0 %5221  ;;  %v5258_v33 = vpop.permute.xlu1 %5257  ;;  %5763 = vrot.lane.b32.xlu1 %v15645_v28, %s14047_s0  ;;  %5837 = vrot.lane.b32.xlu0 %v15503_v42, %s14051_s14 }
 0x7c6   :  { %vm5228_vm13 = vcmp.gt.f32.partialorder %v5222_v13, %v15655_v54  ;;  %vm5230_vm15 = vcmp.eq.f32.partialorder %v5222_v13, %v15655_v54  ;;  %v5319_v13 = vrot.slane %v5315_v47, %v15707_v31  ;;  %vm5264_vm10 = vcmp.gt.f32.partialorder %v5258_v33, %v15655_v54 }
 0x7c7   :  { %vm5239_vm3 = vmand %vm5230_vm15, %vm15866_vm9  ;;  %vm5412_vm15 = vcmp.lt.f32.partialorder %v15757_v1, %v15492_v17  ;;  %v5387_v47 = vsel %vm5371_vm2, 1, %v18610_v15 }
 0x7c8   :  { %vm5241_vm14 = vmor %vm5228_vm13, %vm5239_vm3  ;;  %vm18861_vm3 = vcmp.eq.f32.partialorder %v5258_v33, %v15655_v54  ;;  %v5391_v33 = vrot.slane %v5387_v47, %v15707_v31  ;;  %v18869_v47 = vmov 0 }
 0x7c9   :  { %vm5249_vm4 = vmand %vm15854_vm7, %vm5241_vm14  ;;  %v5294_v58 = vpop.permute.xlu0 %5293  ;;  %5873 = vrot.lane.b32.xlu1 %v15503_v42, %s14053_s22  ;;  %5797 = vrot.lane.b32.xlu0 %v15655_v54, %s14050_s13  ;;  %v5330_v15 = vpop.permute.xlu1 %5329 }
 0x7ca   :  { %vm18860_vm13 = vmand %vm15850_vm6, %vm15846_vm0  ;;  %v9837_v61 = vsel %vm5249_vm4, 1.0, %v18612_v41  ;;  %vm5302_vm14 = vcmp.eq.f32.partialorder %v5294_v58, %v15655_v54  ;;  %vm5407_vm0 = vcmp.eq.f32.partialorder %v15757_v1, %v15490_v0  ;;  %vm5338_vm5 = vcmp.eq.f32.partialorder %v5330_v15, %v15655_v54 }
 0x7cb   :  { %v9835_v62 = vsel %vm18860_vm13, 1.0, %v18612_v41  ;;  %vm5275_vm8 = vmand %vm18861_vm3, %vm15900_vm11  ;;  %vm15935_vm13 = vcmp.eq.s32.totalorder %v5319_v13, 1  ;;  %vm15939_vm3 = vcmp.eq.s32.totalorder %v5309_v32, 1  ;;  %v18867_v13 = vmov 0.0  }
 0x7cc   :  { %v5255_v41 = vadd.f32 %v9837_v61, %v9835_v62  ;;  %vm5277_vm2 = vmor %vm5264_vm10, %vm5275_vm8  ;;  %v18863_v16 = vsel %vm15935_vm13, 4294967295, %v18862_v16  ;;  %v5413_v62 = vsel %vm5412_vm15, 1, %v18866_v53  ;;  %v5423_v1 = vsel %vm5407_vm0, 1, %v18866_v53 }
 0x7cd   :  { %vm5285_vm10 = vmand %vm15882_vm1, %vm5277_vm2  ;;  %v5366_v7 = vpop.permute.xlu0 %5365  ;;  %vm18868_vm2 = vcmp.gt.f32.partialorder %v5294_v58, %v15655_v54  ;;  %5833 = vrot.lane.b32.xlu1 %v15655_v54, %s14051_s14  ;;  %5799 = vrot.lane.b32.xlu0 %v15645_v28, %s14050_s13  ;;  %v5417_v5 = vrot.slane %v5413_v62, %v15787_v18  ;;  %vm15974_vm0 = vcmp.eq.s32.totalorder %v5345_v57, 1  ;;  %v5402_v57 = vpop.permute.xlu1 %5401 }
 0x7ce   :  { %v9839_v32 = vsel %vm5285_vm10, 1.0, %v18867_v13  ;;  %vm5311_vm4 = vmand %vm5302_vm14, %vm15939_vm3  ;;  %vm15969_vm14 = vcmp.eq.s32.totalorder %v5355_v14, 1  ;;  %v18872_v12 = vsel %vm15974_vm0, 4294967295, %v18871_v12  ;;  %vm18873_vm10 = vcmp.eq.f32.partialorder %v15766_v52, %v15490_v0 }
 0x7cf   :  { %v5291_v61 = vadd.f32 %v9839_v32, %v5255_v41  ;;  %vm5313_vm1 = vmor %vm18868_vm2, %vm5311_vm4  ;;  %v18870_v47 = vsel %vm15969_vm14, 4294967295, %v18869_v47  ;;  %v5459_v58 = vsel %vm18873_vm10, 1, %v18866_v53  ;;  %v5427_v14 = vrot.slane %v5423_v1, %v15707_v31 }
 0x7d0   :  { %vm5321_vm4 = vmand %vm15935_vm13, %vm5313_vm1  ;;  %vm18874_vm1 = vcmp.lt.f32.partialorder %v15766_v52, %v15492_v17  ;;  %vm18875_vm10 = vcmp.gt.f32.partialorder %v5330_v15, %v15655_v54  ;;  %vm16000_vm13 = vcmp.eq.s32.totalorder %v5391_v33, 1  ;;  %v5463_v15 = vrot.slane %v5459_v58, %v15707_v31 }
 0x7d1   :  { %v9841_v41 = vsel %vm5321_vm4, 1.0, %v18867_v13  ;;  %vm5347_vm8 = vmand %vm5338_vm5, %vm15974_vm0  ;;  %v5449_v62 = vsel %vm18874_vm1, 1, %v18866_v53  ;;  %v18877_v48 = vsel %vm16000_vm13, 4294967295, %v18876_v48  ;;  %vm16004_vm5 = vcmp.eq.s32.totalorder %v5381_v63, 1  ;;  %5835 = vrot.lane.b32.xlu1 %v15645_v28, %s14051_s14  ;;  %5909 = vrot.lane.b32.xlu0 %v15503_v42, %s14054_s9  ;;  %v5438_v33 = vpop.permute.xlu0 %5437 }
 0x7d2   :  { %v5327_v32 = vadd.f32 %v9841_v41, %v5291_v61  ;;  %vm5349_vm2 = vmor %vm18875_vm10, %vm5347_vm8  ;;  %v18879_v26 = vsel %vm16004_vm5, 4294967295, %v18878_v26  ;;  %vm18880_vm8 = vcmp.lt.f32.partialorder %v15772_v45, %v15492_v17  ;;  %vm5410_vm15 = vcmp.eq.f32.partialorder %v5402_v57, %v15655_v54 }
 0x7d3   :  { %vm5357_vm1 = vmand %vm15969_vm14, %vm5349_vm2  ;;  %v5485_v63 = vsel %vm18880_vm8, 1, %v18866_v53  ;;  %vm18881_vm2 = vcmp.eq.f32.partialorder %v5366_v7, %v15655_v54  ;;  %v5453_v1 = vrot.slane %v5449_v62, %v15787_v18  ;;  %vm18882_vm14 = vcmp.gt.f32.partialorder %v5366_v7, %v15655_v54 }
 0x7d4   :  { %v9843_v52 = vsel %vm5357_vm1, 1.0, %v18867_v13  ;;  %vm5383_vm10 = vmand %vm18881_vm2, %vm16004_vm5  ;;  %vm16033_vm1 = vcmp.eq.s32.totalorder %v5427_v14, 1  ;;  %v18883_v58 = vmov 0  ;;  %vm18885_vm2 = vcmp.eq.f32.partialorder %v15772_v45, %v15490_v0  ;;  %v5474_v45 = vpop.permute.xlu1 %5473 }
 0x7d5   :  { %v5363_v61 = vadd.f32 %v9843_v52, %v5327_v32  ;;  %vm5385_vm7 = vmor %vm18882_vm14, %vm5383_vm10  ;;  %v18884_v58 = vsel %vm16033_vm1, 4294967295, %v18883_v58  ;;  %v5495_v41 = vsel %vm18885_vm2, 1, %v18866_v53  ;;  %vm16041_vm5 = vcmp.eq.s32.totalorder %v5417_v5, 1  ;;  %5945 = vrot.lane.b32.xlu1 %v15503_v42, %s14055_s12  ;;  %5869 = vrot.lane.b32.xlu0 %v15655_v54, %s14053_s22 }
 0x7d6   :  { %v18886_v62 = vmov 0  ;;  %vm5393_vm4 = vmand %vm16000_vm13, %vm5385_vm7  ;;  %v5489_v7 = vrot.slane %v5485_v63, %v15787_v18  ;;  %vm18888_vm7 = vcmp.lt.f32.partialorder %v15782_v11, %v15492_v17  ;;  %vm16067_vm14 = vcmp.eq.s32.totalorder %v5463_v15, 1 }
 0x7d7   :  { %v18887_v62 = vsel %vm16041_vm5, 4294967295, %v18886_v62  ;;  %v9845_v14 = vsel %vm5393_vm4, 1.0, %v18867_v13  ;;  %vm5419_vm10 = vmand %vm5410_vm15, %vm16041_vm5  ;;  %v5521_v5 = vsel %vm18888_vm7, 1, %v18866_v53  ;;  %vm18889_vm15 = vcmp.gt.f32.partialorder %v5402_v57, %v15655_v54 }
 0x7d8   :  { %v5399_v32 = vadd.f32 %v9845_v14, %v5363_v61  ;;  %vm5421_vm2 = vmor %vm18889_vm15, %vm5419_vm10  ;;  %v18890_v63 = vmov 0  ;;  %v5499_v52 = vrot.slane %v5495_v41, %v15707_v31  ;;  %vm16072_vm13 = vcmp.eq.s32.totalorder %v5453_v1, 1  ;;  %v16078_v55 = vpop.f32.mrb[8].mxu0  ;;  %v5510_v1 = vpop.permute.xlu0 %5509 }
 0x7d9   :  { %v18891_v63 = vsel %vm16067_vm14, 4294967295, %v18890_v63  ;;  %v18893_v37 = vsel %vm16072_vm13, 4294967295, %v18892_v37  ;;  %vm5429_vm7 = vmand %vm16033_vm1, %vm5421_vm2  ;;  %vm18894_vm10 = vcmp.eq.f32.partialorder %v15782_v11, %v15490_v0  ;;  %vm18895_vm8 = vcmp.eq.f32.partialorder %v5438_v33, %v15655_v54  ;;  %v16092_v61 = vpop.f32.mrb[9].mxu0  ;;  %5905 = vrot.lane.b32.xlu1 %v15655_v54, %s14054_s9  ;;  %5871 = vrot.lane.b32.xlu0 %v15645_v28, %s14053_s22 }
 0x7da   :  { %v5531_v57 = vsel %vm18894_vm10, 1, %v18866_v53  ;;  %v9847_v15 = vsel %vm5429_vm7, 1.0, %v18867_v13  ;;  %vm5455_vm4 = vmand %vm18895_vm8, %vm16072_vm13  ;;  %v5525_v41 = vrot.slane %v5521_v5, %v15787_v18  ;;  %vm18896_vm2 = vcmp.lt.f32.partialorder %v15790_v25, %v15492_v17 }
 0x7db   :  { %v5557_v11 = vsel %vm18896_vm2, 1, %v18866_v53  ;;  %v5435_v14 = vadd.f32 %v9847_v15, %v5399_v32  ;;  %vm18897_vm7 = vcmp.gt.f32.partialorder %v5438_v33, %v15655_v54  ;;  %vm5480_vm15 = vcmp.gt.f32.partialorder %v5474_v45, %v15655_v54 }
 0x7dc   :  { %vm5457_vm10 = vmor %vm18897_vm7, %vm5455_vm4  ;;  %vm16106_vm8 = vcmp.eq.s32.totalorder %v5489_v7, 1  ;;  %v5535_v5 = vrot.slane %v5531_v57, %v15707_v31  ;;  %vm18900_vm4 = vcmp.eq.f32.partialorder %v15790_v25, %v15490_v0  ;;  %vm18901_vm2 = vcmp.eq.f32.partialorder %v5474_v45, %v15655_v54  ;;  %v5546_v7 = vpop.permute.xlu1 %5545 }
 0x7dd   :  { %v18899_v49 = vsel %vm16106_vm8, 4294967295, %v18898_v49  ;;  %vm5465_vm5 = vmand %vm16067_vm14, %vm5457_vm10  ;;  %v5567_v33 = vsel %vm18900_vm4, 1, %v18866_v53  ;;  %vm5518_vm1 = vcmp.eq.f32.partialorder %v5510_v1, %v15655_v54  ;;  %vm16123_vm13 = vcmp.eq.s32.totalorder %v5499_v52, 1 }
 0x7de   :  { %v9849_v32 = vsel %vm5465_vm5, 1.0, %v18867_v13  ;;  %vm5491_vm7 = vmand %vm18901_vm2, %vm16106_vm8  ;;  %v18902_v15 = vmov 0  ;;  %vm5516_vm14 = vcmp.gt.f32.partialorder %v5510_v1, %v15655_v54  ;;  %v5561_v25 = vrot.slane %v5557_v11, %v15787_v18 }
 0x7df   :  { %v18903_v15 = vsel %vm16123_vm13, 4294967295, %v18902_v15  ;;  %v5471_v57 = vadd.f32 %v9849_v32, %v5435_v14  ;;  %vm5493_vm10 = vmor %vm5480_vm15, %vm5491_vm7  ;;  %vm16129_vm4 = vcmp.eq.s32.totalorder %v5525_v41, 1  ;;  %v5571_v52 = vrot.slane %v5567_v33, %v15707_v31 }
 0x7e0   :  { %v18905_v39 = vsel %vm16129_vm4, 4294967295, %v18904_v39  ;;  %vm5501_vm5 = vmand %vm16123_vm13, %vm5493_vm10  ;;  %vm5554_vm15 = vcmp.eq.f32.partialorder %v5546_v7, %v15655_v54  ;;  %vm16140_vm7 = vcmp.eq.s32.totalorder %v5535_v5, 1  ;;  %v18906_v1 = vmov 0 }
 0x7e1   :  { %v9851_v45 = vsel %vm5501_vm5, 1.0, %v18867_v13  ;;  %vm5527_vm2 = vmand %vm5518_vm1, %vm16129_vm4  ;;  %v18907_v1 = vsel %vm16140_vm7, 4294967295, %v18906_v1  ;;  %vm5552_vm0 = vcmp.gt.f32.partialorder %v5546_v7, %v15655_v54  ;;  %vm16147_vm13 = vcmp.eq.s32.totalorder %v5561_v25, 1 }
 0x7e2   :  { %v5507_v41 = vadd.f32 %v9851_v45, %v5471_v57  ;;  %vm5529_vm8 = vmor %vm5516_vm14, %vm5527_vm2  ;;  %v18908_v11 = vmov 0  ;;  %vm16154_vm5 = vcmp.eq.s32.totalorder %v5571_v52, 1  ;;  %v18910_v33 = vmov 0 }
 0x7e3   :  { %vm5537_vm10 = vmand %vm16140_vm7, %vm5529_vm8  ;;  %v18909_v11 = vsel %vm16147_vm13, 4294967295, %v18908_v11  ;;  %v18911_v33 = vsel %vm16154_vm5, 4294967295, %v18910_v33  ;;  %vm5195_vm8 = vcmp.eq.f32.partialorder %v15717_v38, %v15645_v28  ;;  %vm5193_vm7 = vcmp.gt.f32.partialorder %v15717_v38, %v15645_v28 }
 0x7e4   :  { %v9853_v14 = vsel %vm5537_vm10, 1.0, %v18867_v13  ;;  %vm5563_vm1 = vmand %vm5554_vm15, %vm16147_vm13  ;;  %vm5231_vm10 = vcmp.eq.f32.partialorder %v15730_v44, %v15645_v28  ;;  %vm5267_vm15 = vcmp.eq.f32.partialorder %v15732_v21, %v15645_v28  ;;  %v18912_v57 = vmov 0 }
 0x7e5   :  { %v5543_v5 = vadd.f32 %v9853_v14, %v5507_v41  ;;  %vm5565_vm14 = vmor %vm5552_vm0, %vm5563_vm1  ;;  %vm5229_vm1 = vcmp.gt.f32.partialorder %v15730_v44, %v15645_v28  ;;  %vm5303_vm4 = vcmp.eq.f32.partialorder %v15749_v24, %v15645_v28 }
 0x7e6   :  { %vm5573_vm2 = vmand %vm16154_vm5, %vm5565_vm14 }
 0x7e7   :  { %v9855_v32 = vsel %vm5573_vm2, 1.0, %v18867_v13  ;;  %vm5204_vm0 = vmand %vm5195_vm8, %vm15816_vm12  ;;  %vm5265_vm2 = vcmp.gt.f32.partialorder %v15732_v21, %v15645_v28 }
 0x7e8   :  { %v16161_v7 = vadd.f32 %v9855_v32, %v5543_v5  ;;  %vm5240_vm14 = vmand %vm5231_vm10, %vm15866_vm9  ;;  %vm5339_vm9 = vcmp.eq.f32.partialorder %v15759_v40, %v15645_v28 }
 0x7e9   :  { %vm5276_vm5 = vmand %vm5267_vm15, %vm15900_vm11  ;;  %vm5337_vm15 = vcmp.gt.f32.partialorder %v15759_v40, %v15645_v28  ;;  %vm5375_vm11 = vcmp.eq.f32.partialorder %v15764_v27, %v15645_v28 }
 0x7ea   :  { %vm16181_vm13 = vmor %vm5193_vm7, %vm5204_vm0  ;;  %vm5301_vm7 = vcmp.gt.f32.partialorder %v15749_v24, %v15645_v28  ;;  %vm18918_vm0 = vnez %v18872_v12  ;;  %v18923_v12 = vmov 0  ;;  %v18935_v24 = vmov 0 }
 0x7eb   :  { %v18913_v57 = vsel %vm16181_vm13, 4294967295, %v18912_v57  ;;  %vm16187_vm12 = vmor %vm5229_vm1, %vm5240_vm14  ;;  %vm4418_vm1 = vcmp.eq.f32.partialorder %v15698_v2, %v15490_v0  ;;  %vm18919_vm14 = vnez %v18852_v29 }
 0x7ec   :  { %vm16193_vm8 = vmor %vm5265_vm2, %vm5276_vm5  ;;  %v4419_v0 = vsel %vm4418_vm1, 1, %v18866_v53  ;;  %vm5447_vm1 = vcmp.eq.f32.partialorder %v15780_v4, %v15645_v28 }
 0x7ed   :  { %v18917_v10 = vsel %vm16193_vm8, 4294967295, %v18916_v10  ;;  %vm5312_vm10 = vmand %vm5303_vm4, %vm15939_vm3  ;;  %vm18922_vm3 = vnez %v18856_v30  ;;  %vm5411_vm4 = vcmp.eq.f32.partialorder %v15774_v8, %v15645_v28  ;;  %v4423_v2 = vrot.slane %v4419_v0, %v15707_v31  ;;  %v16336_v30 = vld [vmem:[%s18531_s17] sm:$0x1] }
 0x7ee   :  { %vm5348_vm5 = vmand %vm5339_vm9, %vm18918_vm0  ;;  %vm18925_vm0 = vnez %v18879_v26 }
 0x7ef   :  { %vm5250_vm2 = vmand %vm18919_vm14, %vm16187_vm12  ;;  %vm5373_vm12 = vcmp.gt.f32.partialorder %v15764_v27, %v15645_v28 }
 0x7f0   :  { %vm16217_vm13 = vmor %vm5301_vm7, %vm5312_vm10  ;;  %vm18926_vm10 = vnez %v18863_v16  ;;  %v9838_v44 = vsel %vm5250_vm2, 1.0, %v18867_v13  ;;  %vm18934_vm2 = vnez %v18877_v48 }
 0x7f1   :  { %vm16225_vm9 = vmor %vm5337_vm15, %vm5348_vm5  ;;  %vm5445_vm5 = vcmp.gt.f32.partialorder %v15780_v4, %v15645_v28  ;;  %v18939_v4 = vmov 0 }
 0x7f2   :  { %v18924_v12 = vsel %vm16225_vm9, 4294967295, %v18923_v12  ;;  %vm5384_vm7 = vmand %vm5375_vm11, %vm18925_vm0  ;;  %vm5409_vm11 = vcmp.gt.f32.partialorder %v15774_v8, %v15645_v28  ;;  %vm18930_vm0 = vnez %v18887_v62  ;;  %vm18931_vm9 = vnez %v18893_v37 }
 0x7f3   :  { %vm16247_vm8 = vmor %vm5373_vm12, %vm5384_vm7  ;;  %vm18932_vm12 = vnez %v18913_v57 }
 0x7f4   :  { %vm5420_vm14 = vmand %vm5411_vm4, %vm18930_vm0  ;;  %vm5483_vm4 = vcmp.eq.f32.partialorder %v15792_v35, %v15645_v28  ;;  %vm16272_vm0 = vcmp.eq.s32.totalorder %v4423_v2, 1 }
 0x7f5   :  { %vm5456_vm15 = vmand %vm5447_vm1, %vm18931_vm9  ;;  %v18936_v24 = vsel %vm16272_vm0, 4294967295, %v18935_v24  ;;  %vm5481_vm1 = vcmp.gt.f32.partialorder %v15792_v35, %v15645_v28 }
 0x7f6   :  { %vm18933_vm7 = vmand %vm15850_vm6, %vm18932_vm12  ;;  %vm18941_vm12 = vnez %v18899_v49 }
 0x7f7   :  { %v9836_v21 = vsel %vm18933_vm7, 1.0, %v18867_v13  ;;  %vm16276_vm9 = vmor %vm5409_vm11, %vm5420_vm14  ;;  %vm18942_vm14 = vnez %v18917_v10 }
 0x7f8   :  { %v5256_v37 = vadd.f32 %v9838_v44, %v9836_v21  ;;  %vm16280_vm6 = vmor %vm5445_vm5, %vm5456_vm15 }
 0x7f9   :  { %v18940_v4 = vsel %vm16280_vm6, 4294967295, %v18939_v4  ;;  %vm5492_vm7 = vmand %vm5483_vm4, %vm18941_vm12  ;;  %vm18946_vm4 = vnez %v18884_v58  ;;  %vm5517_vm6 = vcmp.gt.f32.partialorder %v15808_v36, %v15645_v28 }
 0x7fa   :  { %vm18943_vm15 = vmand %vm18922_vm3, %vm18942_vm14  ;;  %vm5587_vm14 = vcmp.eq.f32.partialorder %v15810_v22, %v16336_v30  ;;  %vm18953_vm3 = vnez %v18905_v39 }
 0x7fb   :  { %v9840_v29 = vsel %vm18943_vm15, 1.0, %v18867_v13  ;;  %vm18944_vm5 = vmmov %vm16217_vm13  ;;  %vm5519_vm13 = vcmp.eq.f32.partialorder %v15808_v36, %v15645_v28  ;;  %vm18948_vm15 = vnez %v18870_v47  ;;  %v5603_v48 = vsel %vm5587_vm14, 1, %v18866_v53 }
 0x7fc   :  { %vm18945_vm11 = vmand %vm18926_vm10, %vm18944_vm5  ;;  %v5292_v49 = vadd.f32 %v9840_v29, %v5256_v37  ;;  %vm5555_vm10 = vcmp.eq.f32.partialorder %v15832_v6, %v15645_v28  ;;  %vm18949_vm5 = vnez %v18924_v12  ;;  %vm18964_vm14 = vnez %v18940_v4 }
 0x7fd   :  { %v9842_v35 = vsel %vm18945_vm11, 1.0, %v18867_v13  ;;  %vm18950_vm11 = vmand %vm18948_vm15, %vm18949_vm5  ;;  %vm18955_vm5 = vnez %v18909_v11  ;;  %v5607_v11 = vrot.slane %v5603_v48, %v15707_v31 }
 0x7fe   :  { %v9844_v16 = vsel %vm18950_vm11, 1.0, %v18867_v13  ;;  %vm16329_vm12 = vmor %vm5481_vm1, %vm5492_vm7  ;;  %v5328_v60 = vadd.f32 %v9842_v35, %v5292_v49  ;;  %vm5553_vm7 = vcmp.gt.f32.partialorder %v15832_v6, %v15645_v28 }
 0x7ff   :  { %vm5528_vm15 = vmand %vm5519_vm13, %vm18953_vm3  ;;  %vm5623_vm3 = vcmp.eq.f32.partialorder %v15830_v20, %v16336_v30 }
 0x800   :  { %vm18954_vm1 = vmand %vm18934_vm2, %vm16247_vm8  ;;  %v5639_v32 = vsel %vm5623_vm3, 1, %v18866_v53 }
 0x801   :  { %v9846_v62 = vsel %vm18954_vm1, 1.0, %v18867_v13  ;;  %vm5564_vm11 = vmand %vm5555_vm10, %vm18955_vm5  ;;  %v5643_v21 = vrot.slane %v5639_v32, %v15707_v31 }
 0x802   :  { %vm18956_vm13 = vmand %vm18946_vm4, %vm16276_vm9  ;;  %vm5628_vm9 = vcmp.lt.f32.partialorder %v15830_v20, %v15492_v17  ;;  %vm18960_vm4 = vnez %v18936_v24 }
 0x803   :  { %v9848_v39 = vsel %vm18956_vm13, 1.0, %v18867_v13  ;;  %vm16366_vm2 = vmor %vm5517_vm6, %vm5528_vm15  ;;  %vm18963_vm6 = vnez %v18891_v63  ;;  %vm18966_vm15 = vnez %v18907_v1 }
 0x804   :  { %vm18965_vm10 = vmand %vm18963_vm6, %vm18964_vm14 }
 0x805   :  { %v9850_v20 = vsel %vm18965_vm10, 1.0, %v18867_v13  ;;  %vm5538_vm1 = vmand %vm18966_vm15, %vm16366_vm2 }
 0x806   :  { %v9854_v43 = vsel %vm5538_vm1, 1.0, %v18867_v13 }
 0x80f   :  { %v6276_v27 = vpop.permute.xlu0 %6275  ;;  %v6280_v8 = vpop.permute.xlu1 %6279 }
 0x810   :  { %v6282_v23 = vsel %vm16272_vm0, %v6276_v27, %v6280_v8  ;;  %vm5592_vm0 = vcmp.lt.f32.partialorder %v15810_v22, %v15492_v17  ;;  %v5364_v22 = vadd.f32 %v9844_v16, %v5328_v60 }
 0x811   :  { %v16291_v59 = vmax.f32 %v15728_v51, %v6282_v23  ;;  %v5593_v47 = vsel %vm5592_vm0, 1, %v18866_v53  ;;  %vm18957_vm0 = vnez %v18903_v15 }
 0x812   :  { %vm5502_vm8 = vmand %vm18957_vm0, %vm16329_vm12  ;;  %v5597_v15 = vrot.slane %v5593_v47, %v15787_v18  ;;  %v5400_v45 = vadd.f32 %v9846_v62, %v5364_v22 }
 0x813   :  { %6291 = vrot.lane.b32.xlu0 %v16291_v59, %s14051_s14  ;;  %6287 = vrot.lane.b32.xlu1 %v16291_v59, %s14026_s21  ;;  %vm16377_vm12 = vmor %vm5553_vm7, %vm5564_vm11  ;;  %v9852_v5 = vsel %vm5502_vm8, 1.0, %v18867_v13  ;;  %vm18967_vm7 = vnez %v18911_v33 }
 0x814   :  { %v5436_v14 = vadd.f32 %v9848_v39, %v5400_v45  ;;  %vm5574_vm5 = vmand %vm18967_vm7, %vm16377_vm12  ;;  %vm16408_vm0 = vcmp.eq.s32.totalorder %v5597_v15, 1 }
 0x815   :  { %v9856_v40 = vsel %vm5574_vm5, 1.0, %v18867_v13 }
 0x816   :  { %v5472_v38 = vadd.f32 %v9850_v20, %v5436_v14 }
 0x817   :  { %v6274_v36 = vpop.permute.xlu0 %6273  ;;  %v6278_v6 = vpop.permute.xlu1 %6277 }
 0x818   :  { %v6281_v58 = vsel %vm18960_vm4, %v6274_v36, %v6278_v6  ;;  %v5508_v2 = vadd.f32 %v9852_v5, %v5472_v38 }
 0x819   :  { %v16382_v41 = vmax.f32 %v15747_v34, %v6281_v58  ;;  %v5629_v34 = vsel %vm5628_vm9, 1, %v18866_v53  ;;  %vm16417_vm9 = vcmp.eq.s32.totalorder %v5607_v11, 1 }
 0x81a   :  { %v5633_v44 = vrot.slane %v5629_v34, %v15787_v18  ;;  %v5544_v8 = vadd.f32 %v9854_v43, %v5508_v2 }
 0x81b   :  { %v5582_v57 = vpop.permute.xlu0 %5581  ;;  %6289 = vrot.lane.b32.xlu0 %v16382_v41, %s14051_s14  ;;  %6285 = vrot.lane.b32.xlu1 %v16382_v41, %s14026_s21  ;;  %v5658_v63 = vpop.permute.xlu1 %5657 }
 0x81c   :  { %vm5588_vm11 = vcmp.gt.f32.partialorder %v5582_v57, %v15655_v54  ;;  %vm5590_vm13 = vcmp.eq.f32.partialorder %v5582_v57, %v15655_v54  ;;  %vm5664_vm8 = vcmp.lt.f32.partialorder %v5658_v63, %v15492_v17  ;;  %vm5659_vm6 = vcmp.eq.f32.partialorder %v5658_v63, %v16336_v30 }
 0x81d   :  { %vm5599_vm2 = vmand %vm5590_vm13, %vm16408_vm0  ;;  %v5665_v10 = vsel %vm5664_vm8, 1, %v18866_v53  ;;  %v5675_v23 = vsel %vm5659_vm6, 1, %v18866_v53  ;;  %v5580_v33 = vadd.f32 %v9856_v40, %v5544_v8  ;;  %vm16450_vm13 = vcmp.eq.s32.totalorder %v5633_v44, 1 }
 0x81e   :  { %vm5601_vm3 = vmor %vm5588_vm11, %vm5599_vm2  ;;  %v5669_v0 = vrot.slane %v5665_v10, %v15787_v18  ;;  %v5679_v49 = vrot.slane %v5675_v23, %v15707_v31 }
 0x81f   :  { %vm5609_vm14 = vmand %vm16417_vm9, %vm5601_vm3  ;;  %v5584_v26 = vpop.permute.xlu0 %5583  ;;  %5981 = vrot.lane.b32.xlu0 %v15503_v42, %s14056_s3  ;;  %5907 = vrot.lane.b32.xlu1 %v15645_v28, %s14054_s9  ;;  %v5618_v37 = vpop.permute.xlu1 %5617 }
 0x820   :  { %v9857_v27 = vsel %vm5609_vm14, 1.0, %v18867_v13  ;;  %vm5589_vm10 = vcmp.gt.f32.partialorder %v5584_v26, %v15645_v28  ;;  %vm5591_vm15 = vcmp.eq.f32.partialorder %v5584_v26, %v15645_v28  ;;  %vm5626_vm11 = vcmp.eq.f32.partialorder %v5618_v37, %v15655_v54 }
 0x821   :  { %v5615_v4 = vadd.f32 %v9857_v27, %v16161_v7  ;;  %vm5600_vm1 = vmand %vm5591_vm15, %vm16408_vm0  ;;  %vm5624_vm7 = vcmp.gt.f32.partialorder %v5618_v37, %v15655_v54  ;;  %vm16460_vm0 = vcmp.eq.s32.totalorder %v5643_v21, 1  ;;  %vm16481_vm15 = vcmp.eq.s32.totalorder %v5669_v0, 1 }
 0x822   :  { %vm5602_vm12 = vmor %vm5589_vm10, %vm5600_vm1 }
 0x823   :  { %vm5610_vm5 = vmand %vm16417_vm9, %vm5602_vm12  ;;  %v5694_v7 = vpop.permute.xlu0 %5693  ;;  %5941 = vrot.lane.b32.xlu0 %v15655_v54, %s14055_s12  ;;  %6017 = vrot.lane.b32.xlu1 %v15503_v42, %s14057_s26  ;;  %v5620_v35 = vpop.permute.xlu1 %5619 }
 0x824   :  { %v9858_v16 = vsel %vm5610_vm5, 1.0, %v18867_v13  ;;  %vm5635_vm8 = vmand %vm5626_vm11, %vm16450_vm13  ;;  %vm5700_vm2 = vcmp.lt.f32.partialorder %v5694_v7, %v15492_v17  ;;  %vm5625_vm9 = vcmp.gt.f32.partialorder %v5620_v35, %v15645_v28  ;;  %vm5627_vm6 = vcmp.eq.f32.partialorder %v5620_v35, %v15645_v28 }
 0x825   :  { %v5616_v60 = vadd.f32 %v9858_v16, %v5580_v33  ;;  %vm5637_vm3 = vmor %vm5624_vm7, %vm5635_vm8  ;;  %v16470_v47 = vsel %vm5700_vm2, 1, %v18866_v53  ;;  %vm16491_vm7 = vcmp.eq.s32.totalorder %v5679_v49, 1  ;;  %vm5695_vm2 = vcmp.eq.f32.partialorder %v5694_v7, %v16336_v30 }
 0x826   :  { %vm5645_vm14 = vmand %vm16460_vm0, %vm5637_vm3  ;;  %v5705_v62 = vrot.slane %v16470_v47, %v15787_v18  ;;  %v5711_v57 = vsel %vm5695_vm2, 1, %v18866_v53 }
 0x827   :  { %v9859_v22 = vsel %vm5645_vm14, 1.0, %v18867_v13  ;;  %vm5636_vm10 = vmand %vm5627_vm6, %vm16450_vm13  ;;  %v5654_v39 = vpop.permute.xlu0 %5653  ;;  %5943 = vrot.lane.b32.xlu0 %v15645_v28, %s14055_s12  ;;  %5977 = vrot.lane.b32.xlu1 %v15655_v54, %s14056_s3  ;;  %v5730_v36 = vpop.permute.xlu1 %5729  ;;  %vm5734_vm14 = vcmp.eq.f32.partialorder %v15738_v50, %v15655_v54 }
 0x828   :  { %v5651_v6 = vadd.f32 %v9859_v22, %v5615_v4  ;;  %vm5638_vm1 = vmor %vm5625_vm9, %vm5636_vm10  ;;  %vm5660_vm11 = vcmp.gt.f32.partialorder %v5654_v39, %v15655_v54  ;;  %vm5662_vm12 = vcmp.eq.f32.partialorder %v5654_v39, %v15655_v54  ;;  %vm5731_vm13 = vcmp.eq.f32.partialorder %v5730_v36, %v16336_v30 }
 0x829   :  { %vm5646_vm5 = vmand %vm16460_vm0, %vm5638_vm1  ;;  %vm5736_vm8 = vcmp.lt.f32.partialorder %v5730_v36, %v15492_v17  ;;  %v5747_v45 = vsel %vm5731_vm13, 1, %v18866_v53 }
 0x82a   :  { %v9860_v58 = vsel %vm5646_vm5, 1.0, %v18867_v13  ;;  %vm5671_vm3 = vmand %vm5662_vm12, %vm16481_vm15  ;;  %v5737_v15 = vsel %vm5736_vm8, 1, %v18866_v53  ;;  %v5751_v11 = vrot.slane %v5747_v45, %v15707_v31  ;;  %vm5732_vm5 = vcmp.gt.f32.partialorder %v15738_v50, %v15655_v54 }
 0x82b   :  { %v5652_v52 = vadd.f32 %v9860_v58, %v5616_v60  ;;  %vm5673_vm9 = vmor %vm5660_vm11, %vm5671_vm3  ;;  %v5741_v20 = vrot.slane %v5737_v15, %v15787_v18  ;;  %v5656_v14 = vpop.permute.xlu0 %5655  ;;  %6053 = vrot.lane.b32.xlu0 %v15503_v42, %s14058_s5  ;;  %5979 = vrot.lane.b32.xlu1 %v15645_v28, %s14056_s3  ;;  %v5690_v5 = vpop.permute.xlu1 %5689  ;;  %vm5735_vm11 = vcmp.eq.f32.partialorder %v15715_v3, %v15645_v28 }
 0x82c   :  { %vm5681_vm0 = vmand %vm16491_vm7, %vm5673_vm9  ;;  %vm5663_vm6 = vcmp.eq.f32.partialorder %v5656_v14, %v15645_v28  ;;  %vm16530_vm8 = vcmp.eq.s32.totalorder %v5751_v11, 1  ;;  %v5715_v50 = vrot.slane %v5711_v57, %v15707_v31  ;;  %v16824_v57 = vld [vmem:[%s18530_s16 + $0x10] sm:$0xff] }
 0x82d   :  { %v9861_v34 = vsel %vm5681_vm0, 1.0, %v18867_v13  ;;  %vm5742_vm10 = vcmp.eq.s32.totalorder %v5741_v20, 1  ;;  %vm16519_vm1 = vmand %vm5663_vm6, %vm16481_vm15  ;;  %vm5733_vm15 = vcmp.gt.f32.partialorder %v15715_v3, %v15645_v28  ;;  %vm5661_vm0 = vcmp.gt.f32.partialorder %v5656_v14, %v15645_v28 }
 0x82e   :  { %v5687_v63 = vadd.f32 %v9861_v34, %v5651_v6  ;;  %vm5743_vm12 = vmand %vm5734_vm14, %vm5742_vm10 }
 0x82f   :  { %vm5744_vm13 = vmand %vm5735_vm11, %vm5742_vm10  ;;  %v5766_v38 = vpop.permute.xlu0 %5765  ;;  %6013 = vrot.lane.b32.xlu0 %v15655_v54, %s14057_s26  ;;  %6089 = vrot.lane.b32.xlu1 %v15503_v42, %s14059_s28  ;;  %v5692_v10 = vpop.permute.xlu1 %5691  ;;  %vm16562_vm11 = vcmp.eq.s32.totalorder %v5705_v62, 1 }
 0x830   :  { %vm16540_vm2 = vmor %vm5732_vm5, %vm5743_vm12  ;;  %vm5772_vm3 = vcmp.lt.f32.partialorder %v5766_v38, %v15492_v17  ;;  %vm5767_vm6 = vcmp.eq.f32.partialorder %v5766_v38, %v16336_v30  ;;  %vm5698_vm12 = vcmp.eq.f32.partialorder %v5690_v5, %v15655_v54  ;;  %vm5697_vm4 = vcmp.gt.f32.partialorder %v5692_v10, %v15645_v28 }
 0x831   :  { %vm16546_vm9 = vmor %vm5733_vm15, %vm5744_vm13  ;;  %v5773_v0 = vsel %vm5772_vm3, 1, %v18866_v53  ;;  %vm5696_vm13 = vcmp.gt.f32.partialorder %v5690_v5, %v15655_v54  ;;  %v5783_v21 = vsel %vm5767_vm6, 1, %v18866_v53  ;;  %vm16576_vm3 = vcmp.eq.s32.totalorder %v5715_v50, 1 }
 0x832   :  { %v5777_v3 = vrot.slane %v5773_v0, %v15787_v18  ;;  %vm5674_vm5 = vmor %vm5661_vm0, %vm16519_vm1  ;;  %vm5699_vm0 = vcmp.eq.f32.partialorder %v5692_v10, %v15645_v28  ;;  %v5787_v23 = vrot.slane %v5783_v21, %v15707_v31 }
 0x833   :  { %v5802_v26 = vpop.permute.xlu0 %5801  ;;  %6015 = vrot.lane.b32.xlu0 %v15645_v28, %s14057_s26  ;;  %6049 = vrot.lane.b32.xlu1 %v15655_v54, %s14058_s5  ;;  %v5762_v44 = vpop.permute.xlu1 %5761  ;;  %vm5682_vm10 = vmand %vm16491_vm7, %vm5674_vm5 }
 0x834   :  { %vm5808_vm15 = vcmp.lt.f32.partialorder %v5802_v26, %v15492_v17  ;;  %vm5803_vm14 = vcmp.eq.f32.partialorder %v5802_v26, %v16336_v30  ;;  %v9862_v27 = vsel %vm5682_vm10, 1.0, %v18867_v13  ;;  %vm5707_vm1 = vmand %vm5698_vm12, %vm16562_vm11  ;;  %vm16606_vm5 = vcmp.eq.s32.totalorder %v5777_v3, 1 }
 0x835   :  { %v5809_v40 = vsel %vm5808_vm15, 1, %v18866_v53  ;;  %v5688_v4 = vadd.f32 %v9862_v27, %v5652_v52  ;;  %vm5709_vm6 = vmor %vm5696_vm13, %vm5707_vm1  ;;  %v5819_v7 = vsel %vm5803_vm14, 1, %v18866_v53  ;;  %vm5770_vm13 = vcmp.eq.f32.partialorder %v5762_v44, %v15655_v54 }
 0x836   :  { %v5813_v8 = vrot.slane %v5809_v40, %v15787_v18  ;;  %vm5717_vm7 = vmand %vm16576_vm3, %vm5709_vm6  ;;  %vm5768_vm15 = vcmp.gt.f32.partialorder %v5762_v44, %v15655_v54  ;;  %vm16622_vm1 = vcmp.eq.s32.totalorder %v5787_v23, 1  ;;  %v5823_v36 = vrot.slane %v5819_v7, %v15707_v31 }
 0x837   :  { %v5838_v33 = vpop.permute.xlu0 %5837  ;;  %6125 = vrot.lane.b32.xlu0 %v15503_v42, %s14060_s23  ;;  %6051 = vrot.lane.b32.xlu1 %v15645_v28, %s14058_s5  ;;  %v5764_v29 = vpop.permute.xlu1 %5763  ;;  %v9863_v35 = vsel %vm5717_vm7, 1.0, %v18867_v13  ;;  %vm5708_vm12 = vmand %vm5699_vm0, %vm16562_vm11 }
 0x838   :  { %vm5844_vm10 = vcmp.lt.f32.partialorder %v5838_v33, %v15492_v17  ;;  %v5723_v51 = vadd.f32 %v9863_v35, %v5687_v63  ;;  %vm5710_vm14 = vmor %vm5697_vm4, %vm5708_vm12  ;;  %vm5839_vm6 = vcmp.eq.f32.partialorder %v5838_v33, %v16336_v30  ;;  %vm5769_vm7 = vcmp.gt.f32.partialorder %v5764_v29, %v15645_v28 }
 0x839   :  { %v5845_v16 = vsel %vm5844_vm10, 1, %v18866_v53  ;;  %vm18994_vm11 = vmand %vm16530_vm8, %vm16540_vm2  ;;  %vm5771_vm2 = vcmp.eq.f32.partialorder %v5764_v29, %v15645_v28  ;;  %v5855_v32 = vsel %vm5839_vm6, 1, %v18866_v53 }
 0x83a   :  { %v5849_v60 = vrot.slane %v5845_v16, %v15787_v18  ;;  %v9865_v47 = vsel %vm18994_vm11, 1.0, %v18867_v13  ;;  %vm5718_vm0 = vmand %vm16576_vm3, %vm5710_vm14  ;;  %vm16652_vm14 = vcmp.eq.s32.totalorder %v5813_v8, 1  ;;  %v5859_v1 = vrot.slane %v5855_v32, %v15707_v31 }
 0x83b   :  { %v5798_v22 = vpop.permute.xlu0 %5797  ;;  %6085 = vrot.lane.b32.xlu0 %v15655_v54, %s14059_s28  ;;  %6161 = vrot.lane.b32.xlu1 %v15503_v42, %s14061_s27  ;;  %v5874_v39 = vpop.permute.xlu1 %5873  ;;  %v9864_v48 = vsel %vm5718_vm0, 1.0, %v18867_v13  ;;  %v5759_v6 = vadd.f32 %v9865_v47, %v5723_v51  ;;  %vm5779_vm4 = vmand %vm5770_vm13, %vm16606_vm5 }
 0x83c   :  { %v5724_v25 = vadd.f32 %v9864_v48, %v5688_v4  ;;  %vm5781_vm3 = vmor %vm5768_vm15, %vm5779_vm4  ;;  %vm5880_vm10 = vcmp.lt.f32.partialorder %v5874_v39, %v15492_v17  ;;  %vm5806_vm11 = vcmp.eq.f32.partialorder %v5798_v22, %v15655_v54  ;;  %vm5875_vm4 = vcmp.eq.f32.partialorder %v5874_v39, %v16336_v30  ;;  %v16777_v39 = vld [vmem:[%s18530_s16] sm:$0xff]  ;;  %v16782_v48 = vld [vmem:[%s18530_s16 + $0x8] sm:$0xff] }
 0x83d   :  { %vm18997_vm12 = vmand %vm16530_vm8, %vm16546_vm9  ;;  %v5881_v45 = vsel %vm5880_vm10, 1, %v18866_v53  ;;  %vm5804_vm9 = vcmp.gt.f32.partialorder %v5798_v22, %v15655_v54  ;;  %v5891_v50 = vsel %vm5875_vm4, 1, %v18866_v53 }
 0x83e   :  { %v9866_v58 = vsel %vm18997_vm12, 1.0, %v18867_v13  ;;  %vm5789_vm13 = vmand %vm16622_vm1, %vm5781_vm3  ;;  %v5885_v11 = vrot.slane %v5881_v45, %v15787_v18  ;;  %v5895_v37 = vrot.slane %v5891_v50, %v15707_v31 }
 0x83f   :  { %v9867_v52 = vsel %vm5789_vm13, 1.0, %v18867_v13  ;;  %v5760_v20 = vadd.f32 %v9866_v58, %v5724_v25  ;;  %vm5780_vm15 = vmand %vm5771_vm2, %vm16606_vm5  ;;  %v5800_v14 = vpop.permute.xlu0 %5799  ;;  %6087 = vrot.lane.b32.xlu0 %v15645_v28, %s14059_s28  ;;  %6121 = vrot.lane.b32.xlu1 %v15655_v54, %s14060_s23  ;;  %v5834_v5 = vpop.permute.xlu1 %5833  ;;  %vm16672_vm5 = vcmp.eq.s32.totalorder %v5823_v36, 1  ;;  %vm16696_vm13 = vcmp.eq.s32.totalorder %v5849_v60, 1  ;;  %v16949_v58 = vld [vmem:[%s18530_s16 + $0x50] sm:$0xff] }
 0x840   :  { %v5795_v34 = vadd.f32 %v9867_v52, %v5759_v6  ;;  %vm5782_vm8 = vmor %vm5769_vm7, %vm5780_vm15  ;;  %vm5807_vm3 = vcmp.eq.f32.partialorder %v5800_v14, %v15645_v28  ;;  %vm5805_vm7 = vcmp.gt.f32.partialorder %v5800_v14, %v15645_v28  ;;  %vm5842_vm15 = vcmp.eq.f32.partialorder %v5834_v5, %v15655_v54 }
 0x841   :  { %vm5790_vm0 = vmand %vm16622_vm1, %vm5782_vm8  ;;  %vm5840_vm8 = vcmp.gt.f32.partialorder %v5834_v5, %v15655_v54  ;;  %v4494_v6 = vand.u32 4294901760, %v16777_v39  ;;  %v4497_v25 = vand.u32 4294901760, %v16782_v48 }
 0x842   :  { %v9868_v63 = vsel %vm5790_vm0, 1.0, %v18867_v13  ;;  %vm5815_vm2 = vmand %vm5806_vm11, %vm16652_vm14 }
 0x843   :  { %v5796_v38 = vadd.f32 %v9868_v63, %v5760_v20  ;;  %vm5817_vm6 = vmor %vm5804_vm9, %vm5815_vm2  ;;  %v5910_v10 = vpop.permute.xlu0 %5909  ;;  %6197 = vrot.lane.b32.xlu0 %v15503_v42, %s14062_s19  ;;  %6123 = vrot.lane.b32.xlu1 %v15645_v28, %s14060_s23  ;;  %v5836_v43 = vpop.permute.xlu1 %5835  ;;  %vm16706_vm9 = vcmp.eq.s32.totalorder %v5859_v1, 1  ;;  %v16804_v45 = vpack.c.bf16 %v4497_v25, %v4494_v6  ;;  %v16829_v63 = vld [vmem:[%s18530_s16 + $0x18] sm:$0xff]  ;;  %v4500_v1 = vand.u32 4294901760, %v16824_v57 }
 0x844   :  { %vm5825_vm1 = vmand %vm16672_vm5, %vm5817_vm6  ;;  %vm5916_vm10 = vcmp.lt.f32.partialorder %v5910_v10, %v15492_v17  ;;  %vm5843_vm4 = vcmp.eq.f32.partialorder %v5836_v43, %v15645_v28  ;;  %vm5911_vm2 = vcmp.eq.f32.partialorder %v5910_v10, %v16336_v30 }
 0x845   :  { %v9869_v12 = vsel %vm5825_vm1, 1.0, %v18867_v13  ;;  %vm5816_vm12 = vmand %vm5807_vm3, %vm16652_vm14  ;;  %v5917_v3 = vsel %vm5916_vm10, 1, %v18866_v53  ;;  %vm5841_vm3 = vcmp.gt.f32.partialorder %v5836_v43, %v15645_v28  ;;  %v5927_v35 = vsel %vm5911_vm2, 1, %v18866_v53  ;;  %12887 = vmatprep.subr.bf16.mxu1 %v16804_v45  ;;  %12695 = vmatprep.subr.bf16.mxu0 %v16804_v45 }
 0x846   :  { %v5831_v2 = vadd.f32 %v9869_v12, %v5795_v34  ;;  %vm5818_vm11 = vmor %vm5805_vm7, %vm5816_vm12  ;;  %v5921_v26 = vrot.slane %v5917_v3, %v15787_v18  ;;  %vm16736_vm12 = vcmp.eq.s32.totalorder %v5885_v11, 1  ;;  %v5931_v60 = vrot.slane %v5927_v35, %v15707_v31  ;;  %12889 = vmatpush3.bf16.msra.mxu1 %v16804_v45  ;;  %12697 = vmatpush3.bf16.msra.mxu0 %v16804_v45  ;;  %v16853_v3 = vld [vmem:[%s18530_s16 + $0x20] sm:$0xff] }
 0x847   :  { %vm5826_vm14 = vmand %vm16672_vm5, %vm5818_vm11  ;;  %v5870_v21 = vpop.permute.xlu0 %5869  ;;  %6157 = vrot.lane.b32.xlu0 %v15655_v54, %s14061_s27  ;;  %6233 = vrot.lane.b32.xlu1 %v15503_v42, %s14063_s1  ;;  %v16721_v27 = vpop.permute.xlu1 %5945  ;;  %vm16748_vm11 = vcmp.eq.s32.totalorder %v5895_v37, 1  ;;  %v16873_v37 = vld [vmem:[%s18530_s16 + $0x38] sm:$0xff]  ;;  %v3657_v35 = vld [vmem:[#allocation11] sm:$0xff] }
 0x848   :  { %v9870_v40 = vsel %vm5826_vm14, 1.0, %v18867_v13  ;;  %vm5851_vm0 = vmand %vm5842_vm15, %vm16696_vm13  ;;  %vm5952_vm6 = vcmp.lt.f32.partialorder %v16721_v27, %v15492_v17  ;;  %vm5878_vm10 = vcmp.eq.f32.partialorder %v5870_v21, %v15655_v54  ;;  %vm5876_vm15 = vcmp.gt.f32.partialorder %v5870_v21, %v15655_v54 }
 0x849   :  { %v5832_v8 = vadd.f32 %v9870_v40, %v5796_v38  ;;  %vm5853_vm5 = vmor %vm5840_vm8, %vm5851_vm0  ;;  %v16730_v42 = vsel %vm5952_vm6, 1, %v18866_v53  ;;  %v19014_v38 = vmov 0 }
 0x84a   :  { %vm5861_vm7 = vmand %vm16706_vm9, %vm5853_vm5  ;;  %v5957_v33 = vrot.slane %v16730_v42, %v15787_v18  ;;  %v16954_v42 = vld [vmem:[%s18530_s16 + $0x58] sm:$0xff] }
 0x84b   :  { %v9871_v4 = vsel %vm5861_vm7, 1.0, %v18867_v13  ;;  %vm5852_vm1 = vmand %vm5843_vm4, %vm16696_vm13  ;;  %v5872_v29 = vpop.permute.xlu0 %5871  ;;  %6159 = vrot.lane.b32.xlu0 %v15645_v28, %s14061_s27  ;;  %6193 = vrot.lane.b32.xlu1 %v15655_v54, %s14062_s19  ;;  %v5906_v51 = vpop.permute.xlu1 %5905 }
 0x84c   :  { %v5867_v7 = vadd.f32 %v9871_v4, %v5831_v2  ;;  %vm5854_vm13 = vmor %vm5841_vm3, %vm5852_vm1  ;;  %vm5879_vm0 = vcmp.eq.f32.partialorder %v5872_v29, %v15645_v28  ;;  %vm5877_vm5 = vcmp.gt.f32.partialorder %v5872_v29, %v15645_v28  ;;  %vm16769_vm3 = vcmp.eq.s32.totalorder %v5921_v26, 1  ;;  %v16858_v2 = vld [vmem:[%s18530_s16 + $0x28] sm:$0xff]  ;;  %v16863_v26 = vld [vmem:[%s18530_s16 + $0x30] sm:$0xff] }
 0x84d   :  { %vm5862_vm8 = vmand %vm16706_vm9, %vm5854_vm13  ;;  %vm5914_vm6 = vcmp.eq.f32.partialorder %v5906_v51, %v15655_v54  ;;  %vm5912_vm1 = vcmp.gt.f32.partialorder %v5906_v51, %v15655_v54  ;;  %v18664_v21 = vand.u32 4294901760, %v16858_v2  ;;  %v18663_v40 = vand.u32 4294901760, %v16863_v26 }
 0x84e   :  { %v9872_v16 = vsel %vm5862_vm8, 1.0, %v18867_v13  ;;  %vm5887_vm14 = vmand %vm5878_vm10, %vm16736_vm12  ;;  %vm16787_vm10 = vcmp.eq.s32.totalorder %v5931_v60, 1  ;;  %vm4439_vm8 = vcmp.eq.f32.partialorder %v15700_v56, %v16336_v30  ;;  %v4503_v56 = vand.u32 4294901760, %v16829_v63 }
 0x84f   :  { %v5868_v47 = vadd.f32 %v9872_v16, %v5832_v8  ;;  %vm5889_vm4 = vmor %vm5876_vm15, %vm5887_vm14  ;;  %6195 = vrot.lane.b32.xlu0 %v15645_v28, %s14062_s19  ;;  %6229 = vrot.lane.b32.xlu1 %v15655_v54, %s14063_s1  ;;  %v4440_v14 = vsel %vm4439_vm8, 1, %v18866_v53  ;;  %v18662_v29 = vand.u32 4294901760, %v16873_v37  ;;  %s14064_s19 = smov [#allocation13]  }
 0x850   :  { %vm5897_vm9 = vmand %vm16748_vm11, %vm5889_vm4  ;;  %v4444_v5 = vrot.slane %v4440_v14, %v15707_v31  ;;  %v16845_v12 = vpack.c.bf16 %v4503_v56, %v4500_v1 }
 0x851   :  { %v9873_v62 = vsel %vm5897_vm9, 1.0, %v18867_v13  ;;  %vm5888_vm2 = vmand %vm5879_vm0, %vm16736_vm12  ;;  %vm5947_vm0 = vcmp.eq.f32.partialorder %v16721_v27, %v16336_v30  ;;  %v3655_v27 = vmul.f32 0.35355338, %v16092_v61  ;;  %v16892_v61 = vld [vmem:[%s18530_s16 + $0x48] sm:$0xff] }
 0x852   :  { %v5903_v36 = vadd.f32 %v9873_v62, %v5867_v7  ;;  %vm5890_vm7 = vmor %vm5877_vm5, %vm5888_vm2  ;;  %vm16833_vm14 = vcmp.eq.s32.totalorder %v4444_v5, 1  ;;  %12891 = vmatprep.subr.bf16.mxu1 %v16845_v12  ;;  %12699 = vmatprep.subr.bf16.mxu0 %v16845_v12  ;;  %v5963_v8 = vsel %vm5947_vm0, 1, %v18866_v53  ;;  %v16887_v7 = vld [vmem:[%s18530_s16 + $0x40] sm:$0xff]  ;;  %v18658_v22 = vand.u32 4294901760, %v16892_v61 }
 0x853   :  { %vm5898_vm12 = vmand %vm16748_vm11, %vm5890_vm7  ;;  %6231 = vrot.lane.b32.xlu1 %v15645_v28, %s14063_s1  ;;  %4454 = vrot.lane.b32.xlu0 %v16336_v30, %s14020_s25  ;;  %v19015_v38 = vsel %vm16833_vm14, 4294967295, %v19014_v38  ;;  %v5967_v60 = vrot.slane %v5963_v8, %v15707_v31  ;;  %v18661_v62 = vand.u32 4294901760, %v16887_v7  ;;  %v16989_v8 = vld [vmem:[%s18530_s16 + $0x60] sm:$0xff] }
 0x854   :  { %v9874_v15 = vsel %vm5898_vm12, 1.0, %v18867_v13  ;;  %vm5923_vm13 = vmand %vm5914_vm6, %vm16769_vm3  ;;  %19016 = vst [vmem:[#allocation76_spill] sm:$0xff] %v19015_v38  ;;  %12893 = vmatpush3.bf16.msra.mxu1 %v16845_v12  ;;  %12701 = vmatpush3.bf16.msra.mxu0 %v16845_v12 }
 0x855   :  { %v16806_v52 = vadd.f32 %v9874_v15, %v5868_v47  ;;  %vm5925_vm15 = vmor %vm5912_vm1, %vm5923_vm13  ;;  %v16926_v15 = vadd.f32 %v3657_v35, %v3655_v27  ;;  %vm16938_vm1 = vcmp.eq.s32.totalorder %v5957_v33, 1  ;;  %v3658_v33 = vld [vmem:[#allocation11 + $0x8] sm:$0xff]  ;;  %vm16969_vm8 = vcmp.eq.s32.totalorder %v5967_v60, 1 }
 0x856   :  { %vm5933_vm11 = vmand %vm16787_vm10, %vm5925_vm15  ;;  %v18659_v27 = vand.u32 4294901760, %v16954_v42  ;;  %v17009_v47 = vld [vmem:[%s18530_s16 + $0x68] sm:$0xff] }
 0x857   :  { %v9875_v20 = vsel %vm5933_vm11, 1.0, %v18867_v13  ;;  %v18665_v5 = vand.u32 4294901760, %v17009_v47 }
 0x858   :  { %v16815_v11 = vadd.f32 %v9875_v20, %v5903_v36  ;;  %v3656_v36 = vmul.f32 0.35355338, %v16078_v55 }
 0x885   :  { %v6292_v34 = vpop.permute.xlu0 %6291  ;;  %v6288_v32 = vpop.permute.xlu1 %6287 }
 0x886   :  { %v6294_v44 = vsel %vm16833_vm14, %v6288_v32, %v6292_v34 }
 0x887   :  { %v16900_v49 = vmax.f32 %v16291_v59, %v6294_v44  ;;  %v16921_v59 = vpack.c.bf16 %v18662_v29, %v18663_v40  ;;  %v18660_v44 = vand.u32 4294901760, %v16949_v58  ;;  %v17174_v40 = vsub.f32 %v16824_v57, %v4500_v1  ;;  %v17206_v29 = vld [vmem:[%s18531_s17] sm:$0x1] }
 0x888   :  { %v19047_v1 = vand.u32 4294901760, %v16858_v2 }
 0x889   :  { %19020 = vst [vmem:[#allocation78_spill] sm:$0xff] %v16921_v59 }
 0x88d   :  { %v6290_v10 = vpop.permute.xlu0 %6289  ;;  %v6286_v43 = vpop.permute.xlu1 %6285 }
 0x88e   :  { %v6293_v50 = vsel %vm16833_vm14, %v6286_v43, %v6290_v10 }
 0x88f   :  { %v16848_v0 = vmax.f32 %v16382_v41, %v6293_v50  ;;  %v4506_v41 = vand.u32 4294901760, %v16853_v3  ;;  %v18674_v50 = vand.u32 4294901760, %v16989_v8 }
 0x891   :  { %v5982_v4 = vpop.permute.xlu0 %5981  ;;  %6301 = vrot.lane.b32.xlu1 %v16848_v0, %s14056_s3  ;;  %6297 = vrot.lane.b32.xlu0 %v16848_v0, %s14020_s25  ;;  %v5908_v23 = vpop.permute.xlu1 %5907  ;;  %v16909_v51 = vpack.c.bf16 %v18664_v21, %v4506_v41  ;;  %v17190_v57 = vsub.f32 %v16853_v3, %v4506_v41 }
 0x892   :  { %vm5983_vm4 = vcmp.eq.f32.partialorder %v5982_v4, %v16336_v30  ;;  %vm5988_vm5 = vcmp.lt.f32.partialorder %v5982_v4, %v15492_v17  ;;  %vm5913_vm9 = vcmp.gt.f32.partialorder %v5908_v23, %v15645_v28  ;;  %vm5915_vm2 = vcmp.eq.f32.partialorder %v5908_v23, %v15645_v28 }
 0x893   :  { %v5989_v16 = vsel %vm5988_vm5, 1, %v18866_v53  ;;  %vm5924_vm6 = vmand %vm5915_vm2, %vm16769_vm3  ;;  %19017 = vst [vmem:[#allocation77_spill] sm:$0xff] %v16909_v51  ;;  %v5999_v20 = vsel %vm5983_vm4, 1, %v18866_v53  ;;  %12895 = vmatprep.subr.bf16.mxu1 %v16909_v51  ;;  %12703 = vmatprep.subr.bf16.mxu0 %v16909_v51  ;;  %v16992_v4 = vadd.f32 %v3658_v33, %v3656_v36  ;;  %v17025_v33 = vld [vmem:[%s18530_s16 + $0x78] sm:$0xff] }
 0x894   :  { %vm16913_vm7 = vmor %vm5913_vm9, %vm5924_vm6  ;;  %v5993_v34 = vrot.slane %v5989_v16, %v15787_v18  ;;  %12897 = vmatpush3.bf16.msra.mxu1 %v16909_v51  ;;  %12705 = vmatpush3.bf16.msra.mxu0 %v16909_v51  ;;  %v6003_v23 = vrot.slane %v5999_v20, %v15707_v31 }
 0x895   :  { %vm5934_vm3 = vmand %vm16787_vm10, %vm16913_vm7  ;;  %v5942_v14 = vpop.permute.xlu0 %5941  ;;  %6303 = vrot.lane.b32.xlu1 %v16900_v49, %s14056_s3  ;;  %6299 = vrot.lane.b32.xlu0 %v16900_v49, %s14020_s25  ;;  %v6018_v55 = vpop.permute.xlu1 %6017 }
 0x896   :  { %v9876_v32 = vsel %vm5934_vm3, 1.0, %v18867_v13  ;;  %vm5948_vm10 = vcmp.gt.f32.partialorder %v5942_v14, %v15655_v54  ;;  %vm5950_vm12 = vcmp.eq.f32.partialorder %v5942_v14, %v15655_v54  ;;  %vm6019_vm15 = vcmp.eq.f32.partialorder %v6018_v55, %v16336_v30  ;;  %12899 = vmatprep.subr.bf16.mxu1 %v16921_v59  ;;  %12707 = vmatprep.subr.bf16.mxu0 %v16921_v59  ;;  %v17020_v14 = vld [vmem:[%s18530_s16 + $0x70] sm:$0xff] }
 0x897   :  { %v5940_v10 = vadd.f32 %v9876_v32, %v16806_v52  ;;  %vm5959_vm13 = vmand %vm5950_vm12, %vm16938_vm1  ;;  %vm6024_vm11 = vcmp.lt.f32.partialorder %v6018_v55, %v15492_v17  ;;  %v16982_v52 = vpack.c.bf16 %v18658_v22, %v18661_v62  ;;  %v6035_v35 = vsel %vm6019_vm15, 1, %v18866_v53 }
 0x898   :  { %vm16973_vm0 = vmor %vm5948_vm10, %vm5959_vm13  ;;  %v6025_v20 = vsel %vm6024_vm11, 1, %v18866_v53  ;;  %vm17030_vm6 = vcmp.eq.s32.totalorder %v5993_v34, 1  ;;  %12901 = vmatpush3.bf16.msra.mxu1 %v16921_v59  ;;  %12709 = vmatpush3.bf16.msra.mxu0 %v16921_v59  ;;  %vm17053_vm10 = vcmp.eq.s32.totalorder %v6003_v23, 1  ;;  %v18671_v23 = vand.u32 4294901760, %v17020_v14 }
 0x899   :  { %19027 = vst [vmem:[#allocation79_spill] sm:$0xff] %v16982_v52  ;;  %vm5969_vm4 = vmand %vm16969_vm8, %vm16973_vm0  ;;  %v5944_v16 = vpop.permute.xlu0 %5943  ;;  %4393 = vrot.lane.b32.xlu1 %v16926_v15, %s14039_s20  ;;  %4387 = vrot.lane.b32.xlu0 %v16926_v15, %s14036_s7  ;;  %v5978_v60 = vpop.permute.xlu1 %5977 }
 0x89a   :  { %v9877_v36 = vsel %vm5969_vm4, 1.0, %v18867_v13  ;;  %vm5949_vm5 = vcmp.gt.f32.partialorder %v5944_v16, %v15645_v28  ;;  %vm5951_vm9 = vcmp.eq.f32.partialorder %v5944_v16, %v15645_v28  ;;  %vm5986_vm7 = vcmp.eq.f32.partialorder %v5978_v60, %v15655_v54  ;;  %12903 = vmatprep.subr.bf16.mxu1 %v16982_v52  ;;  %12711 = vmatprep.subr.bf16.mxu0 %v16982_v52 }
 0x89b   :  { %v5975_v32 = vadd.f32 %v9877_v36, %v16815_v11  ;;  %vm5960_vm2 = vmand %vm5951_vm9, %vm16938_vm1  ;;  %v6039_v16 = vrot.slane %v6035_v35, %v15707_v31  ;;  %vm5984_vm1 = vcmp.gt.f32.partialorder %v5978_v60, %v15655_v54  ;;  %v17049_v11 = vpack.c.bf16 %v18659_v27, %v18660_v44 }
 0x89c   :  { %vm17039_vm3 = vmor %vm5949_vm5, %vm5960_vm2  ;;  %v6029_v35 = vrot.slane %v6025_v20, %v15787_v18  ;;  %v18668_v44 = vand.u32 4294901760, %v17025_v33  ;;  %12905 = vmatpush3.bf16.msra.mxu1 %v16982_v52  ;;  %12713 = vmatpush3.bf16.msra.mxu0 %v16982_v52 }
 0x89d   :  { %19032 = vst [vmem:[#allocation80_spill] sm:$0xff] %v17049_v11  ;;  %vm5970_vm12 = vmand %vm16969_vm8, %vm17039_vm3  ;;  %v6054_v36 = vpop.permute.xlu0 %6053  ;;  %4395 = vrot.lane.b32.xlu1 %v16992_v4, %s14039_s20  ;;  %4389 = vrot.lane.b32.xlu0 %v16992_v4, %s14036_s7  ;;  %v5980_v27 = vpop.permute.xlu1 %5979  ;;  %vm17083_vm5 = vcmp.eq.s32.totalorder %v6039_v16, 1 }
 0x89e   :  { %v9878_v62 = vsel %vm5970_vm12, 1.0, %v18867_v13  ;;  %vm5995_vm13 = vmand %vm5986_vm7, %vm17030_vm6  ;;  %vm6055_vm15 = vcmp.eq.f32.partialorder %v6054_v36, %v16336_v30  ;;  %vm6060_vm11 = vcmp.lt.f32.partialorder %v6054_v36, %v15492_v17  ;;  %vm5985_vm8 = vcmp.gt.f32.partialorder %v5980_v27, %v15645_v28  ;;  %12907 = vmatprep.subr.bf16.mxu1 %v17049_v11  ;;  %12715 = vmatprep.subr.bf16.mxu0 %v17049_v11 }
 0x89f   :  { %v5976_v22 = vadd.f32 %v9878_v62, %v5940_v10  ;;  %vm5997_vm0 = vmor %vm5984_vm1, %vm5995_vm13  ;;  %v6061_v43 = vsel %vm6060_vm11, 1, %v18866_v53  ;;  %v6071_v20 = vsel %vm6055_vm15, 1, %v18866_v53  ;;  %vm5987_vm4 = vcmp.eq.f32.partialorder %v5980_v27, %v15645_v28 }
 0x8a0   :  { %vm6005_vm9 = vmand %vm17053_vm10, %vm5997_vm0  ;;  %v17094_v62 = vpack.c.bf16 %v18665_v5, %v18674_v50  ;;  %v17099_v10 = vsub.f32 %v16777_v39, %v4494_v6  ;;  %v6065_v16 = vrot.slane %v6061_v43, %v15787_v18  ;;  %vm17105_vm7 = vcmp.eq.s32.totalorder %v6029_v35, 1  ;;  %12909 = vmatpush3.bf16.msra.mxu1 %v17049_v11  ;;  %12717 = vmatpush3.bf16.msra.mxu0 %v17049_v11 }
 0x8a1   :  { %v9879_v60 = vsel %vm6005_vm9, 1.0, %v18867_v13  ;;  %vm5996_vm2 = vmand %vm5987_vm4, %vm17030_vm6  ;;  %v6014_v36 = vpop.permute.xlu0 %6013  ;;  %v6090_v21 = vpop.permute.xlu1 %6089  ;;  %v17112_v5 = vsub.f32 %v16782_v48, %v4497_v25  ;;  %v6075_v6 = vrot.slane %v6071_v20, %v15707_v31  ;;  %v17129_v48 = vpack.c.bf16 %v18668_v44, %v18671_v23 }
 0x8a2   :  { %19037 = vst [vmem:[#allocation81_spill] sm:$0xff] %v17094_v62  ;;  %v6011_v39 = vadd.f32 %v9879_v60, %v5975_v32  ;;  %vm5998_vm3 = vmor %vm5985_vm8, %vm5996_vm2  ;;  %vm6020_vm6 = vcmp.gt.f32.partialorder %v6014_v36, %v15655_v54  ;;  %vm6022_vm1 = vcmp.eq.f32.partialorder %v6014_v36, %v15655_v54  ;;  %vm6091_vm13 = vcmp.eq.f32.partialorder %v6090_v21, %v16336_v30 }
 0x8a3   :  { %vm6006_vm12 = vmand %vm17053_vm10, %vm5998_vm3  ;;  %vm6096_vm15 = vcmp.lt.f32.partialorder %v6090_v21, %v15492_v17  ;;  %19040 = vst [vmem:[#allocation82_spill] sm:$0xff] %v17129_v48  ;;  %v18667_v25 = vand.u32 4294901760, %v17099_v10  ;;  %v6107_v21 = vsel %vm6091_vm13, 1, %v18866_v53  ;;  %12911 = vmatprep.subr.bf16.mxu1 %v17094_v62  ;;  %v18666_v32 = vand.u32 4294901760, %v17112_v5  ;;  %12719 = vmatprep.subr.bf16.mxu0 %v17094_v62 }
 0x8a4   :  { %v9880_v27 = vsel %vm6006_vm12, 1.0, %v18867_v13  ;;  %vm6031_vm10 = vmand %vm6022_vm1, %vm17105_vm7  ;;  %v6097_v30 = vsel %vm6096_vm15, 1, %v18866_v53  ;;  %v6111_v34 = vrot.slane %v6107_v21, %v15707_v31  ;;  %vm17147_vm8 = vcmp.eq.s32.totalorder %v6075_v6, 1  ;;  %12913 = vmatpush3.bf16.msra.mxu1 %v17094_v62  ;;  %12721 = vmatpush3.bf16.msra.mxu0 %v17094_v62 }
 0x8a5   :  { %v6012_v55 = vadd.f32 %v9880_v27, %v5976_v22  ;;  %vm6033_vm11 = vmor %vm6020_vm6, %vm6031_vm10  ;;  %v6016_v35 = vpop.permute.xlu0 %6015  ;;  %v6050_v43 = vpop.permute.xlu1 %6049  ;;  %v4598_v20 = vsub.f32 %v17099_v10, %v18667_v25  ;;  %vm17155_vm2 = vcmp.eq.s32.totalorder %v6065_v16, 1  ;;  %v6101_v27 = vrot.slane %v6097_v30, %v15787_v18  ;;  %12915 = vmatprep.subr.bf16.mxu1 %v17129_v48  ;;  %12723 = vmatprep.subr.bf16.mxu0 %v17129_v48 }
 0x8a6   :  { %vm6041_vm0 = vmand %vm17083_vm5, %vm6033_vm11  ;;  %vm6021_vm4 = vcmp.gt.f32.partialorder %v6016_v35, %v15645_v28  ;;  %vm6023_vm9 = vcmp.eq.f32.partialorder %v6016_v35, %v15645_v28  ;;  %vm6056_vm6 = vcmp.gt.f32.partialorder %v6050_v43, %v15655_v54  ;;  %vm6058_vm1 = vcmp.eq.f32.partialorder %v6050_v43, %v15655_v54 }
 0x8a7   :  { %v9881_v36 = vsel %vm6041_vm0, 1.0, %v18867_v13  ;;  %vm6032_vm3 = vmand %vm6023_vm9, %vm17105_vm7  ;;  %v4605_v16 = vsub.f32 %v17112_v5, %v18666_v32  ;;  %v17179_v30 = vsub.f32 %v16829_v63, %v4503_v56  ;;  %vm17181_vm7 = vcmp.eq.s32.totalorder %v6111_v34, 1 }
 0x8a8   :  { %v6047_v6 = vadd.f32 %v9881_v36, %v6011_v39  ;;  %vm6034_vm12 = vmor %vm6021_vm4, %vm6032_vm3  ;;  %v4599_v36 = vand.u32 4294901760, %v4598_v20  ;;  %v17195_v63 = vsub.f32 %v16858_v2, %v19047_v1  ;;  %12917 = vmatpush3.bf16.msra.mxu1 %v17129_v48  ;;  %12725 = vmatpush3.bf16.msra.mxu0 %v17129_v48  ;;  %vm17221_vm3 = vcmp.eq.s32.totalorder %v6101_v27, 1 }
 0x8a9   :  { %vm6042_vm13 = vmand %vm17083_vm5, %vm6034_vm12  ;;  %v6126_v39 = vpop.permute.xlu0 %6125  ;;  %v6052_v35 = vpop.permute.xlu1 %6051  ;;  %v4606_v43 = vand.u32 4294901760, %v4605_v16  ;;  %v18670_v20 = vand.u32 4294901760, %v17174_v40  ;;  %v18669_v25 = vand.u32 4294901760, %v17179_v30  ;;  %v19056_v23 = vand.u32 4294901760, %v16863_v26 }
 0x8aa   :  { %v9882_v56 = vsel %vm6042_vm13, 1.0, %v18867_v13  ;;  %vm6067_vm5 = vmand %vm6058_vm1, %vm17155_vm2  ;;  %vm6127_vm15 = vcmp.eq.f32.partialorder %v6126_v39, %v17206_v29  ;;  %vm6132_vm10 = vcmp.lt.f32.partialorder %v6126_v39, %v15492_v17  ;;  %vm6057_vm11 = vcmp.gt.f32.partialorder %v6052_v35, %v15645_v28 }
 0x8ab   :  { %v6048_v3 = vadd.f32 %v9882_v56, %v6012_v55  ;;  %vm6069_vm0 = vmor %vm6056_vm6, %vm6067_vm5  ;;  %v6133_v2 = vsel %vm6132_vm10, 1, %v18866_v53  ;;  %v6143_v41 = vsel %vm6127_vm15, 1, %v18866_v53  ;;  %vm6059_vm4 = vcmp.eq.f32.partialorder %v6052_v35, %v15645_v28 }
 0x8ac   :  { %vm6077_vm9 = vmand %vm17147_vm8, %vm6069_vm0  ;;  %v6147_v34 = vrot.slane %v6143_v41, %v15707_v31  ;;  %v6137_v1 = vrot.slane %v6133_v2, %v15787_v18  ;;  %v18672_v41 = vand.u32 4294901760, %v17190_v57  ;;  %v18673_v16 = vand.u32 4294901760, %v17195_v63 }
 0x8ad   :  { %v9883_v39 = vsel %vm6077_vm9, 1.0, %v18867_v13  ;;  %vm6068_vm6 = vmand %vm6059_vm4, %vm17155_vm2  ;;  %v6086_v56 = vpop.permute.xlu0 %6085  ;;  %v6162_v32 = vpop.permute.xlu1 %6161  ;;  %v17245_v22 = vpack.c.bf16 %v4606_v43, %v4599_v36  ;;  %v4612_v60 = vsub.f32 %v17174_v40, %v18670_v20  ;;  %v4619_v44 = vsub.f32 %v17179_v30, %v18669_v25 }
 0x8ae   :  { %v6083_v27 = vadd.f32 %v9883_v39, %v6047_v6  ;;  %vm6070_vm1 = vmor %vm6057_vm11, %vm6068_vm6  ;;  %vm6092_vm12 = vcmp.gt.f32.partialorder %v6086_v56, %v15655_v54  ;;  %vm6094_vm13 = vcmp.eq.f32.partialorder %v6086_v56, %v15655_v54  ;;  %vm17237_vm5 = vcmp.eq.s32.totalorder %v6147_v34, 1 }
 0x8af   :  { %vm6078_vm2 = vmand %vm17147_vm8, %vm6070_vm1  ;;  %vm6163_vm15 = vcmp.eq.f32.partialorder %v6162_v32, %v17206_v29  ;;  %vm6168_vm10 = vcmp.lt.f32.partialorder %v6162_v32, %v15492_v17  ;;  %vm17256_vm0 = vcmp.eq.s32.totalorder %v6137_v1, 1  ;;  %12919 = vmatprep.subr.bf16.mxu1 %v17245_v22  ;;  %12727 = vmatprep.subr.bf16.mxu0 %v17245_v22  ;;  %v4620_v25 = vand.u32 4294901760, %v4619_v44 }
 0x8b0   :  { %v9884_v6 = vsel %vm6078_vm2, 1.0, %v18867_v13  ;;  %vm6103_vm11 = vmand %vm6094_vm13, %vm17221_vm3  ;;  %v6169_v35 = vsel %vm6168_vm10, 1, %v18866_v53  ;;  %v6179_v34 = vsel %vm6163_vm15, 1, %v18866_v53  ;;  %v4633_v20 = vsub.f32 %v17195_v63, %v18673_v16 }
 0x8b1   :  { %v6084_v39 = vadd.f32 %v9884_v6, %v6048_v3  ;;  %vm6105_vm8 = vmor %vm6092_vm12, %vm6103_vm11  ;;  %v6173_v56 = vrot.slane %v6169_v35, %v15787_v18  ;;  %v6088_v32 = vpop.permute.xlu0 %6087  ;;  %v6122_v43 = vpop.permute.xlu1 %6121  ;;  %v6183_v3 = vrot.slane %v6179_v34, %v15707_v31  ;;  %v4613_v35 = vand.u32 4294901760, %v4612_v60 }
 0x8b2   :  { %vm6113_vm4 = vmand %vm17181_vm7, %vm6105_vm8  ;;  %vm6093_vm9 = vcmp.gt.f32.partialorder %v6088_v32, %v15645_v28  ;;  %vm6095_vm6 = vcmp.eq.f32.partialorder %v6088_v32, %v15645_v28  ;;  %vm6128_vm1 = vcmp.gt.f32.partialorder %v6122_v43, %v15655_v54  ;;  %vm6130_vm13 = vcmp.eq.f32.partialorder %v6122_v43, %v15655_v54 }
 0x8b3   :  { %v9885_v1 = vsel %vm6113_vm4, 1.0, %v18867_v13  ;;  %vm6104_vm12 = vmand %vm6095_vm6, %vm17221_vm3  ;;  %vm17275_vm2 = vcmp.eq.s32.totalorder %v6173_v56, 1  ;;  %v4626_v32 = vsub.f32 %v17190_v57, %v18672_v41  ;;  %v17290_v60 = vsub.f32 %v16863_v26, %v19056_v23 }
 0x8b4   :  { %v6119_v34 = vadd.f32 %v9885_v1, %v6083_v27  ;;  %vm6106_vm15 = vmor %vm6093_vm9, %vm6104_vm12  ;;  %v19057_v44 = vand.u32 4294901760, %v16873_v37  ;;  %v19058_v1 = vand.u32 4294901760, %v16887_v7  ;;  %v19059_v21 = vand.u32 4294901760, %v16892_v61 }
 0x8b5   :  { %vm6114_vm3 = vmand %vm17181_vm7, %vm6106_vm15  ;;  %v6198_v55 = vpop.permute.xlu0 %6197  ;;  %v6124_v56 = vpop.permute.xlu1 %6123  ;;  %v19066_v6 = vand.u32 4294901760, %v16949_v58 }
 0x8b6   :  { %v17295_v27 = vsub.f32 %v16873_v37, %v19057_v44  ;;  %v17300_v41 = vsub.f32 %v16887_v7, %v19058_v1  ;;  %v17305_v16 = vsub.f32 %v16892_v61, %v19059_v21  ;;  %v9886_v50 = vsel %vm6114_vm3, 1.0, %v18867_v13  ;;  %vm6139_vm7 = vmand %vm6130_vm13, %vm17256_vm0 }
 0x8b7   :  { %vm6199_vm10 = vcmp.eq.f32.partialorder %v6198_v55, %v17206_v29  ;;  %vm6204_vm11 = vcmp.lt.f32.partialorder %v6198_v55, %v15492_v17  ;;  %vm6129_vm8 = vcmp.gt.f32.partialorder %v6124_v56, %v15645_v28  ;;  %v6120_v26 = vadd.f32 %v9886_v50, %v6084_v39  ;;  %vm6141_vm4 = vmor %vm6128_vm1, %vm6139_vm7 }
 0x8b8   :  { %v6205_v37 = vsel %vm6204_vm11, 1, %v18866_v53  ;;  %v6215_v7 = vsel %vm6199_vm10, 1, %v18866_v53  ;;  %vm6131_vm9 = vcmp.eq.f32.partialorder %v6124_v56, %v15645_v28  ;;  %vm6149_vm6 = vmand %vm17237_vm5, %vm6141_vm4  ;;  %v17324_v55 = vpack.c.bf16 %v4620_v25, %v4613_v35 }
 0x8b9   :  { %v6209_v61 = vrot.slane %v6205_v37, %v15787_v18  ;;  %v6219_v23 = vrot.slane %v6215_v7, %v15707_v31  ;;  %v4627_v44 = vand.u32 4294901760, %v4626_v32  ;;  %v9887_v50 = vsel %vm6149_vm6, 1.0, %v18867_v13  ;;  %vm6140_vm1 = vmand %vm6131_vm9, %vm17256_vm0  ;;  %v6158_v39 = vpop.permute.xlu0 %6157  ;;  %v6234_v43 = vpop.permute.xlu1 %6233 }
 0x8ba   :  { %v4634_v1 = vand.u32 4294901760, %v4633_v20  ;;  %v18684_v21 = vand.u32 4294901760, %v17290_v60  ;;  %v18679_v46 = vand.u32 4294901760, %v17295_v27  ;;  %v6155_v19 = vadd.f32 %v9887_v50, %v6119_v34  ;;  %vm6142_vm12 = vmor %vm6129_vm8, %vm6140_vm1 }
 0x8bb   :  { %vm6164_vm13 = vcmp.gt.f32.partialorder %v6158_v39, %v15655_v54  ;;  %vm6166_vm15 = vcmp.eq.f32.partialorder %v6158_v39, %v15655_v54  ;;  %vm17335_vm3 = vcmp.eq.s32.totalorder %v6183_v3, 1  ;;  %vm6150_vm0 = vmand %vm17237_vm5, %vm6142_vm12  ;;  %vm6235_vm7 = vcmp.eq.f32.partialorder %v6234_v43, %v17206_v29 }
 0x8bc   :  { %vm6240_vm10 = vcmp.lt.f32.partialorder %v6234_v43, %v15492_v17  ;;  %v17343_v20 = vpack.c.bf16 %v4634_v1, %v4627_v44  ;;  %v9888_v36 = vsel %vm6150_vm0, 1.0, %v18867_v13  ;;  %vm6175_vm11 = vmand %vm6166_vm15, %vm17275_vm2  ;;  %v6251_v3 = vsel %vm6235_vm7, 1, %v18866_v53 }
 0x8bd   :  { %v6241_v35 = vsel %vm6240_vm10, 1, %v18866_v53  ;;  %v4640_v2 = vsub.f32 %v17290_v60, %v18684_v21  ;;  %vm17353_vm5 = vcmp.eq.s32.totalorder %v6219_v23, 1  ;;  %v6156_v17 = vadd.f32 %v9888_v36, %v6120_v26  ;;  %vm6177_vm8 = vmor %vm6164_vm13, %vm6175_vm11  ;;  %v6160_v32 = vpop.permute.xlu0 %6159  ;;  %v6194_v37 = vpop.permute.xlu1 %6193 }
 0x8be   :  { %vm17357_vm4 = vcmp.eq.s32.totalorder %v6209_v61, 1  ;;  %v4647_v7 = vsub.f32 %v17295_v27, %v18679_v46  ;;  %vm6185_vm9 = vmand %vm17335_vm3, %vm6177_vm8  ;;  %v6245_v23 = vrot.slane %v6241_v35, %v15787_v18  ;;  %v6255_v44 = vrot.slane %v6251_v3, %v15707_v31 }
 0x8bf   :  { %vm6165_vm6 = vcmp.gt.f32.partialorder %v6160_v32, %v15645_v28  ;;  %vm6167_vm1 = vcmp.eq.f32.partialorder %v6160_v32, %v15645_v28  ;;  %v9889_v26 = vsel %vm6185_vm9, 1.0, %v18867_v13  ;;  %vm6200_vm13 = vcmp.gt.f32.partialorder %v6194_v37, %v15655_v54 }
 0x8c0   :  { %vm6176_vm12 = vmand %vm6167_vm1, %vm17275_vm2  ;;  %vm6202_vm15 = vcmp.eq.f32.partialorder %v6194_v37, %v15655_v54  ;;  %v4641_v61 = vand.u32 4294901760, %v4640_v2  ;;  %v6191_v50 = vadd.f32 %v9889_v26, %v6155_v19  ;;  %v4648_v39 = vand.u32 4294901760, %v4647_v7 }
 0x8c1   :  { %vm6178_vm0 = vmor %vm6165_vm6, %vm6176_vm12  ;;  %v18676_v18 = vand.u32 4294901760, %v17300_v41  ;;  %v18675_v43 = vand.u32 4294901760, %v17305_v16  ;;  %v6196_v1 = vpop.permute.xlu0 %6195  ;;  %v6230_v36 = vpop.permute.xlu1 %6229  ;;  %v17382_v35 = vsub.f32 %v16949_v58, %v19066_v6  ;;  %v19067_v3 = vand.u32 4294901760, %v16954_v42 }
 0x8c2   :  { %vm6186_vm7 = vmand %vm17335_vm3, %vm6178_vm0  ;;  %v19068_v2 = vand.u32 4294901760, %v16989_v8  ;;  %v19069_v25 = vand.u32 4294901760, %v17009_v47  ;;  %vm6201_vm3 = vcmp.gt.f32.partialorder %v6196_v1, %v15645_v28  ;;  %vm6203_vm10 = vcmp.eq.f32.partialorder %v6196_v1, %v15645_v28 }
 0x8c3   :  { %v17387_v19 = vsub.f32 %v16954_v42, %v19067_v3  ;;  %v9890_v26 = vsel %vm6186_vm7, 1.0, %v18867_v13  ;;  %vm6211_vm2 = vmand %vm6202_vm15, %vm17357_vm4  ;;  %vm17406_vm11 = vcmp.eq.s32.totalorder %v6245_v23, 1  ;;  %vm6238_vm9 = vcmp.eq.f32.partialorder %v6230_v36, %v15655_v54 }
 0x8c4   :  { %v17392_v32 = vsub.f32 %v16989_v8, %v19068_v2  ;;  %v17397_v7 = vsub.f32 %v17009_v47, %v19069_v25  ;;  %v6192_v42 = vadd.f32 %v9890_v26, %v6156_v17  ;;  %vm6213_vm8 = vmor %vm6200_vm13, %vm6211_vm2  ;;  %v17413_v8 = vpack.c.bf16 %v4648_v39, %v4641_v61 }
 0x8c5   :  { %v4654_v47 = vsub.f32 %v17300_v41, %v18676_v18  ;;  %vm6221_vm6 = vmand %vm17353_vm5, %vm6213_vm8  ;;  %v4661_v23 = vsub.f32 %v17305_v16, %v18675_v43  ;;  %v18678_v17 = vand.u32 4294901760, %v17382_v35  ;;  %v18677_v37 = vand.u32 4294901760, %v17387_v19  ;;  %v6232_v39 = vpop.permute.xlu1 %6231 }
 0x8c6   :  { %v18680_v6 = vand.u32 4294901760, %v17392_v32  ;;  %v9891_v61 = vsel %vm6221_vm6, 1.0, %v18867_v13  ;;  %vm6212_vm1 = vmand %vm6203_vm10, %vm17357_vm4  ;;  %v18683_v2 = vand.u32 4294901760, %v17397_v7  ;;  %v19072_v25 = vand.u32 4294901760, %v17020_v14 }
 0x8c7   :  { %v4655_v3 = vand.u32 4294901760, %v4654_v47  ;;  %vm17435_vm12 = vcmp.eq.s32.totalorder %v6255_v44, 1  ;;  %v6227_v18 = vadd.f32 %v9891_v61, %v6191_v50  ;;  %vm6214_vm13 = vmor %vm6201_vm3, %vm6212_vm1  ;;  %vm6236_vm15 = vcmp.gt.f32.partialorder %v6230_v36, %v15655_v54 }
 0x8c8   :  { %v17433_v26 = vsub.f32 %v17020_v14, %v19072_v25  ;;  %vm6222_vm4 = vmand %vm17353_vm5, %vm6214_vm13  ;;  %vm6237_vm0 = vcmp.gt.f32.partialorder %v6232_v39, %v15645_v28  ;;  %v4662_v56 = vand.u32 4294901760, %v4661_v23  ;;  %v4668_v14 = vsub.f32 %v17382_v35, %v18678_v17 }
 0x8c9   :  { %v4675_v44 = vsub.f32 %v17387_v19, %v18677_v37  ;;  %v9892_v50 = vsel %vm6222_vm4, 1.0, %v18867_v13  ;;  %vm6247_vm7 = vmand %vm6238_vm9, %vm17406_vm11  ;;  %vm6239_vm5 = vcmp.eq.f32.partialorder %v6232_v39, %v15645_v28  ;;  %v4682_v34 = vsub.f32 %v17392_v32, %v18680_v6 }
 0x8ca   :  { %v4689_v1 = vsub.f32 %v17397_v7, %v18683_v2  ;;  %v6228_v47 = vadd.f32 %v9892_v50, %v6192_v42  ;;  %vm6249_vm2 = vmor %vm6236_vm15, %vm6247_vm7  ;;  %v17463_v23 = vpack.c.bf16 %v4662_v56, %v4655_v3  ;;  %v4669_v61 = vand.u32 4294901760, %v4668_v14 }
 0x8cb   :  { %v4676_v25 = vand.u32 4294901760, %v4675_v44  ;;  %vm6257_vm3 = vmand %vm17435_vm12, %vm6249_vm2  ;;  %v4683_v36 = vand.u32 4294901760, %v4682_v34  ;;  %v18682_v17 = vand.u32 4294901760, %v17433_v26  ;;  %v19075_v42 = vand.u32 4294901760, %v17025_v33 }
 0x8cc   :  { %v4690_v37 = vand.u32 4294901760, %v4689_v1  ;;  %v9893_v46 = vsel %vm6257_vm3, 1.0, %v18867_v13  ;;  %vm6248_vm10 = vmand %vm6239_vm5, %vm17406_vm11  ;;  %v17480_v56 = vpack.c.bf16 %v17112_v5, %v17099_v10  ;;  %v17491_v50 = vpack.c.bf16 %v17179_v30, %v17174_v40 }
 0x8cd   :  { %v17471_v6 = vpack.c.bf16 %v4676_v25, %v4669_v61  ;;  %v17476_v3 = vsub.f32 %v17025_v33, %v19075_v42  ;;  %v6263_v14 = vadd.f32 %v9893_v46, %v6227_v18  ;;  %vm6250_vm8 = vmor %vm6237_vm0, %vm6248_vm10  ;;  %v4696_v58 = vsub.f32 %v17433_v26, %v18682_v17  ;;  %v4455_v42 = vpop.permute.xlu0 %4454 }
 0x8ce   :  { %v17484_v44 = vpack.c.bf16 %v4690_v37, %v4683_v36  ;;  %vm6258_vm11 = vmand %vm17435_vm12, %vm6250_vm8  ;;  %v17498_v46 = vpack.c.bf16 %v17195_v63, %v17190_v57  ;;  %v17502_v18 = vpack.c.bf16 %v17295_v27, %v17290_v60  ;;  %v17510_v61 = vpack.c.bf16 %v17305_v16, %v17300_v41 }
 0x8cf   :  { %v18681_v33 = vand.u32 4294901760, %v17476_v3  ;;  %v9894_v37 = vsel %vm6258_vm11, 1.0, %v18867_v13  ;;  %v4697_v34 = vand.u32 4294901760, %v4696_v58  ;;  %v17516_v36 = vpack.c.bf16 %v17387_v19, %v17382_v35 }
 0x8d0   :  { %v6264_v39 = vadd.f32 %v9894_v37, %v6228_v47  ;;  %v17520_v13 = vpack.c.bf16 %v17397_v7, %v17392_v32  ;;  %v17524_v47 = vpack.c.bf16 %v17476_v3, %v17433_v26  ;;  %vm4460_vm9 = vcmp.eq.f32.partialorder %v4455_v42, %v17206_v29 }
 0x8d1   :  { %v4703_v1 = vsub.f32 %v17476_v3, %v18681_v33  ;;  %v4461_v58 = vsel %vm4460_vm9, 1, %v18866_v53  ;;  %vm6265_vm1 = vcmp.lt.f32.partialorder %v6263_v14, 4.0  ;;  %vm19078_vm13 = vnez %v18844_v9 }
 0x8d2   :  { %v4465_v37 = vrot.slane %v4461_v58, %v15707_v31  ;;  %v6267_v2 = vsel %vm6265_vm1, %v15655_v54, -1e+30  ;;  %vm6266_vm12 = vcmp.lt.f32.partialorder %v6264_v39, 4.0  ;;  %vm19082_vm15 = vnez %v18936_v24 }
 0x8d3   :  { %v4704_v43 = vand.u32 4294901760, %v4703_v1  ;;  %v6268_v14 = vsel %vm6266_vm12, %v15645_v28, -1e+30  ;;  %v19090_v24 = vand.u32 4294901760, %v17295_v27  ;;  %v19096_v27 = vand.u32 4294901760, %v17387_v19 }
 0x8d4   :  { %vm17529_vm6 = vcmp.eq.s32.totalorder %v4465_v37, 1  ;;  %v19102_v19 = vand.u32 4294901760, %v17476_v3 }
 0x8d5   :  { %v17512_v25 = vpack.c.bf16 %v4704_v43, %v4697_v34  ;;  %v13837_v34 = vld [vmem:[%s18529_s15 + $0x10] sm:$0xff] }
 0x903   :  { %v6298_v1 = vpop.permute.xlu0 %6297  ;;  %v6302_v43 = vpop.permute.xlu1 %6301 }
 0x904   :  { %v6305_v33 = vsel %vm17529_vm6, %v6298_v1, %v6302_v43 }
 0x905   :  { %v6307_v17 = vmax.f32 %v16848_v0, %v6305_v33 }
 0x907   :  { %v6309_v29 = vsub.f32 %v6267_v2, %v6307_v17  ;;  %v6300_v42 = vpop.permute.xlu0 %6299  ;;  %v6304_v53 = vpop.permute.xlu1 %6303 }
 0x908   :  { %v6306_v31 = vsel %vm17529_vm6, %v6300_v42, %v6304_v53 }
 0x909   :  { %v6311_v58 = vmul.f32 1.442695, %v6309_v29  ;;  %v6308_v37 = vmax.f32 %v16900_v49, %v6306_v31 }
 0x90b   :  { %13810 = vpow2.f32 %v6311_v58  ;;  %v6310_v21 = vsub.f32 %v6268_v14, %v6308_v37  ;;  %v4388_v38 = vpop.permute.xlu0 %4387  ;;  %v4394_v1 = vpop.permute.xlu1 %4393 }
 0x90c   :  { %v4404_v0 = vsel %vm19078_vm13, %v4388_v38, %v4394_v1  ;;  %v19079_v1 = vand.u32 4294901760, %v17099_v10 }
 0x90d   :  { %v6313_v54 = vmul.f32 1.442695, %v6310_v21  ;;  %v17544_v17 = vmax.f32 %v16926_v15, %v4404_v0  ;;  %v19080_v0 = vand.u32 4294901760, %v17112_v5 }
 0x90f   :  { %13812 = vpow2.f32 %v6313_v54  ;;  %v4390_v2 = vpop.permute.xlu0 %4389  ;;  %4414 = vrot.lane.b32.xlu1 %v17544_v17, %s14047_s0  ;;  %4408 = vrot.lane.b32.xlu0 %v17544_v17, %s14035_s2  ;;  %v4396_v28 = vpop.permute.xlu1 %4395  ;;  %v17632_v54 = vpack.c.bf16 %v19080_v0, %v19079_v1 }
 0x910   :  { %v4405_v49 = vsel %vm19078_vm13, %v4390_v2, %v4396_v28 }
 0x911   :  { %v17553_v33 = vmax.f32 %v16992_v4, %v4405_v49  ;;  %19081 = vst [vmem:[#allocation83_spill] sm:$0xff] %v17632_v54 }
 0x913   :  { %4416 = vrot.lane.b32.xlu1 %v17553_v33, %s14047_s0  ;;  %4410 = vrot.lane.b32.xlu0 %v17553_v33, %s14035_s2 }
 0x915   :  { %v17559_v38 = vpop.eup %13810 }
 0x916   :  { %v17562_v21 = vand.u32 4294901760, %v17559_v38 }
 0x918   :  { %v6397_v39 = vsub.f32 %v17559_v38, %v17562_v21 }
 0x919   :  { %v17566_v43 = vpop.eup %13812 }
 0x91a   :  { %v6398_v9 = vand.u32 4294901760, %v6397_v39  ;;  %v17569_v29 = vand.u32 4294901760, %v17566_v43 }
 0x91c   :  { %v6399_v42 = vsub.f32 %v6397_v39, %v6398_v9  ;;  %v17573_v53 = vsub.f32 %v17566_v43, %v17569_v29 }
 0x91e   :  { %v6400_v31 = vand.u32 4294901760, %v6399_v42  ;;  %v6408_v58 = vand.u32 4294901760, %v17573_v53  ;;  %v19084_v42 = vand.u32 4294901760, %v17179_v30 }
 0x920   :  { %11544 = vmatprep.mubr.f32.mxu1 %v6400_v31  ;;  %v6409_v37 = vsub.f32 %v17573_v53, %v6408_v58 }
 0x922   :  { %v6410_v14 = vand.u32 4294901760, %v6409_v37  ;;  %v19089_v37 = vand.u32 4294901760, %v17290_v60  ;;  %v19095_v60 = vand.u32 4294901760, %v17382_v35  ;;  %v19101_v35 = vand.u32 4294901760, %v17433_v26 }
 0x924   :  { %11545 = vmatmul.mubr.f32.vlgmr.msra.gmra.mrb[10].mxu1 %v6410_v14  ;;  %v17668_v14 = vpack.c.bf16 %v19090_v24, %v19089_v37  ;;  %v17685_v1 = vpack.c.bf16 %v19096_v27, %v19095_v60  ;;  %v19108_v37 = vld [vmem:[#allocation75_spill] sm:$0xff] }
 0x925   :  { %12921 = vmatpush3.bf16.msra.mxu1 %v17245_v22  ;;  %11579 = vmatprep.mubr.f32.mxu1 %v17562_v21 }
 0x926   :  { %12923 = vmatprep.subr.bf16.mxu1 %v17324_v55  ;;  %19091 = vst [vmem:[#allocation86_spill] sm:$0xff] %v17668_v14  ;;  %19097 = vst [vmem:[#allocation88_spill] sm:$0xff] %v17685_v1 }
 0x929   :  { %12925 = vmatpush3.bf16.msra.mxu1 %v17324_v55 }
 0x92a   :  { %12927 = vmatprep.subr.bf16.mxu1 %v17343_v20 }
 0x92d   :  { %12929 = vmatpush3.bf16.msra.mxu1 %v17343_v20 }
 0x92e   :  { %12931 = vmatprep.subr.bf16.mxu1 %v17413_v8 }
 0x931   :  { %12933 = vmatpush3.bf16.msra.mxu1 %v17413_v8 }
 0x932   :  { %12935 = vmatprep.subr.bf16.mxu1 %v17463_v23 }
 0x935   :  { %12937 = vmatpush3.bf16.msra.mxu1 %v17463_v23 }
 0x936   :  { %12939 = vmatprep.subr.bf16.mxu1 %v17471_v6 }
 0x939   :  { %12941 = vmatpush3.bf16.msra.mxu1 %v17471_v6 }
 0x93a   :  { %12943 = vmatprep.subr.bf16.mxu1 %v17484_v44 }
 0x93d   :  { %12945 = vmatpush3.bf16.msra.mxu1 %v17484_v44 }
 0x93e   :  { %12947 = vmatprep.subr.bf16.mxu1 %v17512_v25 }
 0x941   :  { %12949 = vmatpush3.bf16.msra.mxu1 %v17512_v25 }
 0x942   :  { %12951 = vmatprep.subr.bf16.mxu1 %v17480_v56 }
 0x944   :  { %11580 = vmatmul.mubr.f32.vlgmr.msra.gmra.mrb[10].mxu1 %v17569_v29 }
 0x945   :  { %12953 = vmatpush3.bf16.msra.mxu1 %v17480_v56  ;;  %11614 = vmatprep.mubr.f32.mxu1 %v6397_v39 }
 0x946   :  { %12955 = vmatprep.subr.bf16.mxu1 %v17491_v50 }
 0x949   :  { %12957 = vmatpush3.bf16.msra.mxu1 %v17491_v50 }
 0x94a   :  { %12959 = vmatprep.subr.bf16.mxu1 %v17498_v46 }
 0x94d   :  { %12961 = vmatpush3.bf16.msra.mxu1 %v17498_v46 }
 0x94e   :  { %12963 = vmatprep.subr.bf16.mxu1 %v17502_v18 }
 0x951   :  { %12965 = vmatpush3.bf16.msra.mxu1 %v17502_v18 }
 0x952   :  { %12967 = vmatprep.subr.bf16.mxu1 %v17510_v61 }
 0x955   :  { %12969 = vmatpush3.bf16.msra.mxu1 %v17510_v61 }
 0x956   :  { %12971 = vmatprep.subr.bf16.mxu1 %v17516_v36 }
 0x959   :  { %12973 = vmatpush3.bf16.msra.mxu1 %v17516_v36 }
 0x95a   :  { %12975 = vmatprep.subr.bf16.mxu1 %v17520_v13 }
 0x95d   :  { %12977 = vmatpush3.bf16.msra.mxu1 %v17520_v13 }
 0x95e   :  { %12979 = vmatprep.subr.bf16.mxu1 %v17524_v47 }
 0x961   :  { %12981 = vmatpush3.bf16.msra.mxu1 %v17524_v47 }
 0x962   :  { %12983 = vmatprep.subr.bf16.mxu1 %v16804_v45 }
 0x964   :  { %11615 = vmatmul.mubr.f32.vlgmr.msra.gmra.mrb[10].mxu1 %v17573_v53  ;;  %v19087_v53 = vand.u32 4294901760, %v17195_v63  ;;  %v19093_v63 = vand.u32 4294901760, %v17305_v16  ;;  %v19099_v16 = vand.u32 4294901760, %v17397_v7 }
 0x965   :  { %12985 = vmatpush3.bf16.msra.mxu1 %v16804_v45  ;;  %11649 = vmatprep.mubr.f32.mxu1 %v6398_v9  ;;  %v19083_v9 = vand.u32 4294901760, %v17174_v40 }
 0x966   :  { %12987 = vmatprep.subr.bf16.mxu1 %v16845_v12 }
 0x967   :  { %v17643_v10 = vpack.c.bf16 %v19084_v42, %v19083_v9 }
 0x969   :  { %12989 = vmatpush3.bf16.msra.mxu1 %v16845_v12  ;;  %19085 = vst [vmem:[#allocation84_spill] sm:$0xff] %v17643_v10 }
 0x96a   :  { %12991 = vmatprep.subr.bf16.mxu1 %v16909_v51 }
 0x96d   :  { %12993 = vmatpush3.bf16.msra.mxu1 %v16909_v51 }
 0x96e   :  { %12995 = vmatprep.subr.bf16.mxu1 %v16921_v59 }
 0x971   :  { %12997 = vmatpush3.bf16.msra.mxu1 %v16921_v59 }
 0x972   :  { %12999 = vmatprep.subr.bf16.mxu1 %v16982_v52 }
 0x975   :  { %13001 = vmatpush3.bf16.msra.mxu1 %v16982_v52 }
 0x976   :  { %13003 = vmatprep.subr.bf16.mxu1 %v17049_v11 }
 0x979   :  { %13005 = vmatpush3.bf16.msra.mxu1 %v17049_v11 }
 0x97a   :  { %13007 = vmatprep.subr.bf16.mxu1 %v17094_v62 }
 0x97d   :  { %13009 = vmatpush3.bf16.msra.mxu1 %v17094_v62 }
 0x97e   :  { %13011 = vmatprep.subr.bf16.mxu1 %v17129_v48 }
 0x981   :  { %13013 = vmatpush3.bf16.msra.mxu1 %v17129_v48  ;;  %v4409_v2 = vpop.permute.xlu0 %4408  ;;  %v4415_v28 = vpop.permute.xlu1 %4414 }
 0x982   :  { %v4425_v49 = vsel %vm19082_vm15, %v4409_v2, %v4415_v28  ;;  %13015 = vmatprep.subr.bf16.mxu1 %v17632_v54  ;;  %v17701_v2 = vpack.c.bf16 %v19102_v19, %v19101_v35 }
 0x983   :  { %v4427_v39 = vmax.f32 %v17544_v17, %v4425_v49  ;;  %v19086_v17 = vand.u32 4294901760, %v17190_v57  ;;  %v19092_v57 = vand.u32 4294901760, %v17300_v41  ;;  %v19098_v41 = vand.u32 4294901760, %v17392_v32 }
 0x984   :  { %11650 = vmatmul.mubr.f32.vlgmr.msra.gmra.mrb[10].mxu1 %v6408_v58  ;;  %19103 = vst [vmem:[#allocation90_spill] sm:$0xff] %v17701_v2 }
 0x985   :  { %13017 = vmatpush3.bf16.msra.mxu1 %v17632_v54  ;;  %11684 = vmatprep.mubr.f32.mxu1 %v17562_v21  ;;  %v4411_v5 = vpop.permute.xlu0 %4410  ;;  %v4417_v31 = vpop.permute.xlu1 %4416  ;;  %v17659_v58 = vpack.c.bf16 %v19087_v53, %v19086_v17  ;;  %v17693_v0 = vpack.c.bf16 %v19099_v16, %v19098_v41  ;;  %v19107_v17 = vld [vmem:[#allocation74_spill] sm:$0xff] }
 0x986   :  { %4435 = vrot.lane.b32.xlu1 %v4427_v39, %s14051_s14  ;;  %4429 = vrot.lane.b32.xlu0 %v4427_v39, %s14026_s21  ;;  %v4426_v40 = vsel %vm19082_vm15, %v4411_v5, %v4417_v31  ;;  %v19105_v5 = vld [vmem:[#allocation72_spill] sm:$0xff]  ;;  %v19106_v31 = vld [vmem:[#allocation73_spill] sm:$0xff] }
 0x987   :  { %v4428_v30 = vmax.f32 %v17553_v33, %v4426_v40  ;;  %13019 = vmatprep.subr.bf16.mxu1 %v17643_v10  ;;  %19088 = vst [vmem:[#allocation85_spill] sm:$0xff] %v17659_v58  ;;  %v17677_v33 = vpack.c.bf16 %v19093_v63, %v19092_v57  ;;  %19100 = vst [vmem:[#allocation89_spill] sm:$0xff] %v17693_v0 }
 0x989   :  { %13021 = vmatpush3.bf16.msra.mxu1 %v17643_v10  ;;  %19094 = vst [vmem:[#allocation87_spill] sm:$0xff] %v17677_v33 }
 0x98a   :  { %4437 = vrot.lane.b32.xlu1 %v4428_v30, %s14051_s14  ;;  %4431 = vrot.lane.b32.xlu0 %v4428_v30, %s14026_s21 }
 0x98b   :  { %13023 = vmatprep.subr.bf16.mxu1 %v17659_v58 }
 0x98d   :  { %13025 = vmatpush3.bf16.msra.mxu1 %v17659_v58 }
 0x98e   :  { %13027 = vmatprep.subr.bf16.mxu1 %v17668_v14 }
 0x991   :  { %13029 = vmatpush3.bf16.msra.mxu1 %v17668_v14 }
 0x992   :  { %13031 = vmatprep.subr.bf16.mxu1 %v17677_v33 }
 0x995   :  { %13033 = vmatpush3.bf16.msra.mxu1 %v17677_v33  ;;  %v13848_v33 = vld [vmem:[%s18529_s15 + $0x60] sm:$0xff] }
 0x996   :  { %13035 = vmatprep.subr.bf16.mxu1 %v17685_v1 }
 0x999   :  { %13037 = vmatpush3.bf16.msra.mxu1 %v17685_v1 }
 0x99a   :  { %13039 = vmatprep.subr.bf16.mxu1 %v17693_v0 }
 0x99d   :  { %13041 = vmatpush3.bf16.msra.mxu1 %v17693_v0 }
 0x99e   :  { %13043 = vmatprep.subr.bf16.mxu1 %v17701_v2 }
 0x9a1   :  { %13045 = vmatpush3.bf16.msra.mxu1 %v17701_v2 }
 0x9a2   :  { %13047 = vmatprep.subr.bf16.mxu1 %v16804_v45 }
 0x9a4   :  { %11685 = vmatmul.mubr.f32.vlgmr.msra.gmra.mrb[10].mxu1 %v17569_v29 }
 0x9a5   :  { %13049 = vmatpush3.bf16.msra.mxu1 %v16804_v45  ;;  %11719 = vmatprep.mubr.f32.mxu1 %v17562_v21 }
 0x9a6   :  { %13051 = vmatprep.subr.bf16.mxu1 %v16845_v12 }
 0x9a9   :  { %13053 = vmatpush3.bf16.msra.mxu1 %v16845_v12 }
 0x9aa   :  { %13055 = vmatprep.subr.bf16.mxu1 %v16909_v51 }
 0x9ad   :  { %13057 = vmatpush3.bf16.msra.mxu1 %v16909_v51 }
 0x9ae   :  { %13059 = vmatprep.subr.bf16.mxu1 %v16921_v59 }
 0x9b1   :  { %13061 = vmatpush3.bf16.msra.mxu1 %v16921_v59 }
 0x9b2   :  { %13063 = vmatprep.subr.bf16.mxu1 %v16982_v52 }
 0x9b5   :  { %13065 = vmatpush3.bf16.msra.mxu1 %v16982_v52 }
 0x9b6   :  { %13067 = vmatprep.subr.bf16.mxu1 %v17049_v11 }
 0x9b9   :  { %13069 = vmatpush3.bf16.msra.mxu1 %v17049_v11 }
 0x9ba   :  { %13071 = vmatprep.subr.bf16.mxu1 %v17094_v62 }
 0x9bd   :  { %13073 = vmatpush3.bf16.msra.mxu1 %v17094_v62 }
 0x9be   :  { %13075 = vmatprep.subr.bf16.mxu1 %v17129_v48 }
 0x9c1   :  { %13077 = vmatpush3.bf16.msra.mxu1 %v17129_v48 }
 0x9c4   :  { %11720 = vmatmul.mubr.f32.vlgmr.msra.gmra.mrb[10].mxu1 %v17569_v29  ;;  %v9834_v29 = vld [vmem:[%s18522_s8] ss:$0 sm:$0xff] }
 0x9c5   :  { %v13571_v40 = vadd.f32 %v9834_v29, %v19106_v31  ;;  %v13572_v53 = vadd.f32 %v19107_v17, %v9834_v29  ;;  %v13840_v31 = vld [vmem:[%s18529_s15 + $0x20] sm:$0xff] }
 0x9f8   :  { %v4430_v32 = vpop.permute.xlu0 %4429  ;;  %v4436_v7 = vpop.permute.xlu1 %4435 }
 0x9f9   :  { %v4446_v3 = vsel %vm16833_vm14, %v4430_v32, %v4436_v7 }
 0x9fa   :  { %v4448_v21 = vmax.f32 %v4427_v39, %v4446_v3  ;;  %v13570_v39 = vadd.f32 %v19105_v5, %v9834_v29  ;;  %v13839_v5 = vld [vmem:[%s18529_s15 + $0x18] sm:$0xff] }
 0x9fc   :  { %v4432_v28 = vpop.permute.xlu0 %4431  ;;  %4456 = vrot.lane.b32.xlu1 %v4448_v21, %s14056_s3  ;;  %4450 = vrot.lane.b32.xlu0 %v4448_v21, %s14020_s25  ;;  %v4438_v49 = vpop.permute.xlu1 %4437 }
 0x9fd   :  { %v4447_v9 = vsel %vm16833_vm14, %v4432_v28, %v4438_v49  ;;  %vm19109_vm14 = vcmask 261120  }
 0x9fe   :  { %v4449_v42 = vmax.f32 %v4428_v30, %v4447_v9  ;;  %v13573_v30 = vadd.f32 %v9834_v29, %v19108_v37  ;;  %vm19110_vm4 = vmmov %vm19109_vm14 }
 0x9ff   :  { %vm19113_vm0 = vmmov %vm19110_vm4 }
 0xa00   :  { %4458 = vrot.lane.b32.xlu1 %v4449_v42, %s14056_s3  ;;  %4452 = vrot.lane.b32.xlu0 %v4449_v42, %s14020_s25  ;;  %vm19114_vm7 = vmmov %vm19113_vm0 }
 0xa01   :  { %vm19215_vm5 = vmmov %vm19113_vm0 }
 0xa02   :  { %vm19216_vm2 = vmmov %vm19113_vm0 }
 0xa03   :  { %vm19217_vm3 = vmmov %vm19113_vm0 }
 0xa04   :  { %7733 = vrot.lane.b32.xlu1 %v13570_v39, %s14032_s6  ;;  %7731 = vrot.lane.b32.xlu0 %v13571_v40, %s14032_s6  ;;  %vm19218_vm10 = vmmov %vm19113_vm0 }
 0xa05   :  { %vm19227_vm8 = vmmov %vm19113_vm0 }
 0xa06   :  { %vm19228_vm11 = vmmov %vm19113_vm0 }
 0xa07   :  { %vm19229_vm9 = vmmov %vm19113_vm0 }
 0xa08   :  { %7737 = vrot.lane.b32.xlu1 %v13572_v53, %s14032_s6  ;;  %7735 = vrot.lane.b32.xlu0 %v13573_v30, %s14032_s6  ;;  %vm19235_vm1 = vmmov %vm19113_vm0 }
 0xa09   :  { %vm19236_vm12 = vmmov %vm19113_vm0 }
 0xa0a   :  { %vm19241_vm13 = vmmov %vm19113_vm0 }
 0xa0b   :  { %vm19242_vm15 = vmmov %vm19113_vm0 }
 0xa6e   :  { %v4451_v24 = vpop.permute.xlu0 %4450  ;;  %v4457_v57 = vpop.permute.xlu1 %4456 }
 0xa6f   :  { %v4467_v63 = vsel %vm17529_vm6, %v4451_v24, %v4457_v57  ;;  %v13841_v24 = vld [vmem:[%s18529_s15 + $0x28] sm:$0xff] }
 0xa70   :  { %v4469_v60 = vmax.f32 %v4448_v21, %v4467_v63 }
 0xa72   :  { %v4471_v27 = vsub.f32 %v16926_v15, %v4469_v60  ;;  %v4453_v41 = vpop.permute.xlu0 %4452  ;;  %v4459_v16 = vpop.permute.xlu1 %4458  ;;  %v13836_v15 = vld [vmem:[%s18529_s15] sm:$0xff] }
 0xa73   :  { %v4468_v35 = vsel %vm17529_vm6, %v4453_v41, %v4459_v16  ;;  %vm19230_vm6 = vmmov %vm19113_vm0 }
 0xa74   :  { %v4470_v19 = vmax.f32 %v4449_v42, %v4468_v35  ;;  %v4473_v32 = vmul.f32 1.442695, %v4471_v27  ;;  %v13842_v35 = vld [vmem:[%s18529_s15 + $0x30] sm:$0xff] }
 0xa76   :  { %v4472_v7 = vsub.f32 %v16992_v4, %v4470_v19  ;;  %v7732_v26 = vpop.permute.xlu0 %7731  ;;  %v7734_v3 = vpop.permute.xlu1 %7733  ;;  %13814 = vpow2.f32 %v4473_v32  ;;  %v13838_v4 = vld [vmem:[%s18529_s15 + $0x8] sm:$0xff]  ;;  %v13843_v32 = vld [vmem:[%s18529_s15 + $0x38] sm:$0xff] }
 0xa77   :  { %v7743_v28 = vsel %vm19109_vm14, %v13571_v40, %v7732_v26  ;;  %v7744_v49 = vsel %vm19110_vm4, %v13570_v39, %v7734_v3  ;;  %vm19243_vm14 = vmmov %vm19113_vm0 }
 0xa78   :  { %v4475_v9 = vmul.f32 1.442695, %v4472_v7  ;;  %v7747_v21 = vmul.f32 %v13836_v15, %v7743_v28  ;;  %v17758_v42 = vmul.f32 %v13837_v34, %v7743_v28  ;;  %v7748_v29 = vmul.f32 %v13838_v4, %v7744_v49  ;;  %vm19244_vm4 = vmmov %vm19113_vm0 }
 0xa79   :  { %v17766_v39 = vmul.f32 %v13839_v5, %v7744_v49  ;;  %v7751_v40 = vmul.f32 %v13840_v31, %v7743_v28  ;;  %v17775_v57 = vmul.f32 %v13841_v24, %v7744_v49  ;;  %v7753_v19 = vmul.f32 %v13842_v35, %v7743_v28  ;;  %v13844_v31 = vld [vmem:[%s18529_s15 + $0x40] sm:$0xff]  ;;  %v13846_v35 = vld [vmem:[%s18529_s15 + $0x50] sm:$0xff] }
 0xa7a   :  { %13816 = vpow2.f32 %v4475_v9  ;;  %v7764_v17 = vand.u32 4294901760, %v7747_v21  ;;  %v7770_v37 = vand.u32 4294901760, %v17758_v42  ;;  %v7767_v63 = vand.u32 4294901760, %v7748_v29  ;;  %v7736_v41 = vpop.permute.xlu0 %7735  ;;  %v7738_v16 = vpop.permute.xlu1 %7737 }
 0xa7b   :  { %v18687_v60 = vand.u32 4294901760, %v17766_v39  ;;  %v17786_v7 = vmul.f32 %v13843_v32, %v7744_v49  ;;  %v7776_v26 = vand.u32 4294901760, %v7751_v40  ;;  %v7779_v9 = vand.u32 4294901760, %v17775_v57 }
 0xa7c   :  { %v17778_v27 = vpack.c.bf16 %v7767_v63, %v7764_v17  ;;  %v7745_v15 = vsel %vm19113_vm0, %v13573_v30, %v7736_v41  ;;  %v7746_v34 = vsel %vm19114_vm7, %v13572_v53, %v7738_v16  ;;  %v7782_v28 = vand.u32 4294901760, %v7753_v19  ;;  %v13845_v53 = vld [vmem:[%s18529_s15 + $0x48] sm:$0xff]  ;;  %vm19245_vm7 = vmmov %vm19113_vm0 }
 0xa7d   :  { %v17790_v3 = vpack.c.bf16 %v18687_v60, %v7770_v37  ;;  %v7785_v49 = vand.u32 4294901760, %v17786_v7  ;;  %v17801_v5 = vpack.c.bf16 %v7779_v9, %v7776_v26  ;;  %v7755_v24 = vmul.f32 %v13844_v31, %v7745_v15  ;;  %v13847_v31 = vld [vmem:[%s18529_s15 + $0x58] sm:$0xff] }
 0xa7e   :  { %19111 = vst [vmem:[#allocation76_spill] sm:$0xff] %v17778_v27  ;;  %13271 = vmatprep.subr.bf16.mxu1 %v17778_v27  ;;  %v7756_v30 = vmul.f32 %v13845_v53, %v7746_v34  ;;  %v7757_v32 = vmul.f32 %v13846_v35, %v7745_v15  ;;  %v7758_v60 = vmul.f32 %v13847_v31, %v7746_v34 }
 0xa7f   :  { %19112 = vst [vmem:[#allocation72_spill] sm:$0xff] %v17790_v3  ;;  %13273 = vmatpush3.bf16.msra.mxu1 %v17778_v27  ;;  %19116 = vst [vmem:[#allocation74_spill] sm:$0xff] %v17801_v5  ;;  %v17813_v16 = vpack.c.bf16 %v7785_v49, %v7782_v28  ;;  %v7788_v2 = vand.u32 4294901760, %v7755_v24  ;;  %v7759_v14 = vmul.f32 %v13848_v33, %v7745_v15  ;;  %v13849_v33 = vld [vmem:[%s18529_s15 + $0x70] sm:$0xff] }
 0xa80   :  { %13275 = vmatprep.subr.bf16.mxu1 %v17790_v3  ;;  %v17799_v4 = vpop.eup %13814  ;;  %v7791_v53 = vand.u32 4294901760, %v7756_v30  ;;  %v17831_v35 = vsub.f32 %v7747_v21, %v7764_v17  ;;  %v17833_v58 = vsub.f32 %v7748_v29, %v7767_v63  ;;  %v7761_v10 = vmul.f32 %v13849_v33, %v7745_v15  ;;  %v13850_v21 = vld [vmem:[%s18529_s15 + $0x68] sm:$0xff]  ;;  %v13851_v17 = vld [vmem:[%s18529_s15 + $0x78] sm:$0xff] }
 0xa81   :  { %19115 = vst [vmem:[#allocation73_spill] sm:$0xff] %v17799_v4  ;;  %19118 = vst [vmem:[#allocation91_spill] sm:$0xff] %v17813_v16  ;;  %v17822_v0 = vand.u32 4294901760, %v17799_v4  ;;  %v7760_v29 = vmul.f32 %v13850_v21, %v7746_v34  ;;  %v7762_v63 = vmul.f32 %v13851_v17, %v7746_v34  ;;  %v17858_v15 = vsub.f32 %v17758_v42, %v7770_v37 }
 0xa82   :  { %v17860_v33 = vsub.f32 %v7751_v40, %v7776_v26  ;;  %v7800_v48 = vand.u32 4294901760, %v7759_v14  ;;  %v7867_v17 = vand.u32 4294901760, %v17831_v35  ;;  %v7874_v42 = vand.u32 4294901760, %v17833_v58 }
 0xa83   :  { %13277 = vmatpush3.bf16.msra.mxu1 %v17790_v3  ;;  %v17838_v31 = vsub.f32 %v17799_v4, %v17822_v0  ;;  %v17853_v4 = vpack.c.bf16 %v7791_v53, %v7788_v2  ;;  %v17872_v37 = vsub.f32 %v7753_v19, %v7782_v28  ;;  %v19119_v40 = vand.u32 4294901760, %v17766_v39 }
 0xa84   :  { %v17809_v41 = vpop.eup %13816  ;;  %13279 = vmatprep.subr.bf16.mxu1 %v17801_v5  ;;  %v7803_v62 = vand.u32 4294901760, %v7760_v29  ;;  %v7809_v11 = vand.u32 4294901760, %v7762_v63  ;;  %v17885_v51 = vsub.f32 %v17786_v7, %v7785_v49  ;;  %v17887_v19 = vsub.f32 %v7755_v24, %v7788_v2 }
 0xa85   :  { %19117 = vst [vmem:[#allocation75_spill] sm:$0xff] %v17809_v41  ;;  %v17825_v1 = vand.u32 4294901760, %v17809_v41  ;;  %v18718_v54 = vand.u32 4294901760, %v17838_v31  ;;  %v17877_v26 = vsub.f32 %v17766_v39, %v19119_v40  ;;  %v17892_v39 = vsub.f32 %v7759_v14, %v7800_v48 }
 0xa86   :  { %v17901_v7 = vsub.f32 %v7756_v30, %v7791_v53  ;;  %v17907_v14 = vsub.f32 %v7760_v29, %v7803_v62  ;;  %v18732_v24 = vand.u32 4294901760, %v17887_v19 }
 0xa87   :  { %13281 = vmatpush3.bf16.msra.mxu1 %v17801_v5  ;;  %v17842_v3 = vsub.f32 %v17809_v41, %v17825_v1  ;;  %v7794_v5 = vand.u32 4294901760, %v7757_v32  ;;  %v7797_v41 = vand.u32 4294901760, %v7758_v60  ;;  %v4577_v21 = vsub.f32 %v17838_v31, %v18718_v54 }
 0xa88   :  { %13283 = vmatprep.subr.bf16.mxu1 %v17813_v16  ;;  %v18731_v30 = vand.u32 4294901760, %v17901_v7  ;;  %v18730_v29 = vand.u32 4294901760, %v17907_v14 }
 0xa89   :  { %v18725_v27 = vand.u32 4294901760, %v17842_v3  ;;  %v17879_v54 = vpack.c.bf16 %v7797_v41, %v7794_v5  ;;  %v4578_v52 = vand.u32 4294901760, %v4577_v21  ;;  %v17889_v28 = vsub.f32 %v7757_v32, %v7794_v5 }
 0xa8a   :  { %v7868_v21 = vsub.f32 %v17831_v35, %v7867_v17  ;;  %v17903_v2 = vsub.f32 %v7758_v60, %v7797_v41  ;;  %v18733_v5 = vand.u32 4294901760, %v17885_v51 }
 0xa8b   :  { %13285 = vmatpush3.bf16.msra.mxu1 %v17813_v16  ;;  %v4587_v34 = vsub.f32 %v17842_v3, %v18725_v27  ;;  %v7806_v16 = vand.u32 4294901760, %v7761_v10  ;;  %v17882_v27 = vsub.f32 %v17775_v57, %v7779_v9  ;;  %11334 = vmatprep.mubr.f32.mxu0 %v4578_v52  ;;  %v17899_v9 = vpack.c.bf16 %v7803_v62, %v7800_v48 }
 0xa8c   :  { %13287 = vmatprep.subr.bf16.mxu1 %v17853_v4  ;;  %v17909_v52 = vsub.f32 %v7762_v63, %v7809_v11  ;;  %v7881_v48 = vand.u32 4294901760, %v17858_v15  ;;  %v18728_v41 = vand.u32 4294901760, %v17889_v28 }
 0xa8d   :  { %v4588_v59 = vand.u32 4294901760, %v4587_v34  ;;  %v7875_v34 = vsub.f32 %v17833_v58, %v7874_v42  ;;  %v17897_v57 = vsub.f32 %v7761_v10, %v7806_v16  ;;  %v17905_v49 = vpack.c.bf16 %v7809_v11, %v7806_v16 }
 0xa8e   :  { %v7888_v10 = vand.u32 4294901760, %v17877_v26  ;;  %v7902_v60 = vand.u32 4294901760, %v17882_v27  ;;  %v7869_v11 = vand.u32 4294901760, %v7868_v21 }
 0xa8f   :  { %13289 = vmatpush3.bf16.msra.mxu1 %v17853_v4  ;;  %11335 = vmatmul.mubr.f32.vlgmr.msra.gmra.mrb[10].mxu0 %v4588_v59  ;;  %v7895_v59 = vand.u32 4294901760, %v17860_v33  ;;  %v7876_v62 = vand.u32 4294901760, %v7875_v34  ;;  %v18729_v63 = vand.u32 4294901760, %v17897_v57  ;;  %v17934_v34 = vpack.c.bf16 %v7874_v42, %v7867_v17 }
 0xa90   :  { %13291 = vmatprep.subr.bf16.mxu1 %v17879_v54  ;;  %12729 = vmatpush3.bf16.msra.mxu0 %v17245_v22  ;;  %v7909_v22 = vand.u32 4294901760, %v17872_v37  ;;  %v17936_v16 = vpack.c.bf16 %v7888_v10, %v7881_v48  ;;  %v19120_v17 = vand.u32 4294901760, %v17903_v2 }
 0xa91   :  { %11369 = vmatprep.mubr.f32.mxu0 %v17822_v0  ;;  %12731 = vmatprep.subr.bf16.mxu0 %v17324_v55  ;;  %v17938_v53 = vpack.c.bf16 %v7902_v60, %v7895_v59 }
 0xa92   :  { %v17944_v40 = vpack.c.bf16 %v18733_v5, %v7909_v22  ;;  %v17957_v42 = vpack.c.bf16 %v19120_v17, %v18728_v41 }
 0xa93   :  { %13293 = vmatpush3.bf16.msra.mxu1 %v17879_v54 }
 0xa94   :  { %13295 = vmatprep.subr.bf16.mxu1 %v17899_v9  ;;  %12733 = vmatpush3.bf16.msra.mxu0 %v17324_v55  ;;  %v13302_v55 = vpack.c.bf16 %v7876_v62, %v7869_v11  ;;  %v19121_v11 = vand.u32 4294901760, %v17892_v39 }
 0xa95   :  { %12735 = vmatprep.subr.bf16.mxu0 %v17343_v20 }
 0xa96   :  { %v17963_v62 = vpack.c.bf16 %v18730_v29, %v19121_v11 }
 0xa97   :  { %v11721_v32 = vpop.f32.mrb[10].mxu1  ;;  %13297 = vmatpush3.bf16.msra.mxu1 %v17899_v9 }
 0xa98   :  { %13818 = vrcp.f32 %v11721_v32  ;;  %v6989_v21 = vpop.f32.mrb[11].mxu1  ;;  %13299 = vmatprep.subr.bf16.mxu1 %v17905_v49  ;;  %12737 = vmatpush3.bf16.msra.mxu0 %v17343_v20  ;;  %v17951_v32 = vpack.c.bf16 %v18731_v30, %v18732_v24  ;;  %v19122_v20 = vand.u32 4294901760, %v17909_v52 }
 0xa99   :  { %13820 = vrcp.f32 %v6989_v21  ;;  %12739 = vmatprep.subr.bf16.mxu0 %v17413_v8 }
 0xa9a   :  { %v17969_v21 = vpack.c.bf16 %v19122_v20, %v18729_v63 }
 0xa9b   :  { %13301 = vmatpush3.bf16.msra.mxu1 %v17905_v49 }
 0xa9c   :  { %13303 = vmatprep.subr.bf16.mxu1 %v13302_v55  ;;  %12741 = vmatpush3.bf16.msra.mxu0 %v17413_v8 }
 0xa9d   :  { %12743 = vmatprep.subr.bf16.mxu0 %v17463_v23 }
 0xaa0   :  { %12745 = vmatpush3.bf16.msra.mxu0 %v17463_v23 }
 0xaa1   :  { %12747 = vmatprep.subr.bf16.mxu0 %v17471_v6 }
 0xaa2   :  { %v13819_v17 = vpop.eup %13818 }
 0xaa3   :  { %v13821_v41 = vpop.eup %13820  ;;  %v7002_v11 = vmul.f32 %v13819_v17, %v17566_v43 }
 0xaa4   :  { %v7000_v20 = vmul.f32 %v13821_v41, %v17559_v38  ;;  %12749 = vmatpush3.bf16.msra.mxu0 %v17471_v6  ;;  %v7882_v38 = vsub.f32 %v17858_v15, %v7881_v48  ;;  %v7889_v41 = vsub.f32 %v17877_v26, %v7888_v10 }
 0xaa5   :  { %v17979_v63 = vand.u32 4294901760, %v7002_v11  ;;  %12751 = vmatprep.subr.bf16.mxu0 %v17484_v44 }
 0xaa6   :  { %v17981_v29 = vand.u32 4294901760, %v7000_v20  ;;  %v7883_v48 = vand.u32 4294901760, %v7882_v38  ;;  %v7890_v5 = vand.u32 4294901760, %v7889_v41 }
 0xaa7   :  { %v17985_v8 = vsub.f32 %v7002_v11, %v17979_v63  ;;  %v7896_v11 = vsub.f32 %v17860_v33, %v7895_v59  ;;  %v19123_v59 = vand.u32 4294901760, %v17885_v51 }
 0xaa8   :  { %v17989_v30 = vsub.f32 %v7000_v20, %v17981_v29  ;;  %12753 = vmatpush3.bf16.msra.mxu0 %v17484_v44  ;;  %v7903_v20 = vsub.f32 %v17882_v27, %v7902_v60  ;;  %v13306_v38 = vpack.c.bf16 %v7890_v5, %v7883_v48 }
 0xaa9   :  { %v18734_v23 = vand.u32 4294901760, %v17985_v8  ;;  %12755 = vmatprep.subr.bf16.mxu0 %v17512_v25  ;;  %v7897_v10 = vand.u32 4294901760, %v7896_v11  ;;  %v7917_v60 = vsub.f32 %v17885_v51, %v19123_v59 }
 0xaaa   :  { %v18735_v43 = vand.u32 4294901760, %v17989_v30 }
 0xaab   :  { %v7857_v6 = vsub.f32 %v17985_v8, %v18734_v23  ;;  %v7904_v23 = vand.u32 4294901760, %v7903_v20  ;;  %v19126_v20 = vand.u32 4294901760, %v17889_v28 }
 0xaac   :  { %v7847_v17 = vsub.f32 %v17989_v30, %v18735_v43  ;;  %12757 = vmatpush3.bf16.msra.mxu0 %v17512_v25  ;;  %v7910_v43 = vsub.f32 %v17872_v37, %v7909_v22  ;;  %v19124_v25 = vand.u32 4294901760, %v17887_v19 }
 0xaad   :  { %v7858_v44 = vand.u32 4294901760, %v7857_v6  ;;  %12759 = vmatprep.subr.bf16.mxu0 %v17480_v56  ;;  %v13310_v22 = vpack.c.bf16 %v7904_v23, %v7897_v10  ;;  %v7918_v6 = vand.u32 4294901760, %v7917_v60  ;;  %v7938_v48 = vsub.f32 %v17889_v28, %v19126_v20  ;;  %v19145_v20 = vld [vmem:[#allocation74_spill] sm:$0xff] }
 0xaae   :  { %v7848_v24 = vand.u32 4294901760, %v7847_v17  ;;  %v7911_v41 = vand.u32 4294901760, %v7910_v43  ;;  %v19125_v17 = vand.u32 4294901760, %v17901_v7  ;;  %v19127_v23 = vand.u32 4294901760, %v17903_v2 }
 0xaaf   :  { %11370 = vmatmul.mubr.f32.vlgmr.msra.gmra.mrb[10].mxu0 %v17825_v1  ;;  %v7939_v59 = vand.u32 4294901760, %v7938_v48  ;;  %v19147_v48 = vld [vmem:[#allocation91_spill] sm:$0xff] }
 0xab0   :  { %11964 = vmatprep.mubr.f32.mxu1 %v7848_v24  ;;  %12761 = vmatpush3.bf16.msra.mxu0 %v17480_v56  ;;  %v7924_v24 = vsub.f32 %v17887_v19, %v19124_v25  ;;  %v7931_v5 = vsub.f32 %v17901_v7, %v19125_v17  ;;  %v7945_v43 = vsub.f32 %v17903_v2, %v19127_v23  ;;  %v19131_v17 = vand.u32 4294901760, %v17909_v52  ;;  %v19149_v23 = vld [vmem:[#allocation87_spill] sm:$0xff] }
 0xab1   :  { %11965 = vmatmul.mubr.f32.vlgmr.msra.gmra.mrb[12].mxu1 %v7858_v44  ;;  %11404 = vmatprep.mubr.f32.mxu0 %v17838_v31 }
 0xab2   :  { %13305 = vmatpush3.bf16.msra.mxu1 %v13302_v55  ;;  %12763 = vmatprep.subr.bf16.mxu0 %v17491_v50  ;;  %v7925_v56 = vand.u32 4294901760, %v7924_v24  ;;  %v13314_v55 = vpack.c.bf16 %v7918_v6, %v7911_v41  ;;  %v7932_v11 = vand.u32 4294901760, %v7931_v5  ;;  %v7946_v60 = vand.u32 4294901760, %v7945_v43  ;;  %v19150_v43 = vld [vmem:[#allocation88_spill] sm:$0xff] }
 0xab3   :  { %13307 = vmatprep.subr.bf16.mxu1 %v13306_v38  ;;  %11999 = vmatprep.mubr.f32.mxu1 %v17981_v29  ;;  %v19130_v41 = vand.u32 4294901760, %v17897_v57  ;;  %v7973_v5 = vsub.f32 %v17909_v52, %v19131_v17 }
 0xab4   :  { %12765 = vmatpush3.bf16.msra.mxu0 %v17491_v50  ;;  %v19128_v50 = vand.u32 4294901760, %v17892_v39  ;;  %v13318_v10 = vpack.c.bf16 %v7932_v11, %v7925_v56  ;;  %v13322_v24 = vpack.c.bf16 %v7946_v60, %v7939_v59  ;;  %v19164_v59 = vld [vmem:[#allocation35_spill] sm:$0xff] }
 0xab5   :  { %12767 = vmatprep.subr.bf16.mxu0 %v17498_v46  ;;  %v7966_v6 = vsub.f32 %v17897_v57, %v19130_v41  ;;  %v19165_v60 = vand.u32 4294901760, %v19164_v59  ;;  %v19197_v59 = vld [vmem:[#allocation57_spill] sm:$0xff] }
 0xab6   :  { %13309 = vmatpush3.bf16.msra.mxu1 %v13306_v38  ;;  %v7952_v44 = vsub.f32 %v17892_v39, %v19128_v50  ;;  %v19129_v38 = vand.u32 4294901760, %v17907_v14  ;;  %v19151_v50 = vld [vmem:[#allocation89_spill] sm:$0xff] }
 0xab7   :  { %13311 = vmatprep.subr.bf16.mxu1 %v13310_v22  ;;  %v7967_v56 = vand.u32 4294901760, %v7966_v6  ;;  %v19172_v6 = vld [vmem:[#allocation43_spill] sm:$0xff] }
 0xab8   :  { %12769 = vmatpush3.bf16.msra.mxu0 %v17498_v46  ;;  %v7959_v25 = vsub.f32 %v17907_v14, %v19129_v38  ;;  %v7953_v46 = vand.u32 4294901760, %v7952_v44  ;;  %v19152_v44 = vld [vmem:[#allocation90_spill] sm:$0xff]  ;;  %v19173_v17 = vand.u32 4294901760, %v19172_v6 }
 0xab9   :  { %12771 = vmatprep.subr.bf16.mxu0 %v17502_v18  ;;  %v19205_v6 = vld [vmem:[#allocation62_spill] sm:$0xff] }
 0xaba   :  { %13313 = vmatpush3.bf16.msra.mxu1 %v13310_v22  ;;  %v7960_v22 = vand.u32 4294901760, %v7959_v25  ;;  %v19168_v25 = vld [vmem:[#allocation36_spill] sm:$0xff] }
 0xabb   :  { %13315 = vmatprep.subr.bf16.mxu1 %v13314_v55 }
 0xabc   :  { %12773 = vmatpush3.bf16.msra.mxu0 %v17502_v18  ;;  %v13326_v18 = vpack.c.bf16 %v7960_v22, %v7953_v46  ;;  %v19169_v46 = vand.u32 4294901760, %v19168_v25  ;;  %v19170_v22 = vld [vmem:[#allocation37_spill] sm:$0xff]  ;;  %v19201_v25 = vld [vmem:[#allocation56_spill] sm:$0xff] }
 0xabd   :  { %12775 = vmatprep.subr.bf16.mxu0 %v17510_v61  ;;  %v19171_v41 = vand.u32 4294901760, %v19170_v22  ;;  %v19203_v22 = vld [vmem:[#allocation59_spill] sm:$0xff] }
 0xabe   :  { %13317 = vmatpush3.bf16.msra.mxu1 %v13314_v55  ;;  %v7974_v55 = vand.u32 4294901760, %v7973_v5 }
 0xabf   :  { %13319 = vmatprep.subr.bf16.mxu1 %v13318_v10  ;;  %v18212_v5 = vpack.c.bf16 %v19173_v17, %v19171_v41  ;;  %v19204_v41 = vld [vmem:[#allocation61_spill] sm:$0xff]  ;;  %v19206_v17 = vld [vmem:[#allocation63_spill] sm:$0xff] }
 0xac0   :  { %12777 = vmatpush3.bf16.msra.mxu0 %v17510_v61  ;;  %v13330_v11 = vpack.c.bf16 %v7974_v55, %v7967_v56  ;;  %v13334_v61 = vpack.c.bf16 %v17833_v58, %v17831_v35  ;;  %v19133_v58 = vld [vmem:[#allocation77_spill] sm:$0xff]  ;;  %v13346_v35 = vpack.c.bf16 %v17885_v51, %v17872_v37  ;;  %v19136_v51 = vld [vmem:[#allocation80_spill] sm:$0xff]  ;;  %v13358_v37 = vpack.c.bf16 %v17907_v14, %v17892_v39  ;;  %v19140_v39 = vld [vmem:[#allocation83_spill] sm:$0xff] }
 0xac1   :  { %12779 = vmatprep.subr.bf16.mxu0 %v17516_v36  ;;  %v19143_v14 = vld [vmem:[#allocation84_spill] sm:$0xff] }
 0xac2   :  { %13321 = vmatpush3.bf16.msra.mxu1 %v13318_v10  ;;  %v19153_v10 = vand.u32 4294901760, %v17985_v8  ;;  %v19176_v55 = vld [vmem:[#allocation44_spill] sm:$0xff] }
 0xac3   :  { %13323 = vmatprep.subr.bf16.mxu1 %v13322_v24 }
 0xac4   :  { %12781 = vmatpush3.bf16.msra.mxu0 %v17516_v36  ;;  %v19132_v36 = vand.u32 4294901760, %v17838_v31  ;;  %v19134_v31 = vld [vmem:[#allocation78_spill] sm:$0xff] }
 0xac5   :  { %12783 = vmatprep.subr.bf16.mxu0 %v17520_v13 }
 0xac6   :  { %13325 = vmatpush3.bf16.msra.mxu1 %v13322_v24 }
 0xac7   :  { %13327 = vmatprep.subr.bf16.mxu1 %v13326_v18 }
 0xac8   :  { %12785 = vmatpush3.bf16.msra.mxu0 %v17520_v13  ;;  %v13338_v13 = vpack.c.bf16 %v17877_v26, %v17858_v15  ;;  %v13350_v15 = vpack.c.bf16 %v17901_v7, %v17887_v19  ;;  %v19137_v26 = vld [vmem:[#allocation81_spill] sm:$0xff]  ;;  %v13362_v19 = vpack.c.bf16 %v17909_v52, %v17897_v57  ;;  %v19139_v7 = vld [vmem:[#allocation76_spill] sm:$0xff]  ;;  %v19142_v57 = vand.u32 4294901760, %v17989_v30 }
 0xac9   :  { %12787 = vmatprep.subr.bf16.mxu0 %v17524_v47  ;;  %v19144_v52 = vld [vmem:[#allocation72_spill] sm:$0xff] }
 0xaca   :  { %13329 = vmatpush3.bf16.msra.mxu1 %v13326_v18  ;;  %v19174_v18 = vld [vmem:[#allocation38_spill] sm:$0xff] }
 0xacb   :  { %13331 = vmatprep.subr.bf16.mxu1 %v13330_v11  ;;  %v19175_v56 = vand.u32 4294901760, %v19174_v18  ;;  %v19207_v18 = vld [vmem:[#allocation64_spill] sm:$0xff] }
 0xacc   :  { %12789 = vmatpush3.bf16.msra.mxu0 %v17524_v47  ;;  %v13342_v47 = vpack.c.bf16 %v17882_v27, %v17860_v33  ;;  %v19135_v27 = vld [vmem:[#allocation79_spill] sm:$0xff]  ;;  %v13354_v33 = vpack.c.bf16 %v17903_v2, %v17889_v28  ;;  %v19138_v28 = vld [vmem:[#allocation82_spill] sm:$0xff]  ;;  %v19141_v2 = vand.u32 4294901760, %v17842_v3 }
 0xacd   :  { %12791 = vmatprep.subr.bf16.mxu0 %v16804_v45 }
 0xace   :  { %13333 = vmatpush3.bf16.msra.mxu1 %v13330_v11  ;;  %v19177_v11 = vand.u32 4294901760, %v19176_v55  ;;  %v19209_v55 = vld [vmem:[#allocation66_spill] sm:$0xff] }
 0xacf   :  { %13335 = vmatprep.subr.bf16.mxu1 %v13334_v61  ;;  %11405 = vmatmul.mubr.f32.vlgmr.msra.gmra.mrb[10].mxu0 %v17842_v3  ;;  %v19146_v3 = vld [vmem:[#allocation85_spill] sm:$0xff] }
 0xad0   :  { %12793 = vmatpush3.bf16.msra.mxu0 %v16804_v45  ;;  %11439 = vmatprep.mubr.f32.mxu0 %v19132_v36  ;;  %v19178_v36 = vld [vmem:[#allocation39_spill] sm:$0xff] }
 0xad1   :  { %12000 = vmatmul.mubr.f32.vlgmr.msra.gmra.mrb[12].mxu1 %v17979_v63  ;;  %12795 = vmatprep.subr.bf16.mxu0 %v16845_v12 }
 0xad2   :  { %13337 = vmatpush3.bf16.msra.mxu1 %v13334_v61  ;;  %12034 = vmatprep.mubr.f32.mxu1 %v17989_v30  ;;  %v19148_v30 = vld [vmem:[#allocation86_spill] sm:$0xff]  ;;  %v18222_v61 = vpack.c.bf16 %v19177_v11, %v19175_v56  ;;  %v19208_v56 = vld [vmem:[#allocation65_spill] sm:$0xff]  ;;  %v19210_v11 = vld [vmem:[#allocation67_spill] sm:$0xff] }
 0xad3   :  { %13339 = vmatprep.subr.bf16.mxu1 %v13338_v13 }
 0xad4   :  { %12797 = vmatpush3.bf16.msra.mxu0 %v16845_v12 }
 0xad5   :  { %12799 = vmatprep.subr.bf16.mxu0 %v19133_v58 }
 0xad6   :  { %13341 = vmatpush3.bf16.msra.mxu1 %v13338_v13  ;;  %v19179_v13 = vand.u32 4294901760, %v19178_v36  ;;  %v19211_v36 = vld [vmem:[#allocation68_spill] sm:$0xff] }
 0xad7   :  { %13343 = vmatprep.subr.bf16.mxu1 %v13342_v47 }
 0xad8   :  { %12801 = vmatpush3.bf16.msra.mxu0 %v19133_v58 }
 0xad9   :  { %12803 = vmatprep.subr.bf16.mxu0 %v19134_v31 }
 0xada   :  { %13345 = vmatpush3.bf16.msra.mxu1 %v13342_v47  ;;  %v19180_v47 = vld [vmem:[#allocation45_spill] sm:$0xff] }
 0xadb   :  { %13347 = vmatprep.subr.bf16.mxu1 %v13346_v35 }
 0xadc   :  { %12805 = vmatpush3.bf16.msra.mxu0 %v19134_v31 }
 0xadd   :  { %12807 = vmatprep.subr.bf16.mxu0 %v19135_v27 }
 0xade   :  { %13349 = vmatpush3.bf16.msra.mxu1 %v13346_v35 }
 0xadf   :  { %13351 = vmatprep.subr.bf16.mxu1 %v13350_v15 }
 0xae0   :  { %12809 = vmatpush3.bf16.msra.mxu0 %v19135_v27 }
 0xae1   :  { %12811 = vmatprep.subr.bf16.mxu0 %v19136_v51 }
 0xae2   :  { %13353 = vmatpush3.bf16.msra.mxu1 %v13350_v15 }
 0xae3   :  { %13355 = vmatprep.subr.bf16.mxu1 %v13354_v33 }
 0xae4   :  { %12813 = vmatpush3.bf16.msra.mxu0 %v19136_v51 }
 0xae5   :  { %12815 = vmatprep.subr.bf16.mxu0 %v19137_v26 }
 0xae6   :  { %13357 = vmatpush3.bf16.msra.mxu1 %v13354_v33  ;;  %v19184_v33 = vld [vmem:[#allocation48_spill] sm:$0xff] }
 0xae7   :  { %13359 = vmatprep.subr.bf16.mxu1 %v13358_v37 }
 0xae8   :  { %12817 = vmatpush3.bf16.msra.mxu0 %v19137_v26 }
 0xae9   :  { %12819 = vmatprep.subr.bf16.mxu0 %v19138_v28 }
 0xaea   :  { %13361 = vmatpush3.bf16.msra.mxu1 %v13358_v37  ;;  %v19186_v37 = vld [vmem:[#allocation40_spill] sm:$0xff] }
 0xaeb   :  { %13363 = vmatprep.subr.bf16.mxu1 %v13362_v19 }
 0xaec   :  { %12821 = vmatpush3.bf16.msra.mxu0 %v19138_v28 }
 0xaed   :  { %12823 = vmatprep.subr.bf16.mxu0 %v19140_v39 }
 0xaee   :  { %13365 = vmatpush3.bf16.msra.mxu1 %v13362_v19  ;;  %v19188_v19 = vld [vmem:[#allocation46_spill] sm:$0xff] }
 0xaef   :  { %13367 = vmatprep.subr.bf16.mxu1 %v19139_v7  ;;  %11440 = vmatmul.mubr.f32.vlgmr.msra.gmra.mrb[10].mxu0 %v19141_v2 }
 0xaf0   :  { %12825 = vmatpush3.bf16.msra.mxu0 %v19140_v39  ;;  %11474 = vmatprep.mubr.f32.mxu0 %v17822_v0 }
 0xaf1   :  { %12035 = vmatmul.mubr.f32.vlgmr.msra.gmra.mrb[12].mxu1 %v17985_v8  ;;  %12827 = vmatprep.subr.bf16.mxu0 %v19143_v14 }
 0xaf2   :  { %13369 = vmatpush3.bf16.msra.mxu1 %v19139_v7  ;;  %12069 = vmatprep.mubr.f32.mxu1 %v19142_v57 }
 0xaf3   :  { %13371 = vmatprep.subr.bf16.mxu1 %v19144_v52 }
 0xaf4   :  { %12829 = vmatpush3.bf16.msra.mxu0 %v19143_v14 }
 0xaf5   :  { %12831 = vmatprep.subr.bf16.mxu0 %v19146_v3 }
 0xaf6   :  { %13373 = vmatpush3.bf16.msra.mxu1 %v19144_v52 }
 0xaf7   :  { %13375 = vmatprep.subr.bf16.mxu1 %v19145_v20 }
 0xaf8   :  { %12833 = vmatpush3.bf16.msra.mxu0 %v19146_v3 }
 0xaf9   :  { %12835 = vmatprep.subr.bf16.mxu0 %v19148_v30 }
 0xafa   :  { %13377 = vmatpush3.bf16.msra.mxu1 %v19145_v20 }
 0xafb   :  { %13379 = vmatprep.subr.bf16.mxu1 %v19147_v48 }
 0xafc   :  { %12837 = vmatpush3.bf16.msra.mxu0 %v19148_v30 }
 0xafd   :  { %12839 = vmatprep.subr.bf16.mxu0 %v19149_v23 }
 0xafe   :  { %13381 = vmatpush3.bf16.msra.mxu1 %v19147_v48 }
 0xaff   :  { %13383 = vmatprep.subr.bf16.mxu1 %v17853_v4 }
 0xb00   :  { %12841 = vmatpush3.bf16.msra.mxu0 %v19149_v23 }
 0xb01   :  { %12843 = vmatprep.subr.bf16.mxu0 %v19150_v43 }
 0xb02   :  { %13385 = vmatpush3.bf16.msra.mxu1 %v17853_v4 }
 0xb03   :  { %13387 = vmatprep.subr.bf16.mxu1 %v17879_v54 }
 0xb04   :  { %12845 = vmatpush3.bf16.msra.mxu0 %v19150_v43 }
 0xb05   :  { %12847 = vmatprep.subr.bf16.mxu0 %v19151_v50 }
 0xb06   :  { %13389 = vmatpush3.bf16.msra.mxu1 %v17879_v54 }
 0xb07   :  { %13391 = vmatprep.subr.bf16.mxu1 %v17899_v9 }
 0xb08   :  { %12849 = vmatpush3.bf16.msra.mxu0 %v19151_v50 }
 0xb09   :  { %12851 = vmatprep.subr.bf16.mxu0 %v19152_v44 }
 0xb0a   :  { %13393 = vmatpush3.bf16.msra.mxu1 %v17899_v9 }
 0xb0b   :  { %13395 = vmatprep.subr.bf16.mxu1 %v17905_v49 }
 0xb0c   :  { %12853 = vmatpush3.bf16.msra.mxu0 %v19152_v44 }
 0xb0d   :  { %12855 = vmatprep.subr.bf16.mxu0 %v16804_v45 }
 0xb0e   :  { %13397 = vmatpush3.bf16.msra.mxu1 %v17905_v49 }
 0xb0f   :  { %13399 = vmatprep.subr.bf16.mxu1 %v17934_v34  ;;  %11475 = vmatmul.mubr.f32.vlgmr.msra.gmra.mrb[10].mxu0 %v17825_v1 }
 0xb10   :  { %12857 = vmatpush3.bf16.msra.mxu0 %v16804_v45  ;;  %11509 = vmatprep.mubr.f32.mxu0 %v17822_v0  ;;  %v19154_v45 = vld [vmem:[#allocation41_spill] sm:$0xff]  ;;  %v19156_v0 = vld [vmem:[#allocation42_spill] sm:$0xff] }
 0xb11   :  { %12070 = vmatmul.mubr.f32.vlgmr.msra.gmra.mrb[12].mxu1 %v19153_v10  ;;  %12859 = vmatprep.subr.bf16.mxu0 %v16845_v12 }
 0xb12   :  { %13401 = vmatpush3.bf16.msra.mxu1 %v17934_v34  ;;  %12104 = vmatprep.mubr.f32.mxu1 %v17981_v29 }
 0xb13   :  { %13403 = vmatprep.subr.bf16.mxu1 %v17936_v16 }
 0xb14   :  { %12861 = vmatpush3.bf16.msra.mxu0 %v16845_v12  ;;  %v19155_v12 = vand.u32 4294901760, %v19154_v45 }
 0xb15   :  { %12863 = vmatprep.subr.bf16.mxu0 %v19133_v58 }
 0xb16   :  { %13405 = vmatpush3.bf16.msra.mxu1 %v17936_v16  ;;  %v19157_v16 = vand.u32 4294901760, %v19156_v0 }
 0xb17   :  { %13407 = vmatprep.subr.bf16.mxu1 %v17938_v53 }
 0xb18   :  { %12865 = vmatpush3.bf16.msra.mxu0 %v19133_v58  ;;  %v19181_v58 = vand.u32 4294901760, %v19180_v47  ;;  %v19213_v47 = vld [vmem:[#allocation70_spill] sm:$0xff] }
 0xb19   :  { %12867 = vmatprep.subr.bf16.mxu0 %v19134_v31 }
 0xb1a   :  { %13409 = vmatpush3.bf16.msra.mxu1 %v17938_v53  ;;  %v18169_v53 = vpack.c.bf16 %v19157_v16, %v19155_v12  ;;  %v18232_v35 = vpack.c.bf16 %v19181_v58, %v19179_v13  ;;  %v19192_v16 = vld [vmem:[#allocation49_spill] sm:$0xff]  ;;  %v19214_v58 = vld [vmem:[#allocation71_spill] sm:$0xff] }
 0xb1b   :  { %13411 = vmatprep.subr.bf16.mxu1 %v17944_v40  ;;  %v19212_v13 = vld [vmem:[#allocation69_spill] sm:$0xff] }
 0xb1c   :  { %12869 = vmatpush3.bf16.msra.mxu0 %v19134_v31  ;;  %v19182_v31 = vld [vmem:[#allocation47_spill] sm:$0xff] }
 0xb1d   :  { %12871 = vmatprep.subr.bf16.mxu0 %v19135_v27  ;;  %v19183_v15 = vand.u32 4294901760, %v19182_v31 }
 0xb1e   :  { %13413 = vmatpush3.bf16.msra.mxu1 %v17944_v40  ;;  %v19158_v40 = vld [vmem:[#allocation31_spill] sm:$0xff] }
 0xb1f   :  { %13415 = vmatprep.subr.bf16.mxu1 %v17951_v32  ;;  %v19159_v34 = vand.u32 4294901760, %v19158_v40 }
 0xb20   :  { %12873 = vmatpush3.bf16.msra.mxu0 %v19135_v27  ;;  %v7148_v27 = vsub.f32 %v19182_v31, %v19183_v15 }
 0xb21   :  { %12875 = vmatprep.subr.bf16.mxu0 %v19136_v51 }
 0xb22   :  { %13417 = vmatpush3.bf16.msra.mxu1 %v17951_v32  ;;  %v19160_v32 = vld [vmem:[#allocation34_spill] sm:$0xff] }
 0xb23   :  { %13419 = vmatprep.subr.bf16.mxu1 %v17957_v42 }
 0xb24   :  { %12877 = vmatpush3.bf16.msra.mxu0 %v19136_v51 }
 0xb25   :  { %12879 = vmatprep.subr.bf16.mxu0 %v19137_v26 }
 0xb26   :  { %13421 = vmatpush3.bf16.msra.mxu1 %v17957_v42  ;;  %v19161_v42 = vand.u32 4294901760, %v19160_v32 }
 0xb27   :  { %13423 = vmatprep.subr.bf16.mxu1 %v17963_v62 }
 0xb28   :  { %12881 = vmatpush3.bf16.msra.mxu0 %v19137_v26  ;;  %v19187_v26 = vand.u32 4294901760, %v19186_v37 }
 0xb29   :  { %12883 = vmatprep.subr.bf16.mxu0 %v19138_v28 }
 0xb2a   :  { %13425 = vmatpush3.bf16.msra.mxu1 %v17963_v62  ;;  %v18180_v62 = vpack.c.bf16 %v19161_v42, %v19159_v34  ;;  %v19193_v34 = vld [vmem:[#allocation50_spill] sm:$0xff]  ;;  %v19194_v42 = vld [vmem:[#allocation51_spill] sm:$0xff] }
 0xb2b   :  { %13427 = vmatprep.subr.bf16.mxu1 %v17969_v21 }
 0xb2c   :  { %12885 = vmatpush3.bf16.msra.mxu0 %v19138_v28  ;;  %v19189_v28 = vand.u32 4294901760, %v19188_v19 }
 0xb2d   :  { %13079 = vmatprep.subr.bf16.mxu0 %v18169_v53 }
 0xb2e   :  { %13429 = vmatpush3.bf16.msra.mxu1 %v17969_v21  ;;  %v19162_v21 = vld [vmem:[#allocation32_spill] sm:$0xff] }
 0xb2f   :  { %13431 = vmatprep.subr.bf16.mxu1 %v19139_v7  ;;  %11510 = vmatmul.mubr.f32.vlgmr.msra.gmra.mrb[10].mxu0 %v17825_v1  ;;  %v19163_v8 = vand.u32 4294901760, %v19162_v21  ;;  %v19166_v1 = vld [vmem:[#allocation33_spill] sm:$0xff]  ;;  %v19195_v21 = vld [vmem:[#allocation52_spill] sm:$0xff] }
 0xb30   :  { %13081 = vmatpush3.bf16.msra.mxu0 %v18169_v53 }
 0xb31   :  { %12105 = vmatmul.mubr.f32.vlgmr.msra.gmra.mrb[12].mxu1 %v17979_v63  ;;  %13083 = vmatprep.subr.bf16.mxu0 %v18180_v62  ;;  %v18192_v38 = vpack.c.bf16 %v19165_v60, %v19163_v8  ;;  %v19196_v8 = vld [vmem:[#allocation54_spill] sm:$0xff]  ;;  %v19198_v60 = vld [vmem:[#allocation60_spill] sm:$0xff] }
 0xb32   :  { %13433 = vmatpush3.bf16.msra.mxu1 %v19139_v7  ;;  %12139 = vmatprep.mubr.f32.mxu1 %v17981_v29  ;;  %v19167_v29 = vand.u32 4294901760, %v19166_v1  ;;  %v18248_v7 = vpack.c.bf16 %v19189_v28, %v19187_v26  ;;  %v19199_v1 = vld [vmem:[#allocation53_spill] sm:$0xff] }
 0xb33   :  { %13435 = vmatprep.subr.bf16.mxu1 %v19144_v52 }
 0xb34   :  { %13085 = vmatpush3.bf16.msra.mxu0 %v18180_v62  ;;  %v18202_v24 = vpack.c.bf16 %v19169_v46, %v19167_v29  ;;  %v19200_v29 = vld [vmem:[#allocation55_spill] sm:$0xff]  ;;  %v19202_v46 = vld [vmem:[#allocation58_spill] sm:$0xff] }
 0xb35   :  { %13087 = vmatprep.subr.bf16.mxu0 %v18192_v38 }
 0xb36   :  { %13437 = vmatpush3.bf16.msra.mxu1 %v19144_v52 }
 0xb37   :  { %13439 = vmatprep.subr.bf16.mxu1 %v19145_v20 }
 0xb38   :  { %13089 = vmatpush3.bf16.msra.mxu0 %v18192_v38 }
 0xb39   :  { %13091 = vmatprep.subr.bf16.mxu0 %v18202_v24 }
 0xb3a   :  { %13441 = vmatpush3.bf16.msra.mxu1 %v19145_v20  ;;  %v19190_v20 = vld [vmem:[#allocation75_spill] sm:$0xff] }
 0xb3b   :  { %13443 = vmatprep.subr.bf16.mxu1 %v19147_v48 }
 0xb3c   :  { %13093 = vmatpush3.bf16.msra.mxu0 %v18202_v24 }
 0xb3d   :  { %13095 = vmatprep.subr.bf16.mxu0 %v18212_v5 }
 0xb3e   :  { %13445 = vmatpush3.bf16.msra.mxu1 %v19147_v48  ;;  %v19191_v48 = vld [vmem:[#allocation73_spill] sm:$0xff] }
 0xb3f   :  { %13447 = vmatprep.subr.bf16.mxu1 %v17853_v4 }
 0xb40   :  { %13097 = vmatpush3.bf16.msra.mxu0 %v18212_v5 }
 0xb41   :  { %13099 = vmatprep.subr.bf16.mxu0 %v18222_v61 }
 0xb42   :  { %13449 = vmatpush3.bf16.msra.mxu1 %v17853_v4  ;;  %v19185_v4 = vand.u32 4294901760, %v19184_v33 }
 0xb43   :  { %13451 = vmatprep.subr.bf16.mxu1 %v17879_v54 }
 0xb44   :  { %v7155_v51 = vsub.f32 %v19184_v33, %v19185_v4  ;;  %13101 = vmatpush3.bf16.msra.mxu0 %v18222_v61 }
 0xb45   :  { %13103 = vmatprep.subr.bf16.mxu0 %v18232_v35 }
 0xb46   :  { %13453 = vmatpush3.bf16.msra.mxu1 %v17879_v54  ;;  %v7149_v54 = vand.u32 4294901760, %v7148_v27  ;;  %v7156_v39 = vand.u32 4294901760, %v7155_v51 }
 0xb47   :  { %13455 = vmatprep.subr.bf16.mxu1 %v17899_v9 }
 0xb48   :  { %13105 = vmatpush3.bf16.msra.mxu0 %v18232_v35  ;;  %v13110_v2 = vpack.c.bf16 %v7156_v39, %v7149_v54  ;;  %v19219_v39 = vld [vmem:[#allocation23_spill] sm:$0xff] }
 0xb49   :  { %13107 = vmatprep.subr.bf16.mxu0 %v18248_v7 }
 0xb4a   :  { %13457 = vmatpush3.bf16.msra.mxu1 %v17899_v9 }
 0xb4b   :  { %13459 = vmatprep.subr.bf16.mxu1 %v17905_v49 }
 0xb4c   :  { %13109 = vmatpush3.bf16.msra.mxu0 %v18248_v7 }
 0xb4d   :  { %13111 = vmatprep.subr.bf16.mxu0 %v13110_v2 }
 0xb4e   :  { %13461 = vmatpush3.bf16.msra.mxu1 %v17905_v49 }
 0xb51   :  { %12140 = vmatmul.mubr.f32.vlgmr.msra.gmra.mrb[12].mxu1 %v17979_v63 }
 0xc02   :  { %v11511_v57 = vpop.f32.mrb[10].mxu0 }
 0xc03   :  { %13822 = vrcp.f32 %v11511_v57  ;;  %v5167_v14 = vpop.f32.mrb[11].mxu0 }
 0xc04   :  { %13824 = vrcp.f32 %v5167_v14 }
 0xc0d   :  { %v13823_v9 = vpop.eup %13822 }
 0xc0e   :  { %v13825_v52 = vpop.eup %13824  ;;  %v5180_v3 = vmul.f32 %v13823_v9, %v19190_v20  ;;  %v19220_v9 = vld [vmem:[#allocation24_spill] sm:$0xff]  ;;  %v19221_v20 = vld [vmem:[#allocation25_spill] sm:$0xff] }
 0xc0f   :  { %v5178_v30 = vmul.f32 %v13825_v52, %v19191_v48 }
 0xc10   :  { %v18259_v23 = vand.u32 4294901760, %v5180_v3 }
 0xc11   :  { %v18261_v43 = vand.u32 4294901760, %v5178_v30 }
 0xc12   :  { %v18264_v49 = vsub.f32 %v5180_v3, %v18259_v23 }
 0xc13   :  { %v7125_v50 = vsub.f32 %v5178_v30, %v18261_v43 }
 0xc14   :  { %v7136_v63 = vand.u32 4294901760, %v18264_v49 }
 0xc15   :  { %v7126_v44 = vand.u32 4294901760, %v7125_v50 }
 0xc16   :  { %v7137_v10 = vsub.f32 %v18264_v49, %v7136_v63 }
 0xc17   :  { %v7127_v45 = vsub.f32 %v7125_v50, %v7126_v44 }
 0xc18   :  { %v7138_v0 = vand.u32 4294901760, %v7137_v10  ;;  %v9092_v10 = vld [vmem:[#allocation8 + $0x8] sm:$0xff] }
 0xc19   :  { %v7128_v12 = vand.u32 4294901760, %v7127_v45  ;;  %v9093_v45 = vld [vmem:[#allocation8 + $0x10] sm:$0xff] }
 0xc1b   :  { %11754 = vmatprep.mubr.f32.mxu0 %v7128_v12 }
 0xc1c   :  { %11755 = vmatmul.mubr.f32.vlgmr.msra.gmra.mrb[12].mxu0 %v7138_v0  ;;  %v9118_v0 = vand.u32 4294901760, %v9092_v10 }
 0xc1d   :  { %13113 = vmatpush3.bf16.msra.mxu0 %v13110_v2  ;;  %11789 = vmatprep.mubr.f32.mxu0 %v18261_v43 }
 0xc1e   :  { %13115 = vmatprep.subr.bf16.mxu0 %v19192_v16 }
 0xc21   :  { %13117 = vmatpush3.bf16.msra.mxu0 %v19192_v16  ;;  %v9094_v16 = vld [vmem:[#allocation8 + $0x18] sm:$0xff] }
 0xc22   :  { %13119 = vmatprep.subr.bf16.mxu0 %v19193_v34 }
 0xc24   :  { %v18274_v40 = vpop.f32.mrb[12].mxu1 }
 0xc25   :  { %8459 = vrot.lane.b32.xlu1 %v18274_v40, %s14030_s4  ;;  %v18279_v32 = vpop.f32.mrb[13].mxu1  ;;  %13121 = vmatpush3.bf16.msra.mxu0 %v19193_v34  ;;  %v9124_v34 = vand.u32 4294901760, %v9094_v16 }
 0xc26   :  { %8457 = vrot.lane.b32.xlu0 %v18279_v32, %s14030_s4  ;;  %13123 = vmatprep.subr.bf16.mxu0 %v19194_v42  ;;  %v8461_v31 = vsel %vm19215_vm5, %v18279_v32, 0  ;;  %vm19246_vm5 = vmmov %vm19113_vm0 }
 0xc29   :  { %13125 = vmatpush3.bf16.msra.mxu0 %v19194_v42 }
 0xc2a   :  { %13127 = vmatprep.subr.bf16.mxu0 %v19195_v21 }
 0xc2d   :  { %13129 = vmatpush3.bf16.msra.mxu0 %v19195_v21 }
 0xc2e   :  { %13131 = vmatprep.subr.bf16.mxu0 %v19196_v8 }
 0xc31   :  { %13133 = vmatpush3.bf16.msra.mxu0 %v19196_v8  ;;  %v9232_v8 = vsub.f32 %v9092_v10, %v9118_v0 }
 0xc32   :  { %13135 = vmatprep.subr.bf16.mxu0 %v19197_v59 }
 0xc35   :  { %13137 = vmatpush3.bf16.msra.mxu0 %v19197_v59 }
 0xc36   :  { %13139 = vmatprep.subr.bf16.mxu0 %v19198_v60 }
 0xc39   :  { %13141 = vmatpush3.bf16.msra.mxu0 %v19198_v60  ;;  %v9233_v60 = vand.u32 4294901760, %v9232_v8 }
 0xc3a   :  { %13143 = vmatprep.subr.bf16.mxu0 %v19199_v1 }
 0xc3c   :  { %11790 = vmatmul.mubr.f32.vlgmr.msra.gmra.mrb[12].mxu0 %v18259_v23 }
 0xc3d   :  { %13145 = vmatpush3.bf16.msra.mxu0 %v19199_v1  ;;  %11824 = vmatprep.mubr.f32.mxu0 %v7125_v50  ;;  %v19225_v50 = vld [vmem:[#allocation29_spill] sm:$0xff] }
 0xc3e   :  { %13147 = vmatprep.subr.bf16.mxu0 %v19200_v29 }
 0xc41   :  { %13149 = vmatpush3.bf16.msra.mxu0 %v19200_v29 }
 0xc42   :  { %13151 = vmatprep.subr.bf16.mxu0 %v19201_v25 }
 0xc45   :  { %13153 = vmatpush3.bf16.msra.mxu0 %v19201_v25  ;;  %v9234_v25 = vsub.f32 %v9232_v8, %v9233_v60 }
 0xc46   :  { %13155 = vmatprep.subr.bf16.mxu0 %v19202_v46 }
 0xc49   :  { %13157 = vmatpush3.bf16.msra.mxu0 %v19202_v46 }
 0xc4a   :  { %13159 = vmatprep.subr.bf16.mxu0 %v19203_v22 }
 0xc4d   :  { %13161 = vmatpush3.bf16.msra.mxu0 %v19203_v22 }
 0xc4e   :  { %13163 = vmatprep.subr.bf16.mxu0 %v19204_v41 }
 0xc51   :  { %13165 = vmatpush3.bf16.msra.mxu0 %v19204_v41  ;;  %v9235_v41 = vand.u32 4294901760, %v9234_v25 }
 0xc52   :  { %13167 = vmatprep.subr.bf16.mxu0 %v19205_v6 }
 0xc55   :  { %13169 = vmatpush3.bf16.msra.mxu0 %v19205_v6 }
 0xc56   :  { %13171 = vmatprep.subr.bf16.mxu0 %v19206_v17 }
 0xc59   :  { %13173 = vmatpush3.bf16.msra.mxu0 %v19206_v17 }
 0xc5a   :  { %13175 = vmatprep.subr.bf16.mxu0 %v18169_v53 }
 0xc5c   :  { %11825 = vmatmul.mubr.f32.vlgmr.msra.gmra.mrb[12].mxu0 %v18264_v49  ;;  %v19224_v49 = vld [vmem:[#allocation28_spill] sm:$0xff] }
 0xc5d   :  { %13177 = vmatpush3.bf16.msra.mxu0 %v18169_v53  ;;  %11859 = vmatprep.mubr.f32.mxu0 %v7126_v44  ;;  %v9091_v44 = vld [vmem:[#allocation8] sm:$0xff] }
 0xc5e   :  { %13179 = vmatprep.subr.bf16.mxu0 %v18180_v62  ;;  %v9115_v12 = vand.u32 4294901760, %v9091_v44 }
 0xc60   :  { %v18420_v32 = vpack.c.bf16 %v9118_v0, %v9115_v12  ;;  %v9225_v21 = vsub.f32 %v9091_v44, %v9115_v12 }
 0xc61   :  { %13181 = vmatpush3.bf16.msra.mxu0 %v18180_v62 }
 0xc62   :  { %13183 = vmatprep.subr.bf16.mxu0 %v18192_v38  ;;  %13511 = vmatprep.subr.bf16.mxu1 %v18420_v32  ;;  %v9226_v59 = vand.u32 4294901760, %v9225_v21  ;;  %v18430_v17 = vpack.c.bf16 %v9232_v8, %v9225_v21 }
 0xc63   :  { %13513 = vmatpush3.bf16.msra.mxu1 %v18420_v32 }
 0xc64   :  { %v9227_v29 = vsub.f32 %v9225_v21, %v9226_v59 }
 0xc65   :  { %13185 = vmatpush3.bf16.msra.mxu0 %v18192_v38 }
 0xc66   :  { %13187 = vmatprep.subr.bf16.mxu0 %v18202_v24  ;;  %v9228_v22 = vand.u32 4294901760, %v9227_v29  ;;  %v9895_v29 = vld [vmem:[%s18524_s10] ss:$0 sm:$0xff] }
 0xc68   :  { %v13518_v6 = vpack.c.bf16 %v9235_v41, %v9228_v22  ;;  %v19231_v41 = vld [vmem:[#allocation19_spill] sm:$0xff] }
 0xc69   :  { %13189 = vmatpush3.bf16.msra.mxu0 %v18202_v24 }
 0xc6a   :  { %13191 = vmatprep.subr.bf16.mxu0 %v18212_v5 }
 0xc6d   :  { %13193 = vmatpush3.bf16.msra.mxu0 %v18212_v5 }
 0xc6e   :  { %13195 = vmatprep.subr.bf16.mxu0 %v18222_v61 }
 0xc71   :  { %13197 = vmatpush3.bf16.msra.mxu0 %v18222_v61 }
 0xc72   :  { %13199 = vmatprep.subr.bf16.mxu0 %v18232_v35 }
 0xc75   :  { %13201 = vmatpush3.bf16.msra.mxu0 %v18232_v35 }
 0xc76   :  { %13203 = vmatprep.subr.bf16.mxu0 %v18248_v7 }
 0xc79   :  { %13205 = vmatpush3.bf16.msra.mxu0 %v18248_v7 }
 0xc7a   :  { %13207 = vmatprep.subr.bf16.mxu0 %v19207_v18 }
 0xc7c   :  { %11860 = vmatmul.mubr.f32.vlgmr.msra.gmra.mrb[12].mxu0 %v7136_v63  ;;  %v19226_v63 = vld [vmem:[#allocation30_spill] sm:$0xff] }
 0xc7d   :  { %13209 = vmatpush3.bf16.msra.mxu0 %v19207_v18  ;;  %11894 = vmatprep.mubr.f32.mxu0 %v18261_v43 }
 0xc7e   :  { %13211 = vmatprep.subr.bf16.mxu0 %v19208_v56 }
 0xc81   :  { %13213 = vmatpush3.bf16.msra.mxu0 %v19208_v56  ;;  %v9246_v56 = vsub.f32 %v9094_v16, %v9124_v34 }
 0xc82   :  { %13215 = vmatprep.subr.bf16.mxu0 %v19209_v55 }
 0xc85   :  { %13217 = vmatpush3.bf16.msra.mxu0 %v19209_v55 }
 0xc86   :  { %13219 = vmatprep.subr.bf16.mxu0 %v19210_v11 }
 0xc89   :  { %13221 = vmatpush3.bf16.msra.mxu0 %v19210_v11  ;;  %v18434_v11 = vpack.c.bf16 %v9233_v60, %v9226_v59 }
 0xc8a   :  { %13223 = vmatprep.subr.bf16.mxu0 %v19211_v36 }
 0xc8d   :  { %13225 = vmatpush3.bf16.msra.mxu0 %v19211_v36 }
 0xc8e   :  { %13227 = vmatprep.subr.bf16.mxu0 %v19212_v13 }
 0xc91   :  { %13229 = vmatpush3.bf16.msra.mxu0 %v19212_v13  ;;  %v9247_v13 = vand.u32 4294901760, %v9246_v56 }
 0xc92   :  { %13231 = vmatprep.subr.bf16.mxu0 %v19213_v47 }
 0xc95   :  { %13233 = vmatpush3.bf16.msra.mxu0 %v19213_v47 }
 0xc96   :  { %13235 = vmatprep.subr.bf16.mxu0 %v19214_v58 }
 0xc97   :  { %v8460_v27 = vpop.permute.xlu1 %8459 }
 0xc98   :  { %v8458_v15 = vpop.permute.xlu0 %8457  ;;  %v8467_v4 = vsel %vm19218_vm10, %v8460_v27, 0  ;;  %vm19249_vm10 = vmmov %vm19113_vm0 }
 0xc99   :  { %13237 = vmatpush3.bf16.msra.mxu0 %v19214_v58  ;;  %v8465_v33 = vsel %vm19217_vm3, %v8458_v15, 0  ;;  %v18377_v26 = vand.u32 4294901760, %v8467_v4  ;;  %vm19248_vm3 = vmmov %vm19113_vm0 }
 0xc9a   :  { %13239 = vmatprep.subr.bf16.mxu0 %v18169_v53  ;;  %v18373_v51 = vand.u32 4294901760, %v8465_v33 }
 0xc9b   :  { %v8569_v54 = vsub.f32 %v8467_v4, %v18377_v26 }
 0xc9c   :  { %11895 = vmatmul.mubr.f32.vlgmr.msra.gmra.mrb[12].mxu0 %v18259_v23  ;;  %v8559_v19 = vsub.f32 %v8465_v33, %v18373_v51 }
 0xc9d   :  { %13241 = vmatpush3.bf16.msra.mxu0 %v18169_v53  ;;  %11929 = vmatprep.mubr.f32.mxu0 %v18261_v43  ;;  %v18360_v53 = vand.u32 4294901760, %v8461_v31  ;;  %v8570_v14 = vand.u32 4294901760, %v8569_v54  ;;  %v19223_v43 = vld [vmem:[#allocation27_spill] sm:$0xff] }
 0xc9e   :  { %13243 = vmatprep.subr.bf16.mxu0 %v18180_v62  ;;  %v8560_v2 = vand.u32 4294901760, %v8559_v19 }
 0xc9f   :  { %v8571_v3 = vsub.f32 %v8569_v54, %v8570_v14 }
 0xca0   :  { %v8561_v52 = vsub.f32 %v8559_v19, %v8560_v2 }
 0xca1   :  { %13245 = vmatpush3.bf16.msra.mxu0 %v18180_v62  ;;  %v8463_v62 = vsel %vm19216_vm2, %v18274_v40, 0  ;;  %v8572_v30 = vand.u32 4294901760, %v8571_v3  ;;  %v9121_v40 = vand.u32 4294901760, %v9093_v45  ;;  %vm19247_vm2 = vmmov %vm19113_vm0 }
 0xca2   :  { %13247 = vmatprep.subr.bf16.mxu0 %v18192_v38  ;;  %v8562_v48 = vand.u32 4294901760, %v8561_v52 }
 0xca3   :  { %v18422_v42 = vpack.c.bf16 %v9124_v34, %v9121_v40  ;;  %v9239_v18 = vsub.f32 %v9093_v45, %v9121_v40 }
 0xca5   :  { %13249 = vmatpush3.bf16.msra.mxu0 %v18192_v38  ;;  %v8539_v38 = vsub.f32 %v8461_v31, %v18360_v53  ;;  %13515 = vmatprep.subr.bf16.mxu1 %v18422_v42  ;;  %v18432_v55 = vpack.c.bf16 %v9246_v56, %v9239_v18  ;;  %v9240_v36 = vand.u32 4294901760, %v9239_v18  ;;  %v13852_v31 = vld [vmem:[%s18522_s8] ss:$0 sm:$0xff] }
 0xca6   :  { %13251 = vmatprep.subr.bf16.mxu0 %v18202_v24  ;;  %13517 = vmatpush3.bf16.msra.mxu1 %v18422_v42 }
 0xca7   :  { %13519 = vmatprep.subr.bf16.mxu1 %v13518_v6  ;;  %v18436_v47 = vpack.c.bf16 %v9247_v13, %v9240_v36 }
 0xca9   :  { %13253 = vmatpush3.bf16.msra.mxu0 %v18202_v24  ;;  %v18369_v24 = vand.u32 4294901760, %v8463_v62 }
 0xcaa   :  { %13255 = vmatprep.subr.bf16.mxu0 %v18212_v5 }
 0xcab   :  { %v8549_v37 = vsub.f32 %v8463_v62, %v18369_v24 }
 0xcad   :  { %13257 = vmatpush3.bf16.msra.mxu0 %v18212_v5  ;;  %v8540_v5 = vand.u32 4294901760, %v8539_v38  ;;  %v8550_v28 = vand.u32 4294901760, %v8549_v37 }
 0xcae   :  { %13259 = vmatprep.subr.bf16.mxu0 %v18222_v61 }
 0xcb1   :  { %13261 = vmatpush3.bf16.msra.mxu0 %v18222_v61  ;;  %v8541_v61 = vsub.f32 %v8539_v38, %v8540_v5 }
 0xcb2   :  { %13263 = vmatprep.subr.bf16.mxu0 %v18232_v35 }
 0xcb3   :  { %v8542_v57 = vand.u32 4294901760, %v8541_v61 }
 0xcb5   :  { %13265 = vmatpush3.bf16.msra.mxu0 %v18232_v35  ;;  %v8551_v35 = vsub.f32 %v8549_v37, %v8550_v28 }
 0xcb6   :  { %13267 = vmatprep.subr.bf16.mxu0 %v18248_v7 }
 0xcb9   :  { %13269 = vmatpush3.bf16.msra.mxu0 %v18248_v7  ;;  %v8552_v7 = vand.u32 4294901760, %v8551_v35 }
 0xcba   :  { %13463 = vmatprep.subr.bf16.mxu0 %v19219_v39 }
 0xcbc   :  { %11930 = vmatmul.mubr.f32.vlgmr.msra.gmra.mrb[12].mxu0 %v18259_v23  ;;  %v19222_v23 = vld [vmem:[#allocation26_spill] sm:$0xff] }
 0xcbd   :  { %13465 = vmatpush3.bf16.msra.mxu0 %v19219_v39  ;;  %12150 = vmatprep.mubr.f32.mxu0 %v8542_v57 }
 0xcbe   :  { %13467 = vmatprep.subr.bf16.mxu0 %v19220_v9 }
 0xcc1   :  { %13469 = vmatpush3.bf16.msra.mxu0 %v19220_v9 }
 0xcc2   :  { %13471 = vmatprep.subr.bf16.mxu0 %v19221_v20 }
 0xcc4   :  { %12151 = vmatmul.mubr.f32.vlgmr.msra.gmra.mrb[14].mxu0 %v8552_v7 }
 0xcc5   :  { %12153 = vmatprep.mubr.f32.mxu0 %v8562_v48  ;;  %13473 = vmatpush3.bf16.msra.mxu0 %v19221_v20 }
 0xcc6   :  { %13475 = vmatprep.subr.bf16.mxu0 %v19222_v23 }
 0xcc8   :  { %12154 = vmatmul.mubr.f32.gmra.mrb[16].mxu0 %v8572_v30 }
 0xcc9   :  { %13477 = vmatpush3.bf16.msra.mxu0 %v19222_v23  ;;  %12164 = vmatprep.mubr.f32.mxu0 %v18360_v53 }
 0xcca   :  { %13479 = vmatprep.subr.bf16.mxu0 %v19223_v43 }
 0xccc   :  { %12165 = vmatmul.mubr.f32.vlgmr.msra.gmra.mrb[14].mxu0 %v18369_v24 }
 0xccd   :  { %12167 = vmatprep.mubr.f32.mxu0 %v18373_v51  ;;  %13481 = vmatpush3.bf16.msra.mxu0 %v19223_v43 }
 0xcce   :  { %13483 = vmatprep.subr.bf16.mxu0 %v19224_v49 }
 0xcd0   :  { %12168 = vmatmul.mubr.f32.gmra.mrb[16].mxu0 %v18377_v26 }
 0xcd1   :  { %13485 = vmatpush3.bf16.msra.mxu0 %v19224_v49  ;;  %12178 = vmatprep.mubr.f32.mxu0 %v8539_v38 }
 0xcd2   :  { %13487 = vmatprep.subr.bf16.mxu0 %v19219_v39 }
 0xcd4   :  { %12179 = vmatmul.mubr.f32.vlgmr.msra.gmra.mrb[14].mxu0 %v8549_v37 }
 0xcd5   :  { %12181 = vmatprep.mubr.f32.mxu0 %v8559_v19  ;;  %13489 = vmatpush3.bf16.msra.mxu0 %v19219_v39 }
 0xcd6   :  { %13491 = vmatprep.subr.bf16.mxu0 %v19220_v9 }
 0xcd8   :  { %12182 = vmatmul.mubr.f32.gmra.mrb[16].mxu0 %v8569_v54  ;;  %v9248_v54 = vsub.f32 %v9246_v56, %v9247_v13 }
 0xcd9   :  { %13493 = vmatpush3.bf16.msra.mxu0 %v19220_v9  ;;  %12192 = vmatprep.mubr.f32.mxu0 %v8540_v5 }
 0xcda   :  { %13495 = vmatprep.subr.bf16.mxu0 %v19225_v50 }
 0xcdc   :  { %12193 = vmatmul.mubr.f32.vlgmr.msra.gmra.mrb[14].mxu0 %v8550_v28  ;;  %v9241_v28 = vsub.f32 %v9239_v18, %v9240_v36  ;;  %v19233_v18 = vld [vmem:[#allocation20_spill] sm:$0xff] }
 0xcdd   :  { %12195 = vmatprep.mubr.f32.mxu0 %v8560_v2  ;;  %13497 = vmatpush3.bf16.msra.mxu0 %v19225_v50  ;;  %v19234_v56 = vmax.f32 %v19233_v18, 0.0 }
 0xcde   :  { %13499 = vmatprep.subr.bf16.mxu0 %v19226_v63 }
 0xce0   :  { %12196 = vmatmul.mubr.f32.gmra.mrb[16].mxu0 %v8570_v14  ;;  %v9242_v14 = vand.u32 4294901760, %v9241_v28 }
 0xce1   :  { %13501 = vmatpush3.bf16.msra.mxu0 %v19226_v63  ;;  %12206 = vmatprep.mubr.f32.mxu0 %v18360_v53 }
 0xce2   :  { %13503 = vmatprep.subr.bf16.mxu0 %v19219_v39 }
 0xce4   :  { %12207 = vmatmul.mubr.f32.vlgmr.msra.gmra.mrb[14].mxu0 %v18369_v24 }
 0xce5   :  { %12209 = vmatprep.mubr.f32.mxu0 %v18373_v51  ;;  %13505 = vmatpush3.bf16.msra.mxu0 %v19219_v39 }
 0xce6   :  { %13507 = vmatprep.subr.bf16.mxu0 %v19220_v9 }
 0xce8   :  { %12210 = vmatmul.mubr.f32.gmra.mrb[16].mxu0 %v18377_v26 }
 0xce9   :  { %13509 = vmatpush3.bf16.msra.mxu0 %v19220_v9  ;;  %12220 = vmatprep.mubr.f32.mxu0 %v18360_v53  ;;  %v9249_v9 = vand.u32 4294901760, %v9248_v54 }
 0xceb   :  { %v13522_v3 = vpack.c.bf16 %v9249_v9, %v9242_v14 }
 0xcec   :  { %12221 = vmatmul.mubr.f32.vlgmr.msra.gmra.mrb[14].mxu0 %v18369_v24 }
 0xced   :  { %12223 = vmatprep.mubr.f32.mxu0 %v18373_v51 }
 0xcf0   :  { %12224 = vmatmul.mubr.f32.gmra.mrb[16].mxu0 %v18377_v26 }
 0xd8f   :  { %v11931_v1 = vpop.f32.mrb[12].mxu0 }
 0xd90   :  { %v7717_v46 = vpop.f32.mrb[13].mxu0  ;;  %8451 = vrot.lane.b32.xlu1 %v11931_v1, %s14030_s4 }
 0xd91   :  { %8449 = vrot.lane.b32.xlu0 %v7717_v46, %s14030_s4 }
 0xdbf   :  { %v12222_v58 = vpop.f32.mrb[14].mxu0 }
 0xdc0   :  { %v13574_v53 = vadd.f32 %v13852_v31, %v12222_v58  ;;  %v9061_v15 = vpop.f32.mrb[15].mxu0 }
 0xdc1   :  { %v13575_v62 = vadd.f32 %v13852_v31, %v9061_v15 }
 0xdc2   :  { %v9084_v38 = vadd.f32 %v13574_v53, %v11931_v1 }
 0xdc3   :  { %v9083_v27 = vadd.f32 %v13575_v62, %v7717_v46  ;;  %v12225_v33 = vpop.f32.mrb[16].mxu0  ;;  %v19239_v62 = vld [vmem:[#allocation21_spill] sm:$0xff] }
 0xdc4   :  { %v9088_v24 = vmul.f32 0.5, %v9084_v38  ;;  %v9073_v4 = vpop.f32.mrb[17].mxu0  ;;  %v13576_v48 = vadd.f32 %v13852_v31, %v12225_v33  ;;  %v19240_v38 = vmax.f32 %v19239_v62, 0.0 }
 0xdc5   :  { %v9087_v51 = vmul.f32 0.5, %v9083_v27  ;;  %v13577_v30 = vadd.f32 %v13852_v31, %v9073_v4  ;;  %v19237_v31 = vld [vmem:[#allocation22_spill] sm:$0xff] }
 0xdc6   :  { %v9106_v5 = vsel %vm19227_vm8, %v9088_v24, 0  ;;  %v19238_v53 = vmax.f32 %v19237_v31, 0.0 }
 0xdc7   :  { %v18442_v37 = vand.u32 4294901760, %v9106_v5  ;;  %v9103_v26 = vsel %vm19228_vm11, %v9087_v51, 0 }
 0xdc8   :  { %v18445_v19 = vand.u32 4294901760, %v9103_v26 }
 0xdc9   :  { %v9194_v61 = vsub.f32 %v9106_v5, %v18442_v37 }
 0xdca   :  { %v9184_v39 = vsub.f32 %v9103_v26, %v18445_v19 }
 0xdcb   :  { %v9195_v2 = vand.u32 4294901760, %v9194_v61 }
 0xdcc   :  { %v9185_v57 = vand.u32 4294901760, %v9184_v39 }
 0xdcd   :  { %v9196_v35 = vsub.f32 %v9194_v61, %v9195_v2 }
 0xdce   :  { %v9186_v52 = vsub.f32 %v9184_v39, %v9185_v57 }
 0xdcf   :  { %v9197_v20 = vand.u32 4294901760, %v9196_v35 }
 0xdd0   :  { %v9187_v7 = vand.u32 4294901760, %v9186_v52 }
 0xdd2   :  { %12234 = vmatprep.mubr.f32.mxu1 %v9187_v7 }
 0xdd3   :  { %12235 = vmatmul.mubr.f32.vlgmr.msra.gmra.mrb[14].mxu1 %v9197_v20 }
 0xdd4   :  { %13521 = vmatpush3.bf16.msra.mxu1 %v13518_v6  ;;  %v19232_v6 = vmax.f32 %v19231_v41, 0.0 }
 0xdd5   :  { %13523 = vmatprep.subr.bf16.mxu1 %v13522_v3 }
 0xdd8   :  { %13525 = vmatpush3.bf16.msra.mxu1 %v13522_v3 }
 0xdd9   :  { %13527 = vmatprep.subr.bf16.mxu1 %v18430_v17 }
 0xe02   :  { %v8452_v23 = vpop.permute.xlu1 %8451 }
 0xe03   :  { %v9086_v43 = vadd.f32 %v13576_v48, %v8452_v23  ;;  %v8450_v49 = vpop.permute.xlu0 %8449 }
 0xe04   :  { %v9085_v50 = vadd.f32 %v13577_v30, %v8450_v49 }
 0xe05   :  { %v9090_v63 = vmul.f32 0.5, %v9086_v43 }
 0xe06   :  { %v9089_v44 = vmul.f32 0.5, %v9085_v50 }
 0xe07   :  { %v9112_v10 = vsel %vm19229_vm9, %v9090_v63, 0 }
 0xe08   :  { %v9213_v45 = vand.u32 4294901760, %v9112_v10  ;;  %v9109_v12 = vsel %vm19230_vm6, %v9089_v44, 0 }
 0xe09   :  { %v9203_v0 = vand.u32 4294901760, %v9109_v12 }
 0xe0a   :  { %v9214_v16 = vsub.f32 %v9112_v10, %v9213_v45 }
 0xe0b   :  { %v9204_v40 = vsub.f32 %v9109_v12, %v9203_v0 }
 0xe0c   :  { %v9215_v34 = vand.u32 4294901760, %v9214_v16 }
 0xe0d   :  { %v9205_v21 = vand.u32 4294901760, %v9204_v40 }
 0xe0e   :  { %v9216_v8 = vsub.f32 %v9214_v16, %v9215_v34 }
 0xe0f   :  { %v9206_v59 = vsub.f32 %v9204_v40, %v9205_v21 }
 0xe10   :  { %v9217_v1 = vand.u32 4294901760, %v9216_v8 }
 0xe11   :  { %v9207_v60 = vand.u32 4294901760, %v9206_v59 }
 0xe13   :  { %12237 = vmatprep.mubr.f32.mxu1 %v9207_v60  ;;  %v9897_v60 = vld [vmem:[#allocation10] ss:$0 sm:$0xff] }
 0xe14   :  { %12238 = vmatmul.mubr.f32.gmra.mrb[16].mxu1 %v9217_v1 }
 0xe15   :  { %12248 = vmatprep.mubr.f32.mxu1 %v18445_v19 }
 0xe18   :  { %12249 = vmatmul.mubr.f32.vlgmr.msra.gmra.mrb[14].mxu1 %v18442_v37 }
 0xe19   :  { %13529 = vmatpush3.bf16.msra.mxu1 %v18430_v17  ;;  %12251 = vmatprep.mubr.f32.mxu1 %v9203_v0 }
 0xe1a   :  { %13531 = vmatprep.subr.bf16.mxu1 %v18432_v55 }
 0xe1c   :  { %12252 = vmatmul.mubr.f32.gmra.mrb[16].mxu1 %v9213_v45 }
 0xe1d   :  { %13533 = vmatpush3.bf16.msra.mxu1 %v18432_v55  ;;  %12262 = vmatprep.mubr.f32.mxu1 %v9184_v39 }
 0xe1e   :  { %13535 = vmatprep.subr.bf16.mxu1 %v18420_v32 }
 0xe20   :  { %12263 = vmatmul.mubr.f32.vlgmr.msra.gmra.mrb[14].mxu1 %v9194_v61 }
 0xe21   :  { %13537 = vmatpush3.bf16.msra.mxu1 %v18420_v32  ;;  %12265 = vmatprep.mubr.f32.mxu1 %v9204_v40 }
 0xe22   :  { %13539 = vmatprep.subr.bf16.mxu1 %v18422_v42 }
 0xe24   :  { %12266 = vmatmul.mubr.f32.gmra.mrb[16].mxu1 %v9214_v16 }
 0xe25   :  { %13541 = vmatpush3.bf16.msra.mxu1 %v18422_v42  ;;  %12276 = vmatprep.mubr.f32.mxu1 %v9185_v57 }
 0xe26   :  { %13543 = vmatprep.subr.bf16.mxu1 %v18434_v11 }
 0xe28   :  { %12277 = vmatmul.mubr.f32.vlgmr.msra.gmra.mrb[14].mxu1 %v9195_v2 }
 0xe29   :  { %13545 = vmatpush3.bf16.msra.mxu1 %v18434_v11  ;;  %12279 = vmatprep.mubr.f32.mxu1 %v9205_v21 }
 0xe2a   :  { %13547 = vmatprep.subr.bf16.mxu1 %v18436_v47 }
 0xe2c   :  { %12280 = vmatmul.mubr.f32.gmra.mrb[16].mxu1 %v9215_v34  ;;  %v9896_v34 = vld [vmem:[%s18525_s11] ss:$0 sm:$0xff]  ;;  %s9816_s11 = sshll.u32 %s14064_s19, 4  ;;  %s9817_s11 = int_to_ptr.vmem [resolvable:$true] %s9816_s11 }
 0xe2d   :  { %13549 = vmatpush3.bf16.msra.mxu1 %v18436_v47  ;;  %12290 = vmatprep.mubr.f32.mxu1 %v18445_v19  ;;  %s13985_s1 = scalar_lea.vmem %s9817_s11, 512  ;;  %p13990_p7 = scmp.lt.s32.totalorder %s9817_s11, %s9817_s11 }
 0xe2e   :  { %13551 = vmatprep.subr.bf16.mxu1 %v18420_v32  ;;  %p13986_p6 = scmp.ne.s32.totalorder %s9817_s11, %s13985_s1  ;;  %p13991_p8 = scmp.lt.s32.totalorder %s13985_s1, %s13985_s1 }
 0xe30   :  { %12291 = vmatmul.mubr.f32.vlgmr.msra.gmra.mrb[14].mxu1 %v18442_v37  ;;  %p13992_p9 = por %p13991_p8, %p13990_p7 }
 0xe31   :  { %13553 = vmatpush3.bf16.msra.mxu1 %v18420_v32  ;;  %12293 = vmatprep.mubr.f32.mxu1 %v9203_v0 }
 0xe32   :  { %13555 = vmatprep.subr.bf16.mxu1 %v18422_v42  ;;  %p13993_p10 = pnand %p13992_p9, %p13986_p6 }
 0xe34   :  { %12294 = vmatmul.mubr.f32.gmra.mrb[16].mxu1 %v9213_v45 }
 0xe35   :  { %13557 = vmatpush3.bf16.msra.mxu1 %v18422_v42  ;;  %12304 = vmatprep.mubr.f32.mxu1 %v18445_v19 }
 0xe38   :  { %12305 = vmatmul.mubr.f32.vlgmr.msra.gmra.mrb[14].mxu1 %v18442_v37 }
 0xe39   :  { %12307 = vmatprep.mubr.f32.mxu1 %v9203_v0 }
 0xe3c   :  { %12308 = vmatmul.mubr.f32.gmra.mrb[16].mxu1 %v9213_v45 }
 0xf0b   :  { %v12306_v25 = vpop.f32.mrb[14].mxu1 }
 0xf0c   :  { %v13578_v46 = vadd.f32 %v12306_v25, %v9895_v29  ;;  %v9706_v22 = vpop.f32.mrb[15].mxu1 }
 0xf0d   :  { %v13579_v32 = vadd.f32 %v9895_v29, %v9706_v22 }
 0xf0e   :  { %v9729_v17 = vadd.f32 %v13578_v46, %v19232_v6 }
 0xf0f   :  { %v9728_v42 = vadd.f32 %v13579_v32, %v19234_v56  ;;  %v12309_v55 = vpop.f32.mrb[16].mxu1 }
 0xf10   :  { %v9718_v11 = vpop.f32.mrb[17].mxu1  ;;  %v9735_v36 = vsel %vm19235_vm1, %v9729_v17, 0.0  ;;  %v13580_v13 = vadd.f32 %v12309_v55, %v9895_v29 }
 0xf11   :  { %v13581_v47 = vadd.f32 %v9895_v29, %v9718_v11  ;;  %9736 = vadd.xlane.f32.xlu1 %v9735_v36  ;;  %v9732_v58 = vsel %vm19236_vm12, %v9728_v42, 0.0 }
 0xf12   :  { %9733 = vadd.xlane.f32.xlu0 %v9732_v58  ;;  %v9731_v27 = vadd.f32 %v13580_v13, %v19240_v38 }
 0xf13   :  { %v9730_v15 = vadd.f32 %v13581_v47, %v19238_v53 }
 0xf14   :  { %v9741_v24 = vsel %vm19242_vm15, %v9731_v27, 0.0 }
 0xf15   :  { %v9738_v33 = vsel %vm19241_vm13, %v9730_v15, 0.0 }
 0xf16   :  { %9739 = vadd.xlane.f32.xlu0 %v9738_v33 }
 0xf1a   :  { %9742 = vadd.xlane.f32.xlu0 %v9741_v24 }
 0xf9e   :  { %v9737_v4 = vpop.xlane.xlu1 %9736 }
 0xf9f   :  { %v9746_v51 = vmul.f32 0.03125, %v9737_v4  ;;  %v9734_v5 = vpop.xlane.xlu0 %9733 }
 0xfa0   :  { %v9745_v37 = vmul.f32 0.03125, %v9734_v5 }
 0xfa1   :  { %v9750_v26 = vsub.f32 %v9729_v17, %v9746_v51 }
 0xfa2   :  { %v9749_v19 = vsub.f32 %v9728_v42, %v9745_v37 }
 0xfa3   :  { %v9740_v61 = vpop.xlane.xlu0 %9739  ;;  %v9754_v28 = vmul.f32 %v9750_v26, %v9750_v26 }
 0xfa4   :  { %v9747_v54 = vmul.f32 0.03125, %v9740_v61  ;;  %v9753_v39 = vmul.f32 %v9749_v19, %v9749_v19 }
 0xfa5   :  { %v9760_v2 = vsel %vm19243_vm14, %v9754_v28, 0.0 }
 0xfa6   :  { %v9751_v57 = vsub.f32 %v9730_v15, %v9747_v54  ;;  %9761 = vadd.xlane.f32.xlu0 %v9760_v2  ;;  %v9757_v35 = vsel %vm19244_vm4, %v9753_v39, 0.0 }
 0xfa7   :  { %9758 = vadd.xlane.f32.xlu1 %v9757_v35  ;;  %v9743_v14 = vpop.xlane.xlu0 %9742 }
 0xfa8   :  { %v9748_v9 = vmul.f32 0.03125, %v9743_v14  ;;  %v9755_v52 = vmul.f32 %v9751_v57, %v9751_v57 }
 0xfaa   :  { %v9752_v7 = vsub.f32 %v9731_v27, %v9748_v9  ;;  %v9763_v20 = vsel %vm19113_vm0, %v9755_v52, 0.0 }
 0xfab   :  { %9764 = vadd.xlane.f32.xlu1 %v9763_v20 }
 0xfac   :  { %v9756_v3 = vmul.f32 %v9752_v7, %v9752_v7 }
 0xfae   :  { %v9766_v48 = vsel %vm19245_vm7, %v9756_v3, 0.0 }
 0xfaf   :  { %9767 = vadd.xlane.f32.xlu0 %v9766_v48 }
0x1033   :  { %v9762_v30 = vpop.xlane.xlu0 %9761 }
0x1034   :  { %v9770_v23 = vmul.f32 0.03125, %v9762_v30  ;;  %v9759_v43 = vpop.xlane.xlu1 %9758 }
0x1035   :  { %v9769_v49 = vmul.f32 0.03125, %v9759_v43 }
0x1036   :  { %v9774_v50 = vadd.f32 1e-05, %v9770_v23 }
0x1037   :  { %v9773_v63 = vadd.f32 1e-05, %v9769_v49 }
0x1038   :  { %13826 = vrsqrt.f32 %v9774_v50  ;;  %v9765_v44 = vpop.xlane.xlu1 %9764 }
0x1039   :  { %13828 = vrsqrt.f32 %v9773_v63  ;;  %v9771_v10 = vmul.f32 0.03125, %v9765_v44 }
0x103b   :  { %v9775_v45 = vadd.f32 1e-05, %v9771_v10 }
0x103c   :  { %v9768_v12 = vpop.xlane.xlu0 %9767 }
0x103d   :  { %13830 = vrsqrt.f32 %v9775_v45  ;;  %v9772_v0 = vmul.f32 0.03125, %v9768_v12 }
0x103f   :  { %v9776_v16 = vadd.f32 1e-05, %v9772_v0 }
0x1041   :  { %13832 = vrsqrt.f32 %v9776_v16 }
0x1042   :  { %v13827_v40 = vpop.eup %13826 }
0x1043   :  { %v13829_v21 = vpop.eup %13828  ;;  %v9782_v8 = vmul.f32 %v13827_v40, %v9750_v26 }
0x1044   :  { %v9781_v59 = vmul.f32 %v13829_v21, %v9749_v19 }
0x1045   :  { %v9793_v1 = vmul.f32 %v9896_v34, %v9782_v8 }
0x1046   :  { %v9792_v29 = vmul.f32 %v9896_v34, %v9781_v59 }
0x1047   :  { %v13831_v25 = vpop.eup %13830  ;;  %v9804_v46 = vadd.f32 %v9897_v60, %v9793_v1 }
0x1048   :  { %v9783_v22 = vmul.f32 %v13831_v25, %v9751_v57  ;;  %v9803_v32 = vadd.f32 %v9897_v60, %v9792_v29 }
0x1049   :  { %9808 = vst.msk [vmem:[#allocation13 + $0x8] sm:$0xff] %vm19246_vm5, %v9804_v46 }
0x104a   :  { %v9794_v41 = vmul.f32 %v9896_v34, %v9783_v22  ;;  %9807 = vst.msk [vmem:[#allocation13] sm:$0xff] %vm19247_vm2, %v9803_v32 }
0x104b   :  { %v13833_v6 = vpop.eup %13832 }
0x104c   :  { %v9784_v17 = vmul.f32 %v13833_v6, %v9752_v7  ;;  %v9805_v18 = vadd.f32 %v9897_v60, %v9794_v41 }
0x104e   :  { %v9795_v56 = vmul.f32 %v9896_v34, %v9784_v17  ;;  %9809 = vst.msk [vmem:[#allocation13 + $0x10] sm:$0xff] %vm19248_vm3, %v9805_v18 }
0x1050   :  { %v9806_v42 = vadd.f32 %v9897_v60, %v9795_v56 }
0x1052   :  { %9810 = vst.msk [vmem:[#allocation13 + $0x18] sm:$0xff] %vm19249_vm10, %v9806_v42 }
0x1053   :  { %13996 = shalt.err (!%p13993_p10)
}
0x1054   :  { %s13997_s9 = scalar_lea.hbm %s18532_s18, 512 }
0x1055   :  { %p13998_p11 = scmp.ne.s32.totalorder %s18532_s18, %s13997_s9  ;;  %p14001_p12 = scmp.lt.u32.totalorder %s13997_s9, %s18532_s18 }
0x1057   :  { %p14003_p13 = pnand %p14001_p12, %p13998_p11 }
0x1059   :  { %14006 = shalt.err (!%p14003_p13)
}
0x105a   :  { %9822 = dma.vmem_to_hbm [thread:$0]  %s9817_s11, 512, %s18532_s18, [#allocation4], %s14019_s24, %s14019_s24, %s14020_s25  }
0x105b   :  { %14015 = dma.done.wait [#allocation4], 512  }
0x105c   :  { %14016 = vsyncadd [#allocation4], 4294966784 }
0x105d   :  { %9826 = vsyncpa [#allocation3], 1 }
0x105e   :  { %9827 = vsyncpa [#allocation6], 1 }
0x105f   :  { %9828 = vsyncpa [#allocation9], 1 }
0x1060   :  { %9829 = vsyncpa [#allocation12], 1 }
0x1061   :  { %9830 = vsyncpa [#allocation4], 1 }

</bundles_post_ra>
